<compile_context>
chip_gen: v7x
topology: tpu7x:2x2x1
jax: 0.10.0
libtpu: 0.0.40
codegen_flags: <defaults>
</compile_context>

<pallas_src>
import numpy as np
import jax
import jax.numpy as jnp
from jax.experimental import pallas as pl
from jax.experimental.pallas import tpu as pltpu

NEG_SLOPE = 0.01          # torch.nn.LeakyReLU default negative_slope
BN_EPS = 1e-5             # BatchNorm1d default eps
STD_EPS = 1e-5            # PNA 'std' aggregator epsilon
# TODO(synk): reference builds deg = zeros(max_degree+1) with max_degree=-1, so the
# PNA avg_deg 'log'/'lin' statistics are 0/0; we pin them deterministically to 1.0.
AVG_DEG_LOG = 1.0
AVG_DEG_LIN = 1.0

F_PAD = 128               # unified (padded) feature width for all 6 layers


def _leaky_relu(x):
    return jnp.where(x > 0, x, NEG_SLOPE * x)


def _round_up(v, m):
    return ((v + m - 1) // m) * m


# ------------------- fused 6-layer PNA stack + readout kernel ------------------
def pna_fused_kernel(x_ref, eattr_ref, gpair_ref, adj_ref, nbr_ref, smask_ref,
                     deg_ref, nmask_ref,
                     bmat_ref, cnt_ref, w1_ref, b1_ref, w2_ref, b2_ref,
                     w3_ref, b3_ref,
                     w_edge_ref, b_edge_ref, w_pre_ref, b_pre_ref,
                     w_post_ref, b_post_ref, gamma_ref, beta_ref,
                     out_ref, h_scr):
    f32, bf16 = jnp.float32, jnp.bfloat16
    layer = pl.program_id(0)
    n_layers = pl.num_programs(0)

    # layer 0 consumes the (feature-padded) node features; later layers consume
    # the previous layer's activations carried in VMEM scratch.
    @pl.when(layer == 0)
    def _():
        h_scr[...] = x_ref[...]

    h = h_scr[...]                                   # [N, F] f32
    h_b = h.astype(bf16)
    n, f = h.shape
    e = adj_ref.shape[1]
    dmax = nbr_ref.shape[0] // n                     # static Python int

    # endpoint gathers: ONE [2E, N] @ [N, F] MXU matmul (dst one-hots stacked
    # above src one-hots; slices are tile-aligned since E % 8 == 0).
    pair = jnp.dot(gpair_ref[...], h_b, preferred_element_type=f32)   # [2E, F]
    x_dst = pair[:e, :]                              # x_i (target)
    x_src = pair[e:, :]                              # x_j (source)

    # edge encoder: Linear(edge_dim -> F)  (bf16 operands, f32 acc)
    e_enc = (jnp.dot(eattr_ref[...], w_edge_ref[0], preferred_element_type=f32)
             + b_edge_ref[0])

    # pre-NN: single K = 3F matmul over cat([x_i, x_j, e_enc])
    pre_in = jnp.concatenate(
        [x_dst.astype(bf16), x_src.astype(bf16), e_enc.astype(bf16)], axis=1)
    m = jnp.dot(pre_in, w_pre_ref[0], preferred_element_type=f32) + b_pre_ref[0]
    m_b = m.astype(bf16)                             # [E, F]

    # degrees (precomputed on the host from the incidence matrix)
    deg_raw = deg_ref[...]                           # [N, 1]
    deg = jnp.maximum(deg_raw, 1.0)

    # mean / std aggregation: ONE [N, E] @ [E, 2F] matmul over cat([m, m*m])
    mm = jnp.concatenate([m_b, (m * m).astype(bf16)], axis=1)          # [E, 2F]
    s12 = jnp.dot(adj_ref[...], mm, preferred_element_type=f32)        # [N, 2F]
    s1 = s12[:, :f]
    s2 = s12[:, f:]
    mean = s1 / deg
    var = s2 / deg - mean * mean
    # TODO(synk): s2 uses bf16-rounded m*m; cancellation is clamped below. Keep
    # the second-moment matmul f32 if exact PyG 'std' parity is required.
    std = jnp.sqrt(jnp.maximum(var, 0.0) + STD_EPS)

    # min / max aggregation: degree-bounded slot gather.  ONE [Dmax*N, E] @
    # [E, F] MXU matmul followed by Dmax masked compares — no O(E*N*F) VPU slab.
    slots = jnp.dot(nbr_ref[...], m_b, preferred_element_type=f32)  # [Dmax*N, F]
    smask = smask_ref[...]                                          # [Dmax*N, 1]
    big = jnp.float32(1e30)
    mx = jnp.full((n, f), -big, f32)
    mn = jnp.full((n, f), big, f32)
    for d in range(dmax):                            # static, small (max degree)
        sl = slots[d * n:(d + 1) * n, :]
        ok = smask[d * n:(d + 1) * n, :] > 0.5
        mx = jnp.maximum(mx, jnp.where(ok, sl, -big))
        mn = jnp.minimum(mn, jnp.where(ok, sl, big))
    has_edge = deg_raw > 0.0
    mx = jnp.where(has_edge, mx, 0.0)
    mn = jnp.where(has_edge, mn, 0.0)

    aggs = (mean, mn, mx, std)                       # ['mean', 'min', 'max', 'std']
    logd = jnp.log(deg + 1.0)
    scales = (jnp.ones_like(deg),                    # identity
              logd / AVG_DEG_LOG,                    # amplification
              AVG_DEG_LOG / logd,                    # attenuation
              deg / AVG_DEG_LIN)                     # linear

    # post-NN (folded with PNAConv.lin on the host): single K = 17F matmul over
    # cat([x, scaled aggregations]); block order is scaler-major, agg-minor (PyG).
    blocks = [h_b]
    for s in range(4):
        for a in range(4):
            blocks.append((aggs[a] * scales[s]).astype(bf16))
    post_in = jnp.concatenate(blocks, axis=1)        # [N, 17F] bf16
    out = (jnp.dot(post_in, w_post_ref[0], preferred_element_type=f32)
           + b_post_ref[0])

    # BatchNorm (training-mode batch stats over *valid* nodes only) + LeakyReLU;
    # padded node rows are zeroed so they can never leak into later stages.
    nmask = nmask_ref[...]                           # [N, 1]
    nv = jnp.sum(nmask, axis=0, keepdims=True)       # [1, 1]
    mu = jnp.sum(out * nmask, axis=0, keepdims=True) / nv
    cen = (out - mu) * nmask
    var_bn = jnp.sum(cen * cen, axis=0, keepdims=True) / nv
    y = (out - mu) * jax.lax.rsqrt(var_bn + BN_EPS) * gamma_ref[0] + beta_ref[0]
    h_new = _leaky_relu(y) * nmask
    h_scr[...] = h_new

    # fused readout (global_mean_pool, global_max_pool, lin1/2/3) on last step
    @pl.when(layer == n_layers - 1)
    def _():
        bmat = bmat_ref[...]                         # [G, N] bf16 one-hot
        cnt = jnp.maximum(cnt_ref[...], 1.0)         # [G, 1] real node counts
        x_mean = (jnp.dot(bmat, h_new.astype(bf16), preferred_element_type=f32)
                  / cnt)
        cand = jnp.where(bmat[:, :, None] > 0.5, h_new[None, :, :], -big)
        x_max = jnp.max(cand, axis=1)                # [G, F]
        r = jnp.concatenate([x_mean.astype(bf16), x_max.astype(bf16)], axis=1)
        r = _leaky_relu(jnp.dot(r, w1_ref[...], preferred_element_type=f32)
                        + b1_ref[...])
        r = _leaky_relu(jnp.dot(r.astype(bf16), w2_ref[...],
                                preferred_element_type=f32) + b2_ref[...])
        out_ref[...] = (jnp.dot(r.astype(bf16), w3_ref[...],
                                preferred_element_type=f32) + b3_ref[...])


# ---------------------------------- wrapper ------------------------------------
def run_pna_fused(x, edge_attr, gpair, adj, nbr, smask, deg, nmask,
                  bmat, cnt, lp, rp):
    n, f = x.shape
    e, ed = edge_attr.shape
    g = bmat.shape[0]
    dmax = nbr.shape[0] // n
    num_layers = lp["w_pre"].shape[0]

    def const_spec(shape):
        nd = len(shape)
        return pl.BlockSpec(shape, lambda *_: (0,) * nd)

    def layer_spec(shape):
        nd = len(shape)
        return pl.BlockSpec((1,) + shape, lambda l: (l,) + (0,) * nd)

    in_specs = [
        const_spec((n, f)),             # x (padded features)
        const_spec((e, ed)),            # edge_attr (bf16)
        const_spec((2 * e, n)),         # gpair = [gdst; gsrc] one-hots
        const_spec((n, e)),             # adj   (incidence = gdst^T)
        const_spec((dmax * n, e)),      # slot-gather one-hots (min/max)
        const_spec((dmax * n, 1)),      # slot mask
        const_spec((n, 1)),             # in-degree
        const_spec((n, 1)),             # valid-node mask (BatchNorm stats)
        const_spec((g, n)),             # graph membership one-hot
        const_spec((g, 1)),             # per-graph node counts
        const_spec((2 * f, 128)),       # w1
        const_spec((1, 128)),           # b1
        const_spec((128, 64)),          # w2
        const_spec((1, 64)),            # b2
        const_spec((64, 1)),            # w3
        const_spec((1, 1)),             # b3
        layer_spec((ed, f)),            # w_edge
        layer_spec((1, f)),             # b_edge
        layer_spec((3 * f, f)),         # w_pre
        layer_spec((1, f)),             # b_pre
        layer_spec((17 * f, f)),        # w_post (folded with PNAConv.lin)
        layer_spec((1, f)),             # b_post (folded)
        layer_spec((1, f)),             # gamma
        layer_spec((1, f)),             # beta
    ]
    args = (x, edge_attr, gpair, adj, nbr, smask, deg, nmask, bmat, cnt,
            rp["w1"], rp["b1"], rp["w2"], rp["b2"], rp["w3"], rp["b3"],
            lp["w_edge"], lp["b_edge"], lp["w_pre"], lp["b_pre"],
            lp["w_post"], lp["b_post"], lp["gamma"], lp["beta"])

    def nbytes(a):
        return int(a.size) * jnp.dtype(a.dtype).itemsize

    # VMEM sized to actual need (const structure + double-buffered layer weights
    # + intermediates), capped well below v7x's 64 MiB physical per-TC VMEM.
    const_bytes = sum(nbytes(a) for a in args[:16])
    layer_slice_bytes = sum(nbytes(a) // a.shape[0] for a in args[16:])
    interm_bytes = (2 * e * f * 4 + e * 3 * f * 2 + e * f * 4 + e * 2 * f * 2
                    + n * 2 * f * 4 + dmax * n * f * 4 + n * 17 * f * 2
                    + 8 * n * f * 4 + g * n * f * 4)
    scratch_bytes = n * f * 4
    vmem_need = 2 * const_bytes + 2 * layer_slice_bytes + scratch_bytes + interm_bytes
    vmem_limit = int(min(48 * 1024 * 1024, max(16 * 1024 * 1024, vmem_need)))

    flops_layer = (2 * (2 * e) * n * f       # stacked endpoint gather
                   + 2 * e * ed * f          # edge encoder
                   + 2 * e * 3 * f * f       # pre-NN
                   + 2 * n * e * 2 * f       # mean/std incidence matmul
                   + 2 * dmax * n * e * f    # min/max slot gather
                   + 2 * n * 17 * f * f)     # post-NN (folded with lin)
    flops_readout = (2 * g * n * f + 2 * g * 2 * f * 128
                     + 2 * g * 128 * 64 + 2 * g * 64)
    total_arg_bytes = sum(nbytes(a) for a in args)
    cost = pl.CostEstimate(
        flops=int(num_layers * flops_layer + flops_readout),
        transcendentals=int(num_layers * (n * f + 2 * n)),
        bytes_accessed=int(total_arg_bytes + g * 4))

    return pl.pallas_call(
        pna_fused_kernel,
        out_shape=jax.ShapeDtypeStruct((g, 1), jnp.float32),
        grid_spec=pltpu.PrefetchScalarGridSpec(
            num_scalar_prefetch=0,
            grid=(num_layers,),
            in_specs=in_specs,
            out_specs=pl.BlockSpec((g, 1), lambda l: (0, 0)),
            scratch_shapes=[pltpu.VMEM((n, f), jnp.float32)],  # carried activation
        ),
        compiler_params=pltpu.CompilerParams(
            dimension_semantics=("arbitrary",),
            vmem_limit_bytes=vmem_limit),
        cost_estimate=cost,
    )(*args)


@jax.jit
def pna_forward(x, edge_attr, gpair, adj, nbr, smask, deg, nmask,
                bmat, cnt, layer_stacked, readout_params):
    return run_pna_fused(x, edge_attr, gpair, adj, nbr, smask, deg, nmask,
                         bmat, cnt, layer_stacked, readout_params)


# ------------------------- deterministic parameter init -----------------------
def _dense(key, fan_in, shape):
    return jax.random.normal(key, shape, jnp.float32) / jnp.sqrt(float(fan_in))


def init_layer_params(key, f_in, f_pad=F_PAD, f_out=F_PAD, edge_dim=4):
    """Native PNAConv-layer weights, zero-padded to the unified F_PAD width."""
    ks = jax.random.split(key, 7)
    w_edge = jnp.zeros((edge_dim, f_pad), jnp.float32)
    w_edge = w_edge.at[:, :f_in].set(_dense(ks[0], edge_dim, (edge_dim, f_in)))
    b_edge = jnp.zeros((1, f_pad), jnp.float32)
    b_edge = b_edge.at[:, :f_in].set(
        0.01 * jax.random.normal(ks[1], (1, f_in), jnp.float32))

    # pre_nn: Linear(3*f_in -> f_in) over cat([x_i, x_j, e_enc])
    w_pre = jnp.zeros((3, f_pad, f_pad), jnp.float32)
    w_pre = w_pre.at[:, :f_in, :f_in].set(_dense(ks[2], 3 * f_in, (3, f_in, f_in)))
    w_pre = w_pre.reshape(3 * f_pad, f_pad)
    b_pre = jnp.zeros((1, f_pad), jnp.float32)

    # post_nn: Linear(17*f_in -> f_out), block order x then scaler-major/agg-minor
    w_post = jnp.zeros((17, f_pad, f_out), jnp.float32)
    w_post = w_post.at[:, :f_in, :].set(_dense(ks[3], 17 * f_in, (17, f_in, f_out)))
    w_post = w_post.reshape(17 * f_pad, f_out)
    b_post = jnp.zeros((1, f_out), jnp.float32)

    w_lin = _dense(ks[5], f_out, (f_out, f_out))
    b_lin = 0.01 * jax.random.normal(ks[6], (1, f_out), jnp.float32)
    return dict(w_edge=w_edge, b_edge=b_edge, w_pre=w_pre, b_pre=b_pre,
                w_post=w_post, b_post=b_post, w_lin=w_lin, b_lin=b_lin,
                gamma=jnp.ones((1, f_out), jnp.float32),
                beta=jnp.zeros((1, f_out), jnp.float32))


def stack_layer_params(layer_params):
    """Stack per-layer weights; fold w_post @ w_lin (no nonlinearity between)."""
    stacked = {}
    for k in ("w_edge", "b_edge", "w_pre", "b_pre", "gamma", "beta"):
        stacked[k] = jnp.stack([p[k] for p in layer_params])
    stacked["w_post"] = jnp.stack(                       # fold in f32, store bf16
        [p["w_post"] @ p["w_lin"] for p in layer_params]).astype(jnp.bfloat16)
    stacked["b_post"] = jnp.stack(
        [p["b_post"] @ p["w_lin"] + p["b_lin"] for p in layer_params])
    stacked["w_edge"] = stacked["w_edge"].astype(jnp.bfloat16)
    stacked["w_pre"] = stacked["w_pre"].astype(jnp.bfloat16)
    return stacked


def init_readout_params(key):
    ks = jax.random.split(key, 3)
    return dict(
        w1=_dense(ks[0], 256, (256, 128)).astype(jnp.bfloat16),  # lin1 over cat([mean,max])
        b1=jnp.zeros((1, 128), jnp.float32),
        w2=_dense(ks[1], 128, (128, 64)).astype(jnp.bfloat16),   # lin2
        b2=jnp.zeros((1, 64), jnp.float32),
        w3=_dense(ks[2], 64, (64, 1)).astype(jnp.bfloat16),      # lin3
        b3=jnp.zeros((1, 1), jnp.float32),
    )


# ------------------------------------ main -------------------------------------
if __name__ == "__main__":
    key = jax.random.PRNGKey(0)
    k_x, k_e, k_p = jax.random.split(key, 3)

    num_graphs = 2
    nodes_per_graph = 16
    n0 = num_graphs * nodes_per_graph
    num_node_features = 4       # add_rna_id=False branch of the module
    edge_dim = 4

    # bidirectional ring graph inside each graph of the batch
    src, dst = [], []
    for gidx in range(num_graphs):
        base = gidx * nodes_per_graph
        for i in range(nodes_per_graph):
            j = (i + 1) % nodes_per_graph
            src += [base + i, base + j]
            dst += [base + j, base + i]
    e0 = len(src)
    batch_np = np.repeat(np.arange(num_graphs), nodes_per_graph)

    x0 = jax.random.normal(k_x, (n0, num_node_features), jnp.float32)
    edge_attr0 = jax.random.normal(k_e, (e0, edge_dim), jnp.float32)

    # ---- host-side glue: lane-dense padding + one-hot gather/scatter matrices ----
    n_pad = _round_up(max(n0, 8), 128)
    e_pad = _round_up(max(e0, 8), 128)

    x = jnp.zeros((n_pad, F_PAD), jnp.float32).at[:n0, :num_node_features].set(x0)
    edge_attr = jnp.zeros((e_pad, edge_dim), jnp.float32).at[:e0].set(
        edge_attr0).astype(jnp.bfloat16)

    src_np = np.asarray(src, dtype=np.int64)
    dst_np = np.asarray(dst, dtype=np.int64)
    gsrc_np = np.zeros((e_pad, n_pad), np.float32)
    gdst_np = np.zeros((e_pad, n_pad), np.float32)
    gsrc_np[np.arange(e0), src_np] = 1.0
    gdst_np[np.arange(e0), dst_np] = 1.0

    deg_np = gdst_np.sum(axis=0)                                  # in-degree
    deg = jnp.asarray(deg_np.reshape(n_pad, 1), jnp.float32)
    nmask = jnp.zeros((n_pad, 1), jnp.float32).at[:n0].set(1.0)

    gpair = jnp.asarray(np.concatenate([gdst_np, gsrc_np], axis=0), jnp.bfloat16)
    adj = jnp.asarray(gdst_np.T, jnp.bfloat16)                    # [N, E]

    # degree-bounded slot-gather tables for the min/max aggregation
    dmax = max(1, int(deg_np.max()))
    nbr_np = np.zeros((dmax, n_pad, e_pad), np.float32)
    smask_np = np.zeros((dmax, n_pad, 1), np.float32)
    slot_cnt = np.zeros(n_pad, np.int64)
    for eidx in range(e0):
        t = int(dst_np[eidx])
        d = int(slot_cnt[t]); slot_cnt[t] += 1
        nbr_np[d, t, eidx] = 1.0
        smask_np[d, t, 0] = 1.0
    nbr = jnp.asarray(nbr_np.reshape(dmax * n_pad, e_pad), jnp.bfloat16)
    smask = jnp.asarray(smask_np.reshape(dmax * n_pad, 1), jnp.float32)

    bmat_np = np.zeros((num_graphs, n_pad), np.float32)
    bmat_np[batch_np, np.arange(n0)] = 1.0
    bmat = jnp.asarray(bmat_np, jnp.bfloat16)
    cnt = jnp.asarray(bmat_np.sum(axis=1, keepdims=True), jnp.float32)

    pk = jax.random.split(k_p, 7)
    layer_params = [
        init_layer_params(pk[i], num_node_features if i == 0 else F_PAD,
                          F_PAD, F_PAD, edge_dim)
        for i in range(6)
    ]
    stacked = stack_layer_params(layer_params)
    readout_params = init_readout_params(pk[6])

    out = pna_forward(x, edge_attr, gpair, adj, nbr, smask, deg, nmask,
                      bmat, cnt, stacked, readout_params)
    jax.block_until_ready(out)
    assert out.shape == (num_graphs, 1)
    assert bool(jnp.all(jnp.isfinite(out)))
    print("KERNEL_OK")
</pallas_src>

<mosaic_0001>
module attributes {stable_mosaic.version = 11 : i64} {
  func.func @pna_fused_kernel(%arg0: i32, %arg1: memref<128x128xf32, #tpu.memory_space<vmem>>, %arg2: memref<128x4xbf16, #tpu.memory_space<vmem>>, %arg3: memref<256x128xbf16, #tpu.memory_space<vmem>>, %arg4: memref<128x128xbf16, #tpu.memory_space<vmem>>, %arg5: memref<256x128xbf16, #tpu.memory_space<vmem>>, %arg6: memref<256x1xf32, #tpu.memory_space<vmem>>, %arg7: memref<128x1xf32, #tpu.memory_space<vmem>>, %arg8: memref<128x1xf32, #tpu.memory_space<vmem>>, %arg9: memref<2x128xbf16, #tpu.memory_space<vmem>>, %arg10: memref<2x1xf32, #tpu.memory_space<vmem>>, %arg11: memref<256x128xbf16, #tpu.memory_space<vmem>>, %arg12: memref<1x128xf32, #tpu.memory_space<vmem>>, %arg13: memref<128x64xbf16, #tpu.memory_space<vmem>>, %arg14: memref<1x64xf32, #tpu.memory_space<vmem>>, %arg15: memref<64x1xbf16, #tpu.memory_space<vmem>>, %arg16: memref<1x1xf32, #tpu.memory_space<vmem>>, %arg17: memref<1x4x128xbf16, #tpu.memory_space<vmem>>, %arg18: memref<1x1x128xf32, #tpu.memory_space<vmem>>, %arg19: memref<1x384x128xbf16, #tpu.memory_space<vmem>>, %arg20: memref<1x1x128xf32, #tpu.memory_space<vmem>>, %arg21: memref<1x2176x128xbf16, #tpu.memory_space<vmem>>, %arg22: memref<1x1x128xf32, #tpu.memory_space<vmem>>, %arg23: memref<1x1x128xf32, #tpu.memory_space<vmem>>, %arg24: memref<1x1x128xf32, #tpu.memory_space<vmem>>, %arg25: memref<2x1xf32, #tpu.memory_space<vmem>>, %arg26: memref<128x128xf32, #tpu.memory_space<vmem>>) attributes {dimension_semantics = [#tpu.dimension_semantics<arbitrary>], iteration_bounds = array<i64: 6>, scalar_prefetch = 0 : i64, scratch_operands = 1 : i64, tpu.core_type = #tpu.core_type<tc>, window_params = [{pipeline_mode = #tpu.pipeline_mode<synchronous>, transform_indices = @transform_0, window_bounds = array<i64: 128, 128>}, {pipeline_mode = #tpu.pipeline_mode<synchronous>, transform_indices = @transform_1, window_bounds = array<i64: 128, 4>}, {pipeline_mode = #tpu.pipeline_mode<synchronous>, transform_indices = @transform_2, window_bounds = array<i64: 256, 128>}, {pipeline_mode = #tpu.pipeline_mode<synchronous>, transform_indices = @transform_3, window_bounds = array<i64: 128, 128>}, {pipeline_mode = #tpu.pipeline_mode<synchronous>, transform_indices = @transform_4, window_bounds = array<i64: 256, 128>}, {pipeline_mode = #tpu.pipeline_mode<synchronous>, transform_indices = @transform_5, window_bounds = array<i64: 256, 1>}, {pipeline_mode = #tpu.pipeline_mode<synchronous>, transform_indices = @transform_6, window_bounds = array<i64: 128, 1>}, {pipeline_mode = #tpu.pipeline_mode<synchronous>, transform_indices = @transform_7, window_bounds = array<i64: 128, 1>}, {pipeline_mode = #tpu.pipeline_mode<synchronous>, transform_indices = @transform_8, window_bounds = array<i64: 2, 128>}, {pipeline_mode = #tpu.pipeline_mode<synchronous>, transform_indices = @transform_9, window_bounds = array<i64: 2, 1>}, {pipeline_mode = #tpu.pipeline_mode<synchronous>, transform_indices = @transform_10, window_bounds = array<i64: 256, 128>}, {pipeline_mode = #tpu.pipeline_mode<synchronous>, transform_indices = @transform_11, window_bounds = array<i64: 1, 128>}, {pipeline_mode = #tpu.pipeline_mode<synchronous>, transform_indices = @transform_12, window_bounds = array<i64: 128, 64>}, {pipeline_mode = #tpu.pipeline_mode<synchronous>, transform_indices = @transform_13, window_bounds = array<i64: 1, 64>}, {pipeline_mode = #tpu.pipeline_mode<synchronous>, transform_indices = @transform_14, window_bounds = array<i64: 64, 1>}, {pipeline_mode = #tpu.pipeline_mode<synchronous>, transform_indices = @transform_15, window_bounds = array<i64: 1, 1>}, {transform_indices = @transform_16, window_bounds = array<i64: 1, 4, 128>}, {transform_indices = @transform_17, window_bounds = array<i64: 1, 1, 128>}, {transform_indices = @transform_18, window_bounds = array<i64: 1, 384, 128>}, {transform_indices = @transform_19, window_bounds = array<i64: 1, 1, 128>}, {transform_indices = @transform_20, window_bounds = array<i64: 1, 2176, 128>}, {transform_indices = @transform_21, window_bounds = array<i64: 1, 1, 128>}, {transform_indices = @transform_22, window_bounds = array<i64: 1, 1, 128>}, {transform_indices = @transform_23, window_bounds = array<i64: 1, 1, 128>}, {pipeline_mode = #tpu.pipeline_mode<synchronous>, transform_indices = @transform_24, window_bounds = array<i64: 2, 1>}]} {
    %c0_i32 = arith.constant 0 : i32
    %0 = arith.cmpi eq, %arg0, %c0_i32 : i32
    %1 = arith.extui %0 : i1 to i32
    %c0_i32_0 = arith.constant 0 : i32
    %2 = arith.cmpi ne, %1, %c0_i32_0 : i32
    scf.if %2 {
      %c0_77 = arith.constant 0 : index
      %c0_78 = arith.constant 0 : index
      %207 = vector.load %arg1[%c0_77, %c0_78] : memref<128x128xf32, #tpu.memory_space<vmem>>, vector<128x128xf32>
      %c0_79 = arith.constant 0 : index
      %c0_80 = arith.constant 0 : index
      %208 = vector.load %arg26[%c0_79, %c0_80] : memref<128x128xf32, #tpu.memory_space<vmem>>, vector<128x128xf32>
      tpu.vector_store %arg26[%c0_79, %c0_80], %207 {strides = array<i32>} : memref<128x128xf32, #tpu.memory_space<vmem>>, vector<128x128xf32>,
    } else {
    }
    %c0 = arith.constant 0 : index
    %c0_1 = arith.constant 0 : index
    %3 = vector.load %arg26[%c0, %c0_1] : memref<128x128xf32, #tpu.memory_space<vmem>>, vector<128x128xf32>
    %4 = arith.truncf %3 : vector<128x128xf32> to vector<128x128xbf16>
    %c0_2 = arith.constant 0 : index
    %c0_3 = arith.constant 0 : index
    %5 = vector.load %arg3[%c0_2, %c0_3] : memref<256x128xbf16, #tpu.memory_space<vmem>>, vector<256x128xbf16>
    %cst = arith.constant dense<0.000000e+00> : vector<256x128xf32>
    %6 = tpu.matmul %5, %4, %cst {dimension_numbers = #tpu.dot_dimension_numbers<[1], [0], [0], [1], [0, 0, 1, 1], [], []>} : vector<256x128xbf16>, vector<128x128xbf16>, vector<256x128xf32> -> vector<256x128xf32>
    %7 = vector.extract_strided_slice %6 {offsets = [0, 0], sizes = [128, 128], strides = [1, 1]} : vector<256x128xf32> to vector<128x128xf32>
    %8 = vector.extract_strided_slice %6 {offsets = [128, 0], sizes = [128, 128], strides = [1, 1]} : vector<256x128xf32> to vector<128x128xf32>
    %c0_4 = arith.constant 0 : index
    %c0_5 = arith.constant 0 : index
    %9 = vector.load %arg2[%c0_4, %c0_5] : memref<128x4xbf16, #tpu.memory_space<vmem>>, vector<128x4xbf16>
    %c0_6 = arith.constant 0 : index
    %c0_7 = arith.constant 0 : index
    %c0_8 = arith.constant 0 : index
    %10 = vector.load %arg17[%c0_6, %c0_7, %c0_8] : memref<1x4x128xbf16, #tpu.memory_space<vmem>>, vector<1x4x128xbf16>
    %11 = vector.shape_cast %10 : vector<1x4x128xbf16> to vector<4x128xbf16>
    %cst_9 = arith.constant dense<0.000000e+00> : vector<128x128xf32>
    %12 = tpu.matmul %9, %11, %cst_9 {dimension_numbers = #tpu.dot_dimension_numbers<[1], [0], [0], [1], [0, 0, 1, 1], [], []>} : vector<128x4xbf16>, vector<4x128xbf16>, vector<128x128xf32> -> vector<128x128xf32>
    %c0_10 = arith.constant 0 : index
    %c0_11 = arith.constant 0 : index
    %c0_12 = arith.constant 0 : index
    %13 = vector.load %arg18[%c0_10, %c0_11, %c0_12] : memref<1x1x128xf32, #tpu.memory_space<vmem>>, vector<1x1x128xf32>
    %14 = vector.shape_cast %13 : vector<1x1x128xf32> to vector<1x128xf32>
    %15 = vector.broadcast %14 : vector<1x128xf32> to vector<128x128xf32>
    %16 = arith.addf %12, %15 : vector<128x128xf32>
    %17 = arith.truncf %7 : vector<128x128xf32> to vector<128x128xbf16>
    %18 = arith.truncf %8 : vector<128x128xf32> to vector<128x128xbf16>
    %19 = arith.truncf %16 : vector<128x128xf32> to vector<128x128xbf16>
    %20 = tpu.concatenate %17, %18, %19 in 1 : vector<128x128xbf16>, vector<128x128xbf16>, vector<128x128xbf16> -> vector<128x384xbf16>
    %c0_13 = arith.constant 0 : index
    %c0_14 = arith.constant 0 : index
    %c0_15 = arith.constant 0 : index
    %21 = vector.load %arg19[%c0_13, %c0_14, %c0_15] : memref<1x384x128xbf16, #tpu.memory_space<vmem>>, vector<1x384x128xbf16>
    %22 = vector.shape_cast %21 : vector<1x384x128xbf16> to vector<384x128xbf16>
    %cst_16 = arith.constant dense<0.000000e+00> : vector<128x128xf32>
    %23 = tpu.matmul %20, %22, %cst_16 {dimension_numbers = #tpu.dot_dimension_numbers<[1], [0], [0], [1], [0, 0, 1, 1], [], []>} : vector<128x384xbf16>, vector<384x128xbf16>, vector<128x128xf32> -> vector<128x128xf32>
    %c0_17 = arith.constant 0 : index
    %c0_18 = arith.constant 0 : index
    %c0_19 = arith.constant 0 : index
    %24 = vector.load %arg20[%c0_17, %c0_18, %c0_19] : memref<1x1x128xf32, #tpu.memory_space<vmem>>, vector<1x1x128xf32>
    %25 = vector.shape_cast %24 : vector<1x1x128xf32> to vector<1x128xf32>
    %26 = vector.broadcast %25 : vector<1x128xf32> to vector<128x128xf32>
    %27 = arith.addf %23, %26 : vector<128x128xf32>
    %28 = arith.truncf %27 : vector<128x128xf32> to vector<128x128xbf16>
    %c0_20 = arith.constant 0 : index
    %c0_21 = arith.constant 0 : index
    %29 = vector.load %arg7[%c0_20, %c0_21] : memref<128x1xf32, #tpu.memory_space<vmem>>, vector<128x1xf32>
    %cst_22 = arith.constant 1.000000e+00 : f32
    %30 = vector.broadcast %cst_22 : f32 to vector<128x1xf32>
    %31 = arith.maximumf %29, %30 : vector<128x1xf32>
    %32 = arith.mulf %27, %27 : vector<128x128xf32>
    %33 = arith.truncf %32 : vector<128x128xf32> to vector<128x128xbf16>
    %34 = tpu.concatenate %28, %33 in 1 : vector<128x128xbf16>, vector<128x128xbf16> -> vector<128x256xbf16>
    %c0_23 = arith.constant 0 : index
    %c0_24 = arith.constant 0 : index
    %35 = vector.load %arg4[%c0_23, %c0_24] : memref<128x128xbf16, #tpu.memory_space<vmem>>, vector<128x128xbf16>
    %cst_25 = arith.constant dense<0.000000e+00> : vector<128x256xf32>
    %36 = tpu.matmul %35, %34, %cst_25 {dimension_numbers = #tpu.dot_dimension_numbers<[1], [0], [0], [1], [0, 0, 1, 1], [], []>} : vector<128x128xbf16>, vector<128x256xbf16>, vector<128x256xf32> -> vector<128x256xf32>
    %37 = vector.extract_strided_slice %36 {offsets = [0, 0], sizes = [128, 128], strides = [1, 1]} : vector<128x256xf32> to vector<128x128xf32>
    %38 = vector.extract_strided_slice %36 {offsets = [0, 128], sizes = [128, 128], strides = [1, 1]} : vector<128x256xf32> to vector<128x128xf32>
    %39 = vector.broadcast %31 : vector<128x1xf32> to vector<128x128xf32>
    %40 = arith.divf %37, %39 : vector<128x128xf32>
    %41 = vector.broadcast %31 : vector<128x1xf32> to vector<128x128xf32>
    %42 = arith.divf %38, %41 : vector<128x128xf32>
    %43 = arith.mulf %40, %40 : vector<128x128xf32>
    %44 = arith.subf %42, %43 : vector<128x128xf32>
    %cst_26 = arith.constant 0.000000e+00 : f32
    %45 = vector.broadcast %cst_26 : f32 to vector<128x128xf32>
    %46 = arith.maximumf %44, %45 : vector<128x128xf32>
    %cst_27 = arith.constant 9.99999974E-6 : f32
    %47 = vector.broadcast %cst_27 : f32 to vector<128x128xf32>
    %48 = arith.addf %46, %47 : vector<128x128xf32>
    %49 = math.sqrt %48 : vector<128x128xf32>
    %c0_28 = arith.constant 0 : index
    %c0_29 = arith.constant 0 : index
    %50 = vector.load %arg5[%c0_28, %c0_29] : memref<256x128xbf16, #tpu.memory_space<vmem>>, vector<256x128xbf16>
    %cst_30 = arith.constant dense<0.000000e+00> : vector<256x128xf32>
    %51 = tpu.matmul %50, %28, %cst_30 {dimension_numbers = #tpu.dot_dimension_numbers<[1], [0], [0], [1], [0, 0, 1, 1], [], []>} : vector<256x128xbf16>, vector<128x128xbf16>, vector<256x128xf32> -> vector<256x128xf32>
    %c0_31 = arith.constant 0 : index
    %c0_32 = arith.constant 0 : index
    %52 = vector.load %arg6[%c0_31, %c0_32] : memref<256x1xf32, #tpu.memory_space<vmem>>, vector<256x1xf32>
    %cst_33 = arith.constant 0.000000e+00 : f32
    %cst_34 = arith.constant 1.000000e+30 : f32
    %53 = arith.subf %cst_33, %cst_34 : f32
    %54 = vector.broadcast %53 : f32 to vector<128x128xf32>
    %cst_35 = arith.constant 1.000000e+30 : f32
    %55 = vector.broadcast %cst_35 : f32 to vector<128x128xf32>
    %56 = vector.extract_strided_slice %51 {offsets = [0, 0], sizes = [128, 128], strides = [1, 1]} : vector<256x128xf32> to vector<128x128xf32>
    %57 = vector.extract_strided_slice %52 {offsets = [0, 0], sizes = [128, 1], strides = [1, 1]} : vector<256x1xf32> to vector<128x1xf32>
    %cst_36 = arith.constant 5.000000e-01 : f32
    %58 = vector.broadcast %cst_36 : f32 to vector<128x1xf32>
    %59 = arith.cmpf ogt, %57, %58 : vector<128x1xf32>
    %cst_37 = arith.constant 0.000000e+00 : f32
    %cst_38 = arith.constant 1.000000e+30 : f32
    %60 = arith.subf %cst_37, %cst_38 : f32
    %61 = vector.shape_cast %59 : vector<128x1xi1> to vector<128x1xi1>
    %62 = vector.broadcast %61 : vector<128x1xi1> to vector<128x128xi1>
    %63 = vector.broadcast %60 : f32 to vector<128x128xf32>
    %64 = arith.select %62, %56, %63 : vector<128x128xi1>, vector<128x128xf32>
    %65 = arith.maximumf %54, %64 : vector<128x128xf32>
    %cst_39 = arith.constant 1.000000e+30 : f32
    %66 = vector.shape_cast %59 : vector<128x1xi1> to vector<128x1xi1>
    %67 = vector.broadcast %66 : vector<128x1xi1> to vector<128x128xi1>
    %68 = vector.broadcast %cst_39 : f32 to vector<128x128xf32>
    %69 = arith.select %67, %56, %68 : vector<128x128xi1>, vector<128x128xf32>
    %70 = arith.minimumf %55, %69 : vector<128x128xf32>
    %71 = vector.extract_strided_slice %51 {offsets = [128, 0], sizes = [128, 128], strides = [1, 1]} : vector<256x128xf32> to vector<128x128xf32>
    %72 = vector.extract_strided_slice %52 {offsets = [128, 0], sizes = [128, 1], strides = [1, 1]} : vector<256x1xf32> to vector<128x1xf32>
    %cst_40 = arith.constant 5.000000e-01 : f32
    %73 = vector.broadcast %cst_40 : f32 to vector<128x1xf32>
    %74 = arith.cmpf ogt, %72, %73 : vector<128x1xf32>
    %cst_41 = arith.constant 0.000000e+00 : f32
    %cst_42 = arith.constant 1.000000e+30 : f32
    %75 = arith.subf %cst_41, %cst_42 : f32
    %76 = vector.shape_cast %74 : vector<128x1xi1> to vector<128x1xi1>
    %77 = vector.broadcast %76 : vector<128x1xi1> to vector<128x128xi1>
    %78 = vector.broadcast %75 : f32 to vector<128x128xf32>
    %79 = arith.select %77, %71, %78 : vector<128x128xi1>, vector<128x128xf32>
    %80 = arith.maximumf %65, %79 : vector<128x128xf32>
    %cst_43 = arith.constant 1.000000e+30 : f32
    %81 = vector.shape_cast %74 : vector<128x1xi1> to vector<128x1xi1>
    %82 = vector.broadcast %81 : vector<128x1xi1> to vector<128x128xi1>
    %83 = vector.broadcast %cst_43 : f32 to vector<128x128xf32>
    %84 = arith.select %82, %71, %83 : vector<128x128xi1>, vector<128x128xf32>
    %85 = arith.minimumf %70, %84 : vector<128x128xf32>
    %cst_44 = arith.constant 0.000000e+00 : f32
    %86 = vector.broadcast %cst_44 : f32 to vector<128x1xf32>
    %87 = arith.cmpf ogt, %29, %86 : vector<128x1xf32>
    %cst_45 = arith.constant 0.000000e+00 : f32
    %88 = vector.shape_cast %87 : vector<128x1xi1> to vector<128x1xi1>
    %89 = vector.broadcast %88 : vector<128x1xi1> to vector<128x128xi1>
    %90 = vector.broadcast %cst_45 : f32 to vector<128x128xf32>
    %91 = arith.select %89, %80, %90 : vector<128x128xi1>, vector<128x128xf32>
    %cst_46 = arith.constant 0.000000e+00 : f32
    %92 = vector.shape_cast %87 : vector<128x1xi1> to vector<128x1xi1>
    %93 = vector.broadcast %92 : vector<128x1xi1> to vector<128x128xi1>
    %94 = vector.broadcast %cst_46 : f32 to vector<128x128xf32>
    %95 = arith.select %93, %85, %94 : vector<128x128xi1>, vector<128x128xf32>
    %cst_47 = arith.constant 1.000000e+00 : f32
    %96 = vector.broadcast %cst_47 : f32 to vector<128x1xf32>
    %97 = arith.addf %31, %96 : vector<128x1xf32>
    %98 = math.log %97 : vector<128x1xf32>
    %cst_48 = arith.constant 1.000000e+00 : f32
    %99 = vector.broadcast %cst_48 : f32 to vector<128x1xf32>
    %cst_49 = arith.constant 1.000000e+00 : f32
    %100 = vector.broadcast %cst_49 : f32 to vector<128x1xf32>
    %101 = arith.divf %98, %100 : vector<128x1xf32>
    %cst_50 = arith.constant 1.000000e+00 : f32
    %102 = vector.broadcast %cst_50 : f32 to vector<128x1xf32>
    %103 = arith.divf %102, %98 : vector<128x1xf32>
    %cst_51 = arith.constant 1.000000e+00 : f32
    %104 = vector.broadcast %cst_51 : f32 to vector<128x1xf32>
    %105 = arith.divf %31, %104 : vector<128x1xf32>
    %106 = vector.broadcast %99 : vector<128x1xf32> to vector<128x128xf32>
    %107 = arith.mulf %40, %106 : vector<128x128xf32>
    %108 = arith.truncf %107 : vector<128x128xf32> to vector<128x128xbf16>
    %109 = vector.broadcast %99 : vector<128x1xf32> to vector<128x128xf32>
    %110 = arith.mulf %95, %109 : vector<128x128xf32>
    %111 = arith.truncf %110 : vector<128x128xf32> to vector<128x128xbf16>
    %112 = vector.broadcast %99 : vector<128x1xf32> to vector<128x128xf32>
    %113 = arith.mulf %91, %112 : vector<128x128xf32>
    %114 = arith.truncf %113 : vector<128x128xf32> to vector<128x128xbf16>
    %115 = vector.broadcast %99 : vector<128x1xf32> to vector<128x128xf32>
    %116 = arith.mulf %49, %115 : vector<128x128xf32>
    %117 = arith.truncf %116 : vector<128x128xf32> to vector<128x128xbf16>
    %118 = vector.broadcast %101 : vector<128x1xf32> to vector<128x128xf32>
    %119 = arith.mulf %40, %118 : vector<128x128xf32>
    %120 = arith.truncf %119 : vector<128x128xf32> to vector<128x128xbf16>
    %121 = vector.broadcast %101 : vector<128x1xf32> to vector<128x128xf32>
    %122 = arith.mulf %95, %121 : vector<128x128xf32>
    %123 = arith.truncf %122 : vector<128x128xf32> to vector<128x128xbf16>
    %124 = vector.broadcast %101 : vector<128x1xf32> to vector<128x128xf32>
    %125 = arith.mulf %91, %124 : vector<128x128xf32>
    %126 = arith.truncf %125 : vector<128x128xf32> to vector<128x128xbf16>
    %127 = vector.broadcast %101 : vector<128x1xf32> to vector<128x128xf32>
    %128 = arith.mulf %49, %127 : vector<128x128xf32>
    %129 = arith.truncf %128 : vector<128x128xf32> to vector<128x128xbf16>
    %130 = vector.broadcast %103 : vector<128x1xf32> to vector<128x128xf32>
    %131 = arith.mulf %40, %130 : vector<128x128xf32>
    %132 = arith.truncf %131 : vector<128x128xf32> to vector<128x128xbf16>
    %133 = vector.broadcast %103 : vector<128x1xf32> to vector<128x128xf32>
    %134 = arith.mulf %95, %133 : vector<128x128xf32>
    %135 = arith.truncf %134 : vector<128x128xf32> to vector<128x128xbf16>
    %136 = vector.broadcast %103 : vector<128x1xf32> to vector<128x128xf32>
    %137 = arith.mulf %91, %136 : vector<128x128xf32>
    %138 = arith.truncf %137 : vector<128x128xf32> to vector<128x128xbf16>
    %139 = vector.broadcast %103 : vector<128x1xf32> to vector<128x128xf32>
    %140 = arith.mulf %49, %139 : vector<128x128xf32>
    %141 = arith.truncf %140 : vector<128x128xf32> to vector<128x128xbf16>
    %142 = vector.broadcast %105 : vector<128x1xf32> to vector<128x128xf32>
    %143 = arith.mulf %40, %142 : vector<128x128xf32>
    %144 = arith.truncf %143 : vector<128x128xf32> to vector<128x128xbf16>
    %145 = vector.broadcast %105 : vector<128x1xf32> to vector<128x128xf32>
    %146 = arith.mulf %95, %145 : vector<128x128xf32>
    %147 = arith.truncf %146 : vector<128x128xf32> to vector<128x128xbf16>
    %148 = vector.broadcast %105 : vector<128x1xf32> to vector<128x128xf32>
    %149 = arith.mulf %91, %148 : vector<128x128xf32>
    %150 = arith.truncf %149 : vector<128x128xf32> to vector<128x128xbf16>
    %151 = vector.broadcast %105 : vector<128x1xf32> to vector<128x128xf32>
    %152 = arith.mulf %49, %151 : vector<128x128xf32>
    %153 = arith.truncf %152 : vector<128x128xf32> to vector<128x128xbf16>
    %154 = tpu.concatenate %4, %108, %111, %114, %117, %120, %123, %126, %129, %132, %135, %138, %141, %144, %147, %150 in 1 : vector<128x128xbf16>, vector<128x128xbf16>, vector<128x128xbf16>, vector<128x128xbf16>, vector<128x128xbf16>, vector<128x128xbf16>, vector<128x128xbf16>, vector<128x128xbf16>, vector<128x128xbf16>, vector<128x128xbf16>, vector<128x128xbf16>, vector<128x128xbf16>, vector<128x128xbf16>, vector<128x128xbf16>, vector<128x128xbf16>, vector<128x128xbf16> -> vector<128x2048xbf16>
    %155 = tpu.concatenate %154, %153 in 1 : vector<128x2048xbf16>, vector<128x128xbf16> -> vector<128x2176xbf16>
    %c0_52 = arith.constant 0 : index
    %c0_53 = arith.constant 0 : index
    %c0_54 = arith.constant 0 : index
    %156 = vector.load %arg21[%c0_52, %c0_53, %c0_54] : memref<1x2176x128xbf16, #tpu.memory_space<vmem>>, vector<1x2176x128xbf16>
    %157 = vector.shape_cast %156 : vector<1x2176x128xbf16> to vector<2176x128xbf16>
    %cst_55 = arith.constant dense<0.000000e+00> : vector<128x128xf32>
    %158 = tpu.matmul %155, %157, %cst_55 {dimension_numbers = #tpu.dot_dimension_numbers<[1], [0], [0], [1], [0, 0, 1, 1], [], []>} : vector<128x2176xbf16>, vector<2176x128xbf16>, vector<128x128xf32> -> vector<128x128xf32>
    %c0_56 = arith.constant 0 : index
    %c0_57 = arith.constant 0 : index
    %c0_58 = arith.constant 0 : index
    %159 = vector.load %arg22[%c0_56, %c0_57, %c0_58] : memref<1x1x128xf32, #tpu.memory_space<vmem>>, vector<1x1x128xf32>
    %160 = vector.shape_cast %159 : vector<1x1x128xf32> to vector<1x128xf32>
    %161 = vector.broadcast %160 : vector<1x128xf32> to vector<128x128xf32>
    %162 = arith.addf %158, %161 : vector<128x128xf32>
    %c0_59 = arith.constant 0 : index
    %c0_60 = arith.constant 0 : index
    %163 = vector.load %arg8[%c0_59, %c0_60] : memref<128x1xf32, #tpu.memory_space<vmem>>, vector<128x1xf32>
    %cst_61 = arith.constant dense<0.000000e+00> : vector<1xf32>
    %164 = vector.multi_reduction <add>, %163, %cst_61 [0] : vector<128x1xf32> to vector<1xf32>
    %165 = vector.shape_cast %164 : vector<1xf32> to vector<1x1xf32>
    %166 = vector.broadcast %163 : vector<128x1xf32> to vector<128x128xf32>
    %167 = arith.mulf %162, %166 : vector<128x128xf32>
    %cst_62 = arith.constant dense<0.000000e+00> : vector<128xf32>
    %168 = vector.multi_reduction <add>, %167, %cst_62 [0] : vector<128x128xf32> to vector<128xf32>
    %169 = vector.shape_cast %168 : vector<128xf32> to vector<1x128xf32>
    %170 = vector.broadcast %165 : vector<1x1xf32> to vector<1x128xf32>
    %171 = arith.divf %169, %170 : vector<1x128xf32>
    %172 = vector.broadcast %171 : vector<1x128xf32> to vector<128x128xf32>
    %173 = arith.subf %162, %172 : vector<128x128xf32>
    %174 = vector.broadcast %163 : vector<128x1xf32> to vector<128x128xf32>
    %175 = arith.mulf %173, %174 : vector<128x128xf32>
    %176 = arith.mulf %175, %175 : vector<128x128xf32>
    %cst_63 = arith.constant dense<0.000000e+00> : vector<128xf32>
    %177 = vector.multi_reduction <add>, %176, %cst_63 [0] : vector<128x128xf32> to vector<128xf32>
    %178 = vector.shape_cast %177 : vector<128xf32> to vector<1x128xf32>
    %179 = vector.broadcast %165 : vector<1x1xf32> to vector<1x128xf32>
    %180 = arith.divf %178, %179 : vector<1x128xf32>
    %181 = vector.broadcast %171 : vector<1x128xf32> to vector<128x128xf32>
    %182 = arith.subf %162, %181 : vector<128x128xf32>
    %cst_64 = arith.constant 9.99999974E-6 : f32
    %183 = vector.broadcast %cst_64 : f32 to vector<1x128xf32>
    %184 = arith.addf %180, %183 : vector<1x128xf32>
    %185 = math.rsqrt %184 : vector<1x128xf32>
    %186 = vector.broadcast %185 : vector<1x128xf32> to vector<128x128xf32>
    %187 = arith.mulf %182, %186 : vector<128x128xf32>
    %c0_65 = arith.constant 0 : index
    %c0_66 = arith.constant 0 : index
    %c0_67 = arith.constant 0 : index
    %188 = vector.load %arg23[%c0_65, %c0_66, %c0_67] : memref<1x1x128xf32, #tpu.memory_space<vmem>>, vector<1x1x128xf32>
    %189 = vector.shape_cast %188 : vector<1x1x128xf32> to vector<1x128xf32>
    %190 = vector.broadcast %189 : vector<1x128xf32> to vector<128x128xf32>
    %191 = arith.mulf %187, %190 : vector<128x128xf32>
    %c0_68 = arith.constant 0 : index
    %c0_69 = arith.constant 0 : index
    %c0_70 = arith.constant 0 : index
    %192 = vector.load %arg24[%c0_68, %c0_69, %c0_70] : memref<1x1x128xf32, #tpu.memory_space<vmem>>, vector<1x1x128xf32>
    %193 = vector.shape_cast %192 : vector<1x1x128xf32> to vector<1x128xf32>
    %194 = vector.broadcast %193 : vector<1x128xf32> to vector<128x128xf32>
    %195 = arith.addf %191, %194 : vector<128x128xf32>
    %cst_71 = arith.constant 0.000000e+00 : f32
    %196 = vector.broadcast %cst_71 : f32 to vector<128x128xf32>
    %197 = arith.cmpf ogt, %195, %196 : vector<128x128xf32>
    %cst_72 = arith.constant 0.00999999977 : f32
    %198 = vector.broadcast %cst_72 : f32 to vector<128x128xf32>
    %199 = arith.mulf %198, %195 : vector<128x128xf32>
    %200 = arith.select %197, %195, %199 : vector<128x128xi1>, vector<128x128xf32>
    %201 = vector.broadcast %163 : vector<128x1xf32> to vector<128x128xf32>
    %202 = arith.mulf %200, %201 : vector<128x128xf32>
    %c0_73 = arith.constant 0 : index
    %c0_74 = arith.constant 0 : index
    %203 = vector.load %arg26[%c0_73, %c0_74] : memref<128x128xf32, #tpu.memory_space<vmem>>, vector<128x128xf32>
    tpu.vector_store %arg26[%c0_73, %c0_74], %202 {strides = array<i32>} : memref<128x128xf32, #tpu.memory_space<vmem>>, vector<128x128xf32>,
    %c5_i32 = arith.constant 5 : i32
    %204 = arith.cmpi eq, %arg0, %c5_i32 : i32
    %205 = arith.extui %204 : i1 to i32
    %cst_75 = arith.constant 1.000000e+30 : f32
    %c0_i32_76 = arith.constant 0 : i32
    %206 = arith.cmpi ne, %205, %c0_i32_76 : i32
    scf.if %206 {
      %c0_77 = arith.constant 0 : index
      %c0_78 = arith.constant 0 : index
      %207 = vector.load %arg9[%c0_77, %c0_78] : memref<2x128xbf16, #tpu.memory_space<vmem>>, vector<2x128xbf16>
      %c0_79 = arith.constant 0 : index
      %c0_80 = arith.constant 0 : index
      %208 = vector.load %arg10[%c0_79, %c0_80] : memref<2x1xf32, #tpu.memory_space<vmem>>, vector<2x1xf32>
      %cst_81 = arith.constant 1.000000e+00 : f32
      %209 = vector.broadcast %cst_81 : f32 to vector<2x1xf32>
      %210 = arith.maximumf %208, %209 : vector<2x1xf32>
      %211 = arith.truncf %202 : vector<128x128xf32> to vector<128x128xbf16>
      %cst_82 = arith.constant dense<0.000000e+00> : vector<2x128xf32>
      %212 = tpu.matmul %207, %211, %cst_82 {dimension_numbers = #tpu.dot_dimension_numbers<[1], [0], [0], [1], [0, 0, 1, 1], [], []>} : vector<2x128xbf16>, vector<128x128xbf16>, vector<2x128xf32> -> vector<2x128xf32>
      %213 = vector.broadcast %210 : vector<2x1xf32> to vector<2x128xf32>
      %214 = arith.divf %212, %213 : vector<2x128xf32>
      %215 = vector.shape_cast %207 : vector<2x128xbf16> to vector<2x128x1xbf16>
      %cst_83 = arith.constant 5.000000e-01 : bf16
      %216 = vector.broadcast %cst_83 : bf16 to vector<2x128x1xbf16>
      %217 = arith.cmpf ogt, %215, %216 : vector<2x128x1xbf16>
      %218 = vector.shape_cast %202 : vector<128x128xf32> to vector<1x128x128xf32>
      %cst_84 = arith.constant 0.000000e+00 : f32
      %219 = arith.subf %cst_84, %cst_75 : f32
      %220 = vector.shape_cast %217 : vector<2x128x1xi1> to vector<2x128x1xi1>
      %221 = vector.broadcast %220 : vector<2x128x1xi1> to vector<2x128x128xi1>
      %222 = vector.shape_cast %218 : vector<1x128x128xf32> to vector<1x128x128xf32>
      %223 = vector.broadcast %222 : vector<1x128x128xf32> to vector<2x128x128xf32>
      %224 = vector.broadcast %219 : f32 to vector<2x128x128xf32>
      %225 = arith.select %221, %223, %224 : vector<2x128x128xi1>, vector<2x128x128xf32>
      %cst_85 = arith.constant dense<0xFF800000> : vector<2x128xf32>
      %226 = vector.multi_reduction <maximumf>, %225, %cst_85 [1] : vector<2x128x128xf32> to vector<2x128xf32>
      %227 = arith.truncf %214 : vector<2x128xf32> to vector<2x128xbf16>
      %228 = arith.truncf %226 : vector<2x128xf32> to vector<2x128xbf16>
      %229 = tpu.concatenate %227, %228 in 1 : vector<2x128xbf16>, vector<2x128xbf16> -> vector<2x256xbf16>
      %c0_86 = arith.constant 0 : index
      %c0_87 = arith.constant 0 : index
      %230 = vector.load %arg11[%c0_86, %c0_87] : memref<256x128xbf16, #tpu.memory_space<vmem>>, vector<256x128xbf16>
      %cst_88 = arith.constant dense<0.000000e+00> : vector<2x128xf32>
      %231 = tpu.matmul %229, %230, %cst_88 {dimension_numbers = #tpu.dot_dimension_numbers<[1], [0], [0], [1], [0, 0, 1, 1], [], []>} : vector<2x256xbf16>, vector<256x128xbf16>, vector<2x128xf32> -> vector<2x128xf32>
      %c0_89 = arith.constant 0 : index
      %c0_90 = arith.constant 0 : index
      %232 = vector.load %arg12[%c0_89, %c0_90] : memref<1x128xf32, #tpu.memory_space<vmem>>, vector<1x128xf32>
      %233 = vector.broadcast %232 : vector<1x128xf32> to vector<2x128xf32>
      %234 = arith.addf %231, %233 : vector<2x128xf32>
      %cst_91 = arith.constant 0.000000e+00 : f32
      %235 = vector.broadcast %cst_91 : f32 to vector<2x128xf32>
      %236 = arith.cmpf ogt, %234, %235 : vector<2x128xf32>
      %cst_92 = arith.constant 0.00999999977 : f32
      %237 = vector.broadcast %cst_92 : f32 to vector<2x128xf32>
      %238 = arith.mulf %237, %234 : vector<2x128xf32>
      %239 = arith.select %236, %234, %238 : vector<2x128xi1>, vector<2x128xf32>
      %240 = arith.truncf %239 : vector<2x128xf32> to vector<2x128xbf16>
      %c0_93 = arith.constant 0 : index
      %c0_94 = arith.constant 0 : index
      %241 = vector.load %arg13[%c0_93, %c0_94] : memref<128x64xbf16, #tpu.memory_space<vmem>>, vector<128x64xbf16>
      %cst_95 = arith.constant dense<0.000000e+00> : vector<2x64xf32>
      %242 = tpu.matmul %240, %241, %cst_95 {dimension_numbers = #tpu.dot_dimension_numbers<[1], [0], [0], [1], [0, 0, 1, 1], [], []>} : vector<2x128xbf16>, vector<128x64xbf16>, vector<2x64xf32> -> vector<2x64xf32>
      %c0_96 = arith.constant 0 : index
      %c0_97 = arith.constant 0 : index
      %243 = vector.load %arg14[%c0_96, %c0_97] : memref<1x64xf32, #tpu.memory_space<vmem>>, vector<1x64xf32>
      %244 = vector.broadcast %243 : vector<1x64xf32> to vector<2x64xf32>
      %245 = arith.addf %242, %244 : vector<2x64xf32>
      %cst_98 = arith.constant 0.000000e+00 : f32
      %246 = vector.broadcast %cst_98 : f32 to vector<2x64xf32>
      %247 = arith.cmpf ogt, %245, %246 : vector<2x64xf32>
      %cst_99 = arith.constant 0.00999999977 : f32
      %248 = vector.broadcast %cst_99 : f32 to vector<2x64xf32>
      %249 = arith.mulf %248, %245 : vector<2x64xf32>
      %250 = arith.select %247, %245, %249 : vector<2x64xi1>, vector<2x64xf32>
      %251 = arith.truncf %250 : vector<2x64xf32> to vector<2x64xbf16>
      %c0_100 = arith.constant 0 : index
      %c0_101 = arith.constant 0 : index
      %252 = vector.load %arg15[%c0_100, %c0_101] : memref<64x1xbf16, #tpu.memory_space<vmem>>, vector<64x1xbf16>
      %cst_102 = arith.constant dense<0.000000e+00> : vector<2x1xf32>
      %253 = tpu.matmul %251, %252, %cst_102 {dimension_numbers = #tpu.dot_dimension_numbers<[1], [0], [0], [1], [0, 0, 1, 1], [], []>} : vector<2x64xbf16>, vector<64x1xbf16>, vector<2x1xf32> -> vector<2x1xf32>
      %c0_103 = arith.constant 0 : index
      %c0_104 = arith.constant 0 : index
      %254 = vector.load %arg16[%c0_103, %c0_104] : memref<1x1xf32, #tpu.memory_space<vmem>>, vector<1x1xf32>
      %255 = vector.broadcast %254 : vector<1x1xf32> to vector<2x1xf32>
      %256 = arith.addf %253, %255 : vector<2x1xf32>
      %c0_105 = arith.constant 0 : index
      %c0_106 = arith.constant 0 : index
      %257 = vector.load %arg25[%c0_105, %c0_106] : memref<2x1xf32, #tpu.memory_space<vmem>>, vector<2x1xf32>
      tpu.vector_store %arg25[%c0_105, %c0_106], %256 {strides = array<i32>} : memref<2x1xf32, #tpu.memory_space<vmem>>, vector<2x1xf32>,
    } else {
    }
    return
  }
  func.func @transform_0(%arg0: i32) -> (i32, i32) {
    %c0_i32 = arith.constant 0 : i32
    %c0_i32_0 = arith.constant 0 : i32
    %c0_i32_1 = arith.constant 0 : i32
    return %c0_i32, %c0_i32_0 : i32, i32
  }
  func.func @transform_1(%arg0: i32) -> (i32, i32) {
    %c0_i32 = arith.constant 0 : i32
    %c0_i32_0 = arith.constant 0 : i32
    %c0_i32_1 = arith.constant 0 : i32
    return %c0_i32, %c0_i32_0 : i32, i32
  }
  func.func @transform_2(%arg0: i32) -> (i32, i32) {
    %c0_i32 = arith.constant 0 : i32
    %c0_i32_0 = arith.constant 0 : i32
    %c0_i32_1 = arith.constant 0 : i32
    return %c0_i32, %c0_i32_0 : i32, i32
  }
  func.func @transform_3(%arg0: i32) -> (i32, i32) {
    %c0_i32 = arith.constant 0 : i32
    %c0_i32_0 = arith.constant 0 : i32
    %c0_i32_1 = arith.constant 0 : i32
    return %c0_i32, %c0_i32_0 : i32, i32
  }
  func.func @transform_4(%arg0: i32) -> (i32, i32) {
    %c0_i32 = arith.constant 0 : i32
    %c0_i32_0 = arith.constant 0 : i32
    %c0_i32_1 = arith.constant 0 : i32
    return %c0_i32, %c0_i32_0 : i32, i32
  }
  func.func @transform_5(%arg0: i32) -> (i32, i32) {
    %c0_i32 = arith.constant 0 : i32
    %c0_i32_0 = arith.constant 0 : i32
    %c0_i32_1 = arith.constant 0 : i32
    return %c0_i32, %c0_i32_0 : i32, i32
  }
  func.func @transform_6(%arg0: i32) -> (i32, i32) {
    %c0_i32 = arith.constant 0 : i32
    %c0_i32_0 = arith.constant 0 : i32
    %c0_i32_1 = arith.constant 0 : i32
    return %c0_i32, %c0_i32_0 : i32, i32
  }
  func.func @transform_7(%arg0: i32) -> (i32, i32) {
    %c0_i32 = arith.constant 0 : i32
    %c0_i32_0 = arith.constant 0 : i32
    %c0_i32_1 = arith.constant 0 : i32
    return %c0_i32, %c0_i32_0 : i32, i32
  }
  func.func @transform_8(%arg0: i32) -> (i32, i32) {
    %c0_i32 = arith.constant 0 : i32
    %c0_i32_0 = arith.constant 0 : i32
    %c0_i32_1 = arith.constant 0 : i32
    return %c0_i32, %c0_i32_0 : i32, i32
  }
  func.func @transform_9(%arg0: i32) -> (i32, i32) {
    %c0_i32 = arith.constant 0 : i32
    %c0_i32_0 = arith.constant 0 : i32
    %c0_i32_1 = arith.constant 0 : i32
    return %c0_i32, %c0_i32_0 : i32, i32
  }
  func.func @transform_10(%arg0: i32) -> (i32, i32) {
    %c0_i32 = arith.constant 0 : i32
    %c0_i32_0 = arith.constant 0 : i32
    %c0_i32_1 = arith.constant 0 : i32
    return %c0_i32, %c0_i32_0 : i32, i32
  }
  func.func @transform_11(%arg0: i32) -> (i32, i32) {
    %c0_i32 = arith.constant 0 : i32
    %c0_i32_0 = arith.constant 0 : i32
    %c0_i32_1 = arith.constant 0 : i32
    return %c0_i32, %c0_i32_0 : i32, i32
  }
  func.func @transform_12(%arg0: i32) -> (i32, i32) {
    %c0_i32 = arith.constant 0 : i32
    %c0_i32_0 = arith.constant 0 : i32
    %c0_i32_1 = arith.constant 0 : i32
    return %c0_i32, %c0_i32_0 : i32, i32
  }
  func.func @transform_13(%arg0: i32) -> (i32, i32) {
    %c0_i32 = arith.constant 0 : i32
    %c0_i32_0 = arith.constant 0 : i32
    %c0_i32_1 = arith.constant 0 : i32
    return %c0_i32, %c0_i32_0 : i32, i32
  }
  func.func @transform_14(%arg0: i32) -> (i32, i32) {
    %c0_i32 = arith.constant 0 : i32
    %c0_i32_0 = arith.constant 0 : i32
    %c0_i32_1 = arith.constant 0 : i32
    return %c0_i32, %c0_i32_0 : i32, i32
  }
  func.func @transform_15(%arg0: i32) -> (i32, i32) {
    %c0_i32 = arith.constant 0 : i32
    %c0_i32_0 = arith.constant 0 : i32
    %c0_i32_1 = arith.constant 0 : i32
    return %c0_i32, %c0_i32_0 : i32, i32
  }
  func.func @transform_16(%arg0: i32) -> (i32, i32, i32) {
    %c0_i32 = arith.constant 0 : i32
    %c0_i32_0 = arith.constant 0 : i32
    %c0_i32_1 = arith.constant 0 : i32
    return %arg0, %c0_i32, %c0_i32_0 : i32, i32, i32
  }
  func.func @transform_17(%arg0: i32) -> (i32, i32, i32) {
    %c0_i32 = arith.constant 0 : i32
    %c0_i32_0 = arith.constant 0 : i32
    %c0_i32_1 = arith.constant 0 : i32
    return %arg0, %c0_i32, %c0_i32_0 : i32, i32, i32
  }
  func.func @transform_18(%arg0: i32) -> (i32, i32, i32) {
    %c0_i32 = arith.constant 0 : i32
    %c0_i32_0 = arith.constant 0 : i32
    %c0_i32_1 = arith.constant 0 : i32
    return %arg0, %c0_i32, %c0_i32_0 : i32, i32, i32
  }
  func.func @transform_19(%arg0: i32) -> (i32, i32, i32) {
    %c0_i32 = arith.constant 0 : i32
    %c0_i32_0 = arith.constant 0 : i32
    %c0_i32_1 = arith.constant 0 : i32
    return %arg0, %c0_i32, %c0_i32_0 : i32, i32, i32
  }
  func.func @transform_20(%arg0: i32) -> (i32, i32, i32) {
    %c0_i32 = arith.constant 0 : i32
    %c0_i32_0 = arith.constant 0 : i32
    %c0_i32_1 = arith.constant 0 : i32
    return %arg0, %c0_i32, %c0_i32_0 : i32, i32, i32
  }
  func.func @transform_21(%arg0: i32) -> (i32, i32, i32) {
    %c0_i32 = arith.constant 0 : i32
    %c0_i32_0 = arith.constant 0 : i32
    %c0_i32_1 = arith.constant 0 : i32
    return %arg0, %c0_i32, %c0_i32_0 : i32, i32, i32
  }
  func.func @transform_22(%arg0: i32) -> (i32, i32, i32) {
    %c0_i32 = arith.constant 0 : i32
    %c0_i32_0 = arith.constant 0 : i32
    %c0_i32_1 = arith.constant 0 : i32
    return %arg0, %c0_i32, %c0_i32_0 : i32, i32, i32
  }
  func.func @transform_23(%arg0: i32) -> (i32, i32, i32) {
    %c0_i32 = arith.constant 0 : i32
    %c0_i32_0 = arith.constant 0 : i32
    %c0_i32_1 = arith.constant 0 : i32
    return %arg0, %c0_i32, %c0_i32_0 : i32, i32, i32
  }
  func.func @transform_24(%arg0: i32) -> (i32, i32) {
    %c0_i32 = arith.constant 0 : i32
    %c0_i32_0 = arith.constant 0 : i32
    %c0_i32_1 = arith.constant 0 : i32
    return %c0_i32, %c0_i32_0 : i32, i32
  }
}

</mosaic_0001>

<bundles_post_ra>
// kernel: pna_forward.1
= control target key start
LH: loop header
LB: loop body
LE: loop exit
PB: predicated region body
PF: predicated region fallthrough
CT: control target
= control target key end

     0   :  { %s14637_s0 = inlined_call_operand.hbm [shape: f32[128,128], index: 0, kind: input, shape index: {}]   ;;  %s14638_s1 = inlined_call_operand.vmem [shape: bf16[128,4], index: 1, kind: input, shape index: {}]   ;;  %s14639_s2 = inlined_call_operand.hbm [shape: bf16[256,128], index: 2, kind: input, shape index: {}]   ;;  %s14640_s3 = inlined_call_operand.hbm [shape: bf16[128,128], index: 3, kind: input, shape index: {}]   ;;  %s14641_s4 = inlined_call_operand.hbm [shape: bf16[256,128], index: 4, kind: input, shape index: {}]   ;;  %s14642_s5 = inlined_call_operand.vmem [shape: f32[256,1], index: 5, kind: input, shape index: {}]   ;;  %s14643_s6 = inlined_call_operand.vmem [shape: f32[128,1], index: 6, kind: input, shape index: {}]   ;;  %s14644_s7 = inlined_call_operand.vmem [shape: f32[128,1], index: 7, kind: input, shape index: {}]   ;;  %s14645_s8 = inlined_call_operand.hbm [shape: bf16[2,128], index: 8, kind: input, shape index: {}]   ;;  %s14646_s9 = inlined_call_operand.vmem [shape: f32[2,1], index: 9, kind: input, shape index: {}]   ;;  %s14647_s10 = inlined_call_operand.hbm [shape: bf16[256,128], index: 10, kind: input, shape index: {}]   ;;  %s14648_s11 = inlined_call_operand.hbm [shape: f32[1,128], index: 11, kind: input, shape index: {}]   ;;  %s14649_s12 = inlined_call_operand.vmem [shape: bf16[128,64], index: 12, kind: input, shape index: {}]   ;;  %s14650_s13 = inlined_call_operand.hbm [shape: f32[1,64], index: 13, kind: input, shape index: {}]   ;;  %s14651_s14 = inlined_call_operand.vmem [shape: bf16[64,1], index: 14, kind: input, shape index: {}]   ;;  %s14652_s15 = inlined_call_operand.<no memory space> [shape: f32[1,1], index: 15, kind: input, shape index: {}]   ;;  %s14653_s16 = inlined_call_operand.hbm [shape: bf16[6,4,128], index: 16, kind: input, shape index: {}]   ;;  %s14654_s17 = inlined_call_operand.hbm [shape: f32[6,1,128], index: 17, kind: input, shape index: {}]   ;;  %s14655_s18 = inlined_call_operand.hbm [shape: bf16[6,384,128], index: 18, kind: input, shape index: {}]   ;;  %s14656_s19 = inlined_call_operand.hbm [shape: f32[6,1,128], index: 19, kind: input, shape index: {}]   ;;  %s14657_s20 = inlined_call_operand.hbm [shape: bf16[6,2176,128], index: 20, kind: input, shape index: {}]   ;;  %s14658_s21 = inlined_call_operand.hbm [shape: f32[6,1,128], index: 21, kind: input, shape index: {}]   ;;  %s14659_s22 = inlined_call_operand.hbm [shape: f32[6,1,128], index: 22, kind: input, shape index: {}]   ;;  %s14660_s23 = inlined_call_operand.hbm [shape: f32[6,1,128], index: 23, kind: input, shape index: {}]   ;;  %s14661_s24 = inlined_call_operand.vmem [shape: f32[2,1], index: 24, kind: output, shape index: {}]  }
   0x1   :  { %15026 = sst [smem:[#allocation146_spill]] %s14637_s0  ;;  %v29_v0 = vstv %s14652_s15 }
   0x2   :  { %15027 = sst [smem:[#allocation147_spill]] %s14638_s1  ;;  %30 = vst [vmem:[#allocation3] sm:$0x1] %v29_v0 }
   0x3   :  { %15028 = sst [smem:[#allocation148_spill]] %s14639_s2 }
   0x4   :  { %15029 = sst [smem:[#allocation149_spill]] %s14640_s3 }
   0x5   :  { %15030 = sst [smem:[#allocation150_spill]] %s14641_s4 }
   0x6   :  { %15031 = sst [smem:[#allocation151_spill]] %s14642_s5 }
   0x7   :  { %15032 = sst [smem:[#allocation152_spill]] %s14643_s6 }
   0x8   :  { %15033 = sst [smem:[#allocation153_spill]] %s14644_s7 }
   0x9   :  { %15034 = sst [smem:[#allocation154_spill]] %s14645_s8 }
   0xa   :  { %15035 = sst [smem:[#allocation155_spill]] %s14646_s9 }
   0xb   :  { %15036 = sst [smem:[#allocation156_spill]] %s14647_s10 }
   0xc   :  { %15037 = sst [smem:[#allocation157_spill]] %s14649_s12 }
   0xd   :  { %15038 = sst [smem:[#allocation158_spill]] %s14651_s14 }
   0xe   :  { %15039 = sst [smem:[#allocation159_spill]] %s14653_s16 }
   0xf   :  { %15040 = sst [smem:[#allocation160_spill]] %s14654_s17 }
  0x10   :  { %15041 = sst [smem:[#allocation161_spill]] %s14655_s18 }
  0x11   :  { %15042 = sst [smem:[#allocation162_spill]] %s14656_s19 }
  0x12   :  { %15043 = sst [smem:[#allocation163_spill]] %s14661_s24 }
  0x13   :  { %31 = vsyncpa [#allocation5], 0 }
  0x14   :  { %32 = vsyncpa [#allocation7], 0 }
  0x15   :  { %33 = vsyncpa [#allocation10], 0 }
  0x16   :  { %34 = vsyncpa [#allocation13], 0 }
  0x17   :  { %35 = vsyncpa [#allocation16], 0  ;;  %s10154_s27 = smov 0   ;;  %s10156_s28 = smov 0  }
  0x18   :  { %s10158_s6 = smov 0   ;;  %s10160_s2 = smov 0  }
  0x19 LB: > { %15044 = sst [smem:[#allocation31_spill]] %s9990_s28  ;;  %s10000_s15 = smov [#allocation4]   ;;  %s9998_s2 = sphi %s10160_s2, %s15794_s2   ;;  %s9994_s6 = sphi %s10158_s6, %s15797_s6   ;;  %s9990_s28 = sphi %s10156_s28, %s15796_s28   ;;  %s9986_s27 = sphi %s10154_s27, %s15795_s27  }
  0x1a   : > { %15045 = sst [smem:[#allocation32_spill]] %s9994_s6  ;;  %s623_s29 = sshll.u32 %s10000_s15, 4  ;;  %s624_s29 = int_to_ptr.vmem [resolvable:$true] %s623_s29 }
  0x1b   : > { %s10175_s0 = sadd.s32 4294967295, %s9998_s2   ;;  %p7660_p0 = scmp.ge.s32.totalorder %s9998_s2, 1 }
  0x1c   : > { %p14672_p1 = scmp.eq.s32.totalorder %s10175_s0, 0  ;;  %p611_p2 = scmp.lt.s32.totalorder %s9998_s2, 7 }
  0x1d   : > { %s10194_s3 = sadd.s32 1, %s9998_s2   ;;  %s15050_s4 = sld [smem:[#allocation146_spill]] }
  0x1e   : > { %p10181_p4 = pnand %p7660_p0, %p611_p2  ;;  %15049 = sst [smem:[#allocation34_spill]] %s10194_s3 }
  0x20   : > { %s15046_s7 = scalar_select %p10181_p4, 1, 0 }
  0x21   : > { %p8989_p5 = pneg %p10181_p4 }
  0x22   : > { %15047 = sst [smem:[#allocation33_spill]] %s15046_s7 }
  0x23   : > { %p10189_p6 = pnand %p8989_p5, %p14672_p1  ;;  %s9480_s1 = scalar_lea.hbm %s15050_s4, 2048 }
  0x24   : > { %p9481_p7 = scmp.ne.s32.totalorder %s15050_s4, %s9480_s1  ;;  %p9487_p11 = scmp.lt.u32.totalorder %s9480_s1, %s15050_s4 }
  0x25   : > { %s15048_s30 = scalar_select %p10189_p6, 1, 0 }
  0x26   : > { %p10204_p8 = pneg %p10189_p6 }
  0x28   : > { %s15051_s15 = scalar_select %p10204_p8, 1, 0 }
  0x29   : > { %p9483_p9 = pnand %p10204_p8, %p9481_p7 }
  0x2b   : > { %p9484_p10 = pneg %p9483_p9 }
  0x2d   : > { %p9489_p12 = pnand %p9487_p11, %p9484_p10 }
  0x2f   : > { %9492 = shalt.err (!%p9489_p12)
}
  0x30   : > { %s9493_s25 = scalar_lea.vmem %s624_s29, 2048  ;;  %p9501_p5 = scmp.lt.s32.totalorder %s624_s29, %s624_s29 }
  0x31   : > { %p9494_p13 = scmp.ne.s32.totalorder %s624_s29, %s9493_s25  ;;  %p9502_p3 = scmp.lt.s32.totalorder %s9493_s25, %s9493_s25 }
  0x33   : > { %p9496_p0 = pnand %p9494_p13, %p10204_p8  ;;  %p9503_p1 = por %p9502_p3, %p9501_p5 }
  0x35   : > { %p9497_p2 = pneg %p9496_p0 }
  0x37   : > { %p9504_p4 = pnand %p9503_p1, %p9497_p2 }
  0x39   : > { %9507 = shalt.err (!%p9504_p4)
}
  0x3a   : > { %s10001_s8 = smov 128   ;;  %s10002_s14 = smov 8  }
  0x3b   : > { %8992 = dma.hbm_to_vmem [thread:$0]  (!%p10189_p6), %s15050_s4, 2048, %s624_s29, [#allocation5], %s10001_s8, %s10001_s8, %s10002_s14  }
  0x3c   : > { %s381_s5 = ssub.s32 %s9998_s2, %s10194_s3  ;;  %s384_s26 = sadd.s32 1, %s9994_s6 }
  0x3d   : > { %p382_p1 = scmp.eq.s32.totalorder %s381_s5, 0  ;;  %p391_p3 = scmp.ne.s32.totalorder %s9994_s6, %s9990_s28 }
  0x3e   : > { %p392_p4 = scmp.eq.s32.totalorder %s9998_s2, 0  ;;  %p397_p7 = scmp.ne.s32.totalorder %s9990_s28, %s9986_s27 }
  0x3f   : > { %s10229_s25 = scalar_select %p382_p1, %s9994_s6, %s384_s26  }
  0x40   : > { %p393_p9 = por %p392_p4, %p391_p3  ;;  %p15053_p10 = scmp.eq.s32.totalorder %s10175_s0, 0 }
  0x41   : > { %15052 = sst [smem:[#allocation35_spill]] %s10229_s25  ;;  %p9047_p12 = scmp.lt.s32.totalorder %s9998_s2, 6 }
  0x42   : > { %p10233_p11 = por %p15053_p10, %p397_p7  ;;  %s746_s9 = sand.u32 1, %s9998_s2  }
  0x43   : > { %s10240_s7 = sand.u32 1, %s9994_s6   ;;  %s7671_s8 = sshll.u32 %s9998_s2, 5 }
  0x44   : > { %s15054_s12 = scalar_select %p10233_p11, 1, 0 }
  0x45   : > { %s7670_s29 = sshll.u32 %s10240_s7, 1  ;;  %s15056_s16 = sld [smem:[#allocation159_spill]] }
  0x46   : > { %15055 = sst [smem:[#allocation36_spill]] %s15054_s12  ;;  %s750_s27 = scalar_lea.vmem [#allocation17], %s7670_s29 }
  0x47   : > { %s757_s5 = sshll.u32 %s750_s27, 4  ;;  %p10249_p13 = pnand %p9047_p12, %p393_p9  ;;  %s10253_s5 = int_to_ptr.vmem [resolvable:$true] %s757_s5 }
  0x48   : > { %s10256_s4 = sshll.u32 %s9998_s2, 4  ;;  %s10258_s25 = scalar_lea.sflag [#allocation5], %s746_s9 }
  0x49   : > { %s15057_s26 = scalar_select %p10249_p13, 1, 0 }
  0x4a   : > { %p10264_p2 = pneg %p10249_p13 }
  0x4b   : > { %s10247_s1 = scalar_lea.hbm %s15056_s16, %s7671_s8  ;;  %s9513_s27 = scalar_lea.hbm %s15056_s16, 192 }
  0x4c   : > { %s9508_s14 = scalar_lea.hbm %s10247_s1, 32  ;;  %p9514_p3 = scmp.lt.u32.totalorder %s10247_s1, %s15056_s16 }
  0x4d   : > { %p9509_p0 = scmp.ne.s32.totalorder %s10247_s1, %s9508_s14  ;;  %p9515_p4 = scmp.lt.u32.totalorder %s9513_s27, %s9508_s14 }
  0x4e   : > { %s15058_s8 = scalar_select %p10264_p2, 1, 0 }
  0x4f   : > { %p9511_p5 = pnand %p10264_p2, %p9509_p0  ;;  %p9516_p7 = por %p9515_p4, %p9514_p3 }
  0x50   : > { %p9517_p9 = scmp.lt.u32.totalorder %s9508_s14, %s10247_s1 }
  0x51   : > { %p9512_p1 = pneg %p9511_p5 }
  0x52   : > { %p9518_p10 = por %p9517_p9, %p9516_p7 }
  0x54   : > { %p9519_p12 = pnand %p9518_p10, %p9512_p1 }
  0x56   : > { %9522 = shalt.err (!%p9519_p12)
}
  0x57   : > { %s9523_s9 = scalar_lea.vmem %s10253_s5, 32  ;;  %s10003_s29 = smov [#allocation17]  }
  0x58   : > { %p9524_p0 = scmp.ne.s32.totalorder %s10253_s5, %s9523_s9  ;;  %s9528_s24 = sshll.u32 %s10003_s29, 4  ;;  %s9529_s24 = int_to_ptr.vmem [resolvable:$false] %s9528_s24 }
  0x59   : > { %s9530_s6 = scalar_lea.vmem %s9529_s24, 64  ;;  %p9531_p6 = scmp.lt.s32.totalorder %s10253_s5, %s9529_s24 }
  0x5a   : > { %p9526_p5 = pnand %p9524_p0, %p10264_p2  ;;  %p9532_p8 = scmp.lt.s32.totalorder %s9530_s6, %s9523_s9 }
  0x5c   : > { %p9527_p11 = pneg %p9526_p5  ;;  %p9533_p3 = por %p9532_p8, %p9531_p6 }
  0x5e   : > { %p9534_p4 = pnand %p9533_p3, %p9527_p11 }
  0x60   : > { %9537 = shalt.err (!%p9534_p4)
}
  0x61   : > { %9017 = dma.hbm_to_vmem [thread:$0]  (!%p10249_p13), %s10247_s1, 32, %s10253_s5, %s10258_s25  }
  0x62   : > { %s15059_s17 = sld [smem:[#allocation160_spill]]  ;;  %s767_s9 = scalar_lea.vmem [#allocation18], %s10240_s7 }
  0x63   : > { %s774_s29 = sshll.u32 %s767_s9, 4  ;;  %s775_s29 = int_to_ptr.vmem [resolvable:$true] %s774_s29 }
  0x68   : > { %s10292_s27 = scalar_lea.hbm %s15059_s17, %s10256_s4  ;;  %s9543_s1 = scalar_lea.hbm %s15059_s17, 96 }
  0x69   : > { %s9538_s24 = scalar_lea.hbm %s10292_s27, 16  ;;  %p9544_p1 = scmp.lt.u32.totalorder %s10292_s27, %s15059_s17 }
  0x6a   : > { %p9539_p6 = scmp.ne.s32.totalorder %s10292_s27, %s9538_s24  ;;  %p9545_p7 = scmp.lt.u32.totalorder %s9543_s1, %s9538_s24 }
  0x6b   : > { %p9547_p10 = scmp.lt.u32.totalorder %s9538_s24, %s10292_s27 }
  0x6c   : > { %p9541_p8 = pnand %p9539_p6, %p10264_p2  ;;  %p9546_p9 = por %p9545_p7, %p9544_p1 }
  0x6e   : > { %p9542_p11 = pneg %p9541_p8  ;;  %p9548_p12 = por %p9547_p10, %p9546_p9 }
  0x70   : > { %p9549_p0 = pnand %p9548_p12, %p9542_p11 }
  0x72   : > { %9552 = shalt.err (!%p9549_p0)
}
  0x73   : > { %s9553_s14 = scalar_lea.vmem %s775_s29, 16  ;;  %s10004_s9 = smov [#allocation18]  }
  0x74   : > { %p9554_p5 = scmp.ne.s32.totalorder %s775_s29, %s9553_s14  ;;  %s9558_s12 = sshll.u32 %s10004_s9, 4  ;;  %s9559_s12 = int_to_ptr.vmem [resolvable:$false] %s9558_s12 }
  0x75   : > { %s9560_s16 = scalar_lea.vmem %s9559_s12, 32  ;;  %p9561_p6 = scmp.lt.s32.totalorder %s775_s29, %s9559_s12 }
  0x76   : > { %p9556_p3 = pnand %p9554_p5, %p10264_p2  ;;  %p9562_p8 = scmp.lt.s32.totalorder %s9560_s16, %s9553_s14 }
  0x78   : > { %p9557_p4 = pneg %p9556_p3  ;;  %p9563_p13 = por %p9562_p8, %p9561_p6 }
  0x7a   : > { %p9564_p1 = pnand %p9563_p13, %p9557_p4 }
  0x7c   : > { %9567 = shalt.err (!%p9564_p1)
}
  0x7d   : > { %p15060_p7 = scmp.ne.s32.totalorder %s15057_s26, 0  ;;  %s8935_s24 = smul.u32 192, %s10240_s7 }
  0x7e   : > { %s8936_s6 = smul.u32 3072, %s9998_s2  ;;  %s15061_s19 = sld [smem:[#allocation162_spill]] }
  0x7f   : > { %9020 = dma.hbm_to_vmem [thread:$0]  (!%p15060_p7), %s10292_s27, 16, %s775_s29, %s10258_s25  }
  0x80   : > { %s15062_s18 = sld [smem:[#allocation161_spill]]  ;;  %s785_s16 = scalar_lea.vmem [#allocation19], %s8935_s24 }
  0x81   : > { %s792_s17 = sshll.u32 %s785_s16, 4  ;;  %s805_s27 = scalar_lea.vmem [#allocation20], %s10240_s7  ;;  %s10326_s17 = int_to_ptr.vmem [resolvable:$true] %s792_s17 }
  0x82   : > { %s10329_s29 = sshll.u32 %s805_s27, 4  ;;  %s813_s29 = int_to_ptr.vmem [resolvable:$true] %s10329_s29 }
  0x84   : > { %s10319_s12 = scalar_lea.hbm %s15061_s19, %s10256_s4 }
  0x86   : > { %s10324_s9 = scalar_lea.hbm %s15062_s18, %s8936_s6  ;;  %s9573_s6 = scalar_lea.hbm %s15062_s18, 18432 }
  0x87   : > { %s9568_s28 = scalar_lea.hbm %s10324_s9, 3072  ;;  %p9574_p10 = scmp.lt.u32.totalorder %s10324_s9, %s15062_s18 }
  0x88   : > { %p9569_p13 = scmp.ne.s32.totalorder %s10324_s9, %s9568_s28  ;;  %p9575_p12 = scmp.lt.u32.totalorder %s9573_s6, %s9568_s28 }
  0x89   : > { %p9577_p5 = scmp.lt.u32.totalorder %s9568_s28, %s10324_s9 }
  0x8a   : > { %p9571_p11 = pnand %p9569_p13, %p10264_p2  ;;  %p9576_p0 = por %p9575_p12, %p9574_p10 }
  0x8c   : > { %p9572_p9 = pneg %p9571_p11  ;;  %p9578_p3 = por %p9577_p5, %p9576_p0 }
  0x8e   : > { %p9579_p4 = pnand %p9578_p3, %p9572_p9 }
  0x90   : > { %9582 = shalt.err (!%p9579_p4)
}
  0x91   : > { %s9583_s24 = scalar_lea.vmem %s10326_s17, 3072  ;;  %s10005_s16 = smov [#allocation19]  }
  0x92   : > { %p9584_p6 = scmp.ne.s32.totalorder %s10326_s17, %s9583_s24  ;;  %s9588_s27 = sshll.u32 %s10005_s16, 4  ;;  %s9589_s27 = int_to_ptr.vmem [resolvable:$false] %s9588_s27 }
  0x93   : > { %s9590_s1 = scalar_lea.vmem %s9589_s27, 6144  ;;  %p9591_p13 = scmp.lt.s32.totalorder %s10326_s17, %s9589_s27 }
  0x94   : > { %p9586_p8 = pnand %p9584_p6, %p10264_p2  ;;  %p9592_p11 = scmp.lt.s32.totalorder %s9590_s1, %s9583_s24 }
  0x96   : > { %p9587_p1 = pneg %p9586_p8  ;;  %p9593_p10 = por %p9592_p11, %p9591_p13 }
  0x98   : > { %p9594_p12 = pnand %p9593_p10, %p9587_p1 }
  0x9a   : > { %9597 = shalt.err (!%p9594_p12)
}
  0x9b   : > { %s14690_s28 = smov 64   ;;  %s14694_s5 = smov 4  }
  0x9c   : > { %9023 = dma.hbm_to_vmem [thread:$0]  (!%p15060_p7), %s10324_s9, 3072, %s10326_s17, %s10258_s25, %s14690_s28, %s14690_s28, %s14694_s5  }
  0x9d   : > { %s8937_s6 = smul.u32 1088, %s10240_s7  ;;  %s9598_s3 = scalar_lea.hbm %s10319_s12, 16 }
  0x9e   : > { %p9599_p9 = scmp.ne.s32.totalorder %s10319_s12, %s9598_s3  ;;  %s9603_s16 = scalar_lea.hbm %s15061_s19, 96 }
  0x9f   : > { %p9604_p3 = scmp.lt.u32.totalorder %s10319_s12, %s15061_s19  ;;  %p9605_p4 = scmp.lt.u32.totalorder %s9603_s16, %s9598_s3 }
  0xa0   : > { %p9601_p0 = pnand %p9599_p9, %p10264_p2  ;;  %p9607_p8 = scmp.lt.u32.totalorder %s9598_s3, %s10319_s12 }
  0xa1   : > { %p9606_p6 = por %p9605_p4, %p9604_p3 }
  0xa2   : > { %p9602_p5 = pneg %p9601_p0 }
  0xa3   : > { %p9608_p1 = por %p9607_p8, %p9606_p6 }
  0xa5   : > { %p9609_p13 = pnand %p9608_p1, %p9602_p5 }
  0xa7   : > { %9612 = shalt.err (!%p9609_p13)
}
  0xa8   : > { %s9613_s17 = scalar_lea.vmem %s813_s29, 16  ;;  %s10008_s9 = smov [#allocation20]  }
  0xa9   : > { %p9614_p11 = scmp.ne.s32.totalorder %s813_s29, %s9613_s17  ;;  %s9618_s28 = sshll.u32 %s10008_s9, 4  ;;  %s9619_s28 = int_to_ptr.vmem [resolvable:$false] %s9618_s28 }
  0xaa   : > { %s9620_s14 = scalar_lea.vmem %s9619_s28, 32  ;;  %p9621_p9 = scmp.lt.s32.totalorder %s813_s29, %s9619_s28 }
  0xab   : > { %p9616_p10 = pnand %p9614_p11, %p10264_p2  ;;  %p9622_p0 = scmp.lt.s32.totalorder %s9620_s14, %s9613_s17 }
  0xad   : > { %p9617_p12 = pneg %p9616_p10  ;;  %p9623_p7 = por %p9622_p0, %p9621_p9 }
  0xaf   : > { %p9624_p3 = pnand %p9623_p7, %p9617_p12 }
  0xb1   : > { %9627 = shalt.err (!%p9624_p3)
}
  0xb2   : > { %p15063_p4 = scmp.ne.s32.totalorder %s15057_s26, 0  ;;  %s8938_s3 = smul.u32 17408, %s9998_s2 }
  0xb3   : > { %s823_s24 = scalar_lea.vmem [#allocation21], %s8937_s6 }
  0xb4   : > { %9026 = dma.hbm_to_vmem [thread:$0]  (!%p15063_p4), %s10319_s12, 16, %s813_s29, %s10258_s25  }
  0xb5   : > { %s830_s16 = sshll.u32 %s823_s24, 4  ;;  %s10380_s9 = scalar_lea.hbm %s14657_s20, %s8938_s3  ;;  %s10382_s16 = int_to_ptr.vmem [resolvable:$true] %s830_s16 }
  0xb6   : > { %s9628_s28 = scalar_lea.hbm %s10380_s9, 17408  ;;  %s9633_s29 = scalar_lea.hbm %s14657_s20, 104448 }
  0xb7   : > { %p9629_p7 = scmp.ne.s32.totalorder %s10380_s9, %s9628_s28  ;;  %p9634_p8 = scmp.lt.u32.totalorder %s10380_s9, %s14657_s20 }
  0xb8   : > { %p9635_p1 = scmp.lt.u32.totalorder %s9633_s29, %s9628_s28  ;;  %p9637_p11 = scmp.lt.u32.totalorder %s9628_s28, %s10380_s9 }
  0xb9   : > { %p9631_p5 = pnand %p9629_p7, %p10264_p2 }
  0xba   : > { %p9636_p13 = por %p9635_p1, %p9634_p8 }
  0xbb   : > { %p9632_p6 = pneg %p9631_p5 }
  0xbc   : > { %p9638_p10 = por %p9637_p11, %p9636_p13 }
  0xbe   : > { %p9639_p12 = pnand %p9638_p10, %p9632_p6 }
  0xc0   : > { %9642 = shalt.err (!%p9639_p12)
}
  0xc1   : > { %s9643_s14 = scalar_lea.vmem %s10382_s16, 17408  ;;  %s10009_s3 = smov [#allocation21]  }
  0xc2   : > { %p9644_p9 = scmp.ne.s32.totalorder %s10382_s16, %s9643_s14  ;;  %s9648_s24 = sshll.u32 %s10009_s3, 4  ;;  %s9649_s24 = int_to_ptr.vmem [resolvable:$false] %s9648_s24 }
  0xc3   : > { %s9650_s27 = scalar_lea.vmem %s9649_s24, 34816  ;;  %p9651_p7 = scmp.lt.s32.totalorder %s10382_s16, %s9649_s24 }
  0xc4   : > { %p9646_p0 = pnand %p9644_p9, %p10264_p2  ;;  %p9652_p5 = scmp.lt.s32.totalorder %s9650_s27, %s9643_s14 }
  0xc6   : > { %p9647_p3 = pneg %p9646_p0  ;;  %p9653_p8 = por %p9652_p5, %p9651_p7 }
  0xc8   : > { %p9654_p1 = pnand %p9653_p8, %p9647_p3 }
  0xca   : > { %9657 = shalt.err (!%p9654_p1)
}
  0xcb   : > { %s15064_s1 = smov 64   ;;  %s10413_s2 = scalar_lea.hbm %s14658_s21, %s10256_s4 }
  0xcc   : > { %9029 = dma.hbm_to_vmem [thread:$0]  (!%p15063_p4), %s10380_s9, 17408, %s10382_s16, %s10258_s25, %s15064_s1, %s15064_s1, %s14694_s5  }
  0xcd   : > { %s843_s29 = scalar_lea.vmem [#allocation22], %s10240_s7  ;;  %s9658_s17 = scalar_lea.hbm %s10413_s2, 16 }
  0xce   : > { %s850_s6 = sshll.u32 %s843_s29, 4  ;;  %p9659_p6 = scmp.ne.s32.totalorder %s10413_s2, %s9658_s17  ;;  %s851_s6 = int_to_ptr.vmem [resolvable:$true] %s850_s6 }
  0xcf   : > { %s9663_s16 = scalar_lea.hbm %s14658_s21, 96  ;;  %p9664_p10 = scmp.lt.u32.totalorder %s10413_s2, %s14658_s21 }
  0xd0   : > { %p9661_p13 = pnand %p9659_p6, %p10264_p2  ;;  %p9665_p12 = scmp.lt.u32.totalorder %s9663_s16, %s9658_s17 }
  0xd1   : > { %p9667_p0 = scmp.lt.u32.totalorder %s9658_s17, %s10413_s2 }
  0xd2   : > { %p9662_p11 = pneg %p9661_p13  ;;  %p9666_p9 = por %p9665_p12, %p9664_p10 }
  0xd4   : > { %p9668_p3 = por %p9667_p0, %p9666_p9 }
  0xd6   : > { %p9669_p7 = pnand %p9668_p3, %p9662_p11 }
  0xd8   : > { %9672 = shalt.err (!%p9669_p7)
}
  0xd9   : > { %s9673_s27 = scalar_lea.vmem %s851_s6, 16  ;;  %s10010_s28 = smov [#allocation22]  }
  0xda   : > { %p9674_p5 = scmp.ne.s32.totalorder %s851_s6, %s9673_s27  ;;  %s9678_s12 = sshll.u32 %s10010_s28, 4  ;;  %s9679_s12 = int_to_ptr.vmem [resolvable:$false] %s9678_s12 }
  0xdb   : > { %s9680_s29 = scalar_lea.vmem %s9679_s12, 32  ;;  %p9681_p6 = scmp.lt.s32.totalorder %s851_s6, %s9679_s12 }
  0xdc   : > { %p9676_p8 = pnand %p9674_p5, %p10264_p2  ;;  %p9682_p13 = scmp.lt.s32.totalorder %s9680_s29, %s9673_s27 }
  0xde   : > { %p9677_p1 = pneg %p9676_p8  ;;  %p9683_p4 = por %p9682_p13, %p9681_p6 }
  0xe0   : > { %p9684_p10 = pnand %p9683_p4, %p9677_p1 }
  0xe2   : > { %9687 = shalt.err (!%p9684_p10)
}
  0xe3   : > { %p15065_p12 = scmp.ne.s32.totalorder %s15057_s26, 0  ;;  %s10011_s17 = smov [#allocation6]  }
  0xe4   : > { %s639_s14 = sshll.u32 %s10011_s17, 4  ;;  %s10012_s3 = smov [#allocation9]   ;;  %s640_s14 = int_to_ptr.vmem [resolvable:$true] %s639_s14 }
  0xe5   : > { %9032 = dma.hbm_to_vmem [thread:$0]  (!%p15065_p12), %s10413_s2, 16, %s851_s6, %s10258_s25  }
  0xe6   : > { %s665_s16 = sshll.u32 %s10012_s3, 4  ;;  %s15066_s28 = sld [smem:[#allocation148_spill]]  ;;  %s666_s16 = int_to_ptr.vmem [resolvable:$true] %s665_s16 }
  0xe7   : > { %p15068_p11 = scmp.ne.s32.totalorder %s15051_s15, 0 }
  0xec   : > { %s15067_s5 = smov %s15066_s28  ;;  %s9688_s18 = scalar_lea.hbm %s15066_s28, 2048 }
  0xed   : > { %p9689_p4 = scmp.ne.s32.totalorder %s15067_s5, %s9688_s18  ;;  %p9695_p3 = scmp.lt.u32.totalorder %s9688_s18, %s15067_s5 }
  0xef   : > { %p9691_p9 = pnand %p9689_p4, %p15068_p11 }
  0xf1   : > { %p9692_p0 = pneg %p9691_p9 }
  0xf3   : > { %p9697_p7 = pnand %p9695_p3, %p9692_p0 }
  0xf5   : > { %9700 = shalt.err (!%p9697_p7)
}
  0xf6   : > { %s9701_s2 = scalar_lea.vmem %s640_s14, 2048  ;;  %p9709_p6 = scmp.lt.s32.totalorder %s640_s14, %s640_s14 }
  0xf7   : > { %p9702_p5 = scmp.ne.s32.totalorder %s640_s14, %s9701_s2  ;;  %p9710_p13 = scmp.lt.s32.totalorder %s9701_s2, %s9701_s2 }
  0xf9   : > { %p9704_p8 = pnand %p9702_p5, %p15068_p11  ;;  %p9711_p10 = por %p9710_p13, %p9709_p6 }
  0xfb   : > { %p9705_p1 = pneg %p9704_p8 }
  0xfd   : > { %p9712_p12 = pnand %p9711_p10, %p9705_p1 }
  0xff   : > { %9715 = shalt.err (!%p9712_p12)
}
 0x100   : > { %p15069_p4 = scmp.ne.s32.totalorder %s15048_s30, 0  ;;  %s15070_s6 = smov 4  }
 0x101   : > { %s15071_s9 = sld [smem:[#allocation150_spill]] }
 0x102   : > { %8995 = dma.hbm_to_vmem [thread:$0]  (!%p15069_p4), %s15067_s5, 2048, %s640_s14, [#allocation7], %s15064_s1, %s15064_s1, %s15070_s6  }
 0x107   : > { %s9716_s24 = scalar_lea.hbm %s15071_s9, 2048 }
 0x108   : > { %p9717_p9 = scmp.ne.s32.totalorder %s15071_s9, %s9716_s24  ;;  %p9723_p3 = scmp.lt.u32.totalorder %s9716_s24, %s15071_s9 }
 0x10a   : > { %p9719_p12 = pnand %p9717_p9, %p15068_p11 }
 0x10c   : > { %p9720_p0 = pneg %p9719_p12 }
 0x10e   : > { %p9725_p7 = pnand %p9723_p3, %p9720_p0 }
 0x110   : > { %9728 = shalt.err (!%p9725_p7)
}
 0x111   : > { %s9729_s2 = scalar_lea.vmem %s666_s16, 2048  ;;  %p9737_p6 = scmp.lt.s32.totalorder %s666_s16, %s666_s16 }
 0x112   : > { %p9730_p5 = scmp.ne.s32.totalorder %s666_s16, %s9729_s2  ;;  %p9738_p13 = scmp.lt.s32.totalorder %s9729_s2, %s9729_s2 }
 0x114   : > { %p9732_p8 = pnand %p9730_p5, %p15068_p11  ;;  %p9739_p10 = por %p9738_p13, %p9737_p6 }
 0x116   : > { %p9733_p1 = pneg %p9732_p8 }
 0x118   : > { %p9740_p2 = pnand %p9739_p10, %p9733_p1 }
 0x11a   : > { %9743 = shalt.err (!%p9740_p2)
}
 0x11b   : > { %9001 = dma.hbm_to_vmem [thread:$0]  (!%p15069_p4), %s15071_s9, 2048, %s666_s16, [#allocation10], %s15064_s1, %s15064_s1, %s15070_s6  }
 0x11c   : > { %s10013_s18 = smov [#allocation12]   ;;  %s10480_s28 = scalar_lea.hbm %s14659_s22, %s10256_s4 }
 0x11d   : > { %s701_s17 = sshll.u32 %s10013_s18, 4  ;;  %s15072_s10 = sld [smem:[#allocation156_spill]]  ;;  %s702_s17 = int_to_ptr.vmem [resolvable:$true] %s701_s17 }
 0x123   : > { %s9744_s29 = scalar_lea.hbm %s15072_s10, 2048 }
 0x124   : > { %p9745_p2 = scmp.ne.s32.totalorder %s15072_s10, %s9744_s29  ;;  %p9751_p0 = scmp.lt.u32.totalorder %s9744_s29, %s15072_s10 }
 0x126   : > { %p9747_p9 = pnand %p9745_p2, %p15068_p11 }
 0x128   : > { %p9748_p12 = pneg %p9747_p9 }
 0x12a   : > { %p9753_p3 = pnand %p9751_p0, %p9748_p12 }
 0x12c   : > { %9756 = shalt.err (!%p9753_p3)
}
 0x12d   : > { %s9757_s19 = scalar_lea.vmem %s702_s17, 2048  ;;  %p9765_p1 = scmp.lt.s32.totalorder %s702_s17, %s702_s17 }
 0x12e   : > { %p9758_p7 = scmp.ne.s32.totalorder %s702_s17, %s9757_s19  ;;  %p9766_p6 = scmp.lt.s32.totalorder %s9757_s19, %s9757_s19 }
 0x130   : > { %p9760_p5 = pnand %p9758_p7, %p15068_p11  ;;  %p9767_p13 = por %p9766_p6, %p9765_p1 }
 0x132   : > { %p9761_p8 = pneg %p9760_p5 }
 0x134   : > { %p9768_p10 = pnand %p9767_p13, %p9761_p8 }
 0x136   : > { %9771 = shalt.err (!%p9768_p10)
}
 0x137   : > { %9007 = dma.hbm_to_vmem [thread:$0]  (!%p15069_p4), %s15072_s10, 2048, %s702_s17, [#allocation13], %s15064_s1, %s15064_s1, %s15070_s6  }
 0x138   : > { %s860_s3 = scalar_lea.vmem [#allocation23], %s10240_s7  ;;  %s10014_s12 = smov [#allocation8]  }
 0x139   : > { %s867_s24 = sshll.u32 %s860_s3, 4  ;;  %s652_s27 = sshll.u32 %s10014_s12, 4  ;;  %s10504_s24 = int_to_ptr.vmem [resolvable:$true] %s867_s24  ;;  %s653_s27 = int_to_ptr.vmem [resolvable:$true] %s652_s27 }
 0x13a   : > { %s9772_s29 = scalar_lea.hbm %s10480_s28, 16  ;;  %p15073_p9 = scmp.ne.s32.totalorder %s15058_s8, 0 }
 0x13b   : > { %p9773_p2 = scmp.ne.s32.totalorder %s10480_s28, %s9772_s29  ;;  %s9777_s14 = scalar_lea.hbm %s14659_s22, 96 }
 0x13c   : > { %p9778_p3 = scmp.lt.u32.totalorder %s10480_s28, %s14659_s22  ;;  %p9779_p7 = scmp.lt.u32.totalorder %s9777_s14, %s9772_s29 }
 0x13d   : > { %p9775_p12 = pnand %p9773_p2, %p15073_p9  ;;  %p9781_p8 = scmp.lt.u32.totalorder %s9772_s29, %s10480_s28 }
 0x13e   : > { %p9780_p5 = por %p9779_p7, %p9778_p3 }
 0x13f   : > { %p9776_p0 = pneg %p9775_p12 }
 0x140   : > { %p9782_p1 = por %p9781_p8, %p9780_p5 }
 0x142   : > { %p9783_p6 = pnand %p9782_p1, %p9776_p0 }
 0x144   : > { %9786 = shalt.err (!%p9783_p6)
}
 0x145   : > { %s9787_s17 = scalar_lea.vmem %s10504_s24, 16  ;;  %s10015_s18 = smov [#allocation23]  }
 0x146   : > { %p9788_p13 = scmp.ne.s32.totalorder %s10504_s24, %s9787_s17  ;;  %s9792_s3 = sshll.u32 %s10015_s18, 4  ;;  %s9793_s3 = int_to_ptr.vmem [resolvable:$false] %s9792_s3 }
 0x147   : > { %s9794_s12 = scalar_lea.vmem %s9793_s3, 32  ;;  %p9795_p12 = scmp.lt.s32.totalorder %s10504_s24, %s9793_s3 }
 0x148   : > { %p9790_p10 = pnand %p9788_p13, %p15073_p9  ;;  %p9796_p4 = scmp.lt.s32.totalorder %s9794_s12, %s9787_s17 }
 0x14a   : > { %p9791_p2 = pneg %p9790_p10  ;;  %p9797_p3 = por %p9796_p4, %p9795_p12 }
 0x14c   : > { %p9798_p7 = pnand %p9797_p3, %p9791_p2 }
 0x14e   : > { %9801 = shalt.err (!%p9798_p7)
}
 0x14f   : > { %p15074_p0 = scmp.ne.s32.totalorder %s15057_s26, 0  ;;  %s15075_s16 = sld [smem:[#allocation149_spill]] }
 0x151   : > { %9035 = dma.hbm_to_vmem [thread:$0]  (!%p15074_p0), %s10480_s28, 16, %s10504_s24, %s10258_s25  }
 0x155   : > { %s9802_s14 = scalar_lea.hbm %s15075_s16, 1024 }
 0x156   : > { %p9803_p5 = scmp.ne.s32.totalorder %s15075_s16, %s9802_s14  ;;  %p9809_p1 = scmp.lt.u32.totalorder %s9802_s14, %s15075_s16 }
 0x158   : > { %p9805_p4 = pnand %p9803_p5, %p15068_p11 }
 0x15a   : > { %p9806_p8 = pneg %p9805_p4 }
 0x15c   : > { %p9811_p6 = pnand %p9809_p1, %p9806_p8 }
 0x15e   : > { %9814 = shalt.err (!%p9811_p6)
}
 0x15f   : > { %s9815_s3 = scalar_lea.vmem %s653_s27, 1024  ;;  %p9823_p12 = scmp.lt.s32.totalorder %s653_s27, %s653_s27 }
 0x160   : > { %p9816_p13 = scmp.ne.s32.totalorder %s653_s27, %s9815_s3  ;;  %p9824_p3 = scmp.lt.s32.totalorder %s9815_s3, %s9815_s3 }
 0x162   : > { %p9818_p10 = pnand %p9816_p13, %p15068_p11  ;;  %p9825_p7 = por %p9824_p3, %p9823_p12 }
 0x164   : > { %p9819_p2 = pneg %p9818_p10 }
 0x166   : > { %p9826_p0 = pnand %p9825_p7, %p9819_p2 }
 0x168   : > { %9829 = shalt.err (!%p9826_p0)
}
 0x169   : > { %p15076_p5 = scmp.ne.s32.totalorder %s15048_s30, 0  ;;  %s10016_s12 = smov [#allocation11]  }
 0x16a   : > { %s688_s29 = sshll.u32 %s10016_s12, 4  ;;  %s10017_s2 = smov [#allocation14]   ;;  %s689_s29 = int_to_ptr.vmem [resolvable:$true] %s688_s29 }
 0x16b   : > { %8998 = dma.hbm_to_vmem [thread:$0]  (!%p15076_p5), %s15075_s16, 1024, %s653_s27, [#allocation7], %s15064_s1, %s15064_s1, %s15070_s6  }
 0x16c   : > { %s715_s14 = sshll.u32 %s10017_s2, 4  ;;  %s15077_s17 = sld [smem:[#allocation154_spill]]  ;;  %s716_s14 = int_to_ptr.vmem [resolvable:$true] %s715_s14 }
 0x172   : > { %s9830_s18 = scalar_lea.hbm %s15077_s17, 16 }
 0x173   : > { %p9831_p0 = scmp.ne.s32.totalorder %s15077_s17, %s9830_s18  ;;  %p9837_p1 = scmp.lt.u32.totalorder %s9830_s18, %s15077_s17 }
 0x175   : > { %p9833_p4 = pnand %p9831_p0, %p15068_p11 }
 0x177   : > { %p9834_p8 = pneg %p9833_p4 }
 0x179   : > { %p9839_p6 = pnand %p9837_p1, %p9834_p8 }
 0x17b   : > { %9842 = shalt.err (!%p9839_p6)
}
 0x17c   : > { %s9843_s1 = scalar_lea.vmem %s689_s29, 16  ;;  %s9850_s6 = scalar_lea.vmem %s689_s29, 32 }
 0x17d   : > { %p9844_p13 = scmp.ne.s32.totalorder %s689_s29, %s9843_s1  ;;  %p9851_p12 = scmp.lt.s32.totalorder %s689_s29, %s689_s29 }
 0x17e   : > { %p9852_p3 = scmp.lt.s32.totalorder %s9850_s6, %s9843_s1 }
 0x17f   : > { %p9846_p10 = pnand %p9844_p13, %p15068_p11 }
 0x180   : > { %p9853_p7 = por %p9852_p3, %p9851_p12 }
 0x181   : > { %p9847_p2 = pneg %p9846_p10 }
 0x183   : > { %p9854_p9 = pnand %p9853_p7, %p9847_p2 }
 0x185   : > { %9857 = shalt.err (!%p9854_p9)
}
 0x186   : > { %9004 = dma.hbm_to_vmem [thread:$0]  (!%p15076_p5), %s15077_s17, 16, %s689_s29, [#allocation10]  }
 0x187   : > { %s9858_s12 = scalar_lea.hbm %s14648_s11, 16 }
 0x188   : > { %p9859_p0 = scmp.ne.s32.totalorder %s14648_s11, %s9858_s12  ;;  %p9865_p9 = scmp.lt.u32.totalorder %s9858_s12, %s14648_s11 }
 0x18a   : > { %p9861_p4 = pnand %p9859_p0, %p15068_p11 }
 0x18c   : > { %p9862_p8 = pneg %p9861_p4 }
 0x18e   : > { %p9867_p1 = pnand %p9865_p9, %p9862_p8 }
 0x190   : > { %9870 = shalt.err (!%p9867_p1)
}
 0x191   : > { %s9871_s3 = scalar_lea.vmem %s716_s14, 16  ;;  %s9878_s29 = scalar_lea.vmem %s716_s14, 32 }
 0x192   : > { %p9872_p6 = scmp.ne.s32.totalorder %s716_s14, %s9871_s3  ;;  %p9879_p2 = scmp.lt.s32.totalorder %s716_s14, %s716_s14 }
 0x193   : > { %p9880_p12 = scmp.lt.s32.totalorder %s9878_s29, %s9871_s3 }
 0x194   : > { %p9874_p13 = pnand %p9872_p6, %p15068_p11 }
 0x195   : > { %p9881_p3 = por %p9880_p12, %p9879_p2 }
 0x196   : > { %p9875_p10 = pneg %p9874_p13 }
 0x198   : > { %p9882_p7 = pnand %p9881_p3, %p9875_p10 }
 0x19a   : > { %9885 = shalt.err (!%p9882_p7)
}
 0x19b   : > { %9010 = dma.hbm_to_vmem [thread:$0]  (!%p15076_p5), %s14648_s11, 16, %s716_s14, [#allocation13]  }
 0x19c   : > { %s10018_s6 = smov [#allocation15]   ;;  %s10589_s24 = scalar_lea.hbm %s14660_s23, %s10256_s4 }
 0x19d   : > { %s729_s9 = sshll.u32 %s10018_s6, 4  ;;  %s9886_s19 = scalar_lea.hbm %s14650_s13, 16  ;;  %s730_s9 = int_to_ptr.vmem [resolvable:$true] %s729_s9 }
 0x19e   : > { %p9887_p0 = scmp.ne.s32.totalorder %s14650_s13, %s9886_s19  ;;  %p9893_p9 = scmp.lt.u32.totalorder %s9886_s19, %s14650_s13 }
 0x1a0   : > { %p9889_p4 = pnand %p9887_p0, %p15068_p11 }
 0x1a2   : > { %p9890_p8 = pneg %p9889_p4 }
 0x1a4   : > { %p9895_p1 = pnand %p9893_p9, %p9890_p8 }
 0x1a6   : > { %9898 = shalt.err (!%p9895_p1)
}
 0x1a7   : > { %s9899_s29 = scalar_lea.vmem %s730_s9, 16  ;;  %s9906_s4 = scalar_lea.vmem %s730_s9, 32 }
 0x1a8   : > { %p9900_p6 = scmp.ne.s32.totalorder %s730_s9, %s9899_s29  ;;  %p9907_p2 = scmp.lt.s32.totalorder %s730_s9, %s730_s9 }
 0x1a9   : > { %p9908_p12 = scmp.lt.s32.totalorder %s9906_s4, %s9899_s29 }
 0x1aa   : > { %p9902_p13 = pnand %p9900_p6, %p15068_p11 }
 0x1ab   : > { %p9909_p3 = por %p9908_p12, %p9907_p2 }
 0x1ac   : > { %p9903_p10 = pneg %p9902_p13 }
 0x1ae   : > { %p9910_p7 = pnand %p9909_p3, %p9903_p10 }
 0x1b0   : > { %9913 = shalt.err (!%p9910_p7)
}
 0x1b1   : > { %9013 = dma.hbm_to_vmem [thread:$0]  (!%p15076_p5), %s14650_s13, 16, %s730_s9, [#allocation16]  }
 0x1b2   : > { %s877_s15 = scalar_lea.vmem [#allocation24], %s10240_s7  ;;  %s9914_s27 = scalar_lea.hbm %s10589_s24, 16 }
 0x1b3   : > { %s884_s6 = sshll.u32 %s877_s15, 4  ;;  %p9915_p11 = scmp.ne.s32.totalorder %s10589_s24, %s9914_s27  ;;  %s885_s6 = int_to_ptr.vmem [resolvable:$true] %s884_s6 }
 0x1b4   : > { %p15078_p0 = scmp.ne.s32.totalorder %s15058_s8, 0  ;;  %s9919_s12 = scalar_lea.hbm %s14660_s23, 96 }
 0x1b5   : > { %p9920_p9 = scmp.lt.u32.totalorder %s10589_s24, %s14660_s23  ;;  %p9921_p1 = scmp.lt.u32.totalorder %s9919_s12, %s9914_s27 }
 0x1b6   : > { %p9917_p4 = pnand %p9915_p11, %p15078_p0  ;;  %p9923_p13 = scmp.lt.u32.totalorder %s9914_s27, %s10589_s24 }
 0x1b7   : > { %p9922_p6 = por %p9921_p1, %p9920_p9 }
 0x1b8   : > { %p9918_p8 = pneg %p9917_p4 }
 0x1b9   : > { %p9924_p5 = por %p9923_p13, %p9922_p6 }
 0x1bb   : > { %p9925_p10 = pnand %p9924_p5, %p9918_p8 }
 0x1bd   : > { %9928 = shalt.err (!%p9925_p10)
}
 0x1be   : > { %s9929_s7 = scalar_lea.vmem %s885_s6, 16  ;;  %s10019_s9 = smov [#allocation24]  }
 0x1bf   : > { %p9930_p2 = scmp.ne.s32.totalorder %s885_s6, %s9929_s7  ;;  %s9934_s5 = sshll.u32 %s10019_s9, 4  ;;  %s9935_s5 = int_to_ptr.vmem [resolvable:$false] %s9934_s5 }
 0x1c0   : > { %s9936_s18 = scalar_lea.vmem %s9935_s5, 32  ;;  %p9937_p7 = scmp.lt.s32.totalorder %s885_s6, %s9935_s5 }
 0x1c1   : > { %p9932_p12 = pnand %p9930_p2, %p15078_p0  ;;  %p9938_p11 = scmp.lt.s32.totalorder %s9936_s18, %s9929_s7 }
 0x1c3   : > { %p9933_p3 = pneg %p9932_p12  ;;  %p9939_p4 = por %p9938_p11, %p9937_p7 }
 0x1c5   : > { %p9940_p1 = pnand %p9939_p4, %p9933_p3 }
 0x1c7   : > { %9943 = shalt.err (!%p9940_p1)
}
 0x1c8   : > { %p15079_p9 = scmp.ne.s32.totalorder %s15057_s26, 0  ;;  %s15080_s14 = sld [smem:[#allocation33_spill]] }
 0x1ca   : > { %9038 = dma.hbm_to_vmem [thread:$0]  (!%p15079_p9), %s10589_s24, 16, %s885_s6, %s10258_s25  }
 0x1ce   : > { %p15081_p8 = scmp.ne.s32.totalorder %s15080_s14, 0 }
 0x1d0   : > { %893 = sbr.rel (%p15081_p8) target bundleno = 2950 (0xb86), region = 116 }
 0x1d7   : > { %p15082_p0 = scmp.eq.s32.totalorder %s10175_s0, 0 }
 0x1d9   : > { %9961 = dma.done.wait (%p15082_p0), [#allocation5], 2048   ;;  %p15083_p6 = pmov %p15082_p0 }
 0x1da   : > { %p15084_p13 = pmov %p15082_p0 }
 0x1db   : > { %9963 = vsyncadd (%p15083_p6), [#allocation5], 4294965248 }
 0x1dc   : > { %9965 = dma.done.wait (%p15084_p13), [#allocation7], 3072   ;;  %p15085_p5 = pmov %p15082_p0 }
 0x1dd   : > { %p15086_p10 = pmov %p15082_p0 }
 0x1de   : > { %9967 = vsyncadd (%p15085_p5), [#allocation7], 4294964224 }
 0x1df   : > { %9969 = dma.done.wait (%p15086_p10), [#allocation10], 2064   ;;  %p15087_p2 = pmov %p15082_p0 }
 0x1e0   : > { %p15088_p12 = pmov %p15082_p0 }
 0x1e1   : > { %9971 = vsyncadd (%p15087_p2), [#allocation10], 4294965232 }
 0x1e2   : > { %9973 = dma.done.wait (%p15088_p12), [#allocation13], 2064   ;;  %p15089_p3 = pmov %p15082_p0 }
 0x1e3   : > { %p15090_p7 = pmov %p15082_p0 }
 0x1e4   : > { %9975 = vsyncadd (%p15089_p3), [#allocation13], 4294965232 }
 0x1e5   : > { %9977 = dma.done.wait (%p15090_p7), [#allocation16], 16   ;;  %p15091_p11 = pmov %p15082_p0 }
 0x1e6   : > { %s15092_s25 = sld [smem:[#allocation31_spill]]  ;;  %s15093_s26 = sld [smem:[#allocation36_spill]] }
 0x1e7   : > { %9979 = vsyncadd (%p15091_p11), [#allocation16], 4294967280  ;;  %s927_s8 = sand.u32 1, %s10175_s0  }
 0x1e8   : > { %s928_s29 = scalar_lea.sflag [#allocation5], %s927_s8 }
 0x1ec   : > { %s10652_s24 = sand.u32 1, %s15092_s25   ;;  %p15094_p4 = scmp.ne.s32.totalorder %s15093_s26, 0 }
 0x1ed   : > { %s7688_s3 = sshll.u32 %s10652_s24, 1 }
 0x1ee   : > { %s10655_s4 = scalar_lea.vmem [#allocation17], %s7688_s3 }
 0x1ef   : > { %9981 = dma.done.wait (%p15094_p4), %s928_s29, 20592  }
 0x1f0   : > { %9983 = vsyncadd (%p15094_p4), %s928_s29, 4294946704  ;;  %s8939_s28 = smul.u32 192, %s10652_s24  ;;  %s939_s15 = scalar_lea.vmem [#allocation18], %s10652_s24 }
 0x1f1   : > { %s8940_s1 = smul.u32 1088, %s10652_s24  ;;  %s956_s27 = scalar_lea.vmem [#allocation20], %s10652_s24 }
 0x1f2   : > { %s10664_s6 = scalar_lea.vmem [#allocation19], %s8939_s28  ;;  %s973_s30 = scalar_lea.vmem [#allocation22], %s10652_s24 }
 0x1f3   : > { %s10667_s10 = scalar_lea.vmem [#allocation21], %s8940_s1  ;;  %s981_s12 = scalar_lea.vmem [#allocation23], %s10652_s24 }
 0x1f4   : > { %s989_s2 = scalar_lea.vmem [#allocation24], %s10652_s24  ;;  %p15095_p1 = scmp.ne.s32.totalorder %s10175_s0, 0 }
 0x1f5   : > { %v1087_v1 = vld [vmem:[#allocation4] sm:$0xff] (!%p15095_p1)  ;;  %v1088_v2 = vld [vmem:[#allocation4 + $0x8] sm:$0xff] (!%p15095_p1)  ;;  %v1089_v3 = vld [vmem:[#allocation4 + $0x10] sm:$0xff] (!%p15095_p1) }
 0x1f6   : > { %1086 = sbr.rel (%p15095_p1) target bundleno = 510 (0x1fe), region = 184  ;;  %1103 = vst [vmem:[#allocation2] sm:$0xff] (!%p15095_p1), %v1087_v1  ;;  %1104 = vst [vmem:[#allocation2 + $0x8] sm:$0xff] (!%p15095_p1), %v1088_v2  ;;  %v1090_v4 = vld [vmem:[#allocation4 + $0x18] sm:$0xff] (!%p15095_p1)  ;;  %v1091_v5 = vld [vmem:[#allocation4 + $0x20] sm:$0xff] (!%p15095_p1) }
 0x1f7   : > { %1105 = vst [vmem:[#allocation2 + $0x10] sm:$0xff] (!%p15095_p1), %v1089_v3  ;;  %v1092_v6 = vld [vmem:[#allocation4 + $0x28] sm:$0xff] (!%p15095_p1)  ;;  %1106 = vst [vmem:[#allocation2 + $0x18] sm:$0xff] (!%p15095_p1), %v1090_v4  ;;  %v1093_v7 = vld [vmem:[#allocation4 + $0x30] sm:$0xff] (!%p15095_p1) }
 0x1f8   : > { %1107 = vst [vmem:[#allocation2 + $0x20] sm:$0xff] (!%p15095_p1), %v1091_v5  ;;  %1108 = vst [vmem:[#allocation2 + $0x28] sm:$0xff] (!%p15095_p1), %v1092_v6  ;;  %v1094_v8 = vld [vmem:[#allocation4 + $0x38] sm:$0xff] (!%p15095_p1)  ;;  %v1095_v9 = vld [vmem:[#allocation4 + $0x40] sm:$0xff] (!%p15095_p1) }
 0x1f9   : > { %1109 = vst [vmem:[#allocation2 + $0x30] sm:$0xff] (!%p15095_p1), %v1093_v7  ;;  %1110 = vst [vmem:[#allocation2 + $0x38] sm:$0xff] (!%p15095_p1), %v1094_v8  ;;  %v1096_v10 = vld [vmem:[#allocation4 + $0x48] sm:$0xff] (!%p15095_p1)  ;;  %v1097_v11 = vld [vmem:[#allocation4 + $0x50] sm:$0xff] (!%p15095_p1) }
 0x1fa   : > { %1111 = vst [vmem:[#allocation2 + $0x40] sm:$0xff] (!%p15095_p1), %v1095_v9  ;;  %v1098_v12 = vld [vmem:[#allocation4 + $0x58] sm:$0xff] (!%p15095_p1)  ;;  %1112 = vst [vmem:[#allocation2 + $0x48] sm:$0xff] (!%p15095_p1), %v1096_v10  ;;  %v1099_v13 = vld [vmem:[#allocation4 + $0x60] sm:$0xff] (!%p15095_p1) }
 0x1fb   : > { %1113 = vst [vmem:[#allocation2 + $0x50] sm:$0xff] (!%p15095_p1), %v1097_v11  ;;  %1114 = vst [vmem:[#allocation2 + $0x58] sm:$0xff] (!%p15095_p1), %v1098_v12  ;;  %v1100_v14 = vld [vmem:[#allocation4 + $0x68] sm:$0xff] (!%p15095_p1)  ;;  %v1101_v15 = vld [vmem:[#allocation4 + $0x70] sm:$0xff] (!%p15095_p1) }
 0x1fc   : > { %1115 = vst [vmem:[#allocation2 + $0x60] sm:$0xff] (!%p15095_p1), %v1099_v13  ;;  %1116 = vst [vmem:[#allocation2 + $0x68] sm:$0xff] (!%p15095_p1), %v1100_v14  ;;  %v1102_v16 = vld [vmem:[#allocation4 + $0x78] sm:$0xff] (!%p15095_p1) }
 0x1fd   : > { %1117 = vst [vmem:[#allocation2 + $0x70] sm:$0xff] %v1101_v15  ;;  %1118 = vst [vmem:[#allocation2 + $0x78] sm:$0xff] %v1102_v16 }
 0x1fe PF: > { %v1119_v17 = vld [vmem:[#allocation2] sm:$0xff]  ;;  %v1120_v18 = vld [vmem:[#allocation2 + $0x8] sm:$0xff]  ;;  %vm1521_vm0 = vcmask 1041408   ;;  %vm1496_vm1 = vcmask 31744   ;;  %s15097_s9 = sld [smem:[#allocation147_spill]]  ;;  %v9110_v52 = vld [vmem:[#allocation6 + $0x10] sm:$0xff]  }
 0x1ff   : > { %v1121_v19 = vld [vmem:[#allocation2 + $0x10] sm:$0xff]  ;;  %v10674_v20 = vpack.c.bf16 %v1120_v18, %v1119_v17  ;;  %v1122_v21 = vld [vmem:[#allocation2 + $0x18] sm:$0xff]  ;;  %v9108_v28 = vld [vmem:[#allocation6] sm:$0xff]   ;;  %s15101_s25 = sld [smem:[#allocation152_spill]]  ;;  %s15102_s1 = sld [smem:[#allocation151_spill]] }
 0x200   : > { %v10676_v22 = vpack.c.bf16 %v1122_v21, %v1121_v19  ;;  %v1123_v23 = vld [vmem:[#allocation2 + $0x20] sm:$0xff]  ;;  %v1124_v24 = vld [vmem:[#allocation2 + $0x28] sm:$0xff]  ;;  %8720 = vmatprep.mubr.bf16.mxu0 %v9108_v28  ;;  %v9114_v57 = vld [vmem:[#allocation6 + $0x30] sm:$0xff]   ;;  %p7959_p9 = scmp.ne.s32.totalorder %s10175_s0, 5 }
 0x201   : > { %8704 = vmatprep.subr.bf16.mxu0 %v10674_v20  ;;  %v1125_v25 = vld [vmem:[#allocation2 + $0x30] sm:$0xff]  ;;  %v10681_v26 = vpack.c.bf16 %v1124_v24, %v1123_v23  ;;  %v1126_v27 = vld [vmem:[#allocation2 + $0x38] sm:$0xff]  ;;  %v1448_v33 = vld [vmem:[%s10655_s4] sm:$0x3]  ;;  %s15117_s4 = sld [smem:[#allocation153_spill]]  ;;  %s15793_s28 = sld [smem:[#allocation163_spill]] (!%p7959_p9) }
 0x202   : > { %8705 = vmatpush3.bf16.msra.mxu0 %v10674_v20  ;;  %v10685_v29 = vpack.c.bf16 %v1126_v27, %v1125_v25  ;;  %v1127_v30 = vld [vmem:[#allocation2 + $0x40] sm:$0xff]  ;;  %v1128_v31 = vld [vmem:[#allocation2 + $0x48] sm:$0xff]  ;;  %8934 = vmatprep.subr.msk.bf16.mxu1 %vm1521_vm0, %v1448_v33  ;;  %v1523_v36 = vsel %vm1521_vm0, %v1448_v33, 0  ;;  %v9122_v61 = vld [vmem:[#allocation6 + $0x50] sm:$0xff]  }
 0x203   : > { %8706 = vmatprep.subr.bf16.mxu0 %v10676_v22  ;;  %v1129_v32 = vld [vmem:[#allocation2 + $0x50] sm:$0xff]  ;;  %v10690_v34 = vpack.c.bf16 %v1128_v31, %v1127_v30  ;;  %v1130_v35 = vld [vmem:[#allocation2 + $0x58] sm:$0xff]  ;;  %8753 = vmatpush3.bf16.msra.mxu1 %v1523_v36  ;;  %v9112_v55 = vld [vmem:[#allocation6 + $0x20] sm:$0xff]  }
 0x204   : > { %v9116_v37 = vld [vmem:[%s15097_s9] sm:$0xff]   ;;  %v9117_v38 = vld [vmem:[%s15097_s9 + $0x8] sm:$0xff]   ;;  %v10701_v40 = vpack.c.bf16 %v1130_v35, %v1129_v32  ;;  %v9120_v42 = vld [vmem:[%s15097_s9 + $0x10] sm:$0xff]   ;;  %v10020_v35 = vmov 0  }
 0x205   : > { %15096 = vst [vmem:[#allocation37_spill] sm:$0xff] %v10690_v34  ;;  %v1131_v39 = vld [vmem:[#allocation2 + $0x60] sm:$0xff]  ;;  %8754 = vmatprep.mubr.msk.bf16.mxu1 %vm1496_vm1, %v9116_v37  ;;  %v1132_v41 = vld [vmem:[#allocation2 + $0x68] sm:$0xff]  ;;  %v1133_v43 = vld [vmem:[#allocation2 + $0x70] sm:$0xff]  ;;  %9106 = vset.pattern.permute.xlu0 %v10020_v35 }
 0x206   : > { %8707 = vmatpush3.bf16.msra.mxu0 %v10676_v22  ;;  %15098 = vst [vmem:[#allocation38_spill] sm:$0xff] %v10701_v40  ;;  %8755 = vmatmul.mubr.msk.bf16.vlgmr.msra.gmra.mrb[0].mxu1 %vm1496_vm1, %v9117_v38  ;;  %v1134_v44 = vld [vmem:[#allocation2 + $0x78] sm:$0xff]  ;;  %v10710_v45 = vpack.c.bf16 %v1132_v41, %v1131_v39  ;;  %v9124_v47 = vld [vmem:[%s15097_s9 + $0x20] sm:$0xff]   ;;  %v9125_v49 = vld [vmem:[%s15097_s9 + $0x28] sm:$0xff]  }
 0x207   : > { %8708 = vmatprep.subr.bf16.mxu0 %v10681_v26  ;;  %8758 = vmatprep.mubr.msk.bf16.mxu1 %vm1496_vm1, %v9120_v42  ;;  %v9121_v46 = vld [vmem:[%s15097_s9 + $0x18] sm:$0xff]   ;;  %v10720_v48 = vpack.c.bf16 %v1134_v44, %v1133_v43  ;;  %v9109_v50 = vld [vmem:[#allocation6 + $0x8] sm:$0xff]   ;;  %v9118_v59 = vld [vmem:[#allocation6 + $0x40] sm:$0xff]  }
 0x208   : > { %15099 = vst [vmem:[#allocation39_spill] sm:$0xff] %v10710_v45  ;;  %v9128_v51 = vld [vmem:[%s15097_s9 + $0x30] sm:$0xff]   ;;  %v9129_v53 = vld [vmem:[%s15097_s9 + $0x38] sm:$0xff]   ;;  %v9126_v63 = vld [vmem:[#allocation6 + $0x60] sm:$0xff]   ;;  %9107 = vset.pattern.permute.xlu1 %v10020_v35 }
 0x209   : > { %15100 = vst [vmem:[#allocation40_spill] sm:$0xff] %v10720_v48  ;;  %v9111_v54 = vld [vmem:[#allocation6 + $0x18] sm:$0xff]   ;;  %v9113_v56 = vld [vmem:[#allocation6 + $0x28] sm:$0xff]   ;;  %v9130_v1 = vld [vmem:[#allocation6 + $0x70] sm:$0xff]  }
 0x20a   : > { %8709 = vmatpush3.bf16.msra.mxu0 %v10681_v26  ;;  %v9115_v58 = vld [vmem:[#allocation6 + $0x38] sm:$0xff]   ;;  %v9119_v60 = vld [vmem:[#allocation6 + $0x48] sm:$0xff]  }
 0x20b   : > { %8710 = vmatprep.subr.bf16.mxu0 %v10685_v29  ;;  %v9123_v62 = vld [vmem:[#allocation6 + $0x58] sm:$0xff]   ;;  %v9127_v0 = vld [vmem:[#allocation6 + $0x68] sm:$0xff]  }
 0x20c   : > { %v9131_v2 = vld [vmem:[#allocation6 + $0x78] sm:$0xff]   ;;  %v9132_v3 = vld [vmem:[%s10664_s6 + $0x80] sm:$0xff]   ;;  %v9141_v12 = vld [vmem:[%s10664_s6 + $0x98] sm:$0xff]  }
 0x20d   : > { %v9133_v4 = vld [vmem:[%s10664_s6 + $0x40] sm:$0xff]   ;;  %v9135_v6 = vld [vmem:[%s10664_s6 + $0x88] sm:$0xff]   ;;  %v9138_v9 = vld [vmem:[%s10664_s6 + $0x90] sm:$0xff]  }
 0x20e   : > { %8711 = vmatpush3.bf16.msra.mxu0 %v10685_v29  ;;  %8759 = vmatmul.mubr.msk.bf16.gmra.mrb[4].mxu1 %vm1496_vm1, %v9121_v46  ;;  %v9134_v5 = vld [vmem:[%s10664_s6] sm:$0xff]   ;;  %v9136_v7 = vld [vmem:[%s10664_s6 + $0x48] sm:$0xff]   ;;  %v9139_v10 = vld [vmem:[%s10664_s6 + $0x50] sm:$0xff]  }
 0x20f   : > { %8712 = vmatprep.subr.bf16.mxu0 %v10690_v34  ;;  %8762 = vmatprep.mubr.msk.bf16.mxu1 %vm1496_vm1, %v9124_v47  ;;  %v9137_v8 = vld [vmem:[%s10664_s6 + $0x8] sm:$0xff]   ;;  %v9140_v11 = vld [vmem:[%s10664_s6 + $0x10] sm:$0xff]   ;;  %v9142_v13 = vld [vmem:[%s10664_s6 + $0x58] sm:$0xff]  }
 0x210   : > { %8027 = vmatprep.subr.bf16.mxu1 %v9133_v4  ;;  %v9143_v14 = vld [vmem:[%s10664_s6 + $0x18] sm:$0xff]   ;;  %v9144_v15 = vld [vmem:[%s10664_s6 + $0xa0] sm:$0xff]   ;;  %v9147_v18 = vld [vmem:[%s10664_s6 + $0xa8] sm:$0xff]  }
 0x211   : > { %8028 = vmatpush3.bf16.msra.mxu1 %v9134_v5  ;;  %v9145_v16 = vld [vmem:[%s10664_s6 + $0x60] sm:$0xff]   ;;  %v9148_v19 = vld [vmem:[%s10664_s6 + $0x68] sm:$0xff]   ;;  %v9150_v23 = vld [vmem:[%s10664_s6 + $0xb0] sm:$0xff]  }
 0x212   : > { %8713 = vmatpush3.bf16.msra.mxu0 %v10690_v34  ;;  %8029 = vmatprep.subr.bf16.mxu1 %v9136_v7  ;;  %v9146_v17 = vld [vmem:[%s10664_s6 + $0x20] sm:$0xff]   ;;  %v9149_v21 = vld [vmem:[%s10664_s6 + $0x28] sm:$0xff]   ;;  %v9151_v24 = vld [vmem:[%s10664_s6 + $0x70] sm:$0xff]  }
 0x213   : > { %8714 = vmatprep.subr.bf16.mxu0 %v10701_v40  ;;  %v9152_v25 = vld [vmem:[%s10664_s6 + $0x30] sm:$0xff]   ;;  %v9153_v27 = vld [vmem:[%s10664_s6 + $0xb8] sm:$0xff]   ;;  %v10771_v32 = vld [vmem:[%s15101_s25 + $0x10] sm:$0xff] }
 0x214   : > { %v9154_v28 = vld [vmem:[%s10664_s6 + $0x78] sm:$0xff]   ;;  %v2065_v37 = vmax.f32 %v10771_v32, 1.0  ;;  %v10785_v38 = vld [vmem:[%s15101_s25 + $0x18] sm:$0xff]  ;;  %v10812_v47 = vld [vmem:[%s15101_s25 + $0x30] sm:$0xff]  ;;  %vm3227_vm12 = vcmp.gt.f32.partialorder %v10771_v32, 0.0 }
 0x215   : > { %8030 = vmatpush3.bf16.msra.mxu1 %v9137_v8  ;;  %v9155_v30 = vld [vmem:[%s10664_s6 + $0x38] sm:$0xff]   ;;  %v2066_v41 = vmax.f32 %v10785_v38, 1.0  ;;  %v10863_v5 = vld [vmem:[%s15101_s25 + $0x50] sm:$0xff]  ;;  %v10869_v8 = vld [vmem:[%s15101_s25 + $0x58] sm:$0xff]  ;;  %vm3228_vm13 = vcmp.gt.f32.partialorder %v10785_v38, 0.0 }
 0x216   : > { %8715 = vmatpush3.bf16.msra.mxu0 %v10701_v40  ;;  %8763 = vmatmul.mubr.msk.bf16.gmra.mrb[8].mxu1 %vm1496_vm1, %v9125_v49  ;;  %v10766_v31 = vld [vmem:[%s15101_s25] sm:$0xff]  ;;  %v10776_v33 = vld [vmem:[%s15101_s25 + $0x8] sm:$0xff]  ;;  %v10817_v49 = vld [vmem:[%s15101_s25 + $0x38] sm:$0xff] }
 0x217   : > { %8716 = vmatprep.subr.bf16.mxu0 %v10710_v45  ;;  %8766 = vmatprep.mubr.msk.bf16.mxu1 %vm1496_vm1, %v9128_v51  ;;  %v2063_v36 = vmax.f32 %v10766_v31, 1.0  ;;  %v2064_v39 = vmax.f32 %v10776_v33, 1.0  ;;  %v10796_v42 = vld [vmem:[%s15101_s25 + $0x20] sm:$0xff]  ;;  %v10801_v43 = vld [vmem:[%s15101_s25 + $0x28] sm:$0xff]  ;;  %v14710_v51 = vmax.f32 %v10817_v49, 1.0  ;;  %vm3225_vm6 = vcmp.gt.f32.partialorder %v10766_v31, 0.0 }
 0x218   : > { %8031 = vmatprep.subr.bf16.mxu1 %v9139_v10  ;;  %2292 = vperm.xlu1 %9107, %v2065_v37   ;;  %v14713_v44 = vmax.f32 %v10796_v42, 1.0  ;;  %v14712_v46 = vmax.f32 %v10801_v43, 1.0  ;;  %vm3226_vm7 = vcmp.gt.f32.partialorder %v10776_v33, 0.0  ;;  %v2881_v33 = vld [vmem:[%s15102_s1 + $0x40] sm:$0xff]  ;;  %v2883_v32 = vld [vmem:[%s15102_s1 + $0x50] sm:$0xff] }
 0x219   : > { %8032 = vmatpush3.bf16.msra.mxu1 %v9140_v11  ;;  %2282 = vperm.xlu0 %9106, %v2063_v36   ;;  %v14707_v11 = vmax.f32 %v10863_v5, 1.0  ;;  %v2899_v38 = vld [vmem:[%s15102_s1 + $0xd0] sm:$0xff] }
 0x21a   : > { %8717 = vmatpush3.bf16.msra.mxu0 %v10710_v45  ;;  %8033 = vmatprep.subr.bf16.mxu1 %v9142_v13 }
 0x21b   : > { %8718 = vmatprep.subr.bf16.mxu0 %v10720_v48 }
 0x21c   : > { %2297 = vperm.xlu1 %9107, %v2066_v41  }
 0x21d   : > { %8034 = vmatpush3.bf16.msra.mxu1 %v9143_v14  ;;  %2287 = vperm.xlu0 %9106, %v2064_v39  }
 0x21e   : > { %8719 = vmatpush3.bf16.msra.mxu0 %v10720_v48  ;;  %8767 = vmatmul.mubr.msk.bf16.gmra.mrb[12].mxu1 %vm1496_vm1, %v9129_v53  ;;  %v10833_v53 = vld [vmem:[%s15101_s25 + $0x48] sm:$0xff] }
 0x21f   : > { %8770 = vmatprep.subr.bf16.mxu0 %v9132_v3  ;;  %8035 = vmatprep.subr.bf16.mxu1 %v9145_v16 }
 0x220   : > { %2307 = vperm.xlu1 %9107, %v14712_v46  }
 0x221   : > { %8721 = vmatmul.mubr.bf16.vlgmr.msra.gmra.mrb[0].mxu0 %v9109_v50  ;;  %8036 = vmatpush3.bf16.msra.mxu1 %v9146_v17  ;;  %v14711_v50 = vmax.f32 %v10812_v47, 1.0 }
 0x222   : > { %8724 = vmatprep.mubr.bf16.mxu0 %v9110_v52  ;;  %8771 = vmatpush3.bf16.msra.mxu0 %v9132_v3  ;;  %v10828_v52 = vld [vmem:[%s15101_s25 + $0x40] sm:$0xff] }
 0x223   : > { %8772 = vmatprep.subr.bf16.mxu0 %v9135_v6  ;;  %8037 = vmatprep.subr.bf16.mxu1 %v9148_v19 }
 0x224   : > { %2302 = vperm.xlu0 %9106, %v14713_v44   ;;  %2317 = vperm.xlu1 %9107, %v14710_v51  }
 0x225   : > { %8038 = vmatpush3.bf16.msra.mxu1 %v9149_v21 }
 0x226   : > { %8773 = vmatpush3.bf16.msra.mxu0 %v9135_v6  ;;  %8039 = vmatprep.subr.bf16.mxu1 %v9151_v24 }
 0x227   : > { %8774 = vmatprep.subr.bf16.mxu0 %v9138_v9 }
 0x228   : > { %2312 = vperm.xlu0 %9106, %v14711_v50   ;;  %v2895_v50 = vld [vmem:[%s15102_s1 + $0xb0] sm:$0xff] }
 0x229   : > { %8725 = vmatmul.mubr.bf16.gmra.mrb[4].mxu0 %v9111_v54  ;;  %8040 = vmatpush3.bf16.msra.mxu1 %v9152_v25  ;;  %v10837_v54 = vld [vmem:[%s939_s15] ss:$0 sm:$0xff] }
 0x22a   : > { %8728 = vmatprep.mubr.bf16.mxu0 %v9112_v55  ;;  %8775 = vmatpush3.bf16.msra.mxu0 %v9138_v9  ;;  %v2873_v55 = vld [vmem:[%s15102_s1] sm:$0xff] }
 0x22b   : > { %8776 = vmatprep.subr.bf16.mxu0 %v9141_v12  ;;  %8041 = vmatprep.subr.bf16.mxu1 %v9154_v28  ;;  %vm2905_vm2 = vcmp.gt.f32.partialorder %v2873_v55, 0.5  ;;  %v2889_v9 = vld [vmem:[%s15102_s1 + $0x80] sm:$0xff]  ;;  %v2875_v28 = vld [vmem:[%s15102_s1 + $0x10] sm:$0xff]  ;;  %v2876_v55 = vld [vmem:[%s15102_s1 + $0x18] sm:$0xff] }
 0x22c   : > { %v2921_v4 = vsel %vm2905_vm2, 1, %v10020_v35  ;;  %vm3065_vm4 = vcmp.gt.f32.partialorder %v2889_v9, 0.5  ;;  %vm2907_vm8 = vcmp.gt.f32.partialorder %v2875_v28, 0.5  ;;  %vm2908_vm9 = vcmp.gt.f32.partialorder %v2876_v55, 0.5 }
 0x22d   : > { %8042 = vmatpush3.bf16.msra.mxu1 %v9155_v30  ;;  %v3081_v24 = vsel %vm3065_vm4, 1, %v10020_v35  ;;  %vm3229_vm2 = vcmp.gt.f32.partialorder %v10796_v42, 0.0 }
 0x22e   : > { %8777 = vmatpush3.bf16.msra.mxu0 %v9141_v12  ;;  %v2890_v12 = vld [vmem:[%s15102_s1 + $0x88] sm:$0xff] }
 0x22f   : > { %8778 = vmatprep.subr.bf16.mxu0 %v9144_v15  ;;  %vm3066_vm5 = vcmp.gt.f32.partialorder %v2890_v12, 0.5  ;;  %v2923_v12 = vsel %vm2907_vm8, 1, %v10020_v35  ;;  %vm3231_vm8 = vcmp.gt.f32.partialorder %v10812_v47, 0.0 }
 0x231   : > { %8729 = vmatmul.mubr.bf16.gmra.mrb[8].mxu0 %v9113_v56 }
 0x232   : > { %8732 = vmatprep.mubr.bf16.mxu0 %v9114_v57  ;;  %8779 = vmatpush3.bf16.msra.mxu0 %v9144_v15  ;;  %v14709_v57 = vmax.f32 %v10828_v52, 1.0  ;;  %v14704_v15 = vmax.f32 %v10869_v8, 1.0 }
 0x233   : > { %8780 = vmatprep.subr.bf16.mxu0 %v9147_v18 }
 0x234   : > { %2322 = vperm.xlu0 %9106, %v14709_v57  }
 0x236   : > { %8781 = vmatpush3.bf16.msra.mxu0 %v9147_v18 }
 0x237   : > { %8782 = vmatprep.subr.bf16.mxu0 %v9150_v23 }
 0x238   : > { %2938 = vperm.xlu0 %9106, %v2921_v4  }
 0x239   : > { %8733 = vmatmul.mubr.bf16.gmra.mrb[12].mxu0 %v9115_v58  ;;  %v14708_v58 = vmax.f32 %v10833_v53, 1.0 }
 0x23a   : > { %8736 = vmatprep.mubr.bf16.mxu0 %v9118_v59  ;;  %8783 = vmatpush3.bf16.msra.mxu0 %v9150_v23  ;;  %v2874_v59 = vld [vmem:[%s15102_s1 + $0x8] sm:$0xff] }
 0x23b   : > { %8784 = vmatprep.subr.bf16.mxu0 %v9153_v27  ;;  %vm2906_vm3 = vcmp.gt.f32.partialorder %v2874_v59, 0.5  ;;  %2327 = vperm.xlu1 %9107, %v14708_v58  }
 0x23c   : > { %v2922_v7 = vsel %vm2906_vm3, 1, %v10020_v35  ;;  %2332 = vperm.xlu0 %9106, %v14707_v11   ;;  %vm3230_vm3 = vcmp.gt.f32.partialorder %v10801_v43, 0.0  ;;  %v3245_v11 = vsel %vm3229_vm2, 1, %v10020_v35  ;;  %vm3075_vm2 = vcmp.gt.f32.partialorder %v2899_v38, 0.5 }
 0x23d   : > { %v3246_v57 = vsel %vm3230_vm3, 1, %v10020_v35 }
 0x23e   : > { %8785 = vmatpush3.bf16.msra.mxu0 %v9153_v27  ;;  %v3082_v27 = vsel %vm3066_vm5, 1, %v10020_v35 }
 0x23f   : > { %2941 = vperm.xlu1 %9107, %v2922_v7  }
 0x240   : > { %3098 = vperm.xlu0 %9106, %v3081_v24   ;;  %v2892_v24 = vld [vmem:[%s15102_s1 + $0x98] sm:$0xff] }
 0x241   : > { %8737 = vmatmul.mubr.bf16.gmra.mrb[16].mxu0 %v9119_v60  ;;  %vm3068_vm11 = vcmp.gt.f32.partialorder %v2892_v24, 0.5 }
 0x242   : > { %8740 = vmatprep.mubr.bf16.mxu0 %v9122_v61 }
 0x243   : > { %2337 = vperm.xlu1 %9107, %v14704_v15  }
 0x247   : > { %3101 = vperm.xlu1 %9107, %v3082_v27  }
 0x249   : > { %8741 = vmatmul.mubr.bf16.gmra.mrb[20].mxu0 %v9123_v62 }
 0x24a   : > { %8744 = vmatprep.mubr.bf16.mxu0 %v9126_v63 }
 0x251   : > { %8745 = vmatmul.mubr.bf16.gmra.mrb[24].mxu0 %v9127_v0 }
 0x252   : > { %8748 = vmatprep.mubr.bf16.mxu0 %v9130_v1 }
 0x259   : > { %8749 = vmatmul.mubr.bf16.gmra.mrb[28].mxu0 %v9131_v2 }
 0x2d9   : > { %v8756_v56 = vpop.f32.mrb[0].mxu1 }
 0x2da   : > { %v1568_v60 = vadd.f32 %v8756_v56, %v10837_v54  ;;  %v1559_v61 = vpop.f32.mrb[1].mxu1 }
 0x2db   : > { %v1560_v62 = vadd.f32 %v10837_v54, %v1559_v61  ;;  %v8757_v63 = vpop.f32.mrb[2].mxu1 }
 0x2dc   : > { %v1571_v0 = vadd.f32 %v8757_v63, %v10837_v54  ;;  %v1562_v1 = vpop.f32.mrb[3].mxu1 }
 0x2dd   : > { %v1563_v2 = vadd.f32 %v10837_v54, %v1562_v1 }
 0x2de   : > { %v1639_v3 = vpack.c.bf16 %v1571_v0, %v1568_v60  ;;  %v3241_v60 = vsel %vm3225_vm6, 1, %v10020_v35  ;;  %v3242_v0 = vsel %vm3226_vm7, 1, %v10020_v35  ;;  %vm3071_vm6 = vcmp.gt.f32.partialorder %v2895_v50, 0.5 }
 0x2df   : > { %v1638_v6 = vpack.c.bf16 %v1563_v2, %v1560_v62  ;;  %3258 = vperm.xlu0 %9106, %v3241_v60   ;;  %3261 = vperm.xlu1 %9107, %v3242_v0  }
 0x2e1   : > { %8786 = vmatprep.mubr.bf16.mxu0 %v1638_v6  ;;  %v8760_v10 = vpop.f32.mrb[4].mxu1 }
 0x2e2   : > { %8787 = vmatmul.mubr.bf16.vlgmr.msra.gmra.mrb[32].mxu0 %v1639_v3  ;;  %v1584_v13 = vadd.f32 %v8760_v10, %v10837_v54  ;;  %v1575_v14 = vpop.f32.mrb[5].mxu1 }
 0x2e3   : > { %v1576_v16 = vadd.f32 %v10837_v54, %v1575_v14  ;;  %v8761_v17 = vpop.f32.mrb[6].mxu1  ;;  %2944 = vperm.xlu0 %9106, %v2923_v12  }
 0x2e4   : > { %v1587_v18 = vadd.f32 %v8761_v17, %v10837_v54  ;;  %v1578_v19 = vpop.f32.mrb[7].mxu1  ;;  %v2924_v17 = vsel %vm2908_vm9, 1, %v10020_v35  ;;  %vm3232_vm9 = vcmp.gt.f32.partialorder %v10817_v49, 0.0 }
 0x2e5   : > { %v1579_v21 = vadd.f32 %v10837_v54, %v1578_v19  ;;  %v2891_v19 = vld [vmem:[%s15102_s1 + $0x90] sm:$0xff]  ;;  %2947 = vperm.xlu1 %9107, %v2924_v17   ;;  %v2877_v17 = vld [vmem:[%s15102_s1 + $0x20] sm:$0xff] }
 0x2e6   : > { %v1641_v23 = vpack.c.bf16 %v1587_v18, %v1584_v13  ;;  %v10917_v13 = vld [vmem:[%s15101_s25 + $0x60] sm:$0xff]  ;;  %v10925_v18 = vld [vmem:[%s15101_s25 + $0x68] sm:$0xff]  ;;  %vm3067_vm10 = vcmp.gt.f32.partialorder %v2891_v19, 0.5  ;;  %vm2909_vm14 = vcmp.gt.f32.partialorder %v2877_v17, 0.5 }
 0x2e7   : > { %v1640_v25 = vpack.c.bf16 %v1579_v21, %v1576_v16  ;;  %v14702_v28 = vmax.f32 %v10925_v18, 1.0  ;;  %v2878_v19 = vld [vmem:[%s15102_s1 + $0x28] sm:$0xff] }
 0x2e8   : > { %vm2910_vm15 = vcmp.gt.f32.partialorder %v2878_v19, 0.5  ;;  %v2894_v19 = vld [vmem:[%s15102_s1 + $0xa8] sm:$0xff] }
 0x2e9   : > { %8790 = vmatprep.mubr.bf16.mxu0 %v1640_v25  ;;  %v8764_v30 = vpop.f32.mrb[8].mxu1  ;;  %2347 = vperm.xlu1 %9107, %v14702_v28   ;;  %vm3070_vm1 = vcmp.gt.f32.partialorder %v2894_v19, 0.5 }
 0x2ea   : > { %8791 = vmatmul.mubr.bf16.gmra.mrb[36].mxu0 %v1641_v23  ;;  %v1600_v56 = vadd.f32 %v8764_v30, %v10837_v54  ;;  %v1591_v59 = vpop.f32.mrb[9].mxu1  ;;  %v14703_v23 = vmax.f32 %v10917_v13, 1.0  ;;  %v3086_v19 = vsel %vm3070_vm1, 1, %v10020_v35 }
 0x2eb   : > { %v1592_v62 = vadd.f32 %v10837_v54, %v1591_v59  ;;  %v8765_v63 = vpop.f32.mrb[10].mxu1 }
 0x2ec   : > { %v1603_v2 = vadd.f32 %v8765_v63, %v10837_v54  ;;  %v1594_v3 = vpop.f32.mrb[11].mxu1  ;;  %2342 = vperm.xlu0 %9106, %v14703_v23  }
 0x2ed   : > { %v1595_v6 = vadd.f32 %v10837_v54, %v1594_v3 }
 0x2ee   : > { %v1643_v10 = vpack.c.bf16 %v1603_v2, %v1600_v56 }
 0x2ef   : > { %v1642_v16 = vpack.c.bf16 %v1595_v6, %v1592_v62 }
 0x2f1   : > { %8794 = vmatprep.mubr.bf16.mxu0 %v1642_v16  ;;  %v8768_v21 = vpop.f32.mrb[12].mxu1 }
 0x2f2   : > { %8795 = vmatmul.mubr.bf16.gmra.mrb[40].mxu0 %v1643_v10  ;;  %v1616_v25 = vadd.f32 %v8768_v21, %v10837_v54  ;;  %v1607_v27 = vpop.f32.mrb[13].mxu1  ;;  %v3083_v10 = vsel %vm3067_vm10, 1, %v10020_v35  ;;  %v3243_v21 = vsel %vm3227_vm12, 1, %v10020_v35  ;;  %vm2913_vm10 = vcmp.gt.f32.partialorder %v2881_v33, 0.5 }
 0x2f3   : > { %v1608_v55 = vadd.f32 %v10837_v54, %v1607_v27  ;;  %v8769_v56 = vpop.f32.mrb[14].mxu1  ;;  %3104 = vperm.xlu0 %9106, %v3083_v10   ;;  %v2926_v10 = vsel %vm2910_vm15, 1, %v10020_v35  ;;  %vm3234_vm15 = vcmp.gt.f32.partialorder %v10833_v53, 0.0 }
 0x2f4   : > { %v10899_v61 = vpop.f32.mrb[0].mxu0  ;;  %v1619_v60 = vadd.f32 %v8769_v56, %v10837_v54  ;;  %v1610_v62 = vpop.f32.mrb[15].mxu1 }
 0x2f5   : > { %v10903_v1 = vpop.f32.mrb[1].mxu0  ;;  %v1611_v0 = vadd.f32 %v10837_v54, %v1610_v62  ;;  %v3084_v54 = vsel %vm3068_vm11, 1, %v10020_v35  ;;  %v2925_v62 = vsel %vm2909_vm14, 1, %v10020_v35  ;;  %vm3233_vm14 = vcmp.gt.f32.partialorder %v10828_v52, 0.0 }
 0x2f6   : > { %v10906_v4 = vpop.f32.mrb[2].mxu0  ;;  %v1645_v6 = vpack.c.bf16 %v1619_v60, %v1616_v25  ;;  %3107 = vperm.xlu1 %9107, %v3084_v54   ;;  %v3244_v25 = vsel %vm3228_vm13, 1, %v10020_v35  ;;  %v2893_v54 = vld [vmem:[%s15102_s1 + $0xa0] sm:$0xff] }
 0x2f7   : > { %v1623_v7 = vpack.c.bf16 %v10906_v4, %v10899_v61  ;;  %v10911_v9 = vpop.f32.mrb[3].mxu0  ;;  %v1644_v16 = vpack.c.bf16 %v1611_v0, %v1608_v55  ;;  %3264 = vperm.xlu0 %9106, %v3243_v21   ;;  %v10981_v0 = vld [vmem:[%s15101_s25 + $0x70] sm:$0xff]  ;;  %vm3069_vm0 = vcmp.gt.f32.partialorder %v2893_v54, 0.5 }
 0x2f8   : > { %v1622_v14 = vpack.c.bf16 %v10911_v9, %v10903_v1  ;;  %v14705_v17 = vmax.f32 %v10981_v0, 1.0  ;;  %v3248_v9 = vsel %vm3232_vm9, 1, %v10020_v35 }
 0x2f9   : > { %8798 = vmatprep.mubr.bf16.mxu0 %v1644_v16  ;;  %v10989_v16 = vld [vmem:[%s15101_s25 + $0x78] sm:$0xff] }
 0x2fa   : > { %8799 = vmatmul.mubr.bf16.gmra.mrb[44].mxu0 %v1645_v6  ;;  %3267 = vperm.xlu1 %9107, %v3244_v25   ;;  %v14706_v21 = vmax.f32 %v10989_v16, 1.0 }
 0x2fb   : > { %2950 = vperm.xlu0 %9106, %v2925_v62  }
 0x2fc   : > { %v10936_v30 = vpop.f32.mrb[4].mxu0 }
 0x2fd   : > { %v10939_v59 = vpop.f32.mrb[5].mxu0 }
 0x2fe   : > { %v10942_v63 = vpop.f32.mrb[6].mxu0  ;;  %2953 = vperm.xlu1 %9107, %v2926_v10   ;;  %v3085_v10 = vsel %vm3069_vm0, 1, %v10020_v35  ;;  %vm2915_vm0 = vcmp.gt.f32.partialorder %v2883_v32, 0.5  ;;  %v15109_v32 = vmax.f32 %v10828_v52, 1.0  ;;  %v15111_v52 = vmax.f32 %v10863_v5, 1.0 }
 0x2ff   : > { %v1625_v2 = vpack.c.bf16 %v10942_v63, %v10936_v30  ;;  %v10949_v3 = vpop.f32.mrb[7].mxu0  ;;  %2352 = vperm.xlu0 %9106, %v14705_v17   ;;  %v2879_v17 = vld [vmem:[%s15102_s1 + $0x30] sm:$0xff] }
 0x300   : > { %v1624_v12 = vpack.c.bf16 %v10949_v3, %v10939_v59  ;;  %vm2911_vm4 = vcmp.gt.f32.partialorder %v2879_v17, 0.5  ;;  %v3356_v59 = vadd.f32 1.0, %v2066_v41  ;;  %v2884_v3 = vld [vmem:[%s15102_s1 + $0x58] sm:$0xff] }
 0x301   : > { %v2927_v62 = vsel %vm2911_vm4, 1, %v10020_v35  ;;  %vm2916_vm1 = vcmp.gt.f32.partialorder %v2884_v3, 0.5  ;;  %v2900_v41 = vld [vmem:[%s15102_s1 + $0xd8] sm:$0xff]  ;;  %vm3235_vm4 = vcmp.gt.f32.partialorder %v10863_v5, 0.0 }
 0x302   : > { %2357 = vperm.xlu1 %9107, %v14706_v21   ;;  %v2880_v21 = vld [vmem:[%s15102_s1 + $0x38] sm:$0xff]  ;;  %vm3076_vm3 = vcmp.gt.f32.partialorder %v2900_v41, 0.5 }
 0x303   : > { %3110 = vperm.xlu0 %9106, %v3085_v10   ;;  %vm2912_vm5 = vcmp.gt.f32.partialorder %v2880_v21, 0.5  ;;  %v2896_v10 = vld [vmem:[%s15102_s1 + $0xb8] sm:$0xff]  ;;  %v3353_v21 = vadd.f32 1.0, %v2063_v36 }
 0x304   : > { %v10966_v24 = vpop.f32.mrb[8].mxu0  ;;  %v2928_v17 = vsel %vm2912_vm5, 1, %v10020_v35  ;;  %vm3072_vm7 = vcmp.gt.f32.partialorder %v2896_v10, 0.5  ;;  %vm3236_vm5 = vcmp.gt.f32.partialorder %v10869_v8, 0.0 }
 0x305   : > { %v10969_v27 = vpop.f32.mrb[9].mxu0  ;;  %v3088_v50 = vsel %vm3072_vm7, 1, %v10020_v35  ;;  %9316 = vlog2.f32 %v3353_v21 }
 0x306   : > { %v10971_v55 = vpop.f32.mrb[10].mxu0  ;;  %3113 = vperm.xlu1 %9107, %v3086_v19  }
 0x307   : > { %v1627_v56 = vpack.c.bf16 %v10971_v55, %v10966_v24  ;;  %v10975_v60 = vpop.f32.mrb[11].mxu0  ;;  %3270 = vperm.xlu0 %9106, %v3245_v11   ;;  %v3354_v11 = vadd.f32 1.0, %v2064_v39  ;;  %v2882_v39 = vld [vmem:[%s15102_s1 + $0x48] sm:$0xff] }
 0x308   : > { %v1626_v6 = vpack.c.bf16 %v10975_v60, %v10969_v27  ;;  %vm2914_vm11 = vcmp.gt.f32.partialorder %v2882_v39, 0.5 }
 0x309   : > { %9318 = vlog2.f32 %v3354_v11 }
 0x30a   : > { %3273 = vperm.xlu1 %9107, %v3246_v57  }
 0x30b   : > { %2956 = vperm.xlu0 %9106, %v2927_v62   ;;  %v2898_v62 = vld [vmem:[%s15102_s1 + $0xc8] sm:$0xff] }
 0x30c   : > { %v10999_v25 = vpop.f32.mrb[12].mxu0  ;;  %vm3074_vm13 = vcmp.gt.f32.partialorder %v2898_v62, 0.5  ;;  %v2932_v62 = vsel %vm2916_vm1, 1, %v10020_v35  ;;  %vm3240_vm1 = vcmp.gt.f32.partialorder %v10989_v16, 0.0 }
 0x30d   : > { %v11001_v28 = vpop.f32.mrb[13].mxu0 }
 0x30e   : > { %v11003_v23 = vpop.f32.mrb[14].mxu0  ;;  %2959 = vperm.xlu1 %9107, %v2928_v17  }
 0x30f   : > { %v11009_v15 = vpop.f32.mrb[15].mxu0  ;;  %v9317_v11 = vpop.eup %9316  ;;  %v15104_v60 = vpack.c.bf16 %v11003_v23, %v10999_v25  ;;  %v3252_v23 = vsel %vm3236_vm5, 1, %v10020_v35 }
 0x310   : > { %v11069_v33 = vmul.f32 0.6931472, %v9317_v11  ;;  %v15103_v27 = vpack.c.bf16 %v11009_v15, %v11001_v28  ;;  %v15106_v11 = vmax.f32 %v10801_v43, 1.0  ;;  %v2885_v15 = vld [vmem:[%s15102_s1 + $0x60] sm:$0xff] }
 0x311   : > { %v2901_v43 = vld [vmem:[%s15102_s1 + $0xe0] sm:$0xff] }
 0x312   : > { %3119 = vperm.xlu1 %9107, %v3088_v50   ;;  %v3358_v24 = vadd.f32 1.0, %v15106_v11 }
 0x313   : > { %v9319_v61 = vpop.eup %9318 }
 0x314   : > { %v8738_v58 = vpop.f32.mrb[16].mxu0 }
 0x315   : > { %v1369_v51 = vpop.f32.mrb[17].mxu0 }
 0x316   : > { %v8739_v46 = vpop.f32.mrb[18].mxu0  ;;  %3279 = vperm.xlu1 %9107, %v3248_v9   ;;  %v3250_v9 = vsel %vm3234_vm15, 1, %v10020_v35 }
 0x317   : > { %v1631_v44 = vpack.c.bf16 %v8739_v46, %v8738_v58  ;;  %v1372_v19 = vpop.f32.mrb[19].mxu0  ;;  %v3087_v46 = vsel %vm3071_vm6, 1, %v10020_v35  ;;  %v3247_v58 = vsel %vm3231_vm8, 1, %v10020_v35  ;;  %vm2917_vm6 = vcmp.gt.f32.partialorder %v2885_v15, 0.5 }
 0x318   : > { %v1630_v54 = vpack.c.bf16 %v1372_v19, %v1369_v51  ;;  %3116 = vperm.xlu0 %9106, %v3087_v46   ;;  %v2930_v19 = vsel %vm2914_vm11, 1, %v10020_v35  ;;  %v2933_v28 = vsel %vm2917_vm6, 1, %v10020_v35  ;;  %vm3077_vm8 = vcmp.gt.f32.partialorder %v2901_v43, 0.5 }
 0x319   : > { %v3093_v25 = vsel %vm3077_vm8, 1, %v10020_v35  ;;  %vm3238_vm11 = vcmp.gt.f32.partialorder %v10925_v18, 0.0 }
 0x31a   : > { %1877 = vmatprep.mubr.bf16.mxu1 %v1630_v54  ;;  %v2929_v54 = vsel %vm2913_vm10, 1, %v10020_v35  ;;  %2965 = vperm.xlu1 %9107, %v2930_v19   ;;  %v3092_v19 = vsel %vm3076_vm3, 1, %v10020_v35  ;;  %vm3237_vm10 = vcmp.gt.f32.partialorder %v10917_v13, 0.0 }
 0x31b   : > { %1878 = vmatmul.mubr.bf16.vlgmr.msra.gmra.mrb[16].mxu1 %v1622_v14  ;;  %v2897_v14 = vld [vmem:[%s15102_s1 + $0xc0] sm:$0xff] }
 0x31c   : > { %1885 = vmatprep.mubr.bf16.mxu1 %v1631_v44  ;;  %v8742_v51 = vpop.f32.mrb[20].mxu0  ;;  %3276 = vperm.xlu0 %9106, %v3247_v58   ;;  %vm3073_vm12 = vcmp.gt.f32.partialorder %v2897_v14, 0.5  ;;  %v3249_v58 = vsel %vm3233_vm14, 1, %v10020_v35  ;;  %v2931_v14 = vsel %vm2915_vm0, 1, %v10020_v35  ;;  %vm3239_vm0 = vcmp.gt.f32.partialorder %v10981_v0, 0.0 }
 0x31d   : > { %v1385_v31 = vpop.f32.mrb[21].mxu0  ;;  %v3089_v50 = vsel %vm3073_vm12, 1, %v10020_v35  ;;  %v3255_v11 = vsel %vm3239_vm0, 1, %v10020_v35 }
 0x31e   : > { %v8743_v36 = vpop.f32.mrb[22].mxu0 }
 0x31f   : > { %v1633_v44 = vpack.c.bf16 %v8743_v36, %v8742_v51  ;;  %v1388_v57 = vpop.f32.mrb[23].mxu0  ;;  %v11074_v36 = vmul.f32 0.6931472, %v9319_v61 }
 0x320   : > { %v1632_v1 = vpack.c.bf16 %v1388_v57, %v1385_v31  ;;  %2962 = vperm.xlu0 %9106, %v2929_v54   ;;  %v3355_v31 = vadd.f32 1.0, %v2065_v37 }
 0x322   : > { %9320 = vlog2.f32 %v3355_v31  ;;  %v15108_v31 = vmax.f32 %v10817_v49, 1.0  ;;  %v3254_v49 = vsel %vm3238_vm11, 1, %v10020_v35 }
 0x323   : > { %1886 = vmatmul.mubr.bf16.gmra.mrb[20].mxu1 %v1623_v7  ;;  %v3090_v7 = vsel %vm3074_vm13, 1, %v10020_v35  ;;  %9322 = vlog2.f32 %v3356_v59  ;;  %v2887_v59 = vld [vmem:[%s15102_s1 + $0x70] sm:$0xff] }
 0x324   : > { %1893 = vmatprep.mubr.bf16.mxu1 %v1632_v1  ;;  %v8746_v10 = vpop.f32.mrb[24].mxu0  ;;  %3122 = vperm.xlu0 %9106, %v3089_v50   ;;  %v2902_v50 = vld [vmem:[%s15102_s1 + $0xe8] sm:$0xff]  ;;  %vm2919_vm12 = vcmp.gt.f32.partialorder %v2887_v59, 0.5 }
 0x325   : > { %v1401_v17 = vpop.f32.mrb[25].mxu0  ;;  %3125 = vperm.xlu1 %9107, %v3090_v7   ;;  %vm3078_vm9 = vcmp.gt.f32.partialorder %v2902_v50, 0.5  ;;  %v2935_v3 = vsel %vm2919_vm12, 1, %v10020_v35 }
 0x326   : > { %v8747_v21 = vpop.f32.mrb[26].mxu0  ;;  %v3094_v7 = vsel %vm3078_vm9, 1, %v10020_v35 }
 0x327   : > { %v1635_v46 = vpack.c.bf16 %v8747_v21, %v8746_v10  ;;  %v1404_v51 = vpop.f32.mrb[27].mxu0  ;;  %v3091_v10 = vsel %vm3075_vm2, 1, %v10020_v35  ;;  %vm5897_vm2 = vcmask 7168  }
 0x328   : > { %v1634_v4 = vpack.c.bf16 %v1404_v51, %v1401_v17  ;;  %3467 = vperm.xlu0 %9106, %v11069_v33  }
 0x329   : > { %3472 = vperm.xlu1 %9107, %v11074_v36  }
 0x32b   : > { %1894 = vmatmul.mubr.bf16.gmra.mrb[24].mxu1 %v1624_v12 }
 0x32c   : > { %1901 = vmatprep.mubr.bf16.mxu1 %v1633_v44  ;;  %v8750_v39 = vpop.f32.mrb[28].mxu0  ;;  %3282 = vperm.xlu0 %9106, %v3249_v58   ;;  %v9321_v54 = vpop.eup %9320  ;;  %v3363_v58 = vadd.f32 1.0, %v15111_v52 }
 0x32d   : > { %v1417_v57 = vpop.f32.mrb[29].mxu0  ;;  %3285 = vperm.xlu1 %9107, %v3250_v9   ;;  %v11103_v17 = vmul.f32 0.6931472, %v9321_v54  ;;  %v9323_v30 = vpop.eup %9322  ;;  %v2903_v9 = vld [vmem:[%s15102_s1 + $0xf0] sm:$0xff] }
 0x32e   : > { %v8751_v37 = vpop.f32.mrb[30].mxu0  ;;  %v11109_v63 = vmul.f32 0.6931472, %v9323_v30  ;;  %vm3079_vm14 = vcmp.gt.f32.partialorder %v2903_v9, 0.5 }
 0x32f   : > { %v1637_v12 = vpack.c.bf16 %v8751_v37, %v8750_v39  ;;  %v1420_v44 = vpop.f32.mrb[31].mxu0  ;;  %v3360_v39 = vadd.f32 1.0, %v15108_v31  ;;  %v3361_v37 = vadd.f32 1.0, %v15109_v32  ;;  %v3095_v41 = vsel %vm3079_vm14, 1, %v10020_v35 }
 0x330   : > { %v1636_v1 = vpack.c.bf16 %v1420_v44, %v1417_v57  ;;  %2968 = vperm.xlu0 %9106, %v2931_v14   ;;  %v15112_v14 = vmax.f32 %v10869_v8, 1.0 }
 0x331   : > { %2971 = vperm.xlu1 %9107, %v2932_v62   ;;  %v15113_v62 = vmax.f32 %v10917_v13, 1.0 }
 0x332   : > { %v3364_v5 = vadd.f32 1.0, %v15112_v14 }
 0x333   : > { %1902 = vmatmul.mubr.bf16.gmra.mrb[28].mxu1 %v1625_v2  ;;  %v3251_v2 = vsel %vm3235_vm4, 1, %v10020_v35  ;;  %v3365_v54 = vadd.f32 1.0, %v15113_v62  ;;  %v5884_v62 = vld [vmem:[%s15117_s4 + $0x18] sm:$0xff] }
 0x334   : > { %1909 = vmatprep.mubr.bf16.mxu1 %v1634_v4  ;;  %3128 = vperm.xlu0 %9106, %v3091_v10   ;;  %v2904_v10 = vld [vmem:[%s15102_s1 + $0xf8] sm:$0xff] }
 0x335   : > { %3131 = vperm.xlu1 %9107, %v3092_v19   ;;  %vm3080_vm15 = vcmp.gt.f32.partialorder %v2904_v10, 0.5  ;;  %v5903_v10 = vsel %vm5897_vm2, %v5884_v62, 0.0 }
 0x338   : > { %3477 = vperm.xlu0 %9106, %v11103_v17  }
 0x339   : > { %3482 = vperm.xlu1 %9107, %v11109_v63  }
 0x33b   : > { %1910 = vmatmul.mubr.bf16.gmra.mrb[32].mxu1 %v1626_v6  ;;  %v15105_v6 = vmax.f32 %v10796_v42, 1.0  ;;  %v2886_v42 = vld [vmem:[%s15102_s1 + $0x68] sm:$0xff] }
 0x33c   : > { %1917 = vmatprep.mubr.bf16.mxu1 %v1635_v46  ;;  %3288 = vperm.xlu0 %9106, %v3251_v2   ;;  %vm2918_vm7 = vcmp.gt.f32.partialorder %v2886_v42, 0.5  ;;  %v15107_v46 = vmax.f32 %v10812_v47, 1.0  ;;  %v3253_v47 = vsel %vm3237_vm10, 1, %v10020_v35  ;;  %v3096_v2 = vsel %vm3080_vm15, 1, %v10020_v35 }
 0x33d   : > { %v3357_v21 = vadd.f32 1.0, %v15105_v6  ;;  %3291 = vperm.xlu1 %9107, %v3252_v23   ;;  %v3256_v42 = vsel %vm3240_vm1, 1, %v10020_v35 }
 0x33e   : > { %v3359_v51 = vadd.f32 1.0, %v15107_v46 }
 0x33f   : > { %9324 = vlog2.f32 %v3357_v21 }
 0x340   : > { %9326 = vlog2.f32 %v3358_v24  ;;  %2974 = vperm.xlu0 %9106, %v2933_v28   ;;  %v15116_v24 = vmax.f32 %v10989_v16, 1.0 }
 0x341   : > { %9328 = vlog2.f32 %v3359_v51 }
 0x342   : > { %9330 = vlog2.f32 %v3360_v39 }
 0x343   : > { %1918 = vmatmul.mubr.bf16.gmra.mrb[36].mxu1 %v1627_v56  ;;  %v2934_v56 = vsel %vm2918_vm7, 1, %v10020_v35  ;;  %9332 = vlog2.f32 %v3361_v37 }
 0x344   : > { %1925 = vmatprep.mubr.bf16.mxu1 %v1636_v1  ;;  %2977 = vperm.xlu1 %9107, %v2934_v56   ;;  %v2888_v1 = vld [vmem:[%s15102_s1 + $0x78] sm:$0xff] }
 0x345   : > { %3134 = vperm.xlu0 %9106, %v3093_v25   ;;  %vm2920_vm13 = vcmp.gt.f32.partialorder %v2888_v1, 0.5  ;;  %v11210_v1 = vpop.permute.xlu0 %2282 }
 0x346   : > { %15118 = vst [vmem:[#allocation41_spill] sm:$0xff] %v11210_v1 }
 0x348   : > { %3137 = vperm.xlu1 %9107, %v3094_v7  }
 0x349   : > { %v9325_v55 = vpop.eup %9324 }
 0x34a   : > { %v11147_v61 = vmul.f32 0.6931472, %v9325_v55  ;;  %v9327_v4 = vpop.eup %9326 }
 0x34b   : > { %1926 = vmatmul.mubr.bf16.gmra.mrb[40].mxu1 %v15103_v27  ;;  %v11153_v57 = vmul.f32 0.6931472, %v9327_v4  ;;  %v9329_v38 = vpop.eup %9328  ;;  %v15114_v27 = vmax.f32 %v10925_v18, 1.0  ;;  %v3368_v18 = vadd.f32 1.0, %v15116_v24  ;;  %v5887_v24 = vld [vmem:[%s15117_s4 + $0x30] sm:$0xff] }
 0x34c   : > { %1933 = vmatprep.mubr.bf16.mxu1 %v1637_v12  ;;  %3487 = vperm.xlu0 %9106, %v11147_v61   ;;  %v15110_v12 = vmax.f32 %v10833_v53, 1.0  ;;  %v2936_v53 = vsel %vm2920_vm13, 1, %v10020_v35  ;;  %v3382_v19 = vmul.f32 0.6931472, %v9329_v38  ;;  %v9331_v30 = vpop.eup %9330  ;;  %v5883_v38 = vld [vmem:[%s15117_s4 + $0x10] sm:$0xff] }
 0x34d   : > { %3492 = vperm.xlu1 %9107, %v11153_v57   ;;  %v3366_v8 = vadd.f32 1.0, %v15114_v27  ;;  %v3384_v6 = vmul.f32 0.6931472, %v9331_v30  ;;  %v9333_v21 = vpop.eup %9332  ;;  %v5885_v30 = vld [vmem:[%s15117_s4 + $0x20] sm:$0xff] }
 0x34e   : > { %v3362_v44 = vadd.f32 1.0, %v15110_v12  ;;  %v3386_v23 = vmul.f32 0.6931472, %v9333_v21  ;;  %v5882_v12 = vld [vmem:[%s15117_s4 + $0x8] sm:$0xff]  ;;  %v5905_v27 = vsel %vm5897_vm2, %v5885_v30, 0.0 }
 0x350   : > { %3294 = vperm.xlu0 %9106, %v3253_v47   ;;  %9334 = vlog2.f32 %v3362_v44 }
 0x351   : > { %3297 = vperm.xlu1 %9107, %v3254_v49   ;;  %9336 = vlog2.f32 %v3363_v58  ;;  %v5899_v58 = vsel %vm5897_vm2, %v5882_v12, 0.0 }
 0x352   : > { %9338 = vlog2.f32 %v3364_v5 }
 0x353   : > { %1934 = vmatmul.mubr.bf16.gmra.mrb[44].mxu1 %v15104_v60  ;;  %9340 = vlog2.f32 %v3365_v54  ;;  %v15115_v60 = vmax.f32 %v10981_v0, 1.0 }
 0x354   : > { %2199 = vmatprep.mubr.bf16.mxu1 %v10020_v35  ;;  %2980 = vperm.xlu0 %9106, %v2935_v3   ;;  %9342 = vlog2.f32 %v3366_v8  ;;  %v5881_v3 = vld [vmem:[%s15117_s4] sm:$0xff]  ;;  %v11226_v8 = vpop.permute.xlu0 %2287 }
 0x355   : > { %2983 = vperm.xlu1 %9107, %v2936_v53   ;;  %v3367_v13 = vadd.f32 1.0, %v15115_v60  ;;  %v5898_v52 = vsel %vm5897_vm2, %v5881_v3, 0.0  ;;  %v9156_v53 = vld [vmem:[#allocation9] sm:$0xff]   ;;  %15120 = vst [vmem:[#allocation43_spill] sm:$0xff] %v11226_v8 }
 0x356   : > { %v5900_v9 = vadd.f32 %v5899_v58, %v5898_v52  ;;  %8818 = vmatprep.mubr.bf16.mxu0 %v9156_v53 }
 0x357   : > { %9344 = vlog2.f32 %v3367_v13  ;;  %v5886_v13 = vld [vmem:[%s15117_s4 + $0x28] sm:$0xff] }
 0x358   : > { %3140 = vperm.xlu0 %9106, %v3095_v41   ;;  %9346 = vlog2.f32 %v3368_v18  ;;  %v5901_v41 = vsel %vm5897_vm2, %v5883_v38, 0.0  ;;  %v5907_v21 = vsel %vm5897_vm2, %v5886_v13, 0.0  ;;  %v5909_v18 = vsel %vm5897_vm2, %v5887_v24, 0.0 }
 0x359   : > { %3143 = vperm.xlu1 %9107, %v3096_v2   ;;  %9348 = vrcp.f32 %v11069_v33  ;;  %v5902_v5 = vadd.f32 %v5901_v41, %v5900_v9  ;;  %v11223_v2 = vpop.permute.xlu1 %2292  ;;  %v5895_v41 = vld [vmem:[%s15117_s4 + $0x70] sm:$0xff] }
 0x35a   : > { %v9335_v15 = vpop.eup %9334  ;;  %9350 = vrcp.f32 %v11074_v36  ;;  %15119 = vst [vmem:[#allocation42_spill] sm:$0xff] %v11223_v2 }
 0x35b   : > { %v9337_v28 = vpop.eup %9336  ;;  %v3388_v43 = vmul.f32 0.6931472, %v9335_v15  ;;  %9352 = vrcp.f32 %v11103_v17 }
 0x35c   : > { %3497 = vperm.xlu0 %9106, %v3382_v19   ;;  %v9339_v0 = vpop.eup %9338  ;;  %v3390_v55 = vmul.f32 0.6931472, %v9337_v28  ;;  %9354 = vrcp.f32 %v11109_v63 }
 0x35d   : > { %3502 = vperm.xlu1 %9107, %v3384_v6   ;;  %v9341_v56 = vpop.eup %9340  ;;  %v3392_v46 = vmul.f32 0.6931472, %v9339_v0  ;;  %9356 = vrcp.f32 %v11147_v61  ;;  %v11239_v28 = vpop.permute.xlu1 %2297 }
 0x35e   : > { %v9343_v25 = vpop.eup %9342  ;;  %v3394_v16 = vmul.f32 0.6931472, %v9341_v56  ;;  %9358 = vrcp.f32 %v11153_v57  ;;  %15121 = vst [vmem:[#allocation44_spill] sm:$0xff] %v11239_v28  ;;  %v5889_v56 = vld [vmem:[%s15117_s4 + $0x40] sm:$0xff] }
 0x35f   : > { %v3396_v50 = vmul.f32 0.6931472, %v9343_v25  ;;  %9360 = vrcp.f32 %v3382_v19  ;;  %v5904_v19 = vadd.f32 %v5903_v10, %v5902_v5 }
 0x360   : > { %3300 = vperm.xlu0 %9106, %v3255_v11   ;;  %9362 = vrcp.f32 %v3384_v6 }
 0x361   : > { %3303 = vperm.xlu1 %9107, %v3256_v42   ;;  %v9345_v51 = vpop.eup %9344  ;;  %9364 = vrcp.f32 %v3386_v23  ;;  %v5906_v60 = vadd.f32 %v5905_v27, %v5904_v19 }
 0x362   : > { %v3398_v4 = vmul.f32 0.6931472, %v9345_v51  ;;  %v9347_v7 = vpop.eup %9346  ;;  %9366 = vrcp.f32 %v3388_v43 }
 0x363   : > { %v9349_v33 = vpop.eup %9348  ;;  %v3400_v36 = vmul.f32 0.6931472, %v9347_v7  ;;  %9368 = vrcp.f32 %v3390_v55  ;;  %v5908_v11 = vadd.f32 %v5907_v21, %v5906_v60 }
 0x364   : > { %3507 = vperm.xlu0 %9106, %v3386_v23   ;;  %v9351_v31 = vpop.eup %9350  ;;  %9370 = vrcp.f32 %v3392_v46  ;;  %v5888_v23 = vld [vmem:[%s15117_s4 + $0x38] sm:$0xff] }
 0x365   : > { %3512 = vperm.xlu1 %9107, %v3388_v43   ;;  %v9353_v17 = vpop.eup %9352  ;;  %9372 = vrcp.f32 %v3394_v16  ;;  %v5910_v15 = vadd.f32 %v5909_v18, %v5908_v11  ;;  %v5911_v42 = vsel %vm5897_vm2, %v5888_v23, 0.0  ;;  %v11244_v43 = vpop.permute.xlu0 %2302 }
 0x366   : > { %v9355_v39 = vpop.eup %9354  ;;  %9374 = vrcp.f32 %v3396_v50  ;;  %15122 = vst [vmem:[#allocation45_spill] sm:$0xff] %v11244_v43 }
 0x367   : > { %v9357_v63 = vpop.eup %9356  ;;  %9376 = vrcp.f32 %v3398_v4 }
 0x368   : > { %3517 = vperm.xlu0 %9106, %v3390_v55   ;;  %v9359_v61 = vpop.eup %9358  ;;  %9378 = vrcp.f32 %v3400_v36  ;;  %v5912_v55 = vadd.f32 %v5911_v42, %v5910_v15 }
 0x369   : > { %3522 = vperm.xlu1 %9107, %v3392_v46   ;;  %v9361_v47 = vpop.eup %9360  ;;  %v5913_v46 = vsel %vm5897_vm2, %v5889_v56, 0.0  ;;  %9380 = vrcp.f32 %v11210_v1 }
 0x36a   : > { %v9363_v57 = vpop.eup %9362  ;;  %v5914_v51 = vadd.f32 %v5913_v46, %v5912_v55  ;;  %9382 = vrcp.f32 %v11226_v8 }
 0x36b   : > { %v9365_v32 = vpop.eup %9364  ;;  %9384 = vrcp.f32 %v11223_v2 }
 0x36c   : > { %3527 = vperm.xlu0 %9106, %v3394_v16   ;;  %v9367_v37 = vpop.eup %9366  ;;  %9386 = vrcp.f32 %v11239_v28 }
 0x36d   : > { %3532 = vperm.xlu1 %9107, %v3396_v50   ;;  %v9369_v59 = vpop.eup %9368  ;;  %v5890_v50 = vld [vmem:[%s15117_s4 + $0x48] sm:$0xff] }
 0x36e   : > { %v9371_v49 = vpop.eup %9370  ;;  %v5915_v7 = vsel %vm5897_vm2, %v5890_v50, 0.0 }
 0x36f   : > { %v9373_v44 = vpop.eup %9372 }
 0x370   : > { %3537 = vperm.xlu0 %9106, %v3398_v4   ;;  %v9375_v14 = vpop.eup %9374 }
 0x371   : > { %3542 = vperm.xlu1 %9107, %v3400_v36   ;;  %v9377_v54 = vpop.eup %9376  ;;  %v5891_v36 = vld [vmem:[%s15117_s4 + $0x50] sm:$0xff] }
 0x372   : > { %v9379_v6 = vpop.eup %9378 }
 0x374   : > { %3643 = vperm.xlu0 %9106, %v9349_v33   ;;  %v5916_v33 = vadd.f32 %v5915_v7, %v5914_v51 }
 0x375   : > { %3648 = vperm.xlu1 %9107, %v9351_v31   ;;  %v11263_v31 = vpop.permute.xlu1 %2307 }
 0x376   : > { %15123 = vst [vmem:[#allocation46_spill] sm:$0xff] %v11263_v31 }
 0x378   : > { %3653 = vperm.xlu0 %9106, %v9353_v17   ;;  %v5917_v17 = vsel %vm5897_vm2, %v5891_v36, 0.0 }
 0x379   : > { %3658 = vperm.xlu1 %9107, %v9355_v39   ;;  %v11266_v39 = vpop.permute.xlu0 %2312  ;;  %v11287_v58 = vpop.permute.xlu1 %2317 }
 0x37a   : > { %15124 = vst [vmem:[#allocation47_spill] sm:$0xff] %v11266_v39  ;;  %15125 = vst [vmem:[#allocation48_spill] sm:$0xff] %v11287_v58 }
 0x37c   : > { %3663 = vperm.xlu0 %9106, %v9357_v63   ;;  %v5918_v63 = vadd.f32 %v5917_v17, %v5916_v33  ;;  %v11330_v17 = vld [vmem:[%s956_s27] ss:$0 sm:$0xff]  ;;  %s15790_s27 = sld [smem:[#allocation155_spill]] (!%p7959_p9) }
 0x37d   : > { %3668 = vperm.xlu1 %9107, %v9359_v61   ;;  %v5892_v61 = vld [vmem:[%s15117_s4 + $0x58] sm:$0xff]  ;;  %v11304_v27 = vpop.permute.xlu1 %2327 }
 0x37e   : > { %15127 = vst [vmem:[#allocation50_spill] sm:$0xff] %v11304_v27 }
 0x380   : > { %3673 = vperm.xlu0 %9106, %v9361_v47   ;;  %v5919_v47 = vsel %vm5897_vm2, %v5892_v61, 0.0 }
 0x381   : > { %3678 = vperm.xlu1 %9107, %v9363_v57   ;;  %v11312_v18 = vpop.permute.xlu1 %2941 }
 0x382   : > { %vm2986_vm4 = vcmp.eq.s32.totalorder %v11312_v18, 1 }
 0x384   : > { %3683 = vperm.xlu0 %9106, %v9365_v32   ;;  %v5920_v32 = vadd.f32 %v5919_v47, %v5918_v63 }
 0x385   : > { %3688 = vperm.xlu1 %9107, %v9367_v37   ;;  %v5893_v37 = vld [vmem:[%s15117_s4 + $0x60] sm:$0xff]  ;;  %v11324_v7 = vpop.permute.xlu1 %2337 }
 0x386   : > { %15129 = vst [vmem:[#allocation52_spill] sm:$0xff] %v11324_v7 }
 0x388   : > { %3693 = vperm.xlu0 %9106, %v9369_v59  }
 0x389   : > { %3698 = vperm.xlu1 %9107, %v9371_v49   ;;  %v5921_v49 = vsel %vm5897_vm2, %v5893_v37, 0.0 }
 0x38c   : > { %3703 = vperm.xlu0 %9106, %v9373_v44   ;;  %v5894_v44 = vld [vmem:[%s15117_s4 + $0x68] sm:$0xff] }
 0x38d   : > { %3708 = vperm.xlu1 %9107, %v9375_v14   ;;  %v5923_v9 = vsel %vm5897_vm2, %v5894_v44, 0.0  ;;  %v5925_v14 = vsel %vm5897_vm2, %v5895_v41, 0.0 }
 0x390   : > { %3713 = vperm.xlu0 %9106, %v9377_v54  }
 0x391   : > { %3718 = vperm.xlu1 %9107, %v9379_v6  }
 0x394   : > { %5937 = vperm.xlu0 %9106, %v5881_v3  }
 0x395   : > { %5942 = vperm.xlu1 %9107, %v5882_v12   ;;  %v5922_v12 = vadd.f32 %v5921_v49, %v5920_v32 }
 0x397   : > { %v5924_v53 = vadd.f32 %v5923_v9, %v5922_v12 }
 0x398   : > { %5947 = vperm.xlu0 %9106, %v5883_v38   ;;  %v11290_v38 = vpop.permute.xlu0 %2322 }
 0x399   : > { %5952 = vperm.xlu1 %9107, %v5884_v62   ;;  %15126 = vst [vmem:[#allocation49_spill] sm:$0xff] %v11290_v38  ;;  %v5926_v5 = vadd.f32 %v5925_v14, %v5924_v53  ;;  %v5896_v62 = vld [vmem:[%s15117_s4 + $0x78] sm:$0xff] }
 0x39a   : > { %v5927_v54 = vsel %vm5897_vm2, %v5896_v62, 0.0 }
 0x39b   : > { %v5928_v19 = vadd.f32 %v5927_v54, %v5926_v5 }
 0x39c   : > { %5957 = vperm.xlu0 %9106, %v5885_v30  }
 0x39d   : > { %5962 = vperm.xlu1 %9107, %v5886_v13   ;;  %v11308_v13 = vpop.permute.xlu0 %2938  ;;  %v5929_v6 = vrot.slane %v5928_v19, 4 }
 0x39e   : > { %vm2985_vm3 = vcmp.eq.s32.totalorder %v11308_v13, 1 }
 0x39f   : > { %v5930_v11 = vadd.f32 %v5929_v6, %v5928_v19 }
 0x3a0   : > { %5967 = vperm.xlu0 %9106, %v5887_v24  }
 0x3a1   : > { %5972 = vperm.xlu1 %9107, %v5888_v23   ;;  %v5931_v24 = vrot.slane %v5930_v11, 2  ;;  %v11314_v15 = vpop.permute.xlu0 %2332 }
 0x3a2   : > { %15128 = vst [vmem:[#allocation51_spill] sm:$0xff] %v11314_v15 }
 0x3a3   : > { %v5932_v42 = vadd.f32 %v5931_v24, %v5930_v11 }
 0x3a4   : > { %5977 = vperm.xlu0 %9106, %v5889_v56  }
 0x3a5   : > { %5982 = vperm.xlu1 %9107, %v5890_v50   ;;  %v5933_v46 = vrot.slane %v5932_v42, 1  ;;  %v11326_v33 = vpop.permute.xlu0 %3098 }
 0x3a6   : > { %vm3145_vm1 = vcmp.eq.s32.totalorder %v11326_v33, 1 }
 0x3a7   : > { %v5934_v50 = vadd.f32 %v5933_v46, %v5932_v42 }
 0x3a8   : > { %5987 = vperm.xlu0 %9106, %v5891_v36  }
 0x3a9   : > { %5992 = vperm.xlu1 %9107, %v5892_v61  }
 0x3ac   : > { %5997 = vperm.xlu0 %9106, %v5893_v37  }
 0x3ad   : > { %6002 = vperm.xlu1 %9107, %v5894_v44  }
 0x3b0   : > { %6007 = vperm.xlu0 %9106, %v5895_v41  }
 0x3b1   : > { %6012 = vperm.xlu1 %9107, %v5896_v62  }
 0x3b4   : > { %6054 = vperm.xlu0 %9106, %v5934_v50  }
 0x3b5   : > { %v11242_v0 = vpop.f32.mrb[32].mxu0 }
 0x3b6   : > { %v11249_v25 = vpop.f32.mrb[33].mxu0 }
 0x3b7   : > { %v11252_v16 = vpop.f32.mrb[34].mxu0 }
 0x3b8   : > { %v11257_v4 = vpop.f32.mrb[35].mxu0 }
 0x3bd   : > { %v11272_v57 = vpop.f32.mrb[36].mxu0 }
 0x3be   : > { %v11277_v59 = vpop.f32.mrb[37].mxu0 }
 0x3bf   : > { %v11280_v3 = vpop.f32.mrb[38].mxu0 }
 0x3c0   : > { %v11285_v52 = vpop.f32.mrb[39].mxu0 }
 0x3c5   : > { %v11300_v10 = vpop.f32.mrb[40].mxu0 }
 0x3c6   : > { %v11302_v30 = vpop.f32.mrb[41].mxu0 }
 0x3c7   : > { %v11306_v60 = vpop.f32.mrb[42].mxu0 }
 0x3c8   : > { %v11310_v21 = vpop.f32.mrb[43].mxu0 }
 0x3cd   : > { %v11316_v23 = vpop.f32.mrb[44].mxu0 }
 0x3ce   : > { %v11318_v55 = vpop.f32.mrb[45].mxu0 }
 0x3cf   : > { %v11320_v56 = vpop.f32.mrb[46].mxu0 }
 0x3d0   : > { %v11322_v51 = vpop.f32.mrb[47].mxu0 }
 0x3ee   : > { %v8043_v36 = vpop.f32.mrb[16].mxu1 }
 0x3ef   : > { %v8044_v63 = vpop.f32.mrb[17].mxu1 }
 0x3f0   : > { %v8045_v61 = vadd.f32 %v8044_v63, %v8043_v36  ;;  %v8046_v47 = vpop.f32.mrb[18].mxu1 }
 0x3f1   : > { %v8047_v32 = vpop.f32.mrb[19].mxu1 }
 0x3f2   : > { %v1880_v37 = vadd.f32 %v8045_v61, %v11330_v17  ;;  %v8048_v49 = vadd.f32 %v8047_v32, %v8046_v47 }
 0x3f4   : > { %v1977_v12 = vadd.f32 %v11249_v25, %v1880_v37  ;;  %v1883_v44 = vadd.f32 %v8048_v49, %v11330_v17 }
 0x3f6   : > { %v1980_v9 = vadd.f32 %v11257_v4, %v1883_v44  ;;  %v8049_v53 = vpop.f32.mrb[20].mxu1  ;;  %v2079_v54 = vmul.f32 %v1977_v12, %v1977_v12 }
 0x3f7   : > { %v8050_v41 = vpop.f32.mrb[21].mxu1 }
 0x3f8   : > { %v8051_v14 = vadd.f32 %v8050_v41, %v8049_v53  ;;  %v8052_v5 = vpop.f32.mrb[22].mxu1  ;;  %v2039_v62 = vpack.c.bf16 %v1980_v9, %v1977_v12  ;;  %v2080_v19 = vmul.f32 %v1980_v9, %v1980_v9 }
 0x3f9   : > { %v8053_v6 = vpop.f32.mrb[23].mxu1 }
 0x3fa   : > { %v1888_v11 = vadd.f32 %v8051_v14, %v11330_v17  ;;  %v8054_v24 = vadd.f32 %v8053_v6, %v8052_v5  ;;  %8802 = vmatprep.subr.bf16.mxu0 %v2039_v62  ;;  %v2095_v42 = vpack.c.bf16 %v2080_v19, %v2079_v54 }
 0x3fb   : > { %8803 = vmatpush3.bf16.msra.mxu0 %v2039_v62 }
 0x3fc   : > { %v1985_v25 = vadd.f32 %v11242_v0, %v1888_v11  ;;  %v1891_v46 = vadd.f32 %v8054_v24, %v11330_v17  ;;  %2167 = vmatprep.subr.bf16.mxu1 %v2095_v42 }
 0x3fd   : > { %2168 = vmatpush1.bf16.msra.mxu1 %v2039_v62 }
 0x3fe   : > { %v1988_v4 = vadd.f32 %v11252_v16, %v1891_v46  ;;  %v8055_v50 = vpop.f32.mrb[24].mxu1  ;;  %v2081_v32 = vmul.f32 %v1985_v25, %v1985_v25 }
 0x3ff   : > { %v8056_v36 = vpop.f32.mrb[25].mxu1 }
 0x400   : > { %v8057_v63 = vadd.f32 %v8056_v36, %v8055_v50  ;;  %v8058_v61 = vpop.f32.mrb[26].mxu1  ;;  %v2040_v47 = vpack.c.bf16 %v1988_v4, %v1985_v25  ;;  %v2082_v37 = vmul.f32 %v1988_v4, %v1988_v4 }
 0x401   : > { %v8059_v49 = vpop.f32.mrb[27].mxu1 }
 0x402   : > { %v1896_v12 = vadd.f32 %v8057_v63, %v11330_v17  ;;  %v8060_v44 = vadd.f32 %v8059_v49, %v8058_v61  ;;  %8804 = vmatprep.subr.bf16.mxu0 %v2040_v47  ;;  %v2096_v9 = vpack.c.bf16 %v2082_v37, %v2081_v32 }
 0x403   : > { %8805 = vmatpush3.bf16.msra.mxu0 %v2040_v47 }
 0x404   : > { %v1993_v0 = vadd.f32 %v11277_v59, %v1896_v12  ;;  %v1899_v53 = vadd.f32 %v8060_v44, %v11330_v17  ;;  %2169 = vmatprep.subr.bf16.mxu1 %v2096_v9 }
 0x405   : > { %2170 = vmatpush1.bf16.msra.mxu1 %v2040_v47 }
 0x406   : > { %v1996_v16 = vadd.f32 %v11285_v52, %v1899_v53  ;;  %v8061_v41 = vpop.f32.mrb[28].mxu1  ;;  %v2083_v19 = vmul.f32 %v1993_v0, %v1993_v0 }
 0x407   : > { %v8062_v14 = vpop.f32.mrb[29].mxu1 }
 0x408   : > { %v8063_v5 = vadd.f32 %v8062_v14, %v8061_v41  ;;  %v8064_v62 = vpop.f32.mrb[30].mxu1  ;;  %v2041_v54 = vpack.c.bf16 %v1996_v16, %v1993_v0  ;;  %v2084_v6 = vmul.f32 %v1996_v16, %v1996_v16 }
 0x409   : > { %v8065_v11 = vpop.f32.mrb[31].mxu1 }
 0x40a   : > { %v1904_v24 = vadd.f32 %v8063_v5, %v11330_v17  ;;  %v8066_v42 = vadd.f32 %v8065_v11, %v8064_v62  ;;  %8806 = vmatprep.subr.bf16.mxu0 %v2041_v54  ;;  %v2097_v25 = vpack.c.bf16 %v2084_v6, %v2083_v19 }
 0x40b   : > { %8807 = vmatpush3.bf16.msra.mxu0 %v2041_v54 }
 0x40c   : > { %v2001_v59 = vadd.f32 %v11272_v57, %v1904_v24  ;;  %v1907_v46 = vadd.f32 %v8066_v42, %v11330_v17  ;;  %2171 = vmatprep.subr.bf16.mxu1 %v2097_v25 }
 0x40d   : > { %2172 = vmatpush1.bf16.msra.mxu1 %v2041_v54 }
 0x40e   : > { %v2004_v52 = vadd.f32 %v11280_v3, %v1907_v46  ;;  %v8067_v4 = vpop.f32.mrb[32].mxu1  ;;  %v2085_v47 = vmul.f32 %v2001_v59, %v2001_v59 }
 0x40f   : > { %v8068_v50 = vpop.f32.mrb[33].mxu1 }
 0x410   : > { %v8069_v36 = vadd.f32 %v8068_v50, %v8067_v4  ;;  %v8070_v63 = vpop.f32.mrb[34].mxu1  ;;  %v2042_v61 = vpack.c.bf16 %v2004_v52, %v2001_v59  ;;  %v2086_v32 = vmul.f32 %v2004_v52, %v2004_v52 }
 0x411   : > { %v8071_v37 = vpop.f32.mrb[35].mxu1 }
 0x412   : > { %v1912_v49 = vadd.f32 %v8069_v36, %v11330_v17  ;;  %v8072_v12 = vadd.f32 %v8071_v37, %v8070_v63  ;;  %8808 = vmatprep.subr.bf16.mxu0 %v2042_v61  ;;  %v2098_v44 = vpack.c.bf16 %v2086_v32, %v2085_v47 }
 0x413   : > { %8809 = vmatpush3.bf16.msra.mxu0 %v2042_v61 }
 0x414   : > { %v2009_v57 = vadd.f32 %v11302_v30, %v1912_v49  ;;  %v1915_v9 = vadd.f32 %v8072_v12, %v11330_v17  ;;  %2173 = vmatprep.subr.bf16.mxu1 %v2098_v44 }
 0x415   : > { %2174 = vmatpush1.bf16.msra.mxu1 %v2042_v61 }
 0x416   : > { %v2012_v3 = vadd.f32 %v11310_v21, %v1915_v9  ;;  %v8073_v0 = vpop.f32.mrb[36].mxu1  ;;  %v2087_v5 = vmul.f32 %v2009_v57, %v2009_v57 }
 0x417   : > { %v8074_v53 = vpop.f32.mrb[37].mxu1 }
 0x418   : > { %v8075_v16 = vadd.f32 %v8074_v53, %v8073_v0  ;;  %v8076_v41 = vpop.f32.mrb[38].mxu1  ;;  %v2043_v14 = vpack.c.bf16 %v2012_v3, %v2009_v57  ;;  %v2088_v62 = vmul.f32 %v2012_v3, %v2012_v3 }
 0x419   : > { %v8077_v54 = vpop.f32.mrb[39].mxu1 }
 0x41a   : > { %v1920_v19 = vadd.f32 %v8075_v16, %v11330_v17  ;;  %v8078_v6 = vadd.f32 %v8077_v54, %v8076_v41  ;;  %8810 = vmatprep.subr.bf16.mxu0 %v2043_v14  ;;  %v2099_v11 = vpack.c.bf16 %v2088_v62, %v2087_v5 }
 0x41b   : > { %8811 = vmatpush3.bf16.msra.mxu0 %v2043_v14 }
 0x41c   : > { %v2017_v30 = vadd.f32 %v11300_v10, %v1920_v19  ;;  %v1923_v24 = vadd.f32 %v8078_v6, %v11330_v17  ;;  %2175 = vmatprep.subr.bf16.mxu1 %v2099_v11  ;;  %v9189_v19 = vld [vmem:[%s10667_s10 + $0xc0] sm:$0xff]  }
 0x41d   : > { %2176 = vmatpush1.bf16.msra.mxu1 %v2043_v14  ;;  %v9157_v11 = vld [vmem:[#allocation9 + $0x8] sm:$0xff]  }
 0x41e   : > { %v2020_v21 = vadd.f32 %v11306_v60, %v1923_v24  ;;  %v8079_v42 = vpop.f32.mrb[40].mxu1  ;;  %v2089_v4 = vmul.f32 %v2017_v30, %v2017_v30  ;;  %v9158_v24 = vld [vmem:[#allocation8] sm:$0xff]  }
 0x41f   : > { %v8080_v25 = vpop.f32.mrb[41].mxu1 }
 0x420   : > { %v8081_v59 = vadd.f32 %v8080_v25, %v8079_v42  ;;  %v8082_v46 = vpop.f32.mrb[42].mxu1  ;;  %v2044_v52 = vpack.c.bf16 %v2020_v21, %v2017_v30  ;;  %v2090_v50 = vmul.f32 %v2020_v21, %v2020_v21  ;;  %v9180_v30 = vld [vmem:[%s10667_s10 + $0x40] sm:$0xff]   ;;  %v9182_v42 = vld [vmem:[%s10667_s10 + $0x48] sm:$0xff]  }
 0x421   : > { %v8083_v36 = vpop.f32.mrb[43].mxu1  ;;  %v9181_v21 = vld [vmem:[%s10667_s10] sm:$0xff]   ;;  %v9195_v25 = vld [vmem:[%s10667_s10 + $0x88] sm:$0xff]  }
 0x422   : > { %v1928_v63 = vadd.f32 %v8081_v59, %v11330_v17  ;;  %v8084_v61 = vadd.f32 %v8083_v36, %v8082_v46  ;;  %8812 = vmatprep.subr.bf16.mxu0 %v2044_v52  ;;  %v2100_v47 = vpack.c.bf16 %v2090_v50, %v2089_v4  ;;  %v9197_v59 = vld [vmem:[%s10667_s10 + $0xd0] sm:$0xff]   ;;  %v9183_v46 = vld [vmem:[%s10667_s10 + $0x8] sm:$0xff]  }
 0x423   : > { %8813 = vmatpush3.bf16.msra.mxu0 %v2044_v52  ;;  %v9184_v4 = vld [vmem:[%s10667_s10 + $0x50] sm:$0xff]  }
 0x424   : > { %v2025_v10 = vadd.f32 %v11318_v55, %v1928_v63  ;;  %v1931_v32 = vadd.f32 %v8084_v61, %v11330_v17  ;;  %2177 = vmatprep.subr.bf16.mxu1 %v2100_v47  ;;  %v9162_v50 = vld [vmem:[#allocation9 + $0x20] sm:$0xff]   ;;  %v9161_v63 = vld [vmem:[#allocation8 + $0x8] sm:$0xff]  }
 0x425   : > { %2178 = vmatpush1.bf16.msra.mxu1 %v2044_v52  ;;  %v9160_v52 = vld [vmem:[#allocation9 + $0x18] sm:$0xff]   ;;  %v9186_v47 = vld [vmem:[%s10667_s10 + $0x58] sm:$0xff]  }
 0x426   : > { %v2028_v60 = vadd.f32 %v11322_v51, %v1931_v32  ;;  %v8085_v37 = vpop.f32.mrb[44].mxu1  ;;  %v2091_v9 = vmul.f32 %v2025_v10, %v2025_v10  ;;  %v9199_v36 = vld [vmem:[%s10667_s10 + $0x90] sm:$0xff]   ;;  %v9163_v32 = vld [vmem:[#allocation9 + $0x28] sm:$0xff]  }
 0x427   : > { %v8086_v49 = vpop.f32.mrb[45].mxu1  ;;  %v9185_v61 = vld [vmem:[%s10667_s10 + $0x10] sm:$0xff]  }
 0x428   : > { %v8087_v12 = vadd.f32 %v8086_v49, %v8085_v37  ;;  %v8088_v44 = vpop.f32.mrb[46].mxu1  ;;  %v2045_v57 = vpack.c.bf16 %v2028_v60, %v2025_v10  ;;  %v2092_v3 = vmul.f32 %v2028_v60, %v2028_v60  ;;  %v9187_v10 = vld [vmem:[%s10667_s10 + $0x18] sm:$0xff]   ;;  %v9188_v60 = vld [vmem:[%s10667_s10 + $0x60] sm:$0xff]  }
 0x429   : > { %v8089_v0 = vpop.f32.mrb[47].mxu1  ;;  %v9165_v37 = vld [vmem:[#allocation9 + $0x30] sm:$0xff]  }
 0x42a   : > { %v1936_v53 = vadd.f32 %v8087_v12, %v11330_v17  ;;  %v8090_v16 = vadd.f32 %v8089_v0, %v8088_v44  ;;  %8814 = vmatprep.subr.bf16.mxu0 %v2045_v57  ;;  %v2101_v55 = vpack.c.bf16 %v2092_v3, %v2091_v9  ;;  %v9164_v49 = vld [vmem:[#allocation8 + $0x10] sm:$0xff]   ;;  %v9166_v9 = vld [vmem:[#allocation9 + $0x38] sm:$0xff]   ;;  %v9168_v0 = vld [vmem:[#allocation9 + $0x40] sm:$0xff]  }
 0x42b   : > { %8815 = vmatpush3.bf16.msra.mxu0 %v2045_v57  ;;  %v9190_v12 = vld [vmem:[%s10667_s10 + $0x20] sm:$0xff]   ;;  %v9192_v44 = vld [vmem:[%s10667_s10 + $0x68] sm:$0xff]   ;;  %v9196_v3 = vld [vmem:[%s10667_s10 + $0x70] sm:$0xff]  }
 0x42c   : > { %v2033_v41 = vadd.f32 %v11316_v23, %v1936_v53  ;;  %v1939_v51 = vadd.f32 %v8090_v16, %v11330_v17  ;;  %2179 = vmatprep.subr.bf16.mxu1 %v2101_v55  ;;  %v9159_v23 = vld [vmem:[#allocation9 + $0x10] sm:$0xff]   ;;  %v9167_v53 = vld [vmem:[#allocation8 + $0x18] sm:$0xff]   ;;  %v9169_v55 = vld [vmem:[#allocation9 + $0x48] sm:$0xff]  }
 0x42d   : > { %2180 = vmatpush1.bf16.msra.mxu1 %v2045_v57  ;;  %v9191_v17 = vld [vmem:[%s10667_s10 + $0x80] sm:$0xff]   ;;  %v9194_v57 = vld [vmem:[%s10667_s10 + $0x28] sm:$0xff]   ;;  %v9198_v16 = vld [vmem:[%s10667_s10 + $0x30] sm:$0xff]  }
 0x42e   : > { %v2036_v14 = vadd.f32 %v11320_v56, %v1939_v51  ;;  %v2093_v62 = vmul.f32 %v2033_v41, %v2033_v41  ;;  %v9193_v56 = vld [vmem:[%s10667_s10 + $0xc8] sm:$0xff]   ;;  %v9170_v51 = vld [vmem:[#allocation8 + $0x20] sm:$0xff]  }
 0x430   : > { %v2046_v5 = vpack.c.bf16 %v2036_v14, %v2033_v41  ;;  %v2094_v54 = vmul.f32 %v2036_v14, %v2036_v14  ;;  %v9171_v41 = vld [vmem:[#allocation9 + $0x50] sm:$0xff]   ;;  %v9172_v14 = vld [vmem:[#allocation9 + $0x58] sm:$0xff]  }
 0x432   : > { %8816 = vmatprep.subr.bf16.mxu0 %v2046_v5  ;;  %v2102_v6 = vpack.c.bf16 %v2094_v54, %v2093_v62  ;;  %v9173_v62 = vld [vmem:[#allocation8 + $0x28] sm:$0xff]  }
 0x433   : > { %8817 = vmatpush3.bf16.msra.mxu0 %v2046_v5  ;;  %v9175_v54 = vld [vmem:[#allocation9 + $0x68] sm:$0xff]  }
 0x434   : > { %2181 = vmatprep.subr.bf16.mxu1 %v2102_v6  ;;  %8195 = vmatprep.subr.bf16.mxu0 %v9189_v19  ;;  %v9177_v19 = vld [vmem:[#allocation9 + $0x70] sm:$0xff]  }
 0x435   : > { %2182 = vmatpush1.bf16.msra.mxu1 %v2046_v5  ;;  %v9174_v5 = vld [vmem:[#allocation9 + $0x60] sm:$0xff]   ;;  %v9176_v6 = vld [vmem:[#allocation8 + $0x30] sm:$0xff]  }
 0x436   : > { %8819 = vmatmul.mubr.bf16.vlgmr.msra.gmra.mrb[48].mxu0 %v9157_v11  ;;  %8131 = vmatprep.subr.bf16.mxu1 %v9180_v30  ;;  %v9178_v11 = vld [vmem:[#allocation9 + $0x78] sm:$0xff]  }
 0x437   : > { %8822 = vmatprep.mubr.bf16.mxu0 %v9159_v23  ;;  %8196 = vmatpush3.bf16.msra.mxu0 %v9191_v17  ;;  %v9179_v30 = vld [vmem:[#allocation8 + $0x38] sm:$0xff]   ;;  %v11391_v23 = vpop.permute.xlu1 %3101  ;;  %v11393_v17 = vpop.permute.xlu0 %3258 }
 0x438   : > { %2200 = vmatmul.mubr.bf16.vlgmr.msra.gmra.mrb[48].mxu1 %v9158_v24  ;;  %8197 = vmatprep.subr.bf16.mxu0 %v9193_v56 }
 0x439   : > { %2209 = vmatprep.mubr.bf16.mxu1 %v10020_v35  ;;  %8132 = vmatpush3.bf16.msra.mxu1 %v9181_v21 }
 0x43a   : > { %8133 = vmatprep.subr.bf16.mxu1 %v9182_v42 }
 0x43b   : > { %8198 = vmatpush3.bf16.msra.mxu0 %v9195_v25  ;;  %v11395_v24 = vpop.permute.xlu1 %3261  ;;  %v11397_v56 = vpop.permute.xlu0 %2944 }
 0x43c   : > { %8199 = vmatprep.subr.bf16.mxu0 %v9197_v59  ;;  %15130 = vst [vmem:[#allocation53_spill] sm:$0xff] %v11395_v24  ;;  %vm2987_vm5 = vcmp.eq.s32.totalorder %v11397_v56, 1 }
 0x43d   : > { %8134 = vmatpush3.bf16.msra.mxu1 %v9183_v46 }
 0x43e   : > { %8823 = vmatmul.mubr.bf16.gmra.mrb[52].mxu0 %v9160_v52  ;;  %8135 = vmatprep.subr.bf16.mxu1 %v9184_v4  ;;  %v9200_v4 = vld [vmem:[%s10667_s10 + $0x78] sm:$0xff]  }
 0x43f   : > { %8826 = vmatprep.mubr.bf16.mxu0 %v9162_v50  ;;  %8200 = vmatpush3.bf16.msra.mxu0 %v9199_v36  ;;  %v11399_v21 = vpop.permute.xlu1 %2947  ;;  %v11401_v42 = vpop.permute.xlu0 %2342  ;;  %v9202_v50 = vld [vmem:[%s10667_s10 + $0x38] sm:$0xff]  }
 0x440   : > { %2210 = vmatmul.mubr.bf16.gmra.mrb[52].mxu1 %v9161_v63  ;;  %15131 = vst [vmem:[#allocation54_spill] sm:$0xff] %v11401_v42  ;;  %9388 = vrcp.f32 %v11401_v42  ;;  %vm2988_vm6 = vcmp.eq.s32.totalorder %v11399_v21, 1 }
 0x441   : > { %2219 = vmatprep.mubr.bf16.mxu1 %v10020_v35  ;;  %8136 = vmatpush3.bf16.msra.mxu1 %v9185_v61 }
 0x442   : > { %8137 = vmatprep.subr.bf16.mxu1 %v9186_v47 }
 0x443   : > { %v11405_v25 = vpop.permute.xlu0 %3104 }
 0x444   : > { %vm3147_vm0 = vcmp.eq.s32.totalorder %v11405_v25, 1 }
 0x445   : > { %8138 = vmatpush3.bf16.msra.mxu1 %v9187_v10 }
 0x446   : > { %8827 = vmatmul.mubr.bf16.gmra.mrb[56].mxu0 %v9163_v32  ;;  %8139 = vmatprep.subr.bf16.mxu1 %v9188_v60  ;;  %v9201_v60 = vld [vmem:[%s10667_s10 + $0xd8] sm:$0xff]  }
 0x447   : > { %8830 = vmatprep.mubr.bf16.mxu0 %v9165_v37  ;;  %v11409_v46 = vpop.permute.xlu0 %3264  ;;  %v9203_v37 = vld [vmem:[%s10667_s10 + $0x98] sm:$0xff]   ;;  %8201 = vmatprep.subr.bf16.mxu0 %v9201_v60 }
 0x448   : > { %2220 = vmatmul.mubr.bf16.gmra.mrb[56].mxu1 %v9164_v49  ;;  %8202 = vmatpush3.bf16.msra.mxu0 %v9203_v37  ;;  %v9221_v37 = vld [vmem:[%s10667_s10 + $0x1c0] sm:$0xff]  }
 0x449   : > { %2229 = vmatprep.mubr.bf16.mxu1 %v10020_v35  ;;  %8140 = vmatpush3.bf16.msra.mxu1 %v9190_v12 }
 0x44a   : > { %8141 = vmatprep.subr.bf16.mxu1 %v9192_v44  ;;  %v9204_v44 = vld [vmem:[%s10667_s10 + $0xe0] sm:$0xff]  }
 0x44b   : > { %v11415_v36 = vpop.permute.xlu0 %2950  ;;  %8203 = vmatprep.subr.bf16.mxu0 %v9204_v44 }
 0x44c   : > { %vm2989_vm7 = vcmp.eq.s32.totalorder %v11415_v36, 1 }
 0x44d   : > { %8142 = vmatpush3.bf16.msra.mxu1 %v9194_v57  ;;  %v9205_v57 = vld [vmem:[%s10667_s10 + $0x140] sm:$0xff]  }
 0x44e   : > { %8831 = vmatmul.mubr.bf16.gmra.mrb[60].mxu0 %v9166_v9  ;;  %8143 = vmatprep.subr.bf16.mxu1 %v9196_v3  ;;  %v9206_v9 = vld [vmem:[%s10667_s10 + $0xa0] sm:$0xff]  }
 0x44f   : > { %8834 = vmatprep.mubr.bf16.mxu0 %v9168_v0  ;;  %v11419_v61 = vpop.permute.xlu0 %2352  ;;  %8204 = vmatpush3.bf16.msra.mxu0 %v9206_v9 }
 0x450   : > { %2230 = vmatmul.mubr.bf16.gmra.mrb[60].mxu1 %v9167_v53  ;;  %15133 = vst [vmem:[#allocation56_spill] sm:$0xff] %v11419_v61  ;;  %v9208_v53 = vld [vmem:[%s10667_s10 + $0xe8] sm:$0xff]  }
 0x451   : > { %2239 = vmatprep.mubr.bf16.mxu1 %v10020_v35  ;;  %8144 = vmatpush3.bf16.msra.mxu1 %v9198_v16  ;;  %v9210_v16 = vld [vmem:[%s10667_s10 + $0xa8] sm:$0xff]  }
 0x452   : > { %8145 = vmatprep.subr.bf16.mxu1 %v9200_v4  ;;  %8205 = vmatprep.subr.bf16.mxu0 %v9208_v53 }
 0x453   : > { %v11423_v10 = vpop.permute.xlu0 %3110  ;;  %8206 = vmatpush3.bf16.msra.mxu0 %v9210_v16 }
 0x455   : > { %8146 = vmatpush3.bf16.msra.mxu1 %v9202_v50 }
 0x456   : > { %8835 = vmatmul.mubr.bf16.gmra.mrb[64].mxu0 %v9169_v55  ;;  %8259 = vmatprep.subr.bf16.mxu1 %v9205_v57 }
 0x457   : > { %8838 = vmatprep.mubr.bf16.mxu0 %v9171_v41  ;;  %v11429_v49 = vpop.permute.xlu0 %3270  ;;  %v9212_v41 = vld [vmem:[%s10667_s10 + $0xf0] sm:$0xff]  }
 0x458   : > { %2240 = vmatmul.mubr.bf16.gmra.mrb[64].mxu1 %v9170_v51  ;;  %15136 = vst [vmem:[#allocation59_spill] sm:$0xff] %v11429_v49  ;;  %8207 = vmatprep.subr.bf16.mxu0 %v9212_v41 }
 0x459   : > { %2249 = vmatprep.mubr.bf16.mxu1 %v10020_v35 }
 0x45b   : > { %v11436_v3 = vpop.permute.xlu0 %2956 }
 0x45c   : > { %vm2991_vm8 = vcmp.eq.s32.totalorder %v11436_v3, 1 }
 0x45e   : > { %8839 = vmatmul.mubr.bf16.gmra.mrb[68].mxu0 %v9172_v14  ;;  %v9214_v14 = vld [vmem:[%s10667_s10 + $0xb0] sm:$0xff]  }
 0x45f   : > { %8842 = vmatprep.mubr.bf16.mxu0 %v9174_v5  ;;  %v11442_v55 = vpop.permute.xlu0 %3116  ;;  %8208 = vmatpush3.bf16.msra.mxu0 %v9214_v14  ;;  %v9216_v5 = vld [vmem:[%s10667_s10 + $0xf8] sm:$0xff]  }
 0x460   : > { %2250 = vmatmul.mubr.bf16.gmra.mrb[68].mxu1 %v9173_v62  ;;  %8209 = vmatprep.subr.bf16.mxu0 %v9216_v5 }
 0x461   : > { %2259 = vmatprep.mubr.bf16.mxu1 %v10020_v35 }
 0x463   : > { %v11449_v62 = vpop.permute.xlu0 %3276 }
 0x464   : > { %15139 = vst [vmem:[#allocation62_spill] sm:$0xff] %v11449_v62 }
 0x466   : > { %8843 = vmatmul.mubr.bf16.gmra.mrb[72].mxu0 %v9175_v54  ;;  %v9218_v54 = vld [vmem:[%s10667_s10 + $0xb8] sm:$0xff]  }
 0x467   : > { %8846 = vmatprep.mubr.bf16.mxu0 %v9177_v19  ;;  %8210 = vmatpush3.bf16.msra.mxu0 %v9218_v54 }
 0x468   : > { %2260 = vmatmul.mubr.bf16.gmra.mrb[72].mxu1 %v9176_v6  ;;  %v11454_v6 = vpop.permute.xlu0 %2962  ;;  %8323 = vmatprep.subr.bf16.mxu0 %v9221_v37 }
 0x469   : > { %2269 = vmatprep.mubr.bf16.mxu1 %v10020_v35  ;;  %v11403_v35 = vpop.permute.xlu1 %2347  ;;  %vm2993_vm12 = vcmp.eq.s32.totalorder %v11454_v6, 1 }
 0x46a   : > { %15132 = vst [vmem:[#allocation55_spill] sm:$0xff] %v11403_v35  ;;  %9390 = vrcp.f32 %v11403_v35 }
 0x46b   : > { %9392 = vrcp.f32 %v11419_v61  ;;  %v9211_v61 = vld [vmem:[%s10667_s10 + $0x108] sm:$0xff]  }
 0x46c   : > { %9394 = vrcp.f32 %v11244_v43 }
 0x46d   : > { %v11407_v59 = vpop.permute.xlu1 %3107 }
 0x46e   : > { %8847 = vmatmul.mubr.bf16.gmra.mrb[76].mxu0 %v9178_v11 }
 0x470   : > { %2270 = vmatmul.mubr.bf16.gmra.mrb[76].mxu1 %v9179_v30  ;;  %v11458_v30 = vpop.permute.xlu0 %3122 }
 0x471   : > { %v11411_v52 = vpop.permute.xlu1 %3267  ;;  %15141 = vst [vmem:[#allocation64_spill] sm:$0xff] %v11458_v30 }
 0x474   : > { %v11462_v50 = vpop.permute.xlu0 %3467 }
 0x475   : > { %v11417_v63 = vpop.permute.xlu1 %2953  ;;  %15143 = vst [vmem:[#allocation66_spill] sm:$0xff] %v11462_v50 }
 0x476   : > { %vm2990_vm10 = vcmp.eq.s32.totalorder %v11417_v63, 1 }
 0x478   : > { %v11467_v44 = vpop.permute.xlu0 %3282 }
 0x479   : > { %v11421_v47 = vpop.permute.xlu1 %2357  ;;  %15145 = vst [vmem:[#allocation68_spill] sm:$0xff] %v11467_v44 }
 0x47a   : > { %15134 = vst [vmem:[#allocation57_spill] sm:$0xff] %v11421_v47  ;;  %9396 = vrcp.f32 %v11421_v47 }
 0x47b   : > { %9398 = vrcp.f32 %v11263_v31 }
 0x47c   : > { %v11471_v9 = vpop.permute.xlu0 %2968  ;;  %9400 = vrcp.f32 %v11266_v39 }
 0x47d   : > { %v11425_v32 = vpop.permute.xlu1 %3113  ;;  %vm2995_vm11 = vcmp.eq.s32.totalorder %v11471_v9, 1  ;;  %9402 = vrcp.f32 %v11287_v58 }
 0x47e   : > { %15135 = vst [vmem:[#allocation58_spill] sm:$0xff] %v11425_v32  ;;  %9404 = vrcp.f32 %v11290_v38 }
 0x47f   : > { %9406 = vrcp.f32 %v11304_v27 }
 0x480   : > { %v11475_v16 = vpop.permute.xlu0 %3128  ;;  %9408 = vrcp.f32 %v11314_v15  ;;  %v9226_v15 = vld [vmem:[%s10667_s10 + $0x128] sm:$0xff]  }
 0x481   : > { %v11431_v12 = vpop.permute.xlu1 %3273  ;;  %15147 = vst [vmem:[#allocation70_spill] sm:$0xff] %v11475_v16  ;;  %9410 = vrcp.f32 %v11324_v7 }
 0x482   : > { %15137 = vst [vmem:[#allocation60_spill] sm:$0xff] %v11431_v12 }
 0x484   : > { %v11479_v14 = vpop.permute.xlu0 %3477 }
 0x485   : > { %v11438_v0 = vpop.permute.xlu1 %2959  ;;  %15149 = vst [vmem:[#allocation72_spill] sm:$0xff] %v11479_v14 }
 0x486   : > { %vm2992_vm9 = vcmp.eq.s32.totalorder %v11438_v0, 1 }
 0x488   : > { %v11483_v54 = vpop.permute.xlu0 %3288 }
 0x489   : > { %v11445_v51 = vpop.permute.xlu1 %3119  ;;  %15151 = vst [vmem:[#allocation74_spill] sm:$0xff] %v11483_v54 }
 0x48a   : > { %15138 = vst [vmem:[#allocation61_spill] sm:$0xff] %v11445_v51 }
 0x48c   : > { %v11487_v45 = vpop.permute.xlu0 %2974 }
 0x48d   : > { %v11452_v19 = vpop.permute.xlu1 %3279  ;;  %vm2997_vm2 = vcmp.eq.s32.totalorder %v11487_v45, 1 }
 0x48e   : > { %15140 = vst [vmem:[#allocation63_spill] sm:$0xff] %v11452_v19 }
 0x490   : > { %v11491_v40 = vpop.permute.xlu0 %3134 }
 0x491   : > { %v11456_v11 = vpop.permute.xlu1 %2965  ;;  %15154 = vst [vmem:[#allocation77_spill] sm:$0xff] %v11491_v40 }
 0x492   : > { %vm2994_vm14 = vcmp.eq.s32.totalorder %v11456_v11, 1 }
 0x494   : > { %v11495_v44 = vpop.permute.xlu0 %3487 }
 0x495   : > { %v11460_v4 = vpop.permute.xlu1 %3125  ;;  %15156 = vst [vmem:[#allocation79_spill] sm:$0xff] %v11495_v44 }
 0x496   : > { %15142 = vst [vmem:[#allocation65_spill] sm:$0xff] %v11460_v4 }
 0x498   : > { %v11499_v34 = vpop.permute.xlu0 %3294 }
 0x499   : > { %v11464_v60 = vpop.permute.xlu1 %3472  ;;  %15158 = vst [vmem:[#allocation81_spill] sm:$0xff] %v11499_v34 }
 0x49a   : > { %15144 = vst [vmem:[#allocation67_spill] sm:$0xff] %v11464_v60 }
 0x49d   : > { %v11469_v57 = vpop.permute.xlu1 %3285 }
 0x49e   : > { %15146 = vst [vmem:[#allocation69_spill] sm:$0xff] %v11469_v57 }
 0x4a1   : > { %v11473_v53 = vpop.permute.xlu1 %2971 }
 0x4a2   : > { %vm2996_vm13 = vcmp.eq.s32.totalorder %v11473_v53, 1 }
 0x4a5   : > { %v11477_v41 = vpop.permute.xlu1 %3131 }
 0x4a6   : > { %15148 = vst [vmem:[#allocation71_spill] sm:$0xff] %v11477_v41 }
 0x4a9   : > { %v11481_v5 = vpop.permute.xlu1 %3482 }
 0x4aa   : > { %15150 = vst [vmem:[#allocation73_spill] sm:$0xff] %v11481_v5  ;;  %v11504_v5 = vpop.permute.xlu0 %2980 }
 0x4ab   : > { %vm2999_vm15 = vcmp.eq.s32.totalorder %v11504_v5, 1 }
 0x4ad   : > { %v11485_v48 = vpop.permute.xlu1 %3291 }
 0x4ae   : > { %15152 = vst [vmem:[#allocation75_spill] sm:$0xff] %v11485_v48  ;;  %v11509_v54 = vpop.permute.xlu0 %3140 }
 0x4af   : > { %15160 = vst [vmem:[#allocation83_spill] sm:$0xff] %v11509_v54 }
 0x4b1   : > { %v11489_v37 = vpop.permute.xlu1 %2977 }
 0x4b2   : > { %15153 = vst [vmem:[#allocation76_spill] sm:$0xff] %v11489_v37  ;;  %v11516_v12 = vpop.permute.xlu0 %3497 }
 0x4b3   : > { %15163 = vst [vmem:[#allocation86_spill] sm:$0xff] %v11516_v12 }
 0x4b5   : > { %v11493_v57 = vpop.permute.xlu1 %3137 }
 0x4b6   : > { %15155 = vst [vmem:[#allocation78_spill] sm:$0xff] %v11493_v57  ;;  %v11562_v51 = vpop.permute.xlu0 %3300 }
 0x4b7   : > { %15166 = vst [vmem:[#allocation89_spill] sm:$0xff] %v11562_v51 }
 0x4b9   : > { %v11497_v4 = vpop.permute.xlu1 %3492 }
 0x4ba   : > { %15157 = vst [vmem:[#allocation80_spill] sm:$0xff] %v11497_v4  ;;  %v9381_v4 = vpop.eup %9380 }
 0x4bb   : > { %v9383_v16 = vpop.eup %9382 }
 0x4bd   : > { %v11501_v41 = vpop.permute.xlu1 %3297 }
 0x4be   : > { %15159 = vst [vmem:[#allocation82_spill] sm:$0xff] %v11501_v41 }
 0x4c1   : > { %v11506_v48 = vpop.permute.xlu1 %2983 }
 0x4c5   : > { %v11511_v57 = vpop.permute.xlu1 %3143 }
 0x4c6   : > { %15161 = vst [vmem:[#allocation84_spill] sm:$0xff] %v11511_v57 }
 0x509   : > { %v8820_v40 = vpop.f32.mrb[48].mxu0 }
 0x50a   : > { %v2746_v44 = vpop.f32.mrb[49].mxu0  ;;  %v11534_v1 = vsel %vm2987_vm5, %v8820_v40, 1e+30 }
 0x50b   : > { %v2201_v34 = vpop.f32.mrb[48].mxu1  ;;  %v8821_v19 = vpop.f32.mrb[50].mxu0  ;;  %v11538_v56 = vsel %vm2985_vm3, %v2746_v44, -1e+30 }
 0x50c   : > { %v11514_v41 = vmul.f32 %v9381_v4, %v2201_v34  ;;  %v2203_v62 = vpop.f32.mrb[49].mxu1  ;;  %v2749_v30 = vpop.f32.mrb[51].mxu0  ;;  %v11576_v51 = vsel %vm2988_vm6, %v8821_v19, -1e+30  ;;  %v11580_v13 = vsel %vm2988_vm6, %v8821_v19, 1e+30 }
 0x50d   : > { %v2392_v49 = vmul.f32 %v9381_v4, %v2203_v62  ;;  %v2205_v8 = vpop.f32.mrb[50].mxu1  ;;  %v11524_v34 = vpop.permute.xlu1 %3502  ;;  %v11529_v62 = vsel %vm2987_vm5, %v8820_v40, -1e+30  ;;  %v11588_v47 = vsel %vm2986_vm4, %v2749_v30, -1e+30  ;;  %vm3305_vm5 = vcmp.eq.s32.totalorder %v11393_v17, 1 }
 0x50e   : > { %15162 = vst [vmem:[#allocation85_spill] sm:$0xff] %v11514_v41  ;;  %v2408_v54 = vmul.f32 %v11514_v41, %v11514_v41  ;;  %15164 = vst [vmem:[#allocation87_spill] sm:$0xff] %v11524_v34  ;;  %v11526_v2 = vmul.f32 %v9383_v16, %v2205_v8  ;;  %v2207_v57 = vpop.f32.mrb[51].mxu1  ;;  %v9207_v34 = vld [vmem:[%s10667_s10 + $0x100] sm:$0xff]   ;;  %vm3146_vm6 = vcmp.eq.s32.totalorder %v11391_v23, 1 }
 0x50f   : > { %v11531_v12 = vmul.f32 %v9383_v16, %v2207_v57  ;;  %v9385_v57 = vpop.eup %9384  ;;  %v11553_v16 = vsel %vm2985_vm3, %v2746_v44, 1e+30  ;;  %15169 = vst [vmem:[#allocation92_spill] sm:$0xff] %v11588_v47  ;;  %vm3148_vm3 = vcmp.eq.s32.totalorder %v11407_v59, 1 }
 0x510   : > { %15165 = vst [vmem:[#allocation88_spill] sm:$0xff] %v11526_v2  ;;  %v2424_v4 = vsub.f32 %v2392_v49, %v2408_v54  ;;  %v3433_v42 = vpack.c.bf16 %v11526_v2, %v11514_v41  ;;  %v9209_v49 = vld [vmem:[%s10667_s10 + $0x148] sm:$0xff]   ;;  %v2409_v54 = vmul.f32 %v11526_v2, %v11526_v2  ;;  %v9387_v37 = vpop.eup %9386 }
 0x511   : > { %v8824_v28 = vpop.f32.mrb[52].mxu0  ;;  %v11572_v43 = vpop.permute.xlu1 %3303 }
 0x512   : > { %v11540_v8 = vpop.f32.mrb[53].mxu0  ;;  %5040 = vmatprep.mubr.bf16.mxu1 %v3433_v42  ;;  %15167 = vst [vmem:[#allocation90_spill] sm:$0xff] %v11572_v43  ;;  %v11592_v43 = vsel %vm2986_vm4, %v2749_v30, 1e+30  ;;  %v2440_v21 = vmax.f32 %v2424_v4, 0.0  ;;  %v2425_v19 = vsub.f32 %v11531_v12, %v2409_v54  ;;  %v9217_v12 = vld [vmem:[%s10667_s10 + $0x158] sm:$0xff]   ;;  %v11620_v30 = vpop.eup %9388 }
 0x513   : > { %v2211_v40 = vpop.f32.mrb[52].mxu1  ;;  %v11557_v35 = vpop.f32.mrb[54].mxu0  ;;  %5041 = vmatmul.mubr.bf16.vlgmr.msra.gmra.mrb[80].mxu1 %v10674_v20  ;;  %15170 = vst [vmem:[#allocation93_spill] sm:$0xff] %v11592_v43  ;;  %15174 = vst [vmem:[#allocation97_spill] sm:$0xff] %v11620_v30  ;;  %v11628_v3 = vsel %vm2989_vm7, %v11540_v8, -1e+30 }
 0x514   : > { %v2213_v32 = vpop.f32.mrb[53].mxu1  ;;  %v11582_v44 = vmul.f32 %v9385_v57, %v2211_v40  ;;  %v2765_v20 = vpop.f32.mrb[55].mxu0  ;;  %8260 = vmatpush3.bf16.msra.mxu1 %v9207_v34  ;;  %v11598_v34 = vsel %vm2991_vm8, %v8824_v28, -1e+30  ;;  %v11602_v40 = vsel %vm2991_vm8, %v8824_v28, 1e+30 }
 0x515   : > { %v11568_v42 = vmul.f32 %v9385_v57, %v2213_v32  ;;  %v9213_v32 = vld [vmem:[%s10667_s10 + $0x150] sm:$0xff]   ;;  %8261 = vmatprep.subr.bf16.mxu1 %v9209_v49  ;;  %15171 = vst [vmem:[#allocation94_spill] sm:$0xff] %v11598_v34  ;;  %15172 = vst [vmem:[#allocation95_spill] sm:$0xff] %v11602_v40  ;;  %v2215_v14 = vpop.f32.mrb[54].mxu1  ;;  %v11632_v43 = vpop.eup %9390  ;;  %v11638_v47 = vadd.f32 1e-05, %v2440_v21 }
 0x516   : > { %15168 = vst [vmem:[#allocation91_spill] sm:$0xff] %v11582_v44  ;;  %v9215_v57 = vld [vmem:[%s10667_s10 + $0x110] sm:$0xff]   ;;  %v2410_v28 = vmul.f32 %v11582_v44, %v11582_v44  ;;  %v11616_v49 = vmul.f32 %v9387_v37, %v2215_v14  ;;  %v2217_v54 = vpop.f32.mrb[55].mxu1  ;;  %15175 = vst [vmem:[#allocation98_spill] sm:$0xff] %v11632_v43  ;;  %v11636_v30 = vpop.permute.xlu1 %3512  ;;  %v2441_v39 = vmax.f32 %v2425_v19, 0.0  ;;  %vm3000_vm4 = vcmp.eq.s32.totalorder %v11506_v48, 1 }
 0x517   : > { %v11630_v14 = vmul.f32 %v9387_v37, %v2217_v54  ;;  %15177 = vst [vmem:[#allocation100_spill] sm:$0xff] %v11636_v30  ;;  %15178 = vst [vmem:[#allocation101_spill] sm:$0xff] %v11638_v47  ;;  %v11643_v4 = vsel %vm2989_vm7, %v11540_v8, 1e+30  ;;  %v9219_v37 = vld [vmem:[%s10667_s10 + $0x118] sm:$0xff]   ;;  %v11647_v54 = vpop.eup %9392  ;;  %9412 = vrsqrt.f32 %v11638_v47  ;;  %vm3306_vm7 = vcmp.eq.s32.totalorder %v11395_v24, 1 }
 0x518   : > { %15173 = vst [vmem:[#allocation96_spill] sm:$0xff] %v11616_v49  ;;  %8262 = vmatpush3.bf16.msra.mxu1 %v9211_v61  ;;  %v11634_v61 = vpop.permute.xlu0 %3507  ;;  %15179 = vst [vmem:[#allocation102_spill] sm:$0xff] %v11643_v4  ;;  %v11658_v21 = vsel %vm2992_vm9, %v11557_v35, 1e+30  ;;  %v2411_v36 = vmul.f32 %v11616_v49, %v11616_v49  ;;  %v3434_v8 = vpack.c.bf16 %v11616_v49, %v11582_v44  ;;  %v9395_v30 = vpop.eup %9394  ;;  %v11669_v40 = vsel %vm2990_vm10, %v2765_v20, -1e+30 }
 0x519   : > { %v11607_v31 = vpop.f32.mrb[56].mxu0  ;;  %8263 = vmatprep.subr.bf16.mxu1 %v9213_v32  ;;  %15176 = vst [vmem:[#allocation99_spill] sm:$0xff] %v11634_v61  ;;  %15180 = vst [vmem:[#allocation103_spill] sm:$0xff] %v11647_v54  ;;  %v11653_v32 = vsel %vm2992_vm9, %v11557_v35, -1e+30  ;;  %v9220_v61 = vld [vmem:[%s10667_s10 + $0x160] sm:$0xff]   ;;  %v2426_v43 = vsub.f32 %v11568_v42, %v2410_v28  ;;  %v11686_v54 = vpop.eup %9396 }
 0x51a   : > { %v11618_v18 = vpop.f32.mrb[57].mxu0  ;;  %15181 = vst [vmem:[#allocation104_spill] sm:$0xff] %v11653_v32  ;;  %15182 = vst [vmem:[#allocation105_spill] sm:$0xff] %v11658_v21  ;;  %v11677_v34 = vsel %vm2990_vm10, %v2765_v20, 1e+30  ;;  %5048 = vmatprep.mubr.bf16.mxu1 %v3434_v8  ;;  %v9222_v20 = vld [vmem:[%s10667_s10 + $0x120] sm:$0xff]   ;;  %v9399_v4 = vpop.eup %9398 }
 0x51b   : > { %v2221_v19 = vpop.f32.mrb[56].mxu1  ;;  %v8829_v58 = vpop.f32.mrb[58].mxu0  ;;  %15183 = vst [vmem:[#allocation106_spill] sm:$0xff] %v11669_v40  ;;  %15184 = vst [vmem:[#allocation107_spill] sm:$0xff] %v11677_v34  ;;  %v11682_v42 = vsel %vm2995_vm11, %v11607_v31, -1e+30  ;;  %5049 = vmatmul.mubr.bf16.gmra.mrb[84].mxu1 %v10676_v22 }
 0x51c   : > { %v2223_v35 = vpop.f32.mrb[57].mxu1  ;;  %v11671_v0 = vpop.f32.mrb[59].mxu0  ;;  %8264 = vmatpush3.bf16.msra.mxu1 %v9215_v57  ;;  %15185 = vst [vmem:[#allocation108_spill] sm:$0xff] %v11682_v42  ;;  %15186 = vst [vmem:[#allocation109_spill] sm:$0xff] %v11686_v54  ;;  %v11690_v38 = vmul.f32 %v9395_v30, %v2221_v19  ;;  %v11696_v8 = vadd.f32 1e-05, %v2441_v39  ;;  %v11760_v42 = vmul.f32 %v11462_v50, %v11514_v41 }
 0x51d   : > { %v11684_v28 = vmul.f32 %v9395_v30, %v2223_v35  ;;  %8265 = vmatprep.subr.bf16.mxu1 %v9217_v12  ;;  %v2225_v63 = vpop.f32.mrb[58].mxu1  ;;  %v2427_v35 = vsub.f32 %v11630_v14, %v2411_v36  ;;  %v9224_v30 = vld [vmem:[%s10667_s10 + $0x168] sm:$0xff]   ;;  %v11705_v22 = vpop.permute.xlu0 %3517  ;;  %v2442_v19 = vmax.f32 %v2426_v43, 0.0  ;;  %v11719_v36 = vsel %vm2995_vm11, %v11607_v31, 1e+30 }
 0x51e   : > { %15187 = vst [vmem:[#allocation110_spill] sm:$0xff] %v11690_v38  ;;  %15188 = vst [vmem:[#allocation111_spill] sm:$0xff] %v11696_v8  ;;  %v2227_v57 = vpop.f32.mrb[59].mxu1  ;;  %v11709_v27 = vmul.f32 %v9399_v4, %v2225_v63  ;;  %v11713_v14 = vpop.eup %9400  ;;  %v11724_v43 = vsel %vm2993_vm12, %v11618_v18, -1e+30  ;;  %9414 = vrsqrt.f32 %v11696_v8  ;;  %vm3151_vm8 = vcmp.eq.s32.totalorder %v11442_v55, 1 }
 0x51f   : > { %15189 = vst [vmem:[#allocation112_spill] sm:$0xff] %v11705_v22  ;;  %15191 = vst [vmem:[#allocation114_spill] sm:$0xff] %v11719_v36  ;;  %v11726_v63 = vmul.f32 %v9399_v4, %v2227_v57  ;;  %v11735_v31 = vpop.permute.xlu1 %3522  ;;  %v11740_v9 = vsel %vm2993_vm12, %v11618_v18, 1e+30  ;;  %v11744_v4 = vsel %vm2996_vm13, %v8829_v58, -1e+30  ;;  %v9403_v34 = vpop.eup %9402 }
 0x520   : > { %15190 = vst [vmem:[#allocation113_spill] sm:$0xff] %v11709_v27  ;;  %8266 = vmatpush3.bf16.msra.mxu1 %v9219_v37  ;;  %v11732_v37 = vmul.f32 %v11464_v60, %v11526_v2  ;;  %15193 = vst [vmem:[#allocation116_spill] sm:$0xff] %v11735_v31  ;;  %v2443_v2 = vmax.f32 %v2427_v35, 0.0  ;;  %v11753_v22 = vsel %vm2996_vm13, %v8829_v58, 1e+30  ;;  %v9228_v31 = vld [vmem:[%s10667_s10 + $0x170] sm:$0xff]   ;;  %v3435_v53 = vpack.c.bf16 %v11709_v27, %v11690_v38  ;;  %v11778_v36 = vpop.eup %9404 }
 0x521   : > { %v11700_v54 = vpop.f32.mrb[60].mxu0  ;;  %8267 = vmatprep.subr.bf16.mxu1 %v9220_v61  ;;  %15194 = vst [vmem:[#allocation117_spill] sm:$0xff] %v11744_v4  ;;  %v2412_v61 = vmul.f32 %v11690_v38, %v11690_v38  ;;  %15195 = vst [vmem:[#allocation118_spill] sm:$0xff] %v11753_v22  ;;  %v11763_v7 = vadd.f32 1e-05, %v2442_v19  ;;  %v11789_v19 = vpop.permute.xlu0 %3527  ;;  %v9232_v35 = vld [vmem:[%s10667_s10 + $0x178] sm:$0xff]  }
 0x522   : > { %v11711_v12 = vpop.f32.mrb[61].mxu0  ;;  %15192 = vst [vmem:[#allocation115_spill] sm:$0xff] %v11732_v37  ;;  %15196 = vst [vmem:[#allocation119_spill] sm:$0xff] %v11760_v42  ;;  %v11769_v58 = vsel %vm2994_vm14, %v11671_v0, -1e+30  ;;  %5056 = vmatprep.mubr.bf16.mxu1 %v3435_v53  ;;  %v9234_v42 = vld [vmem:[%s10667_s10 + $0x138] sm:$0xff]  }
 0x523   : > { %v2231_v39 = vpop.f32.mrb[60].mxu1  ;;  %v11728_v49 = vpop.f32.mrb[62].mxu0  ;;  %15197 = vst [vmem:[#allocation120_spill] sm:$0xff] %v11763_v7  ;;  %15198 = vst [vmem:[#allocation121_spill] sm:$0xff] %v11769_v58  ;;  %v11791_v40 = vadd.f32 1e-05, %v2443_v2  ;;  %5057 = vmatmul.mubr.bf16.gmra.mrb[88].mxu1 %v10681_v26  ;;  %9416 = vrsqrt.f32 %v11763_v7 }
 0x524   : > { %v2233_v57 = vpop.f32.mrb[61].mxu1  ;;  %v11755_v6 = vpop.f32.mrb[63].mxu0  ;;  %8268 = vmatpush3.bf16.msra.mxu1 %v9222_v20  ;;  %v2428_v20 = vsub.f32 %v11684_v28, %v2412_v61  ;;  %15199 = vst [vmem:[#allocation122_spill] sm:$0xff] %v11789_v19  ;;  %v11797_v38 = vsel %vm2994_vm14, %v11671_v0, 1e+30  ;;  %v11801_v28 = vmul.f32 %v11709_v27, %v11709_v27  ;;  %vm3307_vm9 = vcmp.eq.s32.totalorder %v11409_v46, 1 }
 0x525   : > { %v2235_v18 = vpop.f32.mrb[62].mxu1  ;;  %8269 = vmatprep.subr.bf16.mxu1 %v9224_v30  ;;  %v11785_v41 = vmul.f32 %v11713_v14, %v2233_v57  ;;  %v9230_v30 = vld [vmem:[%s10667_s10 + $0x130] sm:$0xff]   ;;  %15200 = vst [vmem:[#allocation123_spill] sm:$0xff] %v11791_v40  ;;  %15201 = vst [vmem:[#allocation124_spill] sm:$0xff] %v11797_v38  ;;  %v11804_v61 = vpop.eup %9406  ;;  %v11812_v2 = vsel %vm2999_vm15, %v11700_v54, -1e+30  ;;  %9418 = vrsqrt.f32 %v11791_v40 }
 0x526   : > { %v2237_v21 = vpop.f32.mrb[63].mxu1  ;;  %v11807_v57 = vpop.permute.xlu1 %3532  ;;  %15203 = vst [vmem:[#allocation126_spill] sm:$0xff] %v11812_v2  ;;  %v11817_v11 = vsel %vm2999_vm15, %v11700_v54, 1e+30  ;;  %v11819_v0 = vmul.f32 %v9403_v34, %v2235_v18  ;;  %vm3308_vm10 = vcmp.eq.s32.totalorder %v11411_v52, 1  ;;  %v9237_v58 = vld [vmem:[%s10667_s10 + $0x240] sm:$0xff]   ;;  %vm11990_vm15 = vmpackc.low %vm3306_vm7, %vm3305_vm5 }
 0x527   : > { %15202 = vst [vmem:[#allocation125_spill] sm:$0xff] %v11807_v57  ;;  %15204 = vst [vmem:[#allocation127_spill] sm:$0xff] %v11817_v11  ;;  %v11821_v53 = vmul.f32 %v9403_v34, %v2237_v21  ;;  %v11824_v32 = vpop.eup %9408  ;;  %v11828_v57 = vmul.f32 %v11713_v14, %v2231_v39  ;;  %v15207_v21 = vmax.f32 %v11529_v62, -1e+30  ;;  %v15208_v39 = vmin.f32 %v11534_v1, 1e+30  ;;  %v11885_v4 = vpop.permute.xlu0 %3537 }
 0x528   : > { %15205 = vst [vmem:[#allocation128_spill] sm:$0xff] %v11819_v0  ;;  %8270 = vmatpush3.bf16.msra.mxu1 %v9226_v15  ;;  %v2444_v15 = vmax.f32 %v2428_v20, 0.0  ;;  %v11854_v62 = vsel %vm2997_vm2, %v11711_v12, -1e+30  ;;  %v11876_v33 = vsel %vm2997_vm2, %v11711_v12, 1e+30  ;;  %vm12030_vm2 = vmpackc.low %vm3308_vm10, %vm3307_vm9 }
 0x529   : > { %v8836_v26 = vpop.f32.mrb[64].mxu0  ;;  %15206 = vst [vmem:[#allocation129_spill] sm:$0xff] %v11828_v57  ;;  %8271 = vmatprep.subr.bf16.mxu1 %v9228_v31  ;;  %15209 = vst [vmem:[#allocation130_spill] sm:$0xff] %v11854_v62  ;;  %v15210_v31 = vmax.f32 %v11538_v56, -1e+30  ;;  %vm3149_vm11 = vcmp.eq.s32.totalorder %v11423_v10, 1 }
 0x52a   : > { %v3163_v5 = vsel %vm3147_vm0, %v8836_v26, -1e+30  ;;  %v3195_v54 = vsel %vm3147_vm0, %v8836_v26, 1e+30  ;;  %v2810_v18 = vpop.f32.mrb[65].mxu0  ;;  %15211 = vst [vmem:[#allocation131_spill] sm:$0xff] %v11876_v33 }
 0x52b   : > { %v11834_v34 = vpop.f32.mrb[64].mxu1  ;;  %v11839_v19 = vmax.f32 %v15207_v21, %v3163_v5  ;;  %v11843_v14 = vmin.f32 %v15208_v39, %v3195_v54  ;;  %v3161_v27 = vsel %vm3145_vm1, %v2810_v18, -1e+30  ;;  %v8837_v25 = vpop.f32.mrb[66].mxu0  ;;  %v3193_v20 = vsel %vm3145_vm1, %v2810_v18, 1e+30 }
 0x52c   : > { %v11847_v26 = vpop.f32.mrb[65].mxu1  ;;  %v11858_v1 = vmax.f32 %v15210_v31, %v3161_v27  ;;  %v3436_v5 = vpack.c.bf16 %v11819_v0, %v11828_v57  ;;  %v2813_v54 = vpop.f32.mrb[67].mxu0  ;;  %v2429_v27 = vsub.f32 %v11726_v63, %v11801_v28  ;;  %v15212_v56 = vmin.f32 %v11553_v16, 1e+30  ;;  %8272 = vmatpush3.bf16.msra.mxu1 %v9230_v30  ;;  %15213 = vst [vmem:[#allocation132_spill] sm:$0xff] %v11885_v4  ;;  %v15227_v40 = vld [vmem:[#allocation58_spill] sm:$0xff] }
 0x52d   : > { %v11864_v21 = vpop.f32.mrb[66].mxu1  ;;  %v11866_v39 = vpop.eup %9410  ;;  %v3164_v45 = vsel %vm3148_vm3, %v8837_v25, -1e+30  ;;  %8273 = vmatprep.subr.bf16.mxu1 %v9232_v35  ;;  %v11893_v16 = vadd.f32 1e-05, %v2444_v15  ;;  %v11912_v15 = vmul.f32 %v11828_v57, %v11828_v57  ;;  %vm3150_vm14 = vcmp.eq.s32.totalorder %v15227_v40, 1 }
 0x52e   : > { %v11880_v18 = vmin.f32 %v15212_v56, %v3193_v20  ;;  %v11882_v31 = vpop.f32.mrb[67].mxu1  ;;  %v9413_v22 = vpop.eup %9412  ;;  %5064 = vmatprep.mubr.bf16.mxu1 %v3436_v5  ;;  %v15215_v30 = vmax.f32 %v11576_v51, -1e+30  ;;  %v3196_v56 = vsel %vm3148_vm3, %v8837_v25, 1e+30  ;;  %v15220_v25 = vld [vmem:[#allocation76_spill] sm:$0xff] }
 0x52f   : > { %15214 = vst [vmem:[#allocation133_spill] sm:$0xff] %v11893_v16  ;;  %v11902_v63 = vpop.permute.xlu1 %3542  ;;  %v11908_v35 = vsel %vm3000_vm4, %v11728_v49, -1e+30  ;;  %5065 = vmatmul.mubr.bf16.gmra.mrb[92].mxu1 %v10685_v29  ;;  %vm2998_vm12 = vcmp.eq.s32.totalorder %v15220_v25, 1  ;;  %v15221_v12 = vmin.f32 %v11580_v13, 1e+30  ;;  %v2430_v48 = vsub.f32 %v11785_v41, %v11912_v15 }
 0x530   : > { %v11898_v20 = vmax.f32 %v15215_v30, %v3164_v45  ;;  %15216 = vst [vmem:[#allocation134_spill] sm:$0xff] %v11902_v63  ;;  %15217 = vst [vmem:[#allocation135_spill] sm:$0xff] %v11908_v35  ;;  %v15218_v45 = vld [vmem:[#allocation72_spill] sm:$0xff]  ;;  %v2445_v30 = vmax.f32 %v2429_v27, 0.0  ;;  %v3337_v5 = vsel %vm3305_vm5, %v11880_v18, 0.0  ;;  %8274 = vmatpush3.bf16.msra.mxu1 %v9234_v42  ;;  %v15222_v63 = vld [vmem:[#allocation61_spill] sm:$0xff]  ;;  %v11961_v42 = vpop.permute.xlu0 %3643  ;;  %v12004_v35 = vmul.f32 %v11804_v61, %v11864_v21 }
 0x531   : > { %v8840_v51 = vpop.f32.mrb[68].mxu0  ;;  %v11917_v59 = vmul.f32 %v15218_v45, %v11582_v44  ;;  %v11925_v28 = vmin.f32 %v15221_v12, %v3196_v56  ;;  %vm3152_vm13 = vcmp.eq.s32.totalorder %v15222_v63, 1  ;;  %v11933_v44 = vmul.f32 %v9413_v22, %v11638_v47  ;;  %8387 = vmatprep.subr.bf16.mxu1 %v9237_v58  ;;  %v15225_v45 = vld [vmem:[#allocation92_spill] sm:$0xff]  ;;  %v9415_v58 = vpop.eup %9414  ;;  %v9225_v33 = vld [vmem:[%s10667_s10 + $0x1c8] sm:$0xff]   ;;  %v15239_v62 = vld [vmem:[#allocation59_spill] sm:$0xff] }
 0x532   : > { %v7916_v37 = vpack.c.bf16 %v11898_v20, %v11839_v19  ;;  %v11929_v29 = vpop.f32.mrb[69].mxu0  ;;  %v3162_v27 = vsel %vm3146_vm6, %v2813_v54, -1e+30  ;;  %v3194_v13 = vsel %vm3146_vm6, %v2813_v54, 1e+30  ;;  %15228 = vst [vmem:[#allocation92_spill] sm:$0xff] %v11961_v42  ;;  %v11975_v7 = vmul.f32 %v11961_v42, %v3337_v5  ;;  %v12024_v21 = vpop.eup %9416 }
 0x533   : > { %15219 = vst [vmem:[#allocation136_spill] sm:$0xff] %v11917_v59  ;;  %15223 = vst [vmem:[#allocation76_spill] sm:$0xff] %v11933_v44  ;;  %v11940_v12 = vpop.f32.mrb[68].mxu1  ;;  %v11942_v56 = vpop.f32.mrb[70].mxu0  ;;  %v11948_v22 = vsel %vm3000_vm4, %v11728_v49, 1e+30  ;;  %v2415_v49 = vmul.f32 %v11819_v0, %v11819_v0  ;;  %9420 = vrsqrt.f32 %v11893_v16 }
 0x534   : > { %15224 = vst [vmem:[#allocation61_spill] sm:$0xff] %v11948_v22  ;;  %v15226_v57 = vmax.f32 %v15225_v45, -1e+30  ;;  %v11956_v23 = vpop.f32.mrb[69].mxu1  ;;  %v11958_v54 = vpop.f32.mrb[71].mxu0  ;;  %v15230_v45 = vld [vmem:[#allocation93_spill] sm:$0xff] }
 0x535   : > { %v11972_v44 = vpop.f32.mrb[70].mxu1  ;;  %15232 = vst [vmem:[#allocation93_spill] sm:$0xff] %v11975_v7  ;;  %v3167_v41 = vsel %vm3151_vm8, %v8840_v51, -1e+30  ;;  %v3199_v15 = vsel %vm3151_vm8, %v8840_v51, 1e+30 }
 0x536   : > { %v11954_v59 = vmax.f32 %v15226_v57, %v3162_v27  ;;  %v11968_v57 = vmul.f32 %v11462_v50, %v3337_v5  ;;  %v15231_v27 = vmin.f32 %v15230_v45, 1e+30  ;;  %v11983_v0 = vpop.f32.mrb[71].mxu1  ;;  %v9223_v50 = vld [vmem:[%s10667_s10 + $0x180] sm:$0xff]   ;;  %v11994_v45 = vpop.permute.xlu1 %3648  ;;  %15238 = vst [vmem:[#allocation139_spill] sm:$0xff] %v12004_v35  ;;  %vm3309_vm0 = vcmp.eq.s32.totalorder %v15239_v62, 1 }
 0x537   : > { %15235 = vst [vmem:[#allocation137_spill] sm:$0xff] %v11994_v45  ;;  %v15240_v11 = vld [vmem:[#allocation60_spill] sm:$0xff]  ;;  %v15245_v24 = vld [vmem:[#allocation94_spill] sm:$0xff]  ;;  %v15268_v63 = vld [vmem:[#allocation105_spill] sm:$0xff]  ;;  %v12267_v46 = vsel %vm3308_vm10, %v11898_v20, 0.0  ;;  %v2403_v52 = vmul.f32 %v11866_v39, %v11983_v0 }
 0x538   : > { %15229 = vst [vmem:[#allocation58_spill] sm:$0xff] %v11968_v57  ;;  %v3210_v4 = vmin.f32 %v15231_v27, %v3194_v13  ;;  %v7910_v47 = vpack.c.bf16 %v11954_v59, %v11858_v1  ;;  %v15236_v27 = vld [vmem:[#allocation41_spill] sm:$0xff]  ;;  %vm3310_vm1 = vcmp.eq.s32.totalorder %v15240_v11, 1  ;;  %15247 = vst [vmem:[#allocation94_spill] sm:$0xff] %v12024_v21  ;;  %v15253_v21 = vld [vmem:[#allocation70_spill] sm:$0xff] }
 0x539   : > { %v11997_v42 = vmul.f32 %v3337_v5, %v15236_v27  ;;  %v15243_v27 = vld [vmem:[#allocation43_spill] sm:$0xff]  ;;  %vm3155_vm3 = vcmp.eq.s32.totalorder %v15253_v21, 1  ;;  %v15260_v7 = vld [vmem:[#allocation102_spill] sm:$0xff]  ;;  %v15289_v21 = vmax.f32 %v11724_v43, -1e+30  ;;  %v12247_v43 = vsel %vm3307_vm9, %v11843_v14, 0.0 }
 0x53a   : > { %v3338_v55 = vsel %vm3306_vm7, %v3210_v4, 0.0  ;;  %v7913_v51 = vpack.c.bf16 %v3210_v4, %v11880_v18  ;;  %v15246_v4 = vmax.f32 %v15245_v24, -1e+30  ;;  %7911 = vmatprep.mubr.msk.bf16.mxu0 %vm11990_vm15, %v7910_v47  ;;  %v12037_v24 = vmul.f32 %v11778_v36, %v11834_v34  ;;  %15292 = vst [vmem:[#allocation105_spill] sm:$0xff] %v12247_v43 }
 0x53b   : > { %15237 = vst [vmem:[#allocation138_spill] sm:$0xff] %v11997_v42  ;;  %v12010_v2 = vmul.f32 %v11464_v60, %v3338_v55  ;;  %v12013_v5 = vmul.f32 %v11994_v45, %v3338_v55  ;;  %v12016_v38 = vmul.f32 %v3338_v55, %v15243_v27  ;;  %v2431_v55 = vsub.f32 %v11821_v53, %v2415_v49  ;;  %v12048_v60 = vpop.f32.mrb[72].mxu0  ;;  %v12083_v34 = vpop.f32.mrb[72].mxu1  ;;  %v9242_v45 = vld [vmem:[%s10667_s10 + $0x1a8] sm:$0xff]  }
 0x53c   : > { %v12020_v18 = vmax.f32 %v15246_v4, %v3167_v41  ;;  %15250 = vst [vmem:[#allocation142_spill] sm:$0xff] %v12037_v24  ;;  %v15251_v41 = vld [vmem:[#allocation95_spill] sm:$0xff]  ;;  %v3165_v27 = vsel %vm3149_vm11, %v11929_v29, -1e+30  ;;  %7914 = vmatmul.mubr.msk.bf16.vlgmr.msra.gmra.mrb[80].mxu0 %vm11990_vm15, %v7913_v51  ;;  %v12051_v53 = vadd.f32 1e-05, %v2445_v30  ;;  %v12067_v30 = vmul.f32 %v9415_v58, %v11696_v8 }
 0x53d   : > { %15241 = vst [vmem:[#allocation59_spill] sm:$0xff] %v12010_v2  ;;  %15242 = vst [vmem:[#allocation140_spill] sm:$0xff] %v12013_v5  ;;  %v15252_v47 = vmin.f32 %v15251_v41, 1e+30  ;;  %7917 = vmatprep.mubr.msk.bf16.mxu0 %vm12030_vm2, %v7916_v37  ;;  %8324 = vmatpush3.bf16.msra.mxu0 %v9223_v50  ;;  %v12061_v13 = vpop.f32.mrb[73].mxu0  ;;  %v9227_v51 = vld [vmem:[%s10667_s10 + $0x188] sm:$0xff]   ;;  %v3437_v25 = vpack.c.bf16 %v12004_v35, %v12037_v24 }
 0x53e   : > { %15244 = vst [vmem:[#allocation141_spill] sm:$0xff] %v12016_v38  ;;  %15254 = vst [vmem:[#allocation95_spill] sm:$0xff] %v12051_v53  ;;  %v9229_v41 = vld [vmem:[%s10667_s10 + $0x1d0] sm:$0xff]   ;;  %v12072_v49 = vsel %vm2998_vm12, %v11755_v6, -1e+30  ;;  %v12085_v42 = vpop.f32.mrb[74].mxu0  ;;  %8325 = vmatprep.subr.bf16.mxu0 %v9225_v33  ;;  %9422 = vrsqrt.f32 %v12051_v53 }
 0x53f   : > { %v12041_v4 = vmin.f32 %v15252_v47, %v3199_v15  ;;  %v15255_v47 = vld [vmem:[#allocation64_spill] sm:$0xff]  ;;  %15256 = vst [vmem:[#allocation70_spill] sm:$0xff] %v12067_v30  ;;  %v12077_v15 = vsel %vm2998_vm12, %v11755_v6, 1e+30  ;;  %v15258_v50 = vmax.f32 %v11628_v3, -1e+30  ;;  %5072 = vmatprep.mubr.bf16.mxu1 %v3437_v25  ;;  %v2417_v25 = vmul.f32 %v12004_v35, %v12004_v35 }
 0x540   : > { %vm3153_vm4 = vcmp.eq.s32.totalorder %v15255_v47, 1  ;;  %15257 = vst [vmem:[#allocation64_spill] sm:$0xff] %v12077_v15  ;;  %v3197_v58 = vsel %vm3149_vm11, %v11929_v29, 1e+30  ;;  %v3168_v3 = vsel %vm3152_vm13, %v11942_v56, -1e+30 }
 0x541   : > { %v12081_v37 = vmax.f32 %v15258_v50, %v3165_v27  ;;  %v12096_v6 = vpop.f32.mrb[73].mxu1  ;;  %v12098_v27 = vpop.f32.mrb[75].mxu0  ;;  %v2446_v33 = vmax.f32 %v2430_v48, 0.0  ;;  %v2447_v38 = vmax.f32 %v2431_v55, 0.0  ;;  %v15261_v5 = vmin.f32 %v15260_v7, 1e+30  ;;  %8326 = vmatpush3.bf16.msra.mxu0 %v9227_v51 }
 0x542   : > { %v12100_v50 = vpop.eup %9418  ;;  %v15262_v29 = vld [vmem:[#allocation104_spill] sm:$0xff]  ;;  %v12110_v16 = vpop.f32.mrb[74].mxu1  ;;  %v15264_v30 = vld [vmem:[#allocation62_spill] sm:$0xff]  ;;  %v15265_v8 = vld [vmem:[#allocation63_spill] sm:$0xff]  ;;  %v12120_v7 = vmul.f32 %v12037_v24, %v12037_v24  ;;  %v3200_v48 = vsel %vm3152_vm13, %v11942_v56, 1e+30  ;;  %8327 = vmatprep.subr.bf16.mxu0 %v9229_v41 }
 0x543   : > { %15259 = vst [vmem:[#allocation143_spill] sm:$0xff] %v12100_v50  ;;  %v12104_v10 = vmin.f32 %v15261_v5, %v3197_v58  ;;  %v15263_v57 = vmax.f32 %v15262_v29, -1e+30  ;;  %vm3311_vm6 = vcmp.eq.s32.totalorder %v15264_v30, 1  ;;  %vm3312_vm8 = vcmp.eq.s32.totalorder %v15265_v8, 1  ;;  %v12128_v5 = vpop.f32.mrb[75].mxu1  ;;  %vm12186_vm13 = vmpackc.low %vm3310_vm1, %vm3309_vm0  ;;  %v12240_v11 = vpop.eup %9420 }
 0x544   : > { %v12116_v50 = vmul.f32 %v11778_v36, %v11847_v26  ;;  %15266 = vst [vmem:[#allocation102_spill] sm:$0xff] %v12128_v5  ;;  %v9231_v55 = vld [vmem:[%s10667_s10 + $0x190] sm:$0xff]   ;;  %v2401_v26 = vmul.f32 %v11804_v61, %v11882_v31  ;;  %v15269_v56 = vmin.f32 %v15268_v63, 1e+30  ;;  %v15270_v29 = vld [vmem:[#allocation37_spill] sm:$0xff]  ;;  %v9233_v24 = vld [vmem:[%s10667_s10 + $0x1d8] sm:$0xff]  }
 0x545   : > { %v12108_v2 = vmax.f32 %v15263_v57, %v3168_v3  ;;  %v3166_v57 = vsel %vm3150_vm14, %v11958_v54, -1e+30  ;;  %v15267_v58 = vld [vmem:[#allocation71_spill] sm:$0xff]  ;;  %5073 = vmatmul.mubr.bf16.gmra.mrb[96].mxu1 %v15270_v29  ;;  %v15271_v36 = vld [vmem:[#allocation106_spill] sm:$0xff]  ;;  %v3198_v31 = vsel %vm3150_vm14, %v11958_v54, 1e+30  ;;  %8328 = vmatpush3.bf16.msra.mxu0 %v9231_v55 }
 0x546   : > { %vm3156_vm11 = vcmp.eq.s32.totalorder %v15267_v58, 1  ;;  %v12139_v3 = vmin.f32 %v15269_v56, %v3200_v48  ;;  %v15272_v22 = vmax.f32 %v15271_v36, -1e+30  ;;  %v15273_v48 = vld [vmem:[#allocation65_spill] sm:$0xff]  ;;  %v15274_v56 = vld [vmem:[#allocation107_spill] sm:$0xff]  ;;  %v12167_v40 = vpop.f32.mrb[76].mxu0  ;;  %8329 = vmatprep.subr.bf16.mxu0 %v9233_v24 }
 0x547   : > { %vm3154_vm12 = vcmp.eq.s32.totalorder %v15273_v48, 1  ;;  %v15275_v29 = vmin.f32 %v15274_v56, 1e+30  ;;  %v12169_v54 = vadd.f32 1e-05, %v2446_v33  ;;  %v12179_v56 = vpop.f32.mrb[77].mxu0  ;;  %v2433_v33 = vsub.f32 %v2401_v26, %v2417_v25 }
 0x548   : > { %v12148_v61 = vmax.f32 %v15272_v22, %v3166_v57  ;;  %v15277_v22 = vpack.c.bf16 %v11925_v28, %v11843_v14  ;;  %v12171_v57 = vadd.f32 1e-05, %v2447_v38  ;;  %v2432_v38 = vsub.f32 %v12116_v50, %v12120_v7  ;;  %v12199_v41 = vpop.f32.mrb[78].mxu0  ;;  %v9236_v63 = vld [vmem:[%s10667_s10 + $0x1e0] sm:$0xff]   ;;  %v15282_v35 = vld [vmem:[#allocation83_spill] sm:$0xff]  ;;  %15295 = vst [vmem:[#allocation106_spill] sm:$0xff] %v12267_v46  ;;  %v12324_v0 = vpop.eup %9422 }
 0x549   : > { %v12160_v51 = vmin.f32 %v15275_v29, %v3198_v31  ;;  %v12177_v31 = vmul.f32 %v11866_v39, %v11972_v44  ;;  %v9235_v29 = vld [vmem:[%s10667_s10 + $0x198] sm:$0xff]   ;;  %v3171_v55 = vsel %vm3155_vm3, %v12048_v60, -1e+30  ;;  %v15281_v5 = vld [vmem:[#allocation77_spill] sm:$0xff]  ;;  %vm3159_vm15 = vcmp.eq.s32.totalorder %v15282_v35, 1  ;;  %v15304_v46 = vld [vmem:[#allocation38_spill] sm:$0xff] }
 0x54a   : > { %7920 = vmatmul.mubr.msk.bf16.gmra.mrb[84].mxu0 %vm12030_vm2, %v15277_v22  ;;  %v7922_v36 = vpack.c.bf16 %v12148_v61, %v12081_v37  ;;  %v12197_v22 = vpop.f32.mrb[76].mxu1  ;;  %vm3157_vm14 = vcmp.eq.s32.totalorder %v15281_v5, 1  ;;  %v12206_v50 = vmul.f32 %v11824_v32, %v11940_v12  ;;  %v15284_v7 = vld [vmem:[#allocation108_spill] sm:$0xff]  ;;  %v3203_v53 = vsel %vm3155_vm3, %v12048_v60, 1e+30  ;;  %v15300_v58 = vld [vmem:[#allocation117_spill] sm:$0xff] }
 0x54b   : > { %15276 = vst [vmem:[#allocation104_spill] sm:$0xff] %v12160_v51  ;;  %15278 = vst [vmem:[#allocation62_spill] sm:$0xff] %v12177_v31  ;;  %v7925_v44 = vpack.c.bf16 %v12160_v51, %v12104_v10  ;;  %v15285_v26 = vmax.f32 %v15284_v7, -1e+30  ;;  %v3169_v24 = vsel %vm3153_vm4, %v12061_v13, -1e+30  ;;  %8330 = vmatpush3.bf16.msra.mxu0 %v9235_v29  ;;  %9424 = vrsqrt.f32 %v12169_v54 }
 0x54c   : > { %15283 = vst [vmem:[#allocation63_spill] sm:$0xff] %v12206_v50  ;;  %7923 = vmatprep.mubr.msk.bf16.mxu0 %vm12186_vm13, %v7922_v36  ;;  %v12223_v12 = vsel %vm3307_vm9, %v11839_v19, 0.0  ;;  %v15287_v7 = vld [vmem:[#allocation114_spill] sm:$0xff]  ;;  %v12231_v60 = vmax.f32 %v15289_v21, %v3169_v24  ;;  %v3201_v51 = vsel %vm3153_vm4, %v12061_v13, 1e+30  ;;  %v12236_v15 = vpop.f32.mrb[77].mxu1  ;;  %v3438_v24 = vpack.c.bf16 %v12177_v31, %v12206_v50  ;;  %8331 = vmatprep.subr.bf16.mxu0 %v9236_v63 }
 0x54d   : > { %v12210_v25 = vmax.f32 %v15285_v26, %v3171_v55  ;;  %15286 = vst [vmem:[#allocation71_spill] sm:$0xff] %v12223_v12  ;;  %v15288_v55 = vmin.f32 %v15287_v7, 1e+30  ;;  %v12238_v36 = vpop.f32.mrb[79].mxu0  ;;  %v15290_v19 = vld [vmem:[#allocation68_spill] sm:$0xff]  ;;  %v15291_v7 = vld [vmem:[#allocation69_spill] sm:$0xff]  ;;  %9426 = vrsqrt.f32 %v12171_v57 }
 0x54e   : > { %vm3313_vm2 = vcmp.eq.s32.totalorder %v15290_v19, 1  ;;  %vm3314_vm3 = vcmp.eq.s32.totalorder %v15291_v7, 1  ;;  %v15294_v13 = vmin.f32 %v11740_v9, 1e+30  ;;  %v9238_v21 = vld [vmem:[%s10667_s10 + $0x1a0] sm:$0xff]   ;;  %v2448_v17 = vmax.f32 %v2432_v38, 0.0  ;;  %5080 = vmatprep.mubr.bf16.mxu1 %v3438_v24 }
 0x54f   : > { %v12227_v26 = vmin.f32 %v15288_v55, %v3203_v53  ;;  %v12252_v53 = vsel %vm3305_vm5, %v11858_v1, 0.0  ;;  %v12260_v55 = vpop.f32.mrb[78].mxu1  ;;  %v2449_v14 = vmax.f32 %v2433_v33, 0.0  ;;  %v9240_v9 = vld [vmem:[%s10667_s10 + $0x1e8] sm:$0xff]   ;;  %v3172_v29 = vsel %vm3156_vm11, %v12085_v42, -1e+30  ;;  %vm12285_vm5 = vmpackc.low %vm3312_vm8, %vm3311_vm6  ;;  %5081 = vmatmul.mubr.bf16.gmra.mrb[100].mxu1 %v15304_v46  ;;  %8332 = vmatpush3.bf16.msra.mxu0 %v9238_v21 }
 0x550   : > { %15293 = vst [vmem:[#allocation37_spill] sm:$0xff] %v12252_v53  ;;  %v12256_v47 = vmin.f32 %v15294_v13, %v3201_v51  ;;  %v12269_v1 = vpop.f32.mrb[79].mxu1  ;;  %v2402_v51 = vmul.f32 %v11824_v32, %v11956_v23  ;;  %v3204_v20 = vsel %vm3156_vm11, %v12085_v42, 1e+30  ;;  %v15298_v38 = vld [vmem:[#allocation84_spill] sm:$0xff]  ;;  %v12293_v32 = vsel %vm3308_vm10, %v11925_v28, 0.0  ;;  %8333 = vmatprep.subr.bf16.mxu0 %v9240_v9 }
 0x551   : > { %vm3160_vm9 = vcmp.eq.s32.totalorder %v15298_v38, 1  ;;  %15299 = vst [vmem:[#allocation65_spill] sm:$0xff] %v12293_v32  ;;  %v2418_v23 = vmul.f32 %v12206_v50, %v12206_v50  ;;  %v15301_v42 = vmax.f32 %v15300_v58, -1e+30  ;;  %v15302_v13 = vld [vmem:[#allocation118_spill] sm:$0xff]  ;;  %v2419_v28 = vmul.f32 %v12177_v31, %v12177_v31  ;;  %v15342_v38 = vld [vmem:[#allocation101_spill] sm:$0xff] }
 0x552   : > { %v15303_v24 = vmin.f32 %v15302_v13, 1e+30  ;;  %7926 = vmatmul.mubr.msk.bf16.gmra.mrb[88].mxu0 %vm12186_vm13, %v7925_v44  ;;  %v15305_v46 = vpack.c.bf16 %v12108_v2, %v12020_v18  ;;  %v15306_v39 = vld [vmem:[#allocation78_spill] sm:$0xff]  ;;  %v12327_v44 = vadd.f32 1e-05, %v2448_v17  ;;  %v15312_v17 = vld [vmem:[#allocation124_spill] sm:$0xff] }
 0x553   : > { %v12299_v33 = vmax.f32 %v15301_v42, %v3172_v29  ;;  %v3170_v29 = vsel %vm3154_vm12, %v12098_v27, -1e+30  ;;  %vm3158_vm10 = vcmp.eq.s32.totalorder %v15306_v39, 1  ;;  %v12332_v42 = vsel %vm3306_vm7, %v11954_v59, 0.0  ;;  %v9244_v13 = vld [vmem:[%s10667_s10 + $0x1f0] sm:$0xff]   ;;  %8334 = vmatpush3.bf16.msra.mxu0 %v9242_v45  ;;  %v15371_v19 = vld [vmem:[#allocation76_spill] sm:$0xff] }
 0x554   : > { %v12303_v43 = vmin.f32 %v15303_v24, %v3204_v20  ;;  %v3202_v20 = vsel %vm3154_vm12, %v12098_v27, 1e+30  ;;  %7929 = vmatprep.mubr.msk.bf16.mxu0 %vm12285_vm5, %v15305_v46  ;;  %15307 = vst [vmem:[#allocation107_spill] sm:$0xff] %v12327_v44  ;;  %15309 = vst [vmem:[#allocation77_spill] sm:$0xff] %v12332_v42  ;;  %v12334_v27 = vadd.f32 1e-05, %v2449_v14  ;;  %v2434_v58 = vsub.f32 %v2402_v51, %v2418_v23 }
 0x555   : > { %v15310_v24 = vld [vmem:[#allocation121_spill] sm:$0xff]  ;;  %v15313_v31 = vmin.f32 %v15312_v17, 1e+30  ;;  %v15314_v59 = vld [vmem:[#allocation98_spill] sm:$0xff]  ;;  %v3175_v9 = vsel %vm3159_vm15, %v12167_v40, -1e+30  ;;  %v2435_v51 = vsub.f32 %v2403_v52, %v2419_v28  ;;  %9428 = vrsqrt.f32 %v12327_v44  ;;  %8335 = vmatprep.subr.bf16.mxu0 %v9244_v13 }
 0x556   : > { %v15311_v46 = vmax.f32 %v15310_v24, -1e+30  ;;  %v12351_v14 = vmul.f32 %v15314_v59, %v12110_v16  ;;  %v3207_v24 = vsel %vm3159_vm15, %v12167_v40, 1e+30  ;;  %v12367_v16 = vsel %vm3311_vm6, %v12020_v18, 0.0  ;;  %v15319_v23 = vld [vmem:[#allocation97_spill] sm:$0xff] }
 0x557   : > { %v12347_v32 = vmin.f32 %v15313_v31, %v3202_v20  ;;  %v15316_v31 = vld [vmem:[#allocation74_spill] sm:$0xff]  ;;  %v15317_v20 = vld [vmem:[#allocation75_spill] sm:$0xff]  ;;  %15318 = vst [vmem:[#allocation108_spill] sm:$0xff] %v12367_v16  ;;  %v12390_v28 = vsel %vm3311_vm6, %v12041_v4, 0.0  ;;  %vm12408_vm6 = vmpackc.low %vm3314_vm3, %vm3313_vm2  ;;  %9430 = vrsqrt.f32 %v12334_v27  ;;  %v12416_v5 = vsel %vm3309_vm0, %v12081_v37, 0.0 }
 0x558   : > { %v12343_v50 = vmax.f32 %v15311_v46, %v3170_v29  ;;  %15315 = vst [vmem:[#allocation83_spill] sm:$0xff] %v12351_v14  ;;  %v3173_v29 = vsel %vm3157_vm14, %v12179_v56, -1e+30  ;;  %vm3315_vm7 = vcmp.eq.s32.totalorder %v15316_v31, 1  ;;  %vm3316_vm4 = vcmp.eq.s32.totalorder %v15317_v20, 1  ;;  %v15321_v17 = vld [vmem:[#allocation126_spill] sm:$0xff] }
 0x559   : > { %v12371_v46 = vmul.f32 %v15319_v23, %v12083_v34  ;;  %v15322_v21 = vmax.f32 %v15321_v17, -1e+30  ;;  %v15323_v18 = vld [vmem:[#allocation127_spill] sm:$0xff]  ;;  %v15325_v45 = vld [vmem:[#allocation130_spill] sm:$0xff]  ;;  %v15331_v17 = vpack.c.bf16 %v12139_v3, %v12041_v4  ;;  %v2451_v37 = vmax.f32 %v2435_v51, 0.0 }
 0x55a   : > { %v7934_v35 = vpack.c.bf16 %v12343_v50, %v12231_v60  ;;  %v15324_v16 = vmin.f32 %v15323_v18, 1e+30  ;;  %v9246_v34 = vld [vmem:[%s10667_s10 + $0x1b0] sm:$0xff]   ;;  %v15326_v12 = vmax.f32 %v15325_v45, -1e+30  ;;  %v12432_v45 = vsel %vm3309_vm0, %v12104_v10, 0.0 }
 0x55b   : > { %15320 = vst [vmem:[#allocation114_spill] sm:$0xff] %v12371_v46  ;;  %v12380_v48 = vmax.f32 %v15322_v21, %v3175_v9  ;;  %v3205_v21 = vsel %vm3157_vm14, %v12179_v56, 1e+30  ;;  %v3439_v9 = vpack.c.bf16 %v12351_v14, %v12371_v46  ;;  %v2450_v56 = vmax.f32 %v2434_v58, 0.0  ;;  %7932 = vmatmul.mubr.msk.bf16.gmra.mrb[92].mxu0 %vm12285_vm5, %v15331_v17  ;;  %15332 = vst [vmem:[#allocation68_spill] sm:$0xff] %v12432_v45  ;;  %v15334_v10 = vld [vmem:[#allocation135_spill] sm:$0xff] }
 0x55c   : > { %v12384_v52 = vmin.f32 %v15324_v16, %v3207_v24  ;;  %v12394_v44 = vmax.f32 %v15326_v12, %v3173_v29  ;;  %v9248_v24 = vld [vmem:[%s10667_s10 + $0x1f8] sm:$0xff]   ;;  %v12402_v16 = vpop.eup %9424  ;;  %v2404_v58 = vmul.f32 %v15319_v23, %v12096_v6  ;;  %v3176_v4 = vsel %vm3160_vm9, %v12199_v41, -1e+30  ;;  %7935 = vmatprep.mubr.msk.bf16.mxu0 %vm12408_vm6, %v7934_v35  ;;  %8336 = vmatpush3.bf16.msra.mxu0 %v9246_v34  ;;  %v9253_v34 = vld [vmem:[%s10667_s10 + $0x2c0] sm:$0xff]   ;;  %v15347_v40 = vld [vmem:[#allocation82_spill] sm:$0xff] }
 0x55d   : > { %v15329_v12 = vld [vmem:[#allocation131_spill] sm:$0xff]  ;;  %v12427_v18 = vpop.eup %9426  ;;  %5088 = vmatprep.mubr.bf16.mxu1 %v3439_v9  ;;  %v2420_v63 = vmul.f32 %v12371_v46, %v12371_v46  ;;  %v15335_v51 = vmax.f32 %v15334_v10, -1e+30  ;;  %v3208_v6 = vsel %vm3160_vm9, %v12199_v41, 1e+30  ;;  %vm2474_vm11 = vcmp.eq.f32.partialorder %v15342_v38, inf  ;;  %8337 = vmatprep.subr.bf16.mxu0 %v9248_v24  ;;  %vm12523_vm14 = vmpackc.low %vm3316_vm4, %vm3315_vm7 }
 0x55e   : > { %v15330_v13 = vmin.f32 %v15329_v12, 1e+30  ;;  %v15336_v23 = vld [vmem:[#allocation39_spill] sm:$0xff]  ;;  %v3174_v41 = vsel %vm3158_vm10, %v12238_v36, -1e+30  ;;  %vm3318_vm13 = vcmp.eq.s32.totalorder %v15347_v40, 1  ;;  %v15362_v30 = vpack.c.bf16 %v12299_v33, %v12210_v25 }
 0x55f   : > { %v12447_v12 = vmax.f32 %v15335_v51, %v3176_v4  ;;  %5089 = vmatmul.mubr.bf16.gmra.mrb[104].mxu1 %v15336_v23  ;;  %v15337_v9 = vld [vmem:[#allocation111_spill] sm:$0xff]  ;;  %v12473_v51 = vsel %vm3312_vm8, %v12108_v2, 0.0  ;;  %v12475_v23 = vadd.f32 1e-05, %v2450_v56  ;;  %v12488_v24 = vsel %vm3312_vm8, %v12139_v3, 0.0  ;;  %v15353_v3 = vld [vmem:[#allocation109_spill] sm:$0xff] }
 0x560   : > { %v12420_v29 = vmin.f32 %v15330_v13, %v3205_v21  ;;  %v15333_v21 = vld [vmem:[#allocation102_spill] sm:$0xff]  ;;  %vm2481_vm0 = vcmp.eq.f32.partialorder %v15337_v9, inf  ;;  %v9250_v35 = vld [vmem:[%s10667_s10 + $0x1b8] sm:$0xff]   ;;  %v2421_v13 = vmul.f32 %v12351_v14, %v12351_v14  ;;  %15343 = vst [vmem:[#allocation84_spill] sm:$0xff] %v12473_v51  ;;  %15348 = vst [vmem:[#allocation118_spill] sm:$0xff] %v12488_v24  ;;  %v12493_v56 = vsel %vm3310_vm1, %v12148_v61, 0.0 }
 0x561   : > { %v2405_v62 = vmul.f32 %v15314_v59, %v15333_v21  ;;  %v15338_v17 = vld [vmem:[#allocation103_spill] sm:$0xff]  ;;  %v15340_v21 = vld [vmem:[#allocation61_spill] sm:$0xff]  ;;  %15350 = vst [vmem:[#allocation38_spill] sm:$0xff] %v12493_v56  ;;  %v12510_v61 = vmul.f32 %v15353_v3, %v12260_v55  ;;  %8338 = vmatpush3.bf16.msra.mxu0 %v9250_v35  ;;  %v2436_v24 = vsub.f32 %v2404_v58, %v2420_v63  ;;  %vm2476_vm8 = vcmp.eq.f32.partialorder %v15342_v38, 0.0  ;;  %v15366_v58 = vld [vmem:[#allocation40_spill] sm:$0xff] }
 0x562   : > { %v12459_v59 = vmul.f32 %v15338_v17, %v12197_v22  ;;  %v15341_v4 = vmin.f32 %v15340_v21, 1e+30  ;;  %v2406_v39 = vmul.f32 %v15338_v17, %v12236_v15  ;;  %8451 = vmatprep.subr.bf16.mxu0 %v9253_v34  ;;  %9432 = vrsqrt.f32 %v12475_v23  ;;  %v9268_v40 = vld [vmem:[%s10667_s10 + $0x2e0] sm:$0xff]  }
 0x563   : > { %15354 = vst [vmem:[#allocation78_spill] sm:$0xff] %v12510_v61  ;;  %v2437_v22 = vsub.f32 %v2405_v62, %v2421_v13  ;;  %v15359_v62 = vpack.c.bf16 %v12347_v32, %v12256_v47  ;;  %v12545_v35 = vsel %vm3315_vm7, %v12210_v25, 0.0  ;;  %v12550_v13 = vsel %vm3315_vm7, %v12227_v26, 0.0  ;;  %v15364_v25 = vld [vmem:[#allocation120_spill] sm:$0xff] }
 0x564   : > { %15339 = vst [vmem:[#allocation69_spill] sm:$0xff] %v12459_v59  ;;  %v12463_v10 = vmin.f32 %v15341_v4, %v3208_v6  ;;  %v15344_v6 = vmax.f32 %v12072_v49, -1e+30  ;;  %v15346_v4 = vld [vmem:[#allocation81_spill] sm:$0xff]  ;;  %v3206_v49 = vsel %vm3158_vm10, %v12238_v36, 1e+30  ;;  %v2422_v36 = vmul.f32 %v12459_v59, %v12459_v59 }
 0x565   : > { %vm3317_vm12 = vcmp.eq.s32.totalorder %v15346_v4, 1  ;;  %v3440_v63 = vpack.c.bf16 %v12510_v61, %v12459_v59  ;;  %7938 = vmatmul.mubr.msk.bf16.gmra.mrb[96].mxu0 %vm12408_vm6, %v15359_v62  ;;  %15360 = vst [vmem:[#allocation121_spill] sm:$0xff] %v12545_v35  ;;  %15361 = vst [vmem:[#allocation124_spill] sm:$0xff] %v12550_v13  ;;  %v2407_v17 = vmul.f32 %v15353_v3, %v12269_v1  ;;  %v12568_v31 = vsel %vm3313_vm2, %v12231_v60, 0.0  ;;  %v15367_v59 = vld [vmem:[#allocation70_spill] sm:$0xff]  ;;  %v15369_v13 = vld [vmem:[#allocation119_spill] sm:$0xff] }
 0x566   : > { %v12481_v21 = vmax.f32 %v15344_v6, %v3174_v41  ;;  %v12500_v41 = vadd.f32 1e-05, %v2451_v37  ;;  %v15351_v6 = vld [vmem:[#allocation64_spill] sm:$0xff]  ;;  %v2423_v34 = vmul.f32 %v12510_v61, %v12510_v61  ;;  %7941 = vmatprep.mubr.msk.bf16.mxu0 %vm12523_vm14, %v15362_v30  ;;  %v12573_v1 = vsel %vm3313_vm2, %v12256_v47, 0.0  ;;  %v15368_v61 = vld [vmem:[#allocation115_spill] sm:$0xff]  ;;  %vm12610_vm6 = vmpackc.low %vm3318_vm13, %vm3317_vm12 }
 0x567   : > { %v15352_v46 = vmin.f32 %v15351_v6, 1e+30  ;;  %v15357_v37 = vld [vmem:[#allocation104_spill] sm:$0xff]  ;;  %5096 = vmatprep.mubr.bf16.mxu1 %v3440_v63  ;;  %v15365_v6 = vld [vmem:[#allocation94_spill] sm:$0xff]  ;;  %v2453_v62 = vmax.f32 %v2437_v22, 0.0  ;;  %v2438_v30 = vsub.f32 %v2406_v39, %v2422_v36  ;;  %v2482_v60 = vsel %vm2481_vm0, %v15337_v9, %v15367_v59  ;;  %v15374_v36 = vld [vmem:[#allocation73_spill] sm:$0xff] }
 0x568   : > { %15345 = vst [vmem:[#allocation117_spill] sm:$0xff] %v12481_v21  ;;  %v7946_v8 = vpack.c.bf16 %v12481_v21, %v12394_v44  ;;  %v12531_v15 = vsel %vm3310_vm1, %v15357_v37, 0.0  ;;  %9434 = vrsqrt.f32 %v12500_v41  ;;  %v2487_v3 = vmul.f32 %v15365_v6, %v15364_v25  ;;  %5097 = vmatmul.mubr.bf16.gmra.mrb[108].mxu1 %v15366_v58  ;;  %v15373_v59 = vld [vmem:[#allocation96_spill] sm:$0xff]  ;;  %v15375_v63 = vld [vmem:[#allocation123_spill] sm:$0xff]  ;;  %v15392_v4 = vld [vmem:[#allocation110_spill] sm:$0xff] }
 0x569   : > { %v12504_v14 = vmin.f32 %v15352_v46, %v3206_v49  ;;  %v12517_v46 = vpop.eup %9428  ;;  %15358 = vst [vmem:[#allocation53_spill] sm:$0xff] %v12531_v15  ;;  %v15363_v49 = vld [vmem:[#allocation89_spill] sm:$0xff]  ;;  %v2452_v37 = vmax.f32 %v2436_v24, 0.0  ;;  %v15370_v35 = vpack.c.bf16 %v15368_v61, %v15369_v13  ;;  %v2475_v47 = vsel %vm2474_vm11, %v15342_v38, %v15371_v19  ;;  %v15372_v24 = vld [vmem:[#allocation90_spill] sm:$0xff] }
 0x56a   : > { %v12561_v2 = vpop.eup %9430  ;;  %vm3319_vm1 = vcmp.eq.s32.totalorder %v15363_v49, 1  ;;  %vm2483_vm15 = vcmp.eq.f32.partialorder %v15337_v9, 0.0  ;;  %v2484_v22 = vand.u32 2147483648, %v15337_v9  ;;  %vm2488_vm2 = vcmp.eq.f32.partialorder %v15364_v25, inf }
 0x56b   : > { %5234 = vmatprep.mubr.bf16.mxu1 %v15370_v35  ;;  %vm3320_vm5 = vcmp.eq.s32.totalorder %v15372_v24, 1  ;;  %v2439_v39 = vsub.f32 %v2407_v17, %v2423_v34  ;;  %v3548_v58 = vmul.f32 %v15374_v36, %v15373_v59  ;;  %v2489_v61 = vsel %vm2488_vm2, %v15364_v25, %v2487_v3  ;;  %v15376_v35 = vld [vmem:[#allocation143_spill] sm:$0xff] }
 0x56c   : > { %v2494_v13 = vmul.f32 %v15376_v35, %v15375_v63  ;;  %v12598_v6 = vsel %vm2483_vm15, %v2484_v22, %v2482_v60  ;;  %v2491_v19 = vand.u32 2147483648, %v15364_v25  ;;  %vm2495_vm9 = vcmp.eq.f32.partialorder %v15375_v63, inf  ;;  %v12644_v55 = vpop.eup %9432  ;;  %vm12718_vm0 = vmpackc.low %vm3320_vm5, %vm3319_vm1 }
 0x56d   : > { %15377 = vst [vmem:[#allocation98_spill] sm:$0xff] %v12598_v6  ;;  %v2498_v9 = vand.u32 2147483648, %v15375_v63  ;;  %v2454_v21 = vmax.f32 %v2438_v30, 0.0  ;;  %vm2490_vm10 = vcmp.eq.f32.partialorder %v15364_v25, 0.0  ;;  %vm2497_vm7 = vcmp.eq.f32.partialorder %v15375_v63, 0.0  ;;  %v9239_v25 = vld [vmem:[%s10667_s10 + $0x200] sm:$0xff]  }
 0x56e   : > { %v2496_v17 = vsel %vm2495_vm9, %v15375_v63, %v2494_v13  ;;  %v12614_v3 = vadd.f32 1e-05, %v2452_v37  ;;  %v15380_v60 = vand.u32 2147483648, %v15342_v38  ;;  %v15382_v22 = vpack.c.bf16 %v12303_v43, %v12227_v26  ;;  %v9241_v26 = vld [vmem:[%s10667_s10 + $0x248] sm:$0xff]  }
 0x56f   : > { %v12628_v63 = vsel %vm2490_vm10, %v2491_v19, %v2489_v61  ;;  %v12630_v35 = vsel %vm2497_vm7, %v2498_v9, %v2496_v17  ;;  %v12635_v37 = vsel %vm3316_vm4, %v12299_v33, 0.0  ;;  %v2455_v13 = vmax.f32 %v2439_v39, 0.0  ;;  %v15383_v39 = vld [vmem:[#allocation136_spill] sm:$0xff]  ;;  %v15384_v9 = vld [vmem:[#allocation133_spill] sm:$0xff] }
 0x570   : > { %v12620_v30 = vsel %vm2476_vm8, %v15380_v60, %v2475_v47  ;;  %7944 = vmatmul.mubr.msk.bf16.gmra.mrb[100].mxu0 %vm12523_vm14, %v15382_v22  ;;  %v3458_v47 = vpack.c.bf16 %v12630_v35, %v12628_v63  ;;  %v12649_v61 = vsel %vm3316_vm4, %v12303_v43, 0.0  ;;  %v12651_v33 = vadd.f32 1e-05, %v2453_v62 }
 0x571   : > { %15381 = vst [vmem:[#allocation74_spill] sm:$0xff] %v12620_v30  ;;  %v3457_v38 = vpack.c.bf16 %v12598_v6, %v12620_v30  ;;  %7947 = vmatprep.mubr.msk.bf16.mxu0 %vm12610_vm6, %v7946_v8  ;;  %v3562_v19 = vpack.c.bf16 %v3548_v58, %v15383_v39  ;;  %v2501_v17 = vmul.f32 %v12240_v11, %v15384_v9  ;;  %v12659_v8 = vsel %vm3314_vm3, %v12343_v50, 0.0  ;;  %v9243_v58 = vld [vmem:[%s10667_s10 + $0x208] sm:$0xff]   ;;  %v15390_v39 = vld [vmem:[#allocation95_spill] sm:$0xff] }
 0x572   : > { %v12664_v60 = vsel %vm3314_vm3, %v12347_v32, 0.0  ;;  %v12669_v43 = vsel %vm3319_vm1, %v12380_v48, 0.0  ;;  %v12671_v20 = vadd.f32 1e-05, %v2454_v21  ;;  %v12673_v11 = vpop.eup %9434  ;;  %9436 = vrsqrt.f32 %v12614_v3  ;;  %v15387_v32 = vld [vmem:[#allocation113_spill] sm:$0xff]  ;;  %v15388_v21 = vld [vmem:[#allocation80_spill] sm:$0xff] }
 0x573   : > { %15385 = vst [vmem:[#allocation75_spill] sm:$0xff] %v12669_v43  ;;  %5235 = vmatmul.mubr.bf16.vlgmr.msra.gmra.mrb[112].mxu1 %v3457_v38  ;;  %v12679_v50 = vsel %vm3319_vm1, %v12384_v52, 0.0  ;;  %v12684_v7 = vsel %vm3317_vm12, %v12394_v44, 0.0  ;;  %v3550_v62 = vmul.f32 %v15388_v21, %v15387_v32  ;;  %v12692_v22 = vsel %vm3317_vm12, %v12420_v29, 0.0  ;;  %v15393_v32 = vld [vmem:[#allocation79_spill] sm:$0xff]  ;;  %v15413_v43 = vld [vmem:[#allocation142_spill] sm:$0xff] }
 0x574   : > { %15386 = vst [vmem:[#allocation97_spill] sm:$0xff] %v12679_v50  ;;  %5242 = vmatprep.mubr.bf16.mxu1 %v3562_v19  ;;  %8388 = vmatpush3.bf16.msra.mxu1 %v9239_v25  ;;  %15389 = vst [vmem:[#allocation126_spill] sm:$0xff] %v12692_v22  ;;  %v12694_v38 = vadd.f32 1e-05, %v2455_v13  ;;  %vm2502_vm3 = vcmp.eq.f32.partialorder %v15384_v9, inf  ;;  %v2508_v44 = vmul.f32 %v12324_v0, %v15390_v39  ;;  %v9245_v19 = vld [vmem:[%s10667_s10 + $0x250] sm:$0xff]   ;;  %9438 = vrsqrt.f32 %v12651_v33 }
 0x575   : > { %8389 = vmatprep.subr.bf16.mxu1 %v9241_v26  ;;  %v12704_v25 = vsel %vm3320_vm5, %v12447_v12, 0.0  ;;  %v3549_v30 = vmul.f32 %v15393_v32, %v15392_v4  ;;  %v2503_v13 = vsel %vm2502_vm3, %v15384_v9, %v2501_v17  ;;  %9440 = vrsqrt.f32 %v12671_v20  ;;  %v15398_v6 = vld [vmem:[#allocation67_spill] sm:$0xff] }
 0x576   : > { %15391 = vst [vmem:[#allocation127_spill] sm:$0xff] %v12704_v25  ;;  %vm2504_vm4 = vcmp.eq.f32.partialorder %v15384_v9, 0.0  ;;  %v2505_v26 = vand.u32 2147483648, %v15384_v9  ;;  %v2522_v0 = vmul.f32 %v12427_v18, %v12171_v57  ;;  %v15396_v17 = vpack.c.bf16 %v12504_v14, %v12420_v29  ;;  %v9247_v9 = vld [vmem:[%s10667_s10 + $0x210] sm:$0xff]  }
 0x577   : > { %v3563_v4 = vpack.c.bf16 %v3550_v62, %v3549_v30  ;;  %vm2509_vm11 = vcmp.eq.f32.partialorder %v15390_v39, inf  ;;  %v15397_v18 = vld [vmem:[#allocation66_spill] sm:$0xff]  ;;  %v3594_v50 = vmul.f32 %v15398_v6, %v12332_v42  ;;  %9442 = vrsqrt.f32 %v12694_v38  ;;  %v9249_v62 = vld [vmem:[%s10667_s10 + $0x258] sm:$0xff]  }
 0x578   : > { %8390 = vmatpush3.bf16.msra.mxu1 %v9243_v58  ;;  %7950 = vmatmul.mubr.msk.bf16.gmra.mrb[104].mxu0 %vm12610_vm6, %v15396_v17  ;;  %v3593_v49 = vmul.f32 %v15397_v18, %v12252_v53  ;;  %v12734_v25 = vsel %vm2504_vm4, %v2505_v26, %v2503_v13  ;;  %v2510_v30 = vsel %vm2509_vm11, %v15390_v39, %v2508_v44  ;;  %vm2511_vm12 = vcmp.eq.f32.partialorder %v15390_v39, 0.0  ;;  %v15401_v44 = vld [vmem:[#allocation129_spill] sm:$0xff]  ;;  %v15402_v26 = vld [vmem:[#allocation86_spill] sm:$0xff]  ;;  %v15404_v17 = vld [vmem:[#allocation87_spill] sm:$0xff] }
 0x579   : > { %15399 = vst [vmem:[#allocation130_spill] sm:$0xff] %v12734_v25  ;;  %v15400_v29 = vpack.c.bf16 %v12447_v12, %v12380_v48  ;;  %8391 = vmatprep.subr.bf16.mxu1 %v9245_v19  ;;  %v2515_v34 = vmul.f32 %v12402_v16, %v12169_v54  ;;  %v2512_v58 = vand.u32 2147483648, %v15390_v39  ;;  %vm2523_vm8 = vcmp.eq.f32.partialorder %v12171_v57, inf  ;;  %v15403_v12 = vld [vmem:[#allocation128_spill] sm:$0xff]  ;;  %v15405_v16 = vld [vmem:[#allocation107_spill] sm:$0xff] }
 0x57a   : > { %v3609_v13 = vpack.c.bf16 %v3594_v50, %v3593_v49  ;;  %v3551_v48 = vmul.f32 %v15402_v26, %v15401_v44  ;;  %v3552_v19 = vmul.f32 %v15404_v17, %v15403_v12  ;;  %v2529_v18 = vmul.f32 %v12517_v46, %v15405_v16  ;;  %v15407_v50 = vld [vmem:[#allocation139_spill] sm:$0xff]  ;;  %v15408_v39 = vld [vmem:[#allocation100_spill] sm:$0xff] }
 0x57b   : > { %7953 = vmatprep.mubr.msk.bf16.mxu0 %vm12718_vm0, %v15400_v29  ;;  %5243 = vmatmul.mubr.bf16.gmra.mrb[116].mxu1 %v3458_v47  ;;  %v2524_v29 = vsel %vm2523_vm8, %v12171_v57, %v2522_v0  ;;  %v12755_v6 = vsel %vm2511_vm12, %v2512_v58, %v2510_v30  ;;  %vm2516_vm14 = vcmp.eq.f32.partialorder %v12169_v54, inf  ;;  %v2526_v47 = vand.u32 2147483648, %v12171_v57  ;;  %v9251_v44 = vld [vmem:[%s10667_s10 + $0x218] sm:$0xff]   ;;  %v15411_v30 = vld [vmem:[#allocation106_spill] sm:$0xff]  ;;  %v9252_v58 = vld [vmem:[%s10667_s10 + $0x260] sm:$0xff]  }
 0x57c   : > { %5250 = vmatprep.mubr.bf16.mxu1 %v3563_v4  ;;  %15406 = vst [vmem:[#allocation131_spill] sm:$0xff] %v12755_v6  ;;  %8392 = vmatpush3.bf16.msra.mxu1 %v9247_v9  ;;  %v12761_v49 = vmul.f32 %v15408_v39, %v15407_v50  ;;  %v2517_v12 = vsel %vm2516_vm14, %v12169_v54, %v2515_v34  ;;  %vm2525_vm1 = vcmp.eq.f32.partialorder %v12171_v57, 0.0  ;;  %v15409_v0 = vld [vmem:[#allocation71_spill] sm:$0xff]  ;;  %v15410_v46 = vld [vmem:[#allocation72_spill] sm:$0xff]  ;;  %v9437_v42 = vpop.eup %9436  ;;  %v2519_v50 = vand.u32 2147483648, %v12169_v54 }
 0x57d   : > { %8393 = vmatprep.subr.bf16.mxu1 %v9249_v62  ;;  %v12768_v4 = vmul.f32 %v15410_v46, %v15409_v0  ;;  %v12772_v9 = vmul.f32 %v15374_v36, %v15411_v30  ;;  %v12776_v53 = vsel %vm2525_vm1, %v2526_v47, %v2524_v29  ;;  %v15414_v34 = vld [vmem:[#allocation99_spill] sm:$0xff]  ;;  %vm2530_vm15 = vcmp.eq.f32.partialorder %v15405_v16, inf }
 0x57e   : > { %15412 = vst [vmem:[#allocation102_spill] sm:$0xff] %v12776_v53  ;;  %v12780_v22 = vmul.f32 %v15414_v34, %v15413_v43  ;;  %v3564_v57 = vpack.c.bf16 %v3552_v19, %v3551_v48  ;;  %vm2518_vm2 = vcmp.eq.f32.partialorder %v12169_v54, 0.0  ;;  %v2531_v62 = vsel %vm2530_vm15, %v15405_v16, %v2529_v18  ;;  %v9439_v0 = vpop.eup %9438  ;;  %v9254_v48 = vld [vmem:[%s10667_s10 + $0x220] sm:$0xff]   ;;  %v9258_v54 = vld [vmem:[%s10667_s10 + $0x228] sm:$0xff]  }
 0x57f   : > { %v3610_v30 = vpack.c.bf16 %v12772_v9, %v12768_v4  ;;  %v3459_v29 = vpack.c.bf16 %v12755_v6, %v12734_v25  ;;  %v15415_v47 = vpack.c.bf16 %v12463_v10, %v12384_v52  ;;  %v12794_v43 = vsel %vm2518_vm2, %v2519_v50, %v2517_v12  ;;  %v9441_v19 = vpop.eup %9440  ;;  %v15417_v52 = vld [vmem:[#allocation105_spill] sm:$0xff] }
 0x580   : > { %15416 = vst [vmem:[#allocation135_spill] sm:$0xff] %v12794_v43  ;;  %8394 = vmatpush3.bf16.msra.mxu1 %v9251_v44  ;;  %v2533_v18 = vand.u32 2147483648, %v15405_v16  ;;  %vm2532_vm9 = vcmp.eq.f32.partialorder %v15405_v16, 0.0  ;;  %v12805_v59 = vmul.f32 %v15410_v46, %v15417_v52  ;;  %v15418_v12 = vld [vmem:[#allocation65_spill] sm:$0xff]  ;;  %v12822_v16 = vmul.f32 %v15388_v21, %v12493_v56  ;;  %v15423_v56 = vld [vmem:[#allocation58_spill] sm:$0xff] }
 0x581   : > { %7956 = vmatmul.mubr.msk.bf16.gmra.mrb[108].mxu0 %vm12718_vm0, %v15415_v47  ;;  %8395 = vmatprep.subr.bf16.mxu1 %v9252_v58  ;;  %v12809_v50 = vmul.f32 %v15374_v36, %v15418_v12  ;;  %v9256_v44 = vld [vmem:[%s10667_s10 + $0x268] sm:$0xff]   ;;  %v2536_v47 = vmul.f32 %v12561_v2, %v12334_v27  ;;  %v9443_v58 = vpop.eup %9442  ;;  %vm2537_vm10 = vcmp.eq.f32.partialorder %v12334_v27, inf  ;;  %vm2539_vm7 = vcmp.eq.f32.partialorder %v12334_v27, 0.0  ;;  %v9255_v4 = vld [vmem:[%s10667_s10 + $0x280] sm:$0xff]  }
 0x582   : > { %5331 = vmatprep.mubr.bf16.mxu0 %v3609_v13  ;;  %v12812_v9 = vsel %vm2532_vm9, %v2533_v18, %v2531_v62  ;;  %v12818_v13 = vmul.f32 %v15393_v32, %v12416_v5  ;;  %v2557_v2 = vmul.f32 %v9437_v42, %v12614_v3  ;;  %vm2558_vm6 = vcmp.eq.f32.partialorder %v12614_v3, inf }
 0x583   : > { %15419 = vst [vmem:[#allocation39_spill] sm:$0xff] %v12812_v9  ;;  %5251 = vmatmul.mubr.bf16.gmra.mrb[120].mxu1 %v3459_v29  ;;  %vm2560_vm3 = vcmp.eq.f32.partialorder %v12614_v3, 0.0  ;;  %v2564_v29 = vmul.f32 %v9439_v0, %v12651_v33  ;;  %v2561_v62 = vand.u32 2147483648, %v12614_v3  ;;  %vm2565_vm4 = vcmp.eq.f32.partialorder %v12651_v33, inf }
 0x584   : > { %5258 = vmatprep.mubr.bf16.mxu1 %v3564_v57  ;;  %8396 = vmatpush3.bf16.msra.mxu1 %v9254_v48  ;;  %v2559_v6 = vsel %vm2558_vm6, %v12614_v3, %v2557_v2  ;;  %v2568_v42 = vand.u32 2147483648, %v12651_v33  ;;  %v9257_v57 = vld [vmem:[%s10667_s10 + $0x2c8] sm:$0xff]   ;;  %vm2567_vm0 = vcmp.eq.f32.partialorder %v12651_v33, 0.0  ;;  %v12845_v18 = vmul.f32 %v15393_v32, %v12432_v45  ;;  %v15422_v45 = vld [vmem:[#allocation59_spill] sm:$0xff] }
 0x585   : > { %8397 = vmatprep.subr.bf16.mxu1 %v9256_v44  ;;  %v2566_v48 = vsel %vm2565_vm4, %v12651_v33, %v2564_v29  ;;  %v12849_v0 = vmul.f32 %v15388_v21, %v12531_v15  ;;  %v9260_v44 = vld [vmem:[%s10667_s10 + $0x270] sm:$0xff]   ;;  %v2538_v3 = vsel %vm2537_vm10, %v12334_v27, %v2536_v47  ;;  %v12855_v2 = vsel %vm2560_vm3, %v2561_v62, %v2559_v6  ;;  %v15421_v29 = vld [vmem:[#allocation108_spill] sm:$0xff] }
 0x586   : > { %v12857_v25 = vsel %vm2567_vm0, %v2568_v42, %v2566_v48  ;;  %v12861_v33 = vmul.f32 %v15402_v26, %v15421_v29  ;;  %v2540_v32 = vand.u32 2147483648, %v12334_v27  ;;  %v15424_v21 = vpack.c.bf16 %v15422_v45, %v15423_v56  ;;  %v9262_v62 = vld [vmem:[%s10667_s10 + $0x230] sm:$0xff]   ;;  %v12876_v42 = vpop.permute.xlu0 %3653  ;;  %v12878_v48 = vpop.permute.xlu1 %3658  ;;  %v15426_v56 = vld [vmem:[#allocation116_spill] sm:$0xff] }
 0x587   : > { %15420 = vst [vmem:[#allocation111_spill] sm:$0xff] %v12857_v25  ;;  %v12873_v47 = vmul.f32 %v15404_v17, %v12473_v51  ;;  %v15425_v45 = vld [vmem:[#allocation62_spill] sm:$0xff]  ;;  %v2571_v15 = vmul.f32 %v9441_v19, %v12671_v20  ;;  %vm2572_vm11 = vcmp.eq.f32.partialorder %v12671_v20, inf  ;;  %vm2574_vm12 = vcmp.eq.f32.partialorder %v12671_v20, 0.0 }
 0x588   : > { %8398 = vmatpush3.bf16.msra.mxu1 %v9258_v54  ;;  %v9259_v54 = vld [vmem:[%s10667_s10 + $0x288] sm:$0xff]   ;;  %v9261_v51 = vld [vmem:[%s10667_s10 + $0x2d0] sm:$0xff]   ;;  %v2575_v29 = vand.u32 2147483648, %v12671_v20  ;;  %vm2579_vm8 = vcmp.eq.f32.partialorder %v12694_v38, inf  ;;  %v15427_v19 = vpack.c.bf16 %v12776_v53, %v12794_v43  ;;  %v12913_v43 = vsel %vm2539_vm7, %v2540_v32, %v2538_v3  ;;  %v9265_v3 = vld [vmem:[%s10667_s10 + $0x2d8] sm:$0xff]  }
 0x589   : > { %5332 = vmatmul.mubr.bf16.vlgmr.msra.gmra.mrb[112].mxu0 %v15424_v21  ;;  %v12882_v21 = vmul.f32 %v15426_v56, %v15425_v45  ;;  %8399 = vmatprep.subr.bf16.mxu1 %v9260_v44  ;;  %v2578_v45 = vmul.f32 %v9443_v58, %v12694_v38  ;;  %v12902_v44 = vmul.f32 %v15402_v26, %v12390_v28  ;;  %v15428_v6 = vld [vmem:[#allocation118_spill] sm:$0xff]  ;;  %vm2581_vm14 = vcmp.eq.f32.partialorder %v12694_v38, 0.0  ;;  %v9266_v26 = vld [vmem:[%s10667_s10 + $0x238] sm:$0xff]  }
 0x58a   : > { %5339 = vmatprep.mubr.bf16.mxu0 %v3610_v30  ;;  %8452 = vmatpush3.bf16.msra.mxu0 %v9255_v4  ;;  %v9264_v30 = vld [vmem:[%s10667_s10 + $0x278] sm:$0xff]   ;;  %v2573_v4 = vsel %vm2572_vm11, %v12671_v20, %v2571_v15  ;;  %v12906_v25 = vmul.f32 %v15404_v17, %v15428_v6  ;;  %v15429_v58 = vpack.c.bf16 %v12761_v49, %v12780_v22  ;;  %v9263_v17 = vld [vmem:[%s10667_s10 + $0x290] sm:$0xff]   ;;  %v12954_v24 = vpop.permute.xlu1 %3668  ;;  %vm2551_vm1 = vcmp.eq.f32.partialorder %v12500_v41, inf }
 0x58b   : > { %8453 = vmatprep.subr.bf16.mxu0 %v9257_v57  ;;  %5259 = vmatmul.mubr.bf16.gmra.mrb[124].mxu1 %v15427_v19  ;;  %v2582_v57 = vand.u32 2147483648, %v12694_v38  ;;  %15430 = vst [vmem:[#allocation103_spill] sm:$0xff] %v12913_v43  ;;  %v12917_v15 = vsel %vm2574_vm12, %v2575_v29, %v2573_v4  ;;  %v2580_v19 = vsel %vm2579_vm8, %v12694_v38, %v2578_v45  ;;  %v12938_v38 = vsel %vm3320_vm5, %v12463_v10, 0.0  ;;  %v9269_v45 = vld [vmem:[%s10667_s10 + $0x340] sm:$0xff]   ;;  %v15434_v10 = vld [vmem:[#allocation63_spill] sm:$0xff] }
 0x58c   : > { %5266 = vmatprep.mubr.bf16.mxu1 %v15429_v58  ;;  %8400 = vmatpush3.bf16.msra.mxu1 %v9262_v62  ;;  %v12929_v32 = vmul.f32 %v15414_v34, %v12568_v31  ;;  %v12933_v20 = vmul.f32 %v15408_v39, %v12659_v8  ;;  %15431 = vst [vmem:[#allocation61_spill] sm:$0xff] %v12938_v38  ;;  %15433 = vst [vmem:[#allocation81_spill] sm:$0xff] %v12954_v24  ;;  %vm2544_vm5 = vcmp.eq.f32.partialorder %v12475_v23, inf }
 0x58d   : > { %v12923_v22 = vsel %vm2581_vm14, %v2582_v57, %v2580_v19  ;;  %8401 = vmatprep.subr.bf16.mxu1 %v9264_v30  ;;  %v12945_v29 = vmul.f32 %v15414_v34, %v12573_v1  ;;  %v12949_v62 = vmul.f32 %v15408_v39, %v12664_v60  ;;  %v2543_v30 = vmul.f32 %v12644_v55, %v12475_v23  ;;  %v15436_v19 = vld [vmem:[#allocation117_spill] sm:$0xff]  ;;  %v15440_v55 = vld [vmem:[#allocation124_spill] sm:$0xff] }
 0x58e   : > { %8454 = vmatpush3.bf16.msra.mxu0 %v9259_v54  ;;  %v12952_v54 = vpop.permute.xlu0 %3663  ;;  %v2550_v57 = vmul.f32 %v12673_v11, %v12500_v41  ;;  %v12967_v49 = vsel %vm3318_vm13, %v15436_v19, 0.0  ;;  %v15437_v27 = vpack.c.bf16 %v12809_v50, %v12805_v59  ;;  %v12980_v58 = vmul.f32 %v15426_v56, %v12635_v37 }
 0x58f   : > { %8455 = vmatprep.subr.bf16.mxu0 %v9261_v51  ;;  %15432 = vst [vmem:[#allocation101_spill] sm:$0xff] %v12952_v54  ;;  %v15435_v51 = vld [vmem:[#allocation112_spill] sm:$0xff]  ;;  %v12985_v19 = vsel %vm3318_vm13, %v12504_v14, 0.0  ;;  %v3461_v59 = vpack.c.bf16 %v12913_v43, %v12812_v9  ;;  %v15439_v50 = vpack.c.bf16 %v12822_v16, %v12818_v13  ;;  %v13011_v16 = vmul.f32 %v15410_v46, %v12628_v63  ;;  %v13030_v14 = vpop.permute.xlu1 %3678  ;;  %v15454_v43 = vld [vmem:[#allocation83_spill] sm:$0xff] }
 0x590   : > { %v3555_v4 = vmul.f32 %v15435_v51, %v15434_v10  ;;  %8402 = vmatpush3.bf16.msra.mxu1 %v9266_v26  ;;  %v15438_v10 = vld [vmem:[#allocation121_spill] sm:$0xff]  ;;  %v13001_v34 = vmul.f32 %v15435_v51, %v15440_v55  ;;  %v2552_v13 = vsel %vm2551_vm1, %v12500_v41, %v2550_v57  ;;  %vm2553_vm13 = vcmp.eq.f32.partialorder %v12500_v41, 0.0 }
 0x591   : > { %5340 = vmatmul.mubr.bf16.gmra.mrb[116].mxu0 %v15437_v27  ;;  %v12976_v11 = vmul.f32 %v15435_v51, %v15438_v10  ;;  %v9267_v27 = vld [vmem:[%s10667_s10 + $0x298] sm:$0xff]   ;;  %8515 = vmatprep.subr.bf16.mxu1 %v9269_v45  ;;  %15443 = vst [vmem:[#allocation64_spill] sm:$0xff] %v13011_v16  ;;  %v2554_v45 = vand.u32 2147483648, %v12500_v41  ;;  %v15447_v57 = vld [vmem:[#allocation125_spill] sm:$0xff]  ;;  %v2547_v9 = vand.u32 2147483648, %v12475_v23  ;;  %vm2546_vm15 = vcmp.eq.f32.partialorder %v12475_v23, 0.0 }
 0x592   : > { %v3566_v26 = vpack.c.bf16 %v12882_v21, %v3555_v4  ;;  %5347 = vmatprep.mubr.bf16.mxu0 %v15439_v50  ;;  %8456 = vmatpush3.bf16.msra.mxu0 %v9263_v17  ;;  %15441 = vst [vmem:[#allocation82_spill] sm:$0xff] %v13001_v34  ;;  %v13005_v21 = vmul.f32 %v15426_v56, %v12649_v61  ;;  %v13028_v46 = vpop.permute.xlu0 %3673  ;;  %v15450_v4 = vld [vmem:[#allocation126_spill] sm:$0xff]  ;;  %v15455_v16 = vld [vmem:[#allocation75_spill] sm:$0xff] }
 0x593   : > { %8457 = vmatprep.subr.bf16.mxu0 %v9265_v3  ;;  %5267 = vmatmul.mubr.bf16.gmra.mrb[128].mxu1 %v3461_v59  ;;  %v2545_v17 = vsel %vm2544_vm5, %v12475_v23, %v2543_v30  ;;  %v13015_v3 = vmul.f32 %v15374_v36, %v12630_v35  ;;  %v15445_v59 = vld [vmem:[#allocation122_spill] sm:$0xff]  ;;  %v13026_v50 = vmul.f32 %v15447_v57, %v12967_v49  ;;  %v9270_v36 = vld [vmem:[%s10667_s10 + $0x2a0] sm:$0xff]  }
 0x594   : > { %15442 = vst [vmem:[#allocation60_spill] sm:$0xff] %v13005_v21  ;;  %5274 = vmatprep.mubr.bf16.mxu1 %v3566_v26  ;;  %v13022_v30 = vmul.f32 %v15445_v59, %v12684_v7  ;;  %15449 = vst [vmem:[#allocation120_spill] sm:$0xff] %v13028_v46  ;;  %v13038_v51 = vmul.f32 %v15445_v59, %v15450_v4  ;;  %v13042_v56 = vmul.f32 %v15447_v57, %v12985_v19  ;;  %v9272_v26 = vld [vmem:[%s10667_s10 + $0x2e8] sm:$0xff]  }
 0x595   : > { %15444 = vst [vmem:[#allocation109_spill] sm:$0xff] %v13015_v3  ;;  %15448 = vst [vmem:[#allocation89_spill] sm:$0xff] %v13026_v50  ;;  %v13045_v39 = vsel %vm2553_vm13, %v2554_v45, %v2552_v13  ;;  %v3558_v41 = vmul.f32 %v15447_v57, %v15454_v43  ;;  %v15456_v3 = vld [vmem:[#allocation132_spill] sm:$0xff]  ;;  %v15458_v13 = vld [vmem:[#allocation127_spill] sm:$0xff]  ;;  %v13063_v43 = vsel %vm2546_vm15, %v2547_v9, %v2545_v17 }
 0x596   : > { %15446 = vst [vmem:[#allocation104_spill] sm:$0xff] %v13022_v30  ;;  %8458 = vmatpush3.bf16.msra.mxu0 %v9267_v27  ;;  %15451 = vst [vmem:[#allocation94_spill] sm:$0xff] %v13038_v51  ;;  %v13057_v34 = vmul.f32 %v15456_v3, %v15455_v16  ;;  %v15459_v45 = vld [vmem:[#allocation134_spill] sm:$0xff]  ;;  %v15463_v23 = vpack.c.bf16 %v12849_v0, %v12845_v18  ;;  %v15464_v30 = vld [vmem:[#allocation97_spill] sm:$0xff]  ;;  %v15467_v9 = vpack.c.bf16 %v12873_v47, %v12861_v33  ;;  %v13089_v50 = vpop.permute.xlu0 %3683 }
 0x597   : > { %15452 = vst [vmem:[#allocation40_spill] sm:$0xff] %v13042_v56  ;;  %15453 = vst [vmem:[#allocation70_spill] sm:$0xff] %v13045_v39  ;;  %8459 = vmatprep.subr.bf16.mxu0 %v9268_v40  ;;  %v13061_v21 = vmul.f32 %v15459_v45, %v15458_v13  ;;  %v15462_v40 = vld [vmem:[#allocation114_spill] sm:$0xff]  ;;  %v13072_v53 = vmul.f32 %v15456_v3, %v15464_v30  ;;  %v13076_v51 = vmul.f32 %v15459_v45, %v12938_v38  ;;  %v15468_v33 = vld [vmem:[#allocation37_spill] sm:$0xff] }
 0x598   : > { %15457 = vst [vmem:[#allocation115_spill] sm:$0xff] %v13057_v34  ;;  %15461 = vst [vmem:[#allocation76_spill] sm:$0xff] %v13063_v43  ;;  %v3557_v27 = vmul.f32 %v15445_v59, %v15462_v40  ;;  %v3462_v56 = vpack.c.bf16 %v13045_v39, %v13063_v43  ;;  %v9274_v17 = vld [vmem:[%s10667_s10 + $0x2a8] sm:$0xff]   ;;  %v13091_v43 = vpop.permute.xlu1 %3688  ;;  %v15469_v47 = vld [vmem:[#allocation92_spill] sm:$0xff] }
 0x599   : > { %15460 = vst [vmem:[#allocation119_spill] sm:$0xff] %v13061_v21  ;;  %5348 = vmatmul.mubr.bf16.gmra.mrb[120].mxu0 %v15463_v23  ;;  %15465 = vst [vmem:[#allocation90_spill] sm:$0xff] %v13072_v53  ;;  %v9276_v23 = vld [vmem:[%s10667_s10 + $0x2f0] sm:$0xff]   ;;  %v15472_v39 = vld [vmem:[#allocation137_spill] sm:$0xff]  ;;  %v13134_v21 = vmul.f32 %v12952_v54, %v12416_v5 }
 0x59a   : > { %15466 = vst [vmem:[#allocation73_spill] sm:$0xff] %v13076_v51  ;;  %5355 = vmatprep.mubr.bf16.mxu0 %v15467_v9  ;;  %8460 = vmatpush3.bf16.msra.mxu0 %v9270_v36  ;;  %v3567_v0 = vpack.c.bf16 %v3558_v41, %v3557_v27  ;;  %v13095_v9 = vmul.f32 %v15469_v47, %v15468_v33  ;;  %v15471_v36 = vld [vmem:[#allocation77_spill] sm:$0xff]  ;;  %v15474_v27 = vld [vmem:[#allocation71_spill] sm:$0xff]  ;;  %v15476_v18 = vld [vmem:[#allocation106_spill] sm:$0xff] }
 0x59b   : > { %8461 = vmatprep.subr.bf16.mxu0 %v9272_v26  ;;  %5275 = vmatmul.mubr.bf16.gmra.mrb[132].mxu1 %v3462_v56  ;;  %v13099_v38 = vmul.f32 %v15472_v39, %v15471_v36  ;;  %v9278_v26 = vld [vmem:[%s10667_s10 + $0x2b0] sm:$0xff]   ;;  %v13106_v40 = vmul.f32 %v12876_v42, %v15474_v27  ;;  %v13110_v56 = vmul.f32 %v12878_v48, %v15476_v18  ;;  %v9280_v34 = vld [vmem:[%s10667_s10 + $0x2f8] sm:$0xff]   ;;  %v13140_v18 = vpop.permute.xlu0 %3693 }
 0x59c   : > { %15470 = vst [vmem:[#allocation123_spill] sm:$0xff] %v13095_v9  ;;  %5282 = vmatprep.mubr.bf16.mxu1 %v3567_v0  ;;  %v15478_v53 = vld [vmem:[#allocation78_spill] sm:$0xff]  ;;  %v13121_v0 = vmul.f32 %v12878_v48, %v15418_v12  ;;  %v15481_v9 = vld [vmem:[#allocation69_spill] sm:$0xff]  ;;  %15483 = vst [vmem:[#allocation72_spill] sm:$0xff] %v13134_v21  ;;  %v13142_v41 = vpop.permute.xlu1 %3698 }
 0x59d   : > { %15473 = vst [vmem:[#allocation143_spill] sm:$0xff] %v13099_v38  ;;  %15475 = vst [vmem:[#allocation136_spill] sm:$0xff] %v13106_v40  ;;  %v3560_v51 = vmul.f32 %v15459_v45, %v15478_v53  ;;  %v3559_v38 = vmul.f32 %v15456_v3, %v15481_v9  ;;  %v15482_v53 = vpack.c.bf16 %v12906_v25, %v12902_v44  ;;  %v15484_v12 = vld [vmem:[#allocation38_spill] sm:$0xff]  ;;  %v15488_v44 = vld [vmem:[#allocation111_spill] sm:$0xff] }
 0x59e   : > { %8462 = vmatpush3.bf16.msra.mxu0 %v9274_v17  ;;  %15477 = vst [vmem:[#allocation133_spill] sm:$0xff] %v13110_v56  ;;  %v13117_v17 = vmul.f32 %v12876_v42, %v15417_v52  ;;  %15480 = vst [vmem:[#allocation107_spill] sm:$0xff] %v13121_v0  ;;  %v13138_v52 = vmul.f32 %v12954_v24, %v15484_v12  ;;  %v15486_v9 = vpack.c.bf16 %v12933_v20, %v12929_v32  ;;  %v9285_v0 = vld [vmem:[%s10667_s10 + $0x3c0] sm:$0xff]  }
 0x59f   : > { %8463 = vmatprep.subr.bf16.mxu0 %v9276_v23  ;;  %v13150_v25 = vmul.f32 %v15445_v59, %v12855_v2  ;;  %v13154_v23 = vmul.f32 %v15447_v57, %v15488_v44  ;;  %v15490_v56 = vld [vmem:[#allocation68_spill] sm:$0xff]  ;;  %v15492_v20 = vld [vmem:[#allocation53_spill] sm:$0xff]  ;;  %v15493_v59 = vpack.c.bf16 %v15488_v44, %v12855_v2 }
 0x5a0   : > { %15479 = vst [vmem:[#allocation95_spill] sm:$0xff] %v13117_v17  ;;  %15485 = vst [vmem:[#allocation59_spill] sm:$0xff] %v13138_v52  ;;  %v3568_v17 = vpack.c.bf16 %v3560_v51, %v3559_v38  ;;  %v13161_v32 = vmul.f32 %v12952_v54, %v15490_v56  ;;  %v15494_v57 = vld [vmem:[#allocation88_spill] sm:$0xff] }
 0x5a1   : > { %5356 = vmatmul.mubr.bf16.gmra.mrb[124].mxu0 %v15482_v53  ;;  %v9282_v53 = vld [vmem:[%s10667_s10 + $0x2b8] sm:$0xff]   ;;  %15487 = vst [vmem:[#allocation58_spill] sm:$0xff] %v13150_v25  ;;  %15489 = vst [vmem:[#allocation118_spill] sm:$0xff] %v13154_v23  ;;  %v3722_v38 = vmul.f32 %v15472_v39, %v15494_v57  ;;  %v13190_v39 = vmul.f32 %v15459_v45, %v12923_v22  ;;  %v13208_v45 = vmul.f32 %v13091_v43, %v12659_v8  ;;  %v13220_v25 = vpop.permute.xlu0 %3703  ;;  %v13222_v23 = vpop.permute.xlu1 %3708 }
 0x5a2   : > { %5363 = vmatprep.mubr.bf16.mxu0 %v15486_v9  ;;  %8464 = vmatpush3.bf16.msra.mxu0 %v9278_v26  ;;  %15491 = vst [vmem:[#allocation117_spill] sm:$0xff] %v13161_v32  ;;  %v13165_v9 = vmul.f32 %v12954_v24, %v15492_v20  ;;  %v15495_v51 = vld [vmem:[#allocation108_spill] sm:$0xff]  ;;  %v13218_v57 = vmul.f32 %v13091_v43, %v12664_v60 }
 0x5a3   : > { %8465 = vmatprep.subr.bf16.mxu0 %v9280_v34  ;;  %5283 = vmatmul.mubr.bf16.gmra.mrb[136].mxu1 %v15493_v59  ;;  %v13176_v26 = vmul.f32 %v13028_v46, %v15495_v51  ;;  %v15497_v40 = vld [vmem:[#allocation84_spill] sm:$0xff]  ;;  %v13186_v59 = vmul.f32 %v15456_v3, %v12917_v15  ;;  %15500 = vst [vmem:[#allocation125_spill] sm:$0xff] %v13190_v39  ;;  %15504 = vst [vmem:[#allocation127_spill] sm:$0xff] %v13208_v45 }
 0x5a4   : > { %v13180_v21 = vmul.f32 %v13030_v14, %v15497_v40  ;;  %5290 = vmatprep.mubr.bf16.mxu1 %v3568_v17  ;;  %v13194_v34 = vmul.f32 %v13028_v46, %v12390_v28  ;;  %v13200_v17 = vmul.f32 %v13030_v14, %v15428_v6  ;;  %v13204_v3 = vmul.f32 %v13089_v50, %v12568_v31 }
 0x5a5   : > { %15496 = vst [vmem:[#allocation121_spill] sm:$0xff] %v13176_v26  ;;  %15499 = vst [vmem:[#allocation122_spill] sm:$0xff] %v13186_v59  ;;  %v15507_v26 = vld [vmem:[#allocation85_spill] sm:$0xff]  ;;  %v15508_v59 = vpack.c.bf16 %v12949_v62, %v12945_v29  ;;  %v13237_v32 = vmul.f32 %v13140_v18, %v15438_v10  ;;  %v13248_v29 = vmul.f32 %v13140_v18, %v15440_v55  ;;  %v13279_v52 = vpop.permute.xlu0 %3713  ;;  %v15523_v62 = vld [vmem:[#allocation96_spill] sm:$0xff] }
 0x5a6   : > { %15498 = vst [vmem:[#allocation124_spill] sm:$0xff] %v13180_v21  ;;  %15501 = vst [vmem:[#allocation126_spill] sm:$0xff] %v13194_v34  ;;  %8466 = vmatpush3.bf16.msra.mxu0 %v9282_v53  ;;  %v13214_v53 = vmul.f32 %v13089_v50, %v12573_v1  ;;  %v3721_v21 = vmul.f32 %v15469_v47, %v15507_v26  ;;  %v13241_v47 = vmul.f32 %v13142_v41, %v12635_v37 }
 0x5a7   : > { %15502 = vst [vmem:[#allocation75_spill] sm:$0xff] %v13200_v17  ;;  %15503 = vst [vmem:[#allocation132_spill] sm:$0xff] %v13204_v3  ;;  %8579 = vmatprep.subr.bf16.mxu0 %v9285_v0  ;;  %v15511_v0 = vpack.c.bf16 %v12980_v58, %v12976_v11  ;;  %v13258_v39 = vmul.f32 %v12876_v42, %v12628_v63  ;;  %v15516_v58 = vpack.c.bf16 %v12923_v22, %v12917_v15  ;;  %v9271_v3 = vld [vmem:[%s10667_s10 + $0x300] sm:$0xff]  }
 0x5a8   : > { %15505 = vst [vmem:[#allocation134_spill] sm:$0xff] %v13214_v53  ;;  %15506 = vst [vmem:[#allocation97_spill] sm:$0xff] %v13218_v57  ;;  %v3737_v26 = vpack.c.bf16 %v3722_v38, %v3721_v21  ;;  %v13262_v21 = vmul.f32 %v12878_v48, %v12630_v35  ;;  %v13269_v11 = vmul.f32 %v13220_v25, %v12684_v7  ;;  %v15526_v57 = vld [vmem:[#allocation74_spill] sm:$0xff] }
 0x5a9   : > { %5364 = vmatmul.mubr.bf16.gmra.mrb[128].mxu0 %v15508_v59  ;;  %15509 = vst [vmem:[#allocation37_spill] sm:$0xff] %v13237_v32  ;;  %15510 = vst [vmem:[#allocation77_spill] sm:$0xff] %v13241_v47  ;;  %v13254_v59 = vmul.f32 %v13142_v41, %v12649_v61  ;;  %v13273_v38 = vmul.f32 %v13222_v23, %v12967_v49  ;;  %v13281_v32 = vpop.permute.xlu1 %3718  ;;  %v15520_v47 = vld [vmem:[#allocation67_spill] sm:$0xff]  ;;  %v13319_v17 = vmul.f32 %v13279_v52, %v15464_v30 }
 0x5aa   : > { %5371 = vmatprep.mubr.bf16.mxu0 %v15511_v0  ;;  %15512 = vst [vmem:[#allocation71_spill] sm:$0xff] %v13248_v29  ;;  %15514 = vst [vmem:[#allocation111_spill] sm:$0xff] %v13258_v39  ;;  %v13293_v0 = vmul.f32 %v13222_v23, %v12985_v19  ;;  %v3724_v39 = vmul.f32 %v12878_v48, %v15523_v62  ;;  %v15529_v48 = vld [vmem:[#allocation60_spill] sm:$0xff]  ;;  %v15530_v62 = vld [vmem:[#allocation82_spill] sm:$0xff] }
 0x5ab   : > { %15513 = vst [vmem:[#allocation38_spill] sm:$0xff] %v13254_v59  ;;  %15515 = vst [vmem:[#allocation68_spill] sm:$0xff] %v13262_v21  ;;  %5291 = vmatmul.mubr.bf16.gmra.mrb[140].mxu1 %v15516_v58  ;;  %v15519_v58 = vld [vmem:[#allocation98_spill] sm:$0xff]  ;;  %v13299_v21 = vmul.f32 %v13279_v52, %v15455_v16  ;;  %v15528_v59 = vld [vmem:[#allocation91_spill] sm:$0xff]  ;;  %v15531_v45 = vpack.c.bf16 %v15529_v48, %v15530_v62 }
 0x5ac   : > { %15517 = vst [vmem:[#allocation53_spill] sm:$0xff] %v13269_v11  ;;  %15518 = vst [vmem:[#allocation108_spill] sm:$0xff] %v13273_v38  ;;  %5428 = vmatprep.mubr.bf16.mxu1 %v3737_v26  ;;  %v3618_v53 = vmul.f32 %v15520_v47, %v15519_v58  ;;  %v13289_v26 = vmul.f32 %v13220_v25, %v15450_v4  ;;  %v13303_v47 = vmul.f32 %v13281_v32, %v15458_v13  ;;  %v15527_v11 = vld [vmem:[#allocation66_spill] sm:$0xff]  ;;  %v15538_v48 = vld [vmem:[#allocation41_spill] sm:$0xff] }
 0x5ad   : > { %15522 = vst [vmem:[#allocation67_spill] sm:$0xff] %v13293_v0  ;;  %15524 = vst [vmem:[#allocation144_spill] sm:$0xff] %v13299_v21  ;;  %v3617_v38 = vmul.f32 %v15527_v11, %v15526_v57  ;;  %v3723_v58 = vmul.f32 %v12876_v42, %v15528_v59  ;;  %v15533_v11 = vld [vmem:[#allocation61_spill] sm:$0xff]  ;;  %v13333_v34 = vmul.f32 %v15468_v33, %v15538_v48  ;;  %v15540_v21 = vld [vmem:[#allocation43_spill] sm:$0xff] }
 0x5ae   : > { %15521 = vst [vmem:[#allocation84_spill] sm:$0xff] %v13289_v26  ;;  %15525 = vst [vmem:[#allocation145_spill] sm:$0xff] %v13303_v47  ;;  %v13323_v57 = vmul.f32 %v13281_v32, %v15533_v11  ;;  %v15535_v42 = vld [vmem:[#allocation89_spill] sm:$0xff]  ;;  %v15536_v26 = vld [vmem:[#allocation104_spill] sm:$0xff]  ;;  %v13337_v47 = vmul.f32 %v15471_v36, %v15540_v21 }
 0x5af   : > { %15532 = vst [vmem:[#allocation66_spill] sm:$0xff] %v13319_v17  ;;  %v3633_v29 = vpack.c.bf16 %v3618_v53, %v3617_v38  ;;  %v15537_v0 = vpack.c.bf16 %v15535_v42, %v15536_v26  ;;  %v9273_v59 = vld [vmem:[%s10667_s10 + $0x348] sm:$0xff]   ;;  %v3738_v62 = vpack.c.bf16 %v3724_v39, %v3723_v58  ;;  %15539 = vst [vmem:[#allocation82_spill] sm:$0xff] %v13333_v34  ;;  %v15544_v58 = vld [vmem:[#allocation44_spill] sm:$0xff] }
 0x5b0   : > { %15534 = vst [vmem:[#allocation60_spill] sm:$0xff] %v13323_v57  ;;  %15541 = vst [vmem:[#allocation61_spill] sm:$0xff] %v13337_v47  ;;  %v9275_v53 = vld [vmem:[%s10667_s10 + $0x308] sm:$0xff]   ;;  %v9277_v42 = vld [vmem:[%s10667_s10 + $0x350] sm:$0xff]  }
 0x5b1   : > { %5372 = vmatmul.mubr.bf16.gmra.mrb[132].mxu0 %v15531_v45  ;;  %v15542_v39 = vld [vmem:[#allocation42_spill] sm:$0xff]  ;;  %v15547_v36 = vld [vmem:[#allocation113_spill] sm:$0xff] }
 0x5b2   : > { %5379 = vmatprep.mubr.bf16.mxu0 %v15537_v0  ;;  %v13344_v0 = vmul.f32 %v15474_v27, %v15542_v39  ;;  %v15545_v26 = vld [vmem:[#allocation106_spill] sm:$0xff]  ;;  %v15550_v27 = vld [vmem:[#allocation65_spill] sm:$0xff] }
 0x5b3   : > { %5429 = vmatmul.mubr.bf16.vlgmr.msra.gmra.mrb[144].mxu1 %v3633_v29  ;;  %v13348_v33 = vmul.f32 %v15545_v26, %v15544_v58  ;;  %v3726_v29 = vmul.f32 %v12954_v24, %v15547_v36  ;;  %v13361_v45 = vmul.f32 %v15550_v27, %v15544_v58  ;;  %v15552_v34 = vld [vmem:[#allocation110_spill] sm:$0xff]  ;;  %v9281_v27 = vld [vmem:[%s10667_s10 + $0x358] sm:$0xff]  }
 0x5b4   : > { %5436 = vmatprep.mubr.bf16.mxu1 %v3738_v62  ;;  %8516 = vmatpush3.bf16.msra.mxu1 %v9271_v3  ;;  %15543 = vst [vmem:[#allocation89_spill] sm:$0xff] %v13344_v0  ;;  %v15548_v62 = vld [vmem:[#allocation105_spill] sm:$0xff]  ;;  %v3725_v26 = vmul.f32 %v12952_v54, %v15552_v34  ;;  %v15555_v17 = vld [vmem:[#allocation46_spill] sm:$0xff]  ;;  %v15557_v3 = vld [vmem:[#allocation40_spill] sm:$0xff]  ;;  %v13381_v54 = vmul.f32 %v13220_v25, %v12855_v2 }
 0x5b5   : > { %15546 = vst [vmem:[#allocation104_spill] sm:$0xff] %v13348_v33  ;;  %8517 = vmatprep.subr.bf16.mxu1 %v9273_v59  ;;  %v13357_v38 = vmul.f32 %v15548_v62, %v15542_v39  ;;  %15551 = vst [vmem:[#allocation43_spill] sm:$0xff] %v13361_v45  ;;  %v15553_v59 = vld [vmem:[#allocation45_spill] sm:$0xff]  ;;  %v13371_v57 = vmul.f32 %v15484_v12, %v15555_v17  ;;  %v15558_v0 = vld [vmem:[#allocation94_spill] sm:$0xff]  ;;  %v13389_v12 = vmul.f32 %v12628_v63, %v15542_v39 }
 0x5b6   : > { %v13367_v47 = vmul.f32 %v12416_v5, %v15553_v59  ;;  %v15559_v62 = vpack.c.bf16 %v15557_v3, %v15558_v0  ;;  %v9279_v33 = vld [vmem:[%s10667_s10 + $0x310] sm:$0xff]   ;;  %15560 = vst [vmem:[#allocation106_spill] sm:$0xff] %v13381_v54  ;;  %v13385_v5 = vmul.f32 %v13222_v23, %v15488_v44  ;;  %v3739_v45 = vpack.c.bf16 %v3726_v29, %v3725_v26  ;;  %v15574_v29 = vld [vmem:[#allocation48_spill] sm:$0xff] }
 0x5b7   : > { %15549 = vst [vmem:[#allocation41_spill] sm:$0xff] %v13357_v38  ;;  %15556 = vst [vmem:[#allocation44_spill] sm:$0xff] %v13371_v57  ;;  %v15564_v0 = vld [vmem:[#allocation119_spill] sm:$0xff]  ;;  %v13405_v24 = vmul.f32 %v15490_v56, %v15553_v59  ;;  %v13420_v26 = vmul.f32 %v15497_v40, %v15574_v29  ;;  %v13424_v56 = vmul.f32 %v13279_v52, %v12917_v15  ;;  %v15578_v63 = vld [vmem:[#allocation130_spill] sm:$0xff] }
 0x5b8   : > { %15554 = vst [vmem:[#allocation42_spill] sm:$0xff] %v13367_v47  ;;  %8518 = vmatpush3.bf16.msra.mxu1 %v9275_v53  ;;  %15561 = vst [vmem:[#allocation113_spill] sm:$0xff] %v13385_v5  ;;  %v13393_v53 = vmul.f32 %v12630_v35, %v15544_v58  ;;  %v15565_v3 = vld [vmem:[#allocation115_spill] sm:$0xff]  ;;  %v13409_v35 = vmul.f32 %v15492_v20, %v15555_v17  ;;  %v13428_v20 = vmul.f32 %v13281_v32, %v12923_v22  ;;  %v15581_v54 = vld [vmem:[#allocation80_spill] sm:$0xff] }
 0x5b9   : > { %5380 = vmatmul.mubr.bf16.gmra.mrb[136].mxu0 %v15559_v62  ;;  %15562 = vst [vmem:[#allocation105_spill] sm:$0xff] %v13389_v12  ;;  %v15566_v62 = vpack.c.bf16 %v15564_v0, %v15565_v3  ;;  %8519 = vmatprep.subr.bf16.mxu1 %v9277_v42  ;;  %15567 = vst [vmem:[#allocation110_spill] sm:$0xff] %v13405_v24  ;;  %v15569_v0 = vld [vmem:[#allocation109_spill] sm:$0xff]  ;;  %v15570_v42 = vld [vmem:[#allocation64_spill] sm:$0xff] }
 0x5ba   : > { %15563 = vst [vmem:[#allocation65_spill] sm:$0xff] %v13393_v53  ;;  %15568 = vst [vmem:[#allocation45_spill] sm:$0xff] %v13409_v35  ;;  %v15571_v3 = vpack.c.bf16 %v15569_v0, %v15570_v42  ;;  %v15579_v0 = vld [vmem:[#allocation79_spill] sm:$0xff]  ;;  %v9284_v47 = vld [vmem:[%s10667_s10 + $0x360] sm:$0xff]  }
 0x5bb   : > { %5387 = vmatprep.mubr.bf16.mxu0 %v15566_v62  ;;  %v15572_v62 = vld [vmem:[#allocation47_spill] sm:$0xff]  ;;  %15575 = vst [vmem:[#allocation40_spill] sm:$0xff] %v13420_v26  ;;  %15576 = vst [vmem:[#allocation94_spill] sm:$0xff] %v13424_v56  ;;  %v3621_v42 = vmul.f32 %v15579_v0, %v15578_v63  ;;  %v15586_v35 = vld [vmem:[#allocation49_spill] sm:$0xff] }
 0x5bc   : > { %5437 = vmatmul.mubr.bf16.gmra.mrb[148].mxu1 %v15571_v3  ;;  %v13416_v38 = vmul.f32 %v15495_v51, %v15572_v62  ;;  %15577 = vst [vmem:[#allocation119_spill] sm:$0xff] %v13428_v20  ;;  %v15580_v3 = vld [vmem:[#allocation131_spill] sm:$0xff]  ;;  %v13444_v0 = vmul.f32 %v12390_v28, %v15572_v62  ;;  %v13456_v57 = vmul.f32 %v12568_v31, %v15586_v35  ;;  %v15590_v31 = vld [vmem:[#allocation73_spill] sm:$0xff]  ;;  %v15591_v26 = vld [vmem:[#allocation90_spill] sm:$0xff] }
 0x5bd   : > { %5444 = vmatprep.mubr.bf16.mxu1 %v3739_v45  ;;  %v3622_v51 = vmul.f32 %v15581_v54, %v15580_v3  ;;  %8520 = vmatpush3.bf16.msra.mxu1 %v9279_v33  ;;  %v9283_v5 = vld [vmem:[%s10667_s10 + $0x318] sm:$0xff]   ;;  %v13448_v54 = vmul.f32 %v15428_v6, %v15574_v29  ;;  %v15584_v33 = vld [vmem:[#allocation129_spill] sm:$0xff]  ;;  %v15587_v45 = vld [vmem:[#allocation50_spill] sm:$0xff]  ;;  %v13466_v6 = vmul.f32 %v12573_v1, %v15586_v35 }
 0x5be   : > { %15573 = vst [vmem:[#allocation46_spill] sm:$0xff] %v13416_v38  ;;  %8521 = vmatprep.subr.bf16.mxu1 %v9281_v27  ;;  %15582 = vst [vmem:[#allocation115_spill] sm:$0xff] %v13444_v0  ;;  %v3727_v40 = vmul.f32 %v13028_v46, %v15584_v33  ;;  %v15585_v27 = vld [vmem:[#allocation128_spill] sm:$0xff]  ;;  %v13460_v56 = vmul.f32 %v12659_v8, %v15587_v45  ;;  %v13470_v20 = vmul.f32 %v12664_v60, %v15587_v45  ;;  %v15593_v0 = vld [vmem:[#allocation51_spill] sm:$0xff] }
 0x5bf   : > { %15583 = vst [vmem:[#allocation109_spill] sm:$0xff] %v13448_v54  ;;  %v3728_v24 = vmul.f32 %v13030_v14, %v15585_v27  ;;  %15588 = vst [vmem:[#allocation64_spill] sm:$0xff] %v13466_v6  ;;  %v15592_v46 = vpack.c.bf16 %v15590_v31, %v15591_v26  ;;  %v9286_v8 = vld [vmem:[%s10667_s10 + $0x320] sm:$0xff]   ;;  %v13482_v1 = vmul.f32 %v15438_v10, %v15593_v0  ;;  %v15597_v38 = vld [vmem:[#allocation143_spill] sm:$0xff] }
 0x5c0   : > { %15589 = vst [vmem:[#allocation47_spill] sm:$0xff] %v13470_v20  ;;  %v15595_v54 = vld [vmem:[#allocation52_spill] sm:$0xff]  ;;  %v3635_v35 = vpack.c.bf16 %v3622_v51, %v3621_v42  ;;  %v15598_v12 = vld [vmem:[#allocation123_spill] sm:$0xff] }
 0x5c1   : > { %5388 = vmatmul.mubr.bf16.gmra.mrb[140].mxu0 %v15592_v46  ;;  %8522 = vmatpush3.bf16.msra.mxu1 %v9283_v5  ;;  %15594 = vst [vmem:[#allocation48_spill] sm:$0xff] %v13482_v1  ;;  %v13486_v60 = vmul.f32 %v12635_v37, %v15595_v54  ;;  %v15599_v53 = vpack.c.bf16 %v15597_v38, %v15598_v12  ;;  %v9288_v46 = vld [vmem:[%s10667_s10 + $0x368] sm:$0xff]   ;;  %v15604_v12 = vld [vmem:[#allocation55_spill] sm:$0xff]  ;;  %v9287_v10 = vld [vmem:[%s10667_s10 + $0x380] sm:$0xff]  }
 0x5c2   : > { %8523 = vmatprep.subr.bf16.mxu1 %v9284_v47  ;;  %v3740_v26 = vpack.c.bf16 %v3728_v24, %v3727_v40  ;;  %v13498_v37 = vmul.f32 %v15440_v55, %v15593_v0  ;;  %v13502_v42 = vmul.f32 %v12649_v61, %v15595_v54  ;;  %v15602_v38 = vld [vmem:[#allocation54_spill] sm:$0xff]  ;;  %v13510_v24 = vmul.f32 %v12967_v49, %v15604_v12  ;;  %v15607_v51 = vld [vmem:[#allocation87_spill] sm:$0xff] }
 0x5c3   : > { %15596 = vst [vmem:[#allocation130_spill] sm:$0xff] %v13486_v60  ;;  %5525 = vmatprep.mubr.bf16.mxu0 %v15599_v53  ;;  %v13506_v47 = vmul.f32 %v12684_v7, %v15602_v38  ;;  %v15606_v53 = vld [vmem:[#allocation102_spill] sm:$0xff]  ;;  %v13524_v49 = vmul.f32 %v15450_v4, %v15602_v38  ;;  %v15618_v60 = vld [vmem:[#allocation140_spill] sm:$0xff] }
 0x5c4   : > { %15600 = vst [vmem:[#allocation79_spill] sm:$0xff] %v13498_v37  ;;  %15601 = vst [vmem:[#allocation131_spill] sm:$0xff] %v13502_v42  ;;  %5445 = vmatmul.mubr.bf16.gmra.mrb[152].mxu1 %v3635_v35  ;;  %v3624_v55 = vmul.f32 %v15607_v51, %v15606_v53  ;;  %v9290_v40 = vld [vmem:[%s10667_s10 + $0x328] sm:$0xff]   ;;  %v15608_v35 = vld [vmem:[#allocation139_spill] sm:$0xff] }
 0x5c5   : > { %15603 = vst [vmem:[#allocation80_spill] sm:$0xff] %v13506_v47  ;;  %15605 = vst [vmem:[#allocation129_spill] sm:$0xff] %v13510_v24  ;;  %5452 = vmatprep.mubr.bf16.mxu1 %v3740_v26  ;;  %8524 = vmatpush3.bf16.msra.mxu1 %v9286_v8  ;;  %v3730_v31 = vmul.f32 %v13091_v43, %v15608_v35  ;;  %v13528_v8 = vmul.f32 %v12985_v19, %v15604_v12  ;;  %v15611_v26 = vld [vmem:[#allocation135_spill] sm:$0xff]  ;;  %v15612_v51 = vld [vmem:[#allocation86_spill] sm:$0xff] }
 0x5c6   : > { %8525 = vmatprep.subr.bf16.mxu1 %v9288_v46  ;;  %15609 = vst [vmem:[#allocation128_spill] sm:$0xff] %v13524_v49  ;;  %v3623_v61 = vmul.f32 %v15612_v51, %v15611_v26  ;;  %v15613_v5 = vld [vmem:[#allocation142_spill] sm:$0xff]  ;;  %v15614_v42 = vld [vmem:[#allocation56_spill] sm:$0xff]  ;;  %v15615_v47 = vld [vmem:[#allocation57_spill] sm:$0xff]  ;;  %v13548_v51 = vmul.f32 %v12855_v2, %v15602_v38  ;;  %v13552_v24 = vmul.f32 %v15488_v44, %v15604_v12 }
 0x5c7   : > { %15610 = vst [vmem:[#allocation50_spill] sm:$0xff] %v13528_v8  ;;  %v3729_v28 = vmul.f32 %v13089_v50, %v15613_v5  ;;  %v9289_v37 = vld [vmem:[%s10667_s10 + $0x3c8] sm:$0xff]   ;;  %v9292_v46 = vld [vmem:[%s10667_s10 + $0x370] sm:$0xff]   ;;  %v13538_v7 = vmul.f32 %v15455_v16, %v15614_v42  ;;  %v13544_v19 = vmul.f32 %v15458_v13, %v15615_v47  ;;  %v13560_v13 = vmul.f32 %v15464_v30, %v15614_v42  ;;  %v15624_v44 = vld [vmem:[#allocation136_spill] sm:$0xff] }
 0x5c8   : > { %15616 = vst [vmem:[#allocation73_spill] sm:$0xff] %v13548_v51  ;;  %15617 = vst [vmem:[#allocation90_spill] sm:$0xff] %v13552_v24  ;;  %v3636_v1 = vpack.c.bf16 %v3624_v55, %v3623_v61  ;;  %v15619_v16 = vld [vmem:[#allocation93_spill] sm:$0xff]  ;;  %v9294_v4 = vld [vmem:[%s10667_s10 + $0x330] sm:$0xff]   ;;  %v13564_v2 = vmul.f32 %v15533_v11, %v15615_v47 }
 0x5c9   : > { %v15620_v6 = vpack.c.bf16 %v15618_v60, %v15619_v16  ;;  %8526 = vmatpush3.bf16.msra.mxu1 %v9290_v40  ;;  %15621 = vst [vmem:[#allocation51_spill] sm:$0xff] %v13560_v13  ;;  %v3741_v49 = vpack.c.bf16 %v3730_v31, %v3729_v28  ;;  %v15623_v8 = vld [vmem:[#allocation133_spill] sm:$0xff]  ;;  %v9296_v60 = vld [vmem:[%s10667_s10 + $0x378] sm:$0xff]   ;;  %v9293_v11 = vld [vmem:[%s10667_s10 + $0x3d0] sm:$0xff]  }
 0x5ca   : > { %15622 = vst [vmem:[#allocation52_spill] sm:$0xff] %v13564_v2  ;;  %v15625_v20 = vpack.c.bf16 %v15623_v8, %v15624_v44  ;;  %v9291_v55 = vld [vmem:[%s10667_s10 + $0x388] sm:$0xff]   ;;  %8527 = vmatprep.subr.bf16.mxu1 %v9292_v46  ;;  %v9298_v40 = vld [vmem:[%s10667_s10 + $0x338] sm:$0xff]   ;;  %v9295_v46 = vld [vmem:[%s10667_s10 + $0x390] sm:$0xff]  }
 0x5cb   : > { %5526 = vmatmul.mubr.bf16.vlgmr.msra.gmra.mrb[144].mxu0 %v15620_v6  ;;  %v15628_v61 = vld [vmem:[#allocation103_spill] sm:$0xff]  ;;  %v15629_v31 = vld [vmem:[#allocation100_spill] sm:$0xff]  ;;  %v15640_v24 = vld [vmem:[#allocation70_spill] sm:$0xff] }
 0x5cc   : > { %5533 = vmatprep.mubr.bf16.mxu0 %v15625_v20  ;;  %8580 = vmatpush3.bf16.msra.mxu0 %v9287_v10  ;;  %v13580_v20 = vmul.f32 %v12917_v15, %v15614_v42  ;;  %v13584_v10 = vmul.f32 %v12923_v22, %v15615_v47  ;;  %v3626_v8 = vmul.f32 %v15629_v31, %v15628_v61  ;;  %v15630_v15 = vld [vmem:[#allocation62_spill] sm:$0xff]  ;;  %v9297_v22 = vld [vmem:[%s10667_s10 + $0x3d8] sm:$0xff]  }
 0x5cd   : > { %8581 = vmatprep.subr.bf16.mxu0 %v9289_v37  ;;  %5453 = vmatmul.mubr.bf16.gmra.mrb[156].mxu1 %v3636_v1  ;;  %v3732_v16 = vmul.f32 %v13142_v41, %v15630_v15  ;;  %v13596_v1 = vld [vmem:[%s10667_s10 + $0x400] sm:$0xff]   ;;  %v15633_v30 = vld [vmem:[#allocation63_spill] sm:$0xff] }
 0x5ce   : > { %15626 = vst [vmem:[#allocation143_spill] sm:$0xff] %v13580_v20  ;;  %15627 = vst [vmem:[#allocation123_spill] sm:$0xff] %v13584_v10  ;;  %5460 = vmatprep.mubr.bf16.mxu1 %v3741_v49  ;;  %8528 = vmatpush3.bf16.msra.mxu1 %v9294_v4  ;;  %v15631_v49 = vld [vmem:[#allocation39_spill] sm:$0xff]  ;;  %v3731_v37 = vmul.f32 %v13140_v18, %v15633_v30  ;;  %v15638_v20 = vld [vmem:[#allocation72_spill] sm:$0xff] }
 0x5cf   : > { %8529 = vmatprep.subr.bf16.mxu1 %v9296_v60  ;;  %v15632_v4 = vld [vmem:[#allocation99_spill] sm:$0xff] }
 0x5d0   : > { %8582 = vmatpush3.bf16.msra.mxu0 %v9291_v55  ;;  %v3625_v44 = vmul.f32 %v15632_v4, %v15631_v49  ;;  %v15634_v28 = vld [vmem:[#allocation107_spill] sm:$0xff]  ;;  %v3742_v51 = vpack.c.bf16 %v3732_v16, %v3731_v37  ;;  %v9300_v4 = vld [vmem:[%s10667_s10 + $0x3e0] sm:$0xff]  }
 0x5d1   : > { %8583 = vmatprep.subr.bf16.mxu0 %v9293_v11  ;;  %v15635_v31 = vld [vmem:[#allocation95_spill] sm:$0xff]  ;;  %v15643_v37 = vld [vmem:[#allocation76_spill] sm:$0xff] }
 0x5d2   : > { %v15636_v55 = vpack.c.bf16 %v15634_v28, %v15635_v31  ;;  %8530 = vmatpush3.bf16.msra.mxu1 %v9298_v40  ;;  %v3637_v60 = vpack.c.bf16 %v3626_v8, %v3625_v44  ;;  %v15637_v6 = vld [vmem:[#allocation59_spill] sm:$0xff]  ;;  %v15641_v28 = vld [vmem:[#allocation116_spill] sm:$0xff] }
 0x5d3   : > { %v15639_v11 = vpack.c.bf16 %v15637_v6, %v15638_v20  ;;  %v9299_v10 = vld [vmem:[%s10667_s10 + $0x398] sm:$0xff]   ;;  %8850 = vmatprep.subr.bf16.mxu1 %v13596_v1  ;;  %v3628_v40 = vmul.f32 %v15641_v28, %v15640_v24  ;;  %v9302_v8 = vld [vmem:[%s10667_s10 + $0x3a0] sm:$0xff]   ;;  %v9303_v20 = vld [vmem:[%s10667_s10 + $0x3e8] sm:$0xff]  }
 0x5d4   : > { %5534 = vmatmul.mubr.bf16.gmra.mrb[148].mxu0 %v15636_v55  ;;  %v15642_v44 = vld [vmem:[#allocation83_spill] sm:$0xff] }
 0x5d5   : > { %5541 = vmatprep.mubr.bf16.mxu0 %v15639_v11  ;;  %8584 = vmatpush3.bf16.msra.mxu0 %v9295_v46  ;;  %v3734_v6 = vmul.f32 %v13222_v23, %v15642_v44  ;;  %v15644_v46 = vld [vmem:[#allocation112_spill] sm:$0xff]  ;;  %v15649_v11 = vld [vmem:[#allocation121_spill] sm:$0xff]  ;;  %v9306_v13 = vld [vmem:[%s10667_s10 + $0x3f0] sm:$0xff]  }
 0x5d6   : > { %8585 = vmatprep.subr.bf16.mxu0 %v9297_v22  ;;  %5461 = vmatmul.mubr.bf16.gmra.mrb[160].mxu1 %v3637_v60  ;;  %v3627_v16 = vmul.f32 %v15644_v46, %v15643_v37  ;;  %v15645_v22 = vld [vmem:[#allocation114_spill] sm:$0xff] }
 0x5d7   : > { %5468 = vmatprep.mubr.bf16.mxu1 %v3742_v51  ;;  %v3733_v31 = vmul.f32 %v13220_v25, %v15645_v22  ;;  %v15646_v51 = vld [vmem:[#allocation117_spill] sm:$0xff]  ;;  %v9308_v46 = vld [vmem:[%s10667_s10 + $0x3b0] sm:$0xff]  }
 0x5d8   : > { %v15647_v55 = vpack.c.bf16 %v13165_v9, %v15646_v51  ;;  %v3638_v60 = vpack.c.bf16 %v3628_v40, %v3627_v16  ;;  %v9305_v23 = vld [vmem:[%s10667_s10 + $0x3a8] sm:$0xff]   ;;  %v9309_v9 = vld [vmem:[%s10667_s10 + $0x3f8] sm:$0xff]  }
 0x5d9   : > { %8586 = vmatpush3.bf16.msra.mxu0 %v9299_v10  ;;  %v15648_v10 = vld [vmem:[#allocation124_spill] sm:$0xff]  ;;  %v15651_v25 = vld [vmem:[#allocation78_spill] sm:$0xff]  ;;  %v15652_v40 = vld [vmem:[#allocation69_spill] sm:$0xff] }
 0x5da   : > { %8587 = vmatprep.subr.bf16.mxu0 %v9300_v4  ;;  %v15650_v28 = vpack.c.bf16 %v15648_v10, %v15649_v11  ;;  %v3743_v4 = vpack.c.bf16 %v3734_v6, %v3733_v31  ;;  %v3736_v2 = vmul.f32 %v13281_v32, %v15651_v25  ;;  %v3735_v16 = vmul.f32 %v13279_v52, %v15652_v40  ;;  %v15653_v51 = vld [vmem:[#allocation75_spill] sm:$0xff]  ;;  %v15657_v6 = vld [vmem:[#allocation132_spill] sm:$0xff]  ;;  %v15659_v11 = vld [vmem:[#allocation118_spill] sm:$0xff] }
 0x5db   : > { %v15656_v10 = vld [vmem:[#allocation127_spill] sm:$0xff]  ;;  %v15662_v52 = vld [vmem:[#allocation88_spill] sm:$0xff] }
 0x5dc   : > { %5542 = vmatmul.mubr.bf16.gmra.mrb[152].mxu0 %v15647_v55  ;;  %v15654_v55 = vld [vmem:[#allocation126_spill] sm:$0xff]  ;;  %v9311_v31 = vld [vmem:[%s10667_s10 + $0x3b8] sm:$0xff]  }
 0x5dd   : > { %5549 = vmatprep.mubr.bf16.mxu0 %v15650_v28  ;;  %8588 = vmatpush3.bf16.msra.mxu0 %v9302_v8  ;;  %v15655_v8 = vpack.c.bf16 %v15653_v51, %v15654_v55  ;;  %v15660_v28 = vld [vmem:[#allocation58_spill] sm:$0xff]  ;;  %v15664_v51 = vld [vmem:[#allocation97_spill] sm:$0xff] }
 0x5de   : > { %8589 = vmatprep.subr.bf16.mxu0 %v9303_v20  ;;  %5469 = vmatmul.mubr.bf16.gmra.mrb[164].mxu1 %v3638_v60  ;;  %v15658_v20 = vpack.c.bf16 %v15656_v10, %v15657_v6  ;;  %v3744_v60 = vpack.c.bf16 %v3736_v2, %v3735_v16  ;;  %v15661_v32 = vpack.c.bf16 %v15659_v11, %v15660_v28  ;;  %v15665_v55 = vld [vmem:[#allocation134_spill] sm:$0xff]  ;;  %v15668_v2 = vld [vmem:[#allocation37_spill] sm:$0xff]  ;;  %v15675_v28 = vld [vmem:[#allocation96_spill] sm:$0xff] }
 0x5df   : > { %5476 = vmatprep.mubr.bf16.mxu1 %v3743_v4  ;;  %v15670_v10 = vld [vmem:[#allocation125_spill] sm:$0xff]  ;;  %v15671_v6 = vld [vmem:[#allocation122_spill] sm:$0xff] }
 0x5e1   : > { %8590 = vmatpush3.bf16.msra.mxu0 %v9305_v23  ;;  %v15663_v23 = vld [vmem:[#allocation85_spill] sm:$0xff] }
 0x5e2   : > { %8591 = vmatprep.subr.bf16.mxu0 %v9306_v13  ;;  %v3818_v13 = vmul.f32 %v15662_v52, %v15540_v21  ;;  %v3817_v4 = vmul.f32 %v15663_v23, %v15538_v48  ;;  %v15676_v52 = vld [vmem:[#allocation74_spill] sm:$0xff]  ;;  %v15677_v23 = vld [vmem:[#allocation92_spill] sm:$0xff] }
 0x5e4   : > { %5550 = vmatmul.mubr.bf16.gmra.mrb[156].mxu0 %v15655_v8  ;;  %v15666_v8 = vpack.c.bf16 %v15664_v51, %v15665_v55  ;;  %v3833_v16 = vpack.c.bf16 %v3818_v13, %v3817_v4  ;;  %v3793_v51 = vmul.f32 %v15677_v23, %v15676_v52  ;;  %v15678_v55 = vld [vmem:[#allocation91_spill] sm:$0xff]  ;;  %v15686_v23 = vld [vmem:[#allocation84_spill] sm:$0xff] }
 0x5e5   : > { %5557 = vmatprep.mubr.bf16.mxu0 %v15658_v20  ;;  %8592 = vmatpush3.bf16.msra.mxu0 %v9308_v46  ;;  %v15667_v46 = vld [vmem:[#allocation77_spill] sm:$0xff]  ;;  %v15672_v20 = vpack.c.bf16 %v15670_v10, %v15671_v6  ;;  %v15680_v13 = vld [vmem:[#allocation71_spill] sm:$0xff] }
 0x5e6   : > { %8593 = vmatprep.subr.bf16.mxu0 %v9309_v9  ;;  %5477 = vmatmul.mubr.bf16.gmra.mrb[168].mxu1 %v15661_v32  ;;  %v15669_v9 = vpack.c.bf16 %v15667_v46, %v15668_v2  ;;  %v3820_v32 = vmul.f32 %v15675_v28, %v15544_v58  ;;  %v15679_v46 = vld [vmem:[#allocation38_spill] sm:$0xff]  ;;  %v15683_v10 = vld [vmem:[#allocation53_spill] sm:$0xff]  ;;  %v15685_v28 = vld [vmem:[#allocation67_spill] sm:$0xff] }
 0x5e7   : > { %5484 = vmatprep.mubr.bf16.mxu1 %v3744_v60  ;;  %v15674_v60 = vld [vmem:[#allocation137_spill] sm:$0xff]  ;;  %v15681_v4 = vpack.c.bf16 %v15679_v46, %v15680_v13  ;;  %v9307_v58 = vld [vmem:[%s10667_s10 + $0x410] sm:$0xff]  }
 0x5e8   : > { %v9304_v6 = vld [vmem:[%s10667_s10 + $0x408] sm:$0xff]  }
 0x5e9   : > { %8594 = vmatpush3.bf16.msra.mxu0 %v9311_v31  ;;  %v15673_v31 = vld [vmem:[#allocation98_spill] sm:$0xff] }
 0x5ea   : > { %v3794_v11 = vmul.f32 %v15674_v60, %v15673_v31  ;;  %v8147_v60 = vpop.f32.mrb[80].mxu1 }
 0x5ec   : > { %5558 = vmatmul.mubr.bf16.gmra.mrb[160].mxu0 %v15666_v8  ;;  %v3819_v8 = vmul.f32 %v15678_v55, %v15542_v39  ;;  %v3809_v2 = vpack.c.bf16 %v3794_v11, %v3793_v51  ;;  %v3822_v39 = vmul.f32 %v15547_v36, %v15555_v17  ;;  %v3821_v11 = vmul.f32 %v15552_v34, %v15553_v59  ;;  %v15688_v55 = vld [vmem:[#allocation145_spill] sm:$0xff]  ;;  %v9310_v36 = vld [vmem:[%s10667_s10 + $0x418] sm:$0xff]  }
 0x5ed   : > { %5565 = vmatprep.mubr.bf16.mxu0 %v15669_v9  ;;  %v15682_v9 = vld [vmem:[#allocation108_spill] sm:$0xff]  ;;  %v15687_v51 = vpack.c.bf16 %v15685_v28, %v15686_v23  ;;  %v15692_v34 = vld [vmem:[#allocation111_spill] sm:$0xff]  ;;  %v3823_v23 = vmul.f32 %v15584_v33, %v15572_v62 }
 0x5ee   : > { %5485 = vmatmul.mubr.bf16.gmra.mrb[172].mxu1 %v15672_v20  ;;  %v3834_v20 = vpack.c.bf16 %v3820_v32, %v3819_v8  ;;  %v8148_v32 = vpop.f32.mrb[81].mxu1  ;;  %v15689_v8 = vld [vmem:[#allocation144_spill] sm:$0xff] }
 0x5ef   : > { %5622 = vmatprep.mubr.bf16.mxu1 %v3833_v16  ;;  %v15684_v16 = vpack.c.bf16 %v15682_v9, %v15683_v10  ;;  %v15690_v46 = vpack.c.bf16 %v15688_v55, %v15689_v8  ;;  %v8150_v13 = vpop.f32.mrb[82].mxu1  ;;  %v15691_v9 = vld [vmem:[#allocation68_spill] sm:$0xff]  ;;  %v15699_v8 = vld [vmem:[#allocation61_spill] sm:$0xff] }
 0x5f0   : > { %v15693_v10 = vpack.c.bf16 %v15691_v9, %v15692_v34  ;;  %v9312_v28 = vld [vmem:[%s10667_s10 + $0x420] sm:$0xff]  }
 0x5f4   : > { %5566 = vmatmul.mubr.bf16.gmra.mrb[164].mxu0 %v15681_v4  ;;  %v3835_v4 = vpack.c.bf16 %v3822_v39, %v3821_v11  ;;  %v15695_v39 = vld [vmem:[#allocation101_spill] sm:$0xff] }
 0x5f5   : > { %5573 = vmatprep.mubr.bf16.mxu0 %v15684_v16  ;;  %v3797_v11 = vmul.f32 %v15695_v39, %v15578_v63 }
 0x5f6   : > { %5623 = vmatmul.mubr.bf16.vlgmr.msra.gmra.mrb[176].mxu1 %v3809_v2  ;;  %v8151_v2 = vpop.f32.mrb[83].mxu1 }
 0x5f7   : > { %5630 = vmatprep.mubr.bf16.mxu1 %v3834_v20  ;;  %8851 = vmatpush3.bf16.msra.mxu1 %v13596_v1  ;;  %v13685_v1 = vadd.f32 %v8148_v32, %v8147_v60  ;;  %v13691_v16 = vadd.f32 %v8151_v2, %v8150_v13  ;;  %v3824_v60 = vmul.f32 %v15585_v27, %v15574_v29  ;;  %v15697_v32 = vld [vmem:[#allocation66_spill] sm:$0xff]  ;;  %v8153_v2 = vpop.f32.mrb[84].mxu1 }
 0x5f8   : > { %8852 = vmatprep.subr.bf16.mxu1 %v9304_v6  ;;  %v8154_v9 = vpop.f32.mrb[85].mxu1 }
 0x5f9   : > { %v3836_v27 = vpack.c.bf16 %v3824_v60, %v3823_v23  ;;  %v13709_v34 = vadd.f32 %v8154_v9, %v8153_v2  ;;  %v8156_v33 = vpop.f32.mrb[86].mxu1  ;;  %v15702_v60 = vld [vmem:[#allocation120_spill] sm:$0xff]  ;;  %v15703_v23 = vld [vmem:[#allocation49_spill] sm:$0xff] }
 0x5fb   : > { %8853 = vmatpush3.bf16.msra.mxu1 %v9304_v6  ;;  %v15694_v6 = vld [vmem:[#allocation81_spill] sm:$0xff] }
 0x5fc   : > { %5574 = vmatmul.mubr.bf16.gmra.mrb[168].mxu0 %v15687_v51  ;;  %8854 = vmatprep.subr.bf16.mxu1 %v9307_v58  ;;  %v3798_v20 = vmul.f32 %v15694_v6, %v15580_v3  ;;  %v15696_v51 = vld [vmem:[#allocation60_spill] sm:$0xff]  ;;  %v9314_v6 = vld [vmem:[%s10667_s10 + $0x430] sm:$0xff]  }
 0x5fd   : > { %5581 = vmatprep.mubr.bf16.mxu0 %v15690_v46  ;;  %v15698_v55 = vpack.c.bf16 %v15696_v51, %v15697_v32  ;;  %v15700_v46 = vld [vmem:[#allocation82_spill] sm:$0xff]  ;;  %v3825_v51 = vmul.f32 %v15613_v5, %v15703_v23  ;;  %v15704_v32 = vld [vmem:[#allocation141_spill] sm:$0xff]  ;;  %v3802_v5 = vmul.f32 %v13091_v43, %v15628_v61 }
 0x5fe   : > { %5631 = vmatmul.mubr.bf16.gmra.mrb[180].mxu1 %v15693_v10  ;;  %v15701_v13 = vpack.c.bf16 %v15699_v8, %v15700_v46  ;;  %v8157_v10 = vpop.f32.mrb[87].mxu1  ;;  %v15708_v8 = vld [vmem:[#allocation89_spill] sm:$0xff] }
 0x5ff   : > { %5638 = vmatprep.mubr.bf16.mxu1 %v3835_v4  ;;  %8855 = vmatpush3.bf16.msra.mxu1 %v9307_v58  ;;  %v3811_v58 = vpack.c.bf16 %v3798_v20, %v3797_v11  ;;  %v9313_v4 = vld [vmem:[%s10667_s10 + $0x428] sm:$0xff]   ;;  %v3826_v20 = vmul.f32 %v15608_v35, %v15587_v45  ;;  %v13716_v39 = vadd.f32 %v8157_v10, %v8156_v33  ;;  %v9315_v35 = vld [vmem:[%s10667_s10 + $0x438] sm:$0xff]   ;;  %s15792_s10 = sld [smem:[#allocation158_spill]] (!%p7959_p9) }
 0x600   : > { %8856 = vmatprep.subr.bf16.mxu1 %v9310_v36  ;;  %v3799_v11 = vmul.f32 %v15702_v60, %v15611_v26  ;;  %v3801_v10 = vmul.f32 %v13089_v50, %v15631_v49  ;;  %v3827_v60 = vmul.f32 %v15633_v30, %v15593_v0 }
 0x602   : > { %v3813_v43 = vpack.c.bf16 %v3802_v5, %v3801_v10  ;;  %v15716_v5 = vld [vmem:[#allocation45_spill] sm:$0xff]  ;;  %v15720_v10 = vld [vmem:[#allocation46_spill] sm:$0xff] }
 0x603   : > { %8857 = vmatpush3.bf16.msra.mxu1 %v9310_v36  ;;  %v3800_v36 = vmul.f32 %v13030_v14, %v15606_v53 }
 0x604   : > { %5582 = vmatmul.mubr.bf16.gmra.mrb[172].mxu0 %v15698_v55  ;;  %8858 = vmatprep.subr.bf16.mxu1 %v9312_v28  ;;  %v15705_v55 = vld [vmem:[#allocation138_spill] sm:$0xff] }
 0x605   : > { %5719 = vmatprep.mubr.bf16.mxu0 %v15701_v13  ;;  %v3812_v14 = vpack.c.bf16 %v3800_v36, %v3799_v11  ;;  %v3837_v13 = vpack.c.bf16 %v3826_v20, %v3825_v51  ;;  %v15711_v11 = vld [vmem:[#allocation41_spill] sm:$0xff] }
 0x606   : > { %5639 = vmatmul.mubr.bf16.gmra.mrb[184].mxu1 %v3811_v58  ;;  %v15707_v58 = vld [vmem:[#allocation104_spill] sm:$0xff] }
 0x607   : > { %5646 = vmatprep.mubr.bf16.mxu1 %v3836_v27  ;;  %8859 = vmatpush3.bf16.msra.mxu1 %v9312_v28  ;;  %v15706_v28 = vpack.c.bf16 %v15704_v32, %v15705_v55  ;;  %v15709_v46 = vpack.c.bf16 %v15707_v58, %v15708_v8  ;;  %v8159_v27 = vpop.f32.mrb[88].mxu1  ;;  %v15713_v32 = vld [vmem:[#allocation44_spill] sm:$0xff]  ;;  %v15714_v55 = vld [vmem:[#allocation42_spill] sm:$0xff]  ;;  %v3804_v58 = vmul.f32 %v13142_v41, %v15640_v24 }
 0x608   : > { %8860 = vmatprep.subr.bf16.mxu1 %v9313_v4  ;;  %v8160_v2 = vpop.f32.mrb[89].mxu1 }
 0x609   : > { %v13731_v9 = vadd.f32 %v8160_v2, %v8159_v27  ;;  %v8162_v33 = vpop.f32.mrb[90].mxu1  ;;  %v3829_v2 = vmul.f32 %v15645_v22, %v15602_v38 }
 0x60a   : > { %v8163_v36 = vpop.f32.mrb[91].mxu1 }
 0x60b   : > { %8861 = vmatpush3.bf16.msra.mxu1 %v9313_v4  ;;  %v3828_v4 = vmul.f32 %v15630_v15, %v15595_v54  ;;  %v13737_v20 = vadd.f32 %v8163_v36, %v8162_v33  ;;  %v15717_v33 = vld [vmem:[#allocation110_spill] sm:$0xff]  ;;  %v15719_v36 = vld [vmem:[#allocation40_spill] sm:$0xff] }
 0x60c   : > { %5720 = vmatmul.mubr.bf16.vlgmr.msra.gmra.mrb[176].mxu0 %v15706_v28  ;;  %8862 = vmatprep.subr.bf16.mxu1 %v9314_v6  ;;  %v15715_v28 = vpack.c.bf16 %v15713_v32, %v15714_v55 }
 0x60d   : > { %5727 = vmatprep.mubr.bf16.mxu0 %v15709_v46  ;;  %v3838_v15 = vpack.c.bf16 %v3828_v4, %v3827_v60  ;;  %v3830_v46 = vmul.f32 %v15642_v44, %v15604_v12  ;;  %v15718_v4 = vpack.c.bf16 %v15716_v5, %v15717_v33  ;;  %v15721_v60 = vpack.c.bf16 %v15719_v36, %v15720_v10  ;;  %v13767_v12 = vld [vmem:[%s973_s30] ss:$0 sm:$0xff] }
 0x60e   : > { %5647 = vmatmul.mubr.bf16.gmra.mrb[188].mxu1 %v3812_v14  ;;  %v8165_v14 = vpop.f32.mrb[92].mxu1  ;;  %v5043_v38 = vadd.f32 %v13685_v1, %v13767_v12  ;;  %v5046_v32 = vadd.f32 %v13691_v16, %v13767_v12  ;;  %v15726_v16 = vld [vmem:[#allocation113_spill] sm:$0xff]  ;;  %v3890_v36 = vmul.f32 %v15673_v31, %v15540_v21  ;;  %v15735_v31 = vld [vmem:[#allocation119_spill] sm:$0xff] }
 0x60f   : > { %5654 = vmatprep.mubr.bf16.mxu1 %v3837_v13  ;;  %8863 = vmatpush3.bf16.msra.mxu1 %v9314_v6  ;;  %v15710_v6 = vld [vmem:[#allocation43_spill] sm:$0xff]  ;;  %v8166_v50 = vpop.f32.mrb[93].mxu1  ;;  %v3803_v13 = vmul.f32 %v13140_v18, %v15643_v37  ;;  %v3839_v44 = vpack.c.bf16 %v3830_v46, %v3829_v2  ;;  %v8211_v18 = vpop.f32.mrb[80].mxu0 }
 0x610   : > { %8864 = vmatprep.subr.bf16.mxu1 %v9315_v35  ;;  %v15712_v51 = vpack.c.bf16 %v15710_v6, %v15711_v11  ;;  %v13749_v30 = vadd.f32 %v8166_v50, %v8165_v14  ;;  %v8168_v8 = vpop.f32.mrb[94].mxu1  ;;  %v8212_v6 = vpop.f32.mrb[81].mxu0  ;;  %v15722_v14 = vld [vmem:[#allocation109_spill] sm:$0xff]  ;;  %v15723_v50 = vld [vmem:[#allocation115_spill] sm:$0xff] }
 0x611   : > { %v3814_v41 = vpack.c.bf16 %v3804_v58, %v3803_v13  ;;  %v8213_v22 = vadd.f32 %v8212_v6, %v8211_v18  ;;  %v8214_v11 = vpop.f32.mrb[82].mxu0  ;;  %v15724_v58 = vpack.c.bf16 %v15722_v14, %v15723_v50  ;;  %v3889_v6 = vmul.f32 %v15676_v52, %v15538_v48 }
 0x612   : > { %v5059_v52 = vadd.f32 %v13731_v9, %v13767_v12  ;;  %v3893_v9 = vmul.f32 %v15578_v63, %v15553_v59  ;;  %v5067_v59 = vadd.f32 %v13749_v30, %v13767_v12 }
 0x613   : > { %8865 = vmatpush3.bf16.msra.mxu1 %v9315_v35  ;;  %v8169_v35 = vpop.f32.mrb[95].mxu1  ;;  %v13775_v55 = vadd.f32 %v8213_v22, %v5043_v38  ;;  %v15729_v38 = vld [vmem:[#allocation47_spill] sm:$0xff]  ;;  %v15730_v22 = vld [vmem:[#allocation64_spill] sm:$0xff]  ;;  %v3905_v21 = vpack.c.bf16 %v3890_v36, %v3889_v6  ;;  %v15741_v36 = vld [vmem:[#allocation129_spill] sm:$0xff] }
 0x614   : > { %5728 = vmatmul.mubr.bf16.gmra.mrb[180].mxu0 %v15712_v51  ;;  %v13755_v27 = vadd.f32 %v8169_v35, %v8168_v8  ;;  %v3832_v51 = vmul.f32 %v15651_v25, %v15615_v47  ;;  %v15725_v47 = vpack.c.bf16 %v13460_v56, %v13456_v57  ;;  %v15727_v35 = vld [vmem:[#allocation106_spill] sm:$0xff] }
 0x615   : > { %5735 = vmatprep.mubr.bf16.mxu0 %v15715_v28  ;;  %v15728_v13 = vpack.c.bf16 %v15726_v16, %v15727_v35  ;;  %v3894_v16 = vmul.f32 %v15580_v3, %v15555_v17  ;;  %v15742_v17 = vld [vmem:[#allocation80_spill] sm:$0xff] }
 0x616   : > { %5655 = vmatmul.mubr.bf16.gmra.mrb[192].mxu1 %v3813_v43  ;;  %v8215_v43 = vpop.f32.mrb[83].mxu0  ;;  %v15743_v3 = vpack.c.bf16 %v15741_v36, %v15742_v17 }
 0x617   : > { %5662 = vmatprep.mubr.bf16.mxu1 %v3838_v15  ;;  %v8216_v28 = vadd.f32 %v8215_v43, %v8214_v11  ;;  %v3831_v15 = vmul.f32 %v15652_v40, %v15614_v42  ;;  %v15733_v43 = vld [vmem:[#allocation48_spill] sm:$0xff] }
 0x618   : > { %v8171_v1 = vpop.f32.mrb[96].mxu1 }
 0x619   : > { %v13782_v8 = vadd.f32 %v8216_v28, %v5046_v32  ;;  %v3840_v25 = vpack.c.bf16 %v3832_v51, %v3831_v15  ;;  %v8172_v46 = vpop.f32.mrb[97].mxu1  ;;  %v15732_v51 = vld [vmem:[#allocation130_spill] sm:$0xff] }
 0x61a   : > { %v13790_v2 = vadd.f32 %v8172_v46, %v8171_v1  ;;  %v8174_v42 = vpop.f32.mrb[98].mxu1  ;;  %v15734_v32 = vpack.c.bf16 %v15732_v51, %v15733_v43  ;;  %v15736_v28 = vld [vmem:[#allocation94_spill] sm:$0xff] }
 0x61b   : > { %v8175_v5 = vpop.f32.mrb[99].mxu1 }
 0x61c   : > { %5736 = vmatmul.mubr.bf16.gmra.mrb[184].mxu0 %v15718_v4  ;;  %v5051_v4 = vadd.f32 %v13709_v34, %v13767_v12  ;;  %v15731_v34 = vpack.c.bf16 %v15729_v38, %v15730_v22  ;;  %v3896_v22 = vmul.f32 %v15606_v53, %v15574_v29  ;;  %v3897_v29 = vmul.f32 %v15631_v49, %v15703_v23  ;;  %v15747_v53 = vld [vmem:[#allocation50_spill] sm:$0xff] }
 0x61d   : > { %5743 = vmatprep.mubr.bf16.mxu0 %v15721_v60  ;;  %v8217_v40 = vpop.f32.mrb[84].mxu0  ;;  %v5054_v60 = vadd.f32 %v13716_v39, %v13767_v12  ;;  %v15737_v39 = vpack.c.bf16 %v15735_v31, %v15736_v28  ;;  %v5070_v28 = vadd.f32 %v13755_v27, %v13767_v12  ;;  %v5075_v49 = vadd.f32 %v13790_v2, %v13767_v12  ;;  %v15751_v2 = vld [vmem:[#allocation52_spill] sm:$0xff] }
 0x61e   : > { %5663 = vmatmul.mubr.bf16.gmra.mrb[196].mxu1 %v3814_v41  ;;  %v8218_v33 = vpop.f32.mrb[85].mxu0  ;;  %v13794_v41 = vadd.f32 %v8175_v5, %v8174_v42  ;;  %v3900_v23 = vmul.f32 %v15640_v24, %v15595_v54 }
 0x61f   : > { %5670 = vmatprep.mubr.bf16.mxu1 %v3839_v44  ;;  %v8219_v57 = vadd.f32 %v8218_v33, %v8217_v40  ;;  %v8220_v56 = vpop.f32.mrb[86].mxu0  ;;  %v15738_v33 = vld [vmem:[#allocation131_spill] sm:$0xff] }
 0x620   : > { %v8221_v10 = vpop.f32.mrb[87].mxu0 }
 0x621   : > { %v13800_v44 = vadd.f32 %v8219_v57, %v5051_v4  ;;  %v8222_v18 = vadd.f32 %v8221_v10, %v8220_v56  ;;  %v15739_v4 = vld [vmem:[#allocation79_spill] sm:$0xff]  ;;  %v3907_v10 = vpack.c.bf16 %v3894_v16, %v3893_v9 }
 0x622   : > { %v8177_v15 = vpop.f32.mrb[100].mxu1  ;;  %v15740_v57 = vpack.c.bf16 %v15738_v33, %v15739_v4 }
 0x623   : > { %v13807_v11 = vadd.f32 %v8222_v18, %v5054_v60  ;;  %v8178_v50 = vpop.f32.mrb[101].mxu1  ;;  %v15745_v60 = vld [vmem:[#allocation105_spill] sm:$0xff] }
 0x624   : > { %5744 = vmatmul.mubr.bf16.gmra.mrb[188].mxu0 %v15724_v58  ;;  %v13817_v58 = vadd.f32 %v8178_v50, %v8177_v15  ;;  %v8180_v1 = vpop.f32.mrb[102].mxu1 }
 0x625   : > { %5751 = vmatprep.mubr.bf16.mxu0 %v15725_v47  ;;  %v8223_v14 = vpop.f32.mrb[88].mxu0  ;;  %v8181_v46 = vpop.f32.mrb[103].mxu1 }
 0x626   : > { %5671 = vmatmul.mubr.bf16.gmra.mrb[200].mxu1 %v15728_v13  ;;  %v8224_v48 = vpop.f32.mrb[89].mxu0  ;;  %v5062_v13 = vadd.f32 %v13737_v20, %v13767_v12  ;;  %v13823_v42 = vadd.f32 %v8181_v46, %v8180_v1  ;;  %v15744_v20 = vld [vmem:[#allocation65_spill] sm:$0xff] }
 0x627   : > { %5678 = vmatprep.mubr.bf16.mxu1 %v3840_v25  ;;  %v8225_v47 = vadd.f32 %v8224_v48, %v8223_v14  ;;  %v8226_v25 = vpop.f32.mrb[90].mxu0  ;;  %v15746_v18 = vpack.c.bf16 %v15744_v20, %v15745_v60  ;;  %v15748_v48 = vld [vmem:[#allocation128_spill] sm:$0xff]  ;;  %v15755_v20 = vld [vmem:[#allocation73_spill] sm:$0xff] }
 0x628   : > { %v8227_v35 = vpop.f32.mrb[91].mxu0 }
 0x629   : > { %v13825_v40 = vadd.f32 %v8225_v47, %v5059_v52  ;;  %v8228_v5 = vadd.f32 %v8227_v35, %v8226_v25  ;;  %v15749_v52 = vpack.c.bf16 %v15747_v53, %v15748_v48 }
 0x62b   : > { %v13832_v56 = vadd.f32 %v8228_v5, %v5062_v13  ;;  %v5078_v13 = vadd.f32 %v13794_v41, %v13767_v12 }
 0x62c   : > { %5752 = vmatmul.mubr.bf16.gmra.mrb[192].mxu0 %v15731_v34 }
 0x62d   : > { %5759 = vmatprep.mubr.bf16.mxu0 %v15734_v32  ;;  %v3895_v32 = vmul.f32 %v15611_v26, %v15572_v62 }
 0x62e   : > { %5679 = vmatmul.mubr.bf16.gmra.mrb[204].mxu1 %v15737_v39  ;;  %v8229_v6 = vpop.f32.mrb[92].mxu0 }
 0x62f   : > { %8866 = vmatprep.mubr.bf16.mxu1 %v3905_v21  ;;  %v8230_v38 = vpop.f32.mrb[93].mxu0  ;;  %v3898_v21 = vmul.f32 %v15628_v61, %v15587_v45  ;;  %v3908_v26 = vpack.c.bf16 %v3896_v22, %v3895_v32  ;;  %v15750_v61 = vpack.c.bf16 %v13544_v19, %v13538_v7  ;;  %v3899_v19 = vmul.f32 %v15643_v37, %v15593_v0 }
 0x630   : > { %v8231_v34 = vadd.f32 %v8230_v38, %v8229_v6  ;;  %v8232_v51 = vpop.f32.mrb[94].mxu0  ;;  %v5083_v37 = vadd.f32 %v13817_v58, %v13767_v12  ;;  %v15757_v58 = vld [vmem:[#allocation123_spill] sm:$0xff] }
 0x631   : > { %v8233_v31 = vpop.f32.mrb[95].mxu0  ;;  %v3909_v27 = vpack.c.bf16 %v3898_v21, %v3897_v29  ;;  %v3910_v24 = vpack.c.bf16 %v3900_v23, %v3899_v19 }
 0x632   : > { %v8183_v63 = vpop.f32.mrb[104].mxu1  ;;  %v13850_v30 = vadd.f32 %v8231_v34, %v5067_v59  ;;  %v8234_v14 = vadd.f32 %v8233_v31, %v8232_v51 }
 0x633   : > { %v8184_v43 = vpop.f32.mrb[105].mxu1 }
 0x634   : > { %5760 = vmatmul.mubr.bf16.gmra.mrb[196].mxu0 %v15740_v57  ;;  %v8185_v39 = vadd.f32 %v8184_v43, %v8183_v63  ;;  %v8186_v15 = vpop.f32.mrb[106].mxu1  ;;  %v13857_v45 = vadd.f32 %v8234_v14, %v5070_v28  ;;  %v15752_v57 = vld [vmem:[#allocation51_spill] sm:$0xff]  ;;  %v5086_v63 = vadd.f32 %v13823_v42, %v13767_v12 }
 0x635   : > { %5767 = vmatprep.mubr.bf16.mxu0 %v15743_v3  ;;  %v8187_v50 = vpop.f32.mrb[107].mxu1  ;;  %v15753_v36 = vpack.c.bf16 %v15751_v2, %v15752_v57  ;;  %v15758_v14 = vld [vmem:[#allocation143_spill] sm:$0xff] }
 0x636   : > { %8867 = vmatmul.mubr.bf16.vlgmr.msra.gmra.mrb[208].mxu1 %v15746_v18  ;;  %v8188_v62 = vadd.f32 %v8187_v50, %v8186_v15  ;;  %v15759_v50 = vpack.c.bf16 %v15757_v58, %v15758_v14  ;;  %v5091_v48 = vadd.f32 %v8185_v39, %v13767_v12 }
 0x637   : > { %8870 = vmatprep.mubr.bf16.mxu1 %v3907_v10  ;;  %v15754_v10 = vld [vmem:[#allocation90_spill] sm:$0xff] }
 0x638   : > { %v8235_v1 = vpop.f32.mrb[96].mxu0  ;;  %v15756_v60 = vpack.c.bf16 %v15754_v10, %v15755_v20 }
 0x639   : > { %v8236_v47 = vpop.f32.mrb[97].mxu0 }
 0x63a   : > { %v8237_v25 = vadd.f32 %v8236_v47, %v8235_v1  ;;  %v8238_v46 = vpop.f32.mrb[98].mxu0  ;;  %v5094_v1 = vadd.f32 %v8188_v62, %v13767_v12 }
 0x63b   : > { %v8189_v16 = vpop.f32.mrb[108].mxu1  ;;  %v8239_v35 = vpop.f32.mrb[99].mxu0 }
 0x63c   : > { %5768 = vmatmul.mubr.bf16.gmra.mrb[200].mxu0 %v15749_v52  ;;  %v8190_v7 = vpop.f32.mrb[109].mxu1  ;;  %v13870_v5 = vadd.f32 %v8237_v25, %v5075_v49  ;;  %v8240_v9 = vadd.f32 %v8239_v35, %v8238_v46 }
 0x63d   : > { %5775 = vmatprep.mubr.bf16.mxu0 %v15750_v61  ;;  %v8191_v33 = vadd.f32 %v8190_v7, %v8189_v16  ;;  %v8192_v4 = vpop.f32.mrb[110].mxu1 }
 0x63e   : > { %8871 = vmatmul.mubr.bf16.gmra.mrb[212].mxu1 %v3908_v26  ;;  %v8193_v54 = vpop.f32.mrb[111].mxu1  ;;  %v13875_v17 = vadd.f32 %v8240_v9, %v5078_v13 }
 0x63f   : > { %8874 = vmatprep.mubr.bf16.mxu1 %v3909_v27  ;;  %v8194_v3 = vadd.f32 %v8193_v54, %v8192_v4  ;;  %v5099_v19 = vadd.f32 %v8191_v33, %v13767_v12 }
 0x641   : > { %v5102_v57 = vadd.f32 %v8194_v3, %v13767_v12 }
 0x643   : > { %v8241_v41 = vpop.f32.mrb[100].mxu0 }
 0x644   : > { %5776 = vmatmul.mubr.bf16.gmra.mrb[204].mxu0 %v15753_v36  ;;  %v8242_v0 = vpop.f32.mrb[101].mxu0 }
 0x645   : > { %v8243_v18 = vadd.f32 %v8242_v0, %v8241_v41  ;;  %v8244_v6 = vpop.f32.mrb[102].mxu0 }
 0x646   : > { %8875 = vmatmul.mubr.bf16.gmra.mrb[216].mxu1 %v3910_v24  ;;  %v8275_v38 = vpop.f32.mrb[112].mxu1  ;;  %v8245_v59 = vpop.f32.mrb[103].mxu0 }
 0x647   : > { %8878 = vmatprep.mubr.bf16.mxu1 %v15756_v60  ;;  %v8276_v22 = vpop.f32.mrb[113].mxu1  ;;  %v13884_v34 = vadd.f32 %v8243_v18, %v5083_v37  ;;  %v8246_v51 = vadd.f32 %v8245_v59, %v8244_v6 }
 0x648   : > { %v8277_v43 = vadd.f32 %v8276_v22, %v8275_v38  ;;  %v8278_v32 = vpop.f32.mrb[114].mxu1 }
 0x649   : > { %v8279_v21 = vpop.f32.mrb[115].mxu1  ;;  %v13886_v31 = vadd.f32 %v8246_v51, %v5086_v63 }
 0x64a   : > { %v5237_v28 = vadd.f32 %v8277_v43, %v13775_v55  ;;  %v8280_v15 = vadd.f32 %v8279_v21, %v8278_v32 }
 0x64b   : > { %v8247_v29 = vpop.f32.mrb[104].mxu0 }
 0x64c   : > { %v5240_v53 = vadd.f32 %v8280_v15, %v13782_v8  ;;  %v8248_v42 = vpop.f32.mrb[105].mxu0 }
 0x64d   : > { %v8249_v52 = vadd.f32 %v8248_v42, %v8247_v29  ;;  %v8250_v26 = vpop.f32.mrb[106].mxu0 }
 0x64e   : > { %8879 = vmatmul.mubr.bf16.gmra.mrb[220].mxu1 %v15759_v50  ;;  %v8281_v61 = vpop.f32.mrb[116].mxu1  ;;  %v8251_v27 = vpop.f32.mrb[107].mxu0 }
 0x64f   : > { %v8282_v47 = vpop.f32.mrb[117].mxu1  ;;  %v13895_v49 = vadd.f32 %v8249_v52, %v5091_v48  ;;  %v8252_v55 = vadd.f32 %v8251_v27, %v8250_v26 }
 0x650   : > { %v8283_v23 = vadd.f32 %v8282_v47, %v8281_v61  ;;  %v8284_v25 = vpop.f32.mrb[118].mxu1 }
 0x651   : > { %v8285_v46 = vpop.f32.mrb[119].mxu1  ;;  %v13897_v16 = vadd.f32 %v8252_v55, %v5094_v1 }
 0x652   : > { %v5245_v8 = vadd.f32 %v8283_v23, %v13800_v44  ;;  %v8286_v35 = vadd.f32 %v8285_v46, %v8284_v25 }
 0x654   : > { %v8253_v13 = vpop.f32.mrb[108].mxu0  ;;  %v5248_v39 = vadd.f32 %v8286_v35, %v13807_v11 }
 0x655   : > { %v8254_v7 = vpop.f32.mrb[109].mxu0 }
 0x656   : > { %v8255_v9 = vadd.f32 %v8254_v7, %v8253_v13  ;;  %v8256_v62 = vpop.f32.mrb[110].mxu0  ;;  %v8287_v4 = vpop.f32.mrb[120].mxu1 }
 0x657   : > { %v8257_v2 = vpop.f32.mrb[111].mxu0  ;;  %v8288_v36 = vpop.f32.mrb[121].mxu1 }
 0x658   : > { %v13903_v54 = vadd.f32 %v8255_v9, %v5099_v19  ;;  %v8258_v24 = vadd.f32 %v8257_v2, %v8256_v62  ;;  %v8289_v41 = vadd.f32 %v8288_v36, %v8287_v4  ;;  %v8290_v10 = vpop.f32.mrb[122].mxu1 }
 0x659   : > { %v8291_v44 = vpop.f32.mrb[123].mxu1 }
 0x65a   : > { %v13905_v20 = vadd.f32 %v8258_v24, %v5102_v57  ;;  %v5253_v11 = vadd.f32 %v8289_v41, %v13825_v40  ;;  %v8292_v60 = vadd.f32 %v8291_v44, %v8290_v10 }
 0x65c   : > { %v8339_v0 = vpop.f32.mrb[112].mxu0  ;;  %v5256_v33 = vadd.f32 %v8292_v60, %v13832_v56 }
 0x65d   : > { %v8340_v37 = vpop.f32.mrb[113].mxu0 }
 0x65e   : > { %v8341_v18 = vadd.f32 %v8340_v37, %v8339_v0  ;;  %v8342_v6 = vpop.f32.mrb[114].mxu0  ;;  %v8293_v38 = vpop.f32.mrb[124].mxu1 }
 0x65f   : > { %v8343_v12 = vpop.f32.mrb[115].mxu0  ;;  %v8294_v3 = vpop.f32.mrb[125].mxu1 }
 0x660   : > { %v13909_v59 = vadd.f32 %v8341_v18, %v5237_v28  ;;  %v8344_v63 = vadd.f32 %v8343_v12, %v8342_v6  ;;  %v8295_v22 = vadd.f32 %v8294_v3, %v8293_v38  ;;  %v8296_v51 = vpop.f32.mrb[126].mxu1 }
 0x661   : > { %v8297_v43 = vpop.f32.mrb[127].mxu1 }
 0x662   : > { %v13911_v32 = vadd.f32 %v8344_v63, %v5240_v53  ;;  %v5261_v40 = vadd.f32 %v8295_v22, %v13850_v30  ;;  %v8298_v21 = vadd.f32 %v8297_v43, %v8296_v51 }
 0x664   : > { %v8345_v15 = vpop.f32.mrb[116].mxu0  ;;  %v5264_v56 = vadd.f32 %v8298_v21, %v13857_v45 }
 0x665   : > { %v8346_v58 = vpop.f32.mrb[117].mxu0 }
 0x666   : > { %v8347_v14 = vadd.f32 %v8346_v58, %v8345_v15  ;;  %v8348_v50 = vpop.f32.mrb[118].mxu0  ;;  %v8299_v29 = vpop.f32.mrb[128].mxu1 }
 0x667   : > { %v8349_v42 = vpop.f32.mrb[119].mxu0  ;;  %v8300_v48 = vpop.f32.mrb[129].mxu1 }
 0x668   : > { %v13915_v28 = vadd.f32 %v8347_v14, %v5245_v8  ;;  %v8350_v52 = vadd.f32 %v8349_v42, %v8348_v50  ;;  %v8301_v26 = vadd.f32 %v8300_v48, %v8299_v29  ;;  %v8302_v61 = vpop.f32.mrb[130].mxu1 }
 0x669   : > { %v8303_v27 = vpop.f32.mrb[131].mxu1 }
 0x66a   : > { %v13917_v53 = vadd.f32 %v8350_v52, %v5248_v39  ;;  %v5269_v30 = vadd.f32 %v8301_v26, %v13870_v5  ;;  %v8304_v1 = vadd.f32 %v8303_v27, %v8302_v61 }
 0x66c   : > { %v8351_v47 = vpop.f32.mrb[120].mxu0  ;;  %v5272_v45 = vadd.f32 %v8304_v1, %v13875_v17 }
 0x66d   : > { %v8352_v55 = vpop.f32.mrb[121].mxu0 }
 0x66e   : > { %v8353_v23 = vadd.f32 %v8352_v55, %v8351_v47  ;;  %v8354_v25 = vpop.f32.mrb[122].mxu0  ;;  %v8305_v46 = vpop.f32.mrb[132].mxu1 }
 0x66f   : > { %v8355_v35 = vpop.f32.mrb[123].mxu0  ;;  %v8306_v13 = vpop.f32.mrb[133].mxu1 }
 0x670   : > { %v13921_v8 = vadd.f32 %v8353_v23, %v5253_v11  ;;  %v8356_v7 = vadd.f32 %v8355_v35, %v8354_v25  ;;  %v8307_v19 = vadd.f32 %v8306_v13, %v8305_v46  ;;  %v8308_v9 = vpop.f32.mrb[134].mxu1 }
 0x671   : > { %v8309_v62 = vpop.f32.mrb[135].mxu1 }
 0x672   : > { %v13923_v39 = vadd.f32 %v8356_v7, %v5256_v33  ;;  %v5277_v5 = vadd.f32 %v8307_v19, %v13884_v34  ;;  %v8310_v4 = vadd.f32 %v8309_v62, %v8308_v9 }
 0x674   : > { %v8357_v2 = vpop.f32.mrb[124].mxu0  ;;  %v5280_v17 = vadd.f32 %v8310_v4, %v13886_v31 }
 0x675   : > { %v8358_v57 = vpop.f32.mrb[125].mxu0 }
 0x676   : > { %v8359_v36 = vadd.f32 %v8358_v57, %v8357_v2  ;;  %v8360_v24 = vpop.f32.mrb[126].mxu0  ;;  %v8311_v41 = vpop.f32.mrb[136].mxu1 }
 0x677   : > { %v8361_v10 = vpop.f32.mrb[127].mxu0  ;;  %v8312_v44 = vpop.f32.mrb[137].mxu1 }
 0x678   : > { %v13927_v11 = vadd.f32 %v8359_v36, %v5261_v40  ;;  %v8362_v60 = vadd.f32 %v8361_v10, %v8360_v24  ;;  %v8313_v0 = vadd.f32 %v8312_v44, %v8311_v41  ;;  %v8314_v37 = vpop.f32.mrb[138].mxu1 }
 0x679   : > { %v8315_v18 = vpop.f32.mrb[139].mxu1 }
 0x67a   : > { %v13929_v33 = vadd.f32 %v8362_v60, %v5264_v56  ;;  %v5285_v34 = vadd.f32 %v8313_v0, %v13895_v49  ;;  %v8316_v6 = vadd.f32 %v8315_v18, %v8314_v37 }
 0x67c   : > { %v8363_v38 = vpop.f32.mrb[128].mxu0  ;;  %v5288_v31 = vadd.f32 %v8316_v6, %v13897_v16 }
 0x67d   : > { %v8364_v12 = vpop.f32.mrb[129].mxu0 }
 0x67e   : > { %v8365_v3 = vadd.f32 %v8364_v12, %v8363_v38  ;;  %v8366_v63 = vpop.f32.mrb[130].mxu0  ;;  %v8317_v22 = vpop.f32.mrb[140].mxu1 }
 0x67f   : > { %v8367_v51 = vpop.f32.mrb[131].mxu0  ;;  %v8318_v43 = vpop.f32.mrb[141].mxu1 }
 0x680   : > { %v13933_v40 = vadd.f32 %v8365_v3, %v5269_v30  ;;  %v8368_v21 = vadd.f32 %v8367_v51, %v8366_v63  ;;  %v8319_v15 = vadd.f32 %v8318_v43, %v8317_v22  ;;  %v8320_v58 = vpop.f32.mrb[142].mxu1 }
 0x681   : > { %v8321_v14 = vpop.f32.mrb[143].mxu1 }
 0x682   : > { %v13935_v56 = vadd.f32 %v8368_v21, %v5272_v45  ;;  %v5293_v49 = vadd.f32 %v8319_v15, %v13903_v54  ;;  %v8322_v50 = vadd.f32 %v8321_v14, %v8320_v58 }
 0x684   : > { %v8369_v29 = vpop.f32.mrb[132].mxu0  ;;  %v5296_v16 = vadd.f32 %v8322_v50, %v13905_v20 }
 0x685   : > { %v8370_v42 = vpop.f32.mrb[133].mxu0 }
 0x686   : > { %v8371_v48 = vadd.f32 %v8370_v42, %v8369_v29  ;;  %v8372_v52 = vpop.f32.mrb[134].mxu0  ;;  %v8403_v26 = vpop.f32.mrb[144].mxu1 }
 0x687   : > { %v8373_v61 = vpop.f32.mrb[135].mxu0  ;;  %v8404_v27 = vpop.f32.mrb[145].mxu1 }
 0x688   : > { %v13939_v30 = vadd.f32 %v8371_v48, %v5277_v5  ;;  %v8374_v1 = vadd.f32 %v8373_v61, %v8372_v52  ;;  %v8405_v47 = vadd.f32 %v8404_v27, %v8403_v26  ;;  %v8406_v55 = vpop.f32.mrb[146].mxu1 }
 0x689   : > { %v8407_v23 = vpop.f32.mrb[147].mxu1 }
 0x68a   : > { %v13941_v45 = vadd.f32 %v8374_v1, %v5280_v17  ;;  %v5431_v54 = vadd.f32 %v8405_v47, %v13909_v59  ;;  %v8408_v25 = vadd.f32 %v8407_v23, %v8406_v55 }
 0x68c   : > { %v8375_v46 = vpop.f32.mrb[136].mxu0  ;;  %v5434_v20 = vadd.f32 %v8408_v25, %v13911_v32 }
 0x68d   : > { %v8376_v35 = vpop.f32.mrb[137].mxu0 }
 0x68e   : > { %v8377_v13 = vadd.f32 %v8376_v35, %v8375_v46  ;;  %v8378_v7 = vpop.f32.mrb[138].mxu0 }
 0x68f   : > { %v8409_v19 = vpop.f32.mrb[148].mxu1  ;;  %v8379_v9 = vpop.f32.mrb[139].mxu0 }
 0x690   : > { %v8410_v62 = vpop.f32.mrb[149].mxu1  ;;  %v13945_v5 = vadd.f32 %v8377_v13, %v5285_v34  ;;  %v8380_v4 = vadd.f32 %v8379_v9, %v8378_v7 }
 0x691   : > { %v8411_v2 = vadd.f32 %v8410_v62, %v8409_v19  ;;  %v8412_v57 = vpop.f32.mrb[150].mxu1 }
 0x692   : > { %v8413_v36 = vpop.f32.mrb[151].mxu1  ;;  %v13947_v17 = vadd.f32 %v8380_v4, %v5288_v31 }
 0x693   : > { %v5439_v59 = vadd.f32 %v8411_v2, %v13915_v28  ;;  %v8414_v24 = vadd.f32 %v8413_v36, %v8412_v57 }
 0x694   : > { %v8381_v41 = vpop.f32.mrb[140].mxu0 }
 0x695   : > { %v5442_v32 = vadd.f32 %v8414_v24, %v13917_v53  ;;  %v8382_v10 = vpop.f32.mrb[141].mxu0 }
 0x696   : > { %v8383_v44 = vadd.f32 %v8382_v10, %v8381_v41  ;;  %v8384_v60 = vpop.f32.mrb[142].mxu0 }
 0x697   : > { %v8415_v0 = vpop.f32.mrb[152].mxu1  ;;  %v8385_v37 = vpop.f32.mrb[143].mxu0 }
 0x698   : > { %v8416_v18 = vpop.f32.mrb[153].mxu1  ;;  %v13951_v34 = vadd.f32 %v8383_v44, %v5293_v49  ;;  %v8386_v6 = vadd.f32 %v8385_v37, %v8384_v60 }
 0x699   : > { %v8417_v38 = vadd.f32 %v8416_v18, %v8415_v0  ;;  %v8418_v12 = vpop.f32.mrb[154].mxu1 }
 0x69a   : > { %v8419_v3 = vpop.f32.mrb[155].mxu1  ;;  %v13953_v31 = vadd.f32 %v8386_v6, %v5296_v16 }
 0x69b   : > { %v5447_v28 = vadd.f32 %v8417_v38, %v13921_v8  ;;  %v8420_v63 = vadd.f32 %v8419_v3, %v8418_v12 }
 0x69d   : > { %v5450_v53 = vadd.f32 %v8420_v63, %v13923_v39 }
 0x69e   : > { %v8467_v22 = vpop.f32.mrb[144].mxu0 }
 0x69f   : > { %v8468_v51 = vpop.f32.mrb[145].mxu0 }
 0x6a0   : > { %v8469_v43 = vadd.f32 %v8468_v51, %v8467_v22  ;;  %v8470_v21 = vpop.f32.mrb[146].mxu0  ;;  %v8421_v15 = vpop.f32.mrb[156].mxu1 }
 0x6a1   : > { %v8471_v58 = vpop.f32.mrb[147].mxu0  ;;  %v8422_v14 = vpop.f32.mrb[157].mxu1 }
 0x6a2   : > { %v13957_v49 = vadd.f32 %v8469_v43, %v5431_v54  ;;  %v8472_v50 = vadd.f32 %v8471_v58, %v8470_v21  ;;  %v8423_v29 = vadd.f32 %v8422_v14, %v8421_v15  ;;  %v8424_v42 = vpop.f32.mrb[158].mxu1 }
 0x6a3   : > { %v8425_v48 = vpop.f32.mrb[159].mxu1 }
 0x6a4   : > { %v13959_v16 = vadd.f32 %v8472_v50, %v5434_v20  ;;  %v5455_v8 = vadd.f32 %v8423_v29, %v13927_v11  ;;  %v8426_v52 = vadd.f32 %v8425_v48, %v8424_v42 }
 0x6a6   : > { %v5458_v39 = vadd.f32 %v8426_v52, %v13929_v33 }
 0x6a7   : > { %v8473_v26 = vpop.f32.mrb[148].mxu0 }
 0x6a8   : > { %v8474_v61 = vpop.f32.mrb[149].mxu0 }
 0x6a9   : > { %v8475_v27 = vadd.f32 %v8474_v61, %v8473_v26  ;;  %v8476_v1 = vpop.f32.mrb[150].mxu0  ;;  %v8427_v47 = vpop.f32.mrb[160].mxu1 }
 0x6aa   : > { %v8477_v55 = vpop.f32.mrb[151].mxu0  ;;  %v8428_v23 = vpop.f32.mrb[161].mxu1 }
 0x6ab   : > { %v13963_v54 = vadd.f32 %v8475_v27, %v5439_v59  ;;  %v8478_v25 = vadd.f32 %v8477_v55, %v8476_v1  ;;  %v8429_v46 = vadd.f32 %v8428_v23, %v8427_v47  ;;  %v8430_v35 = vpop.f32.mrb[162].mxu1 }
 0x6ac   : > { %v8431_v13 = vpop.f32.mrb[163].mxu1 }
 0x6ad   : > { %v13965_v20 = vadd.f32 %v8478_v25, %v5442_v32  ;;  %v5463_v11 = vadd.f32 %v8429_v46, %v13933_v40  ;;  %v8432_v7 = vadd.f32 %v8431_v13, %v8430_v35 }
 0x6af   : > { %v8479_v19 = vpop.f32.mrb[152].mxu0  ;;  %v5466_v33 = vadd.f32 %v8432_v7, %v13935_v56 }
 0x6b0   : > { %v8480_v9 = vpop.f32.mrb[153].mxu0 }
 0x6b1   : > { %v8481_v62 = vadd.f32 %v8480_v9, %v8479_v19  ;;  %v8482_v4 = vpop.f32.mrb[154].mxu0  ;;  %v8433_v2 = vpop.f32.mrb[164].mxu1 }
 0x6b2   : > { %v8483_v57 = vpop.f32.mrb[155].mxu0  ;;  %v8434_v36 = vpop.f32.mrb[165].mxu1 }
 0x6b3   : > { %v13969_v59 = vadd.f32 %v8481_v62, %v5447_v28  ;;  %v8484_v24 = vadd.f32 %v8483_v57, %v8482_v4  ;;  %v8435_v41 = vadd.f32 %v8434_v36, %v8433_v2  ;;  %v8436_v10 = vpop.f32.mrb[166].mxu1 }
 0x6b4   : > { %v8437_v44 = vpop.f32.mrb[167].mxu1 }
 0x6b5   : > { %v13971_v32 = vadd.f32 %v8484_v24, %v5450_v53  ;;  %v5471_v40 = vadd.f32 %v8435_v41, %v13939_v30  ;;  %v8438_v60 = vadd.f32 %v8437_v44, %v8436_v10 }
 0x6b7   : > { %v8485_v0 = vpop.f32.mrb[156].mxu0  ;;  %v5474_v56 = vadd.f32 %v8438_v60, %v13941_v45 }
 0x6b8   : > { %v8486_v37 = vpop.f32.mrb[157].mxu0 }
 0x6b9   : > { %v8487_v18 = vadd.f32 %v8486_v37, %v8485_v0  ;;  %v8488_v6 = vpop.f32.mrb[158].mxu0  ;;  %v8439_v38 = vpop.f32.mrb[168].mxu1 }
 0x6ba   : > { %v8489_v12 = vpop.f32.mrb[159].mxu0  ;;  %v8440_v3 = vpop.f32.mrb[169].mxu1 }
 0x6bb   : > { %v13975_v28 = vadd.f32 %v8487_v18, %v5455_v8  ;;  %v8490_v63 = vadd.f32 %v8489_v12, %v8488_v6  ;;  %v8441_v22 = vadd.f32 %v8440_v3, %v8439_v38  ;;  %v8442_v51 = vpop.f32.mrb[170].mxu1 }
 0x6bc   : > { %v8443_v43 = vpop.f32.mrb[171].mxu1 }
 0x6bd   : > { %v13977_v53 = vadd.f32 %v8490_v63, %v5458_v39  ;;  %v5479_v30 = vadd.f32 %v8441_v22, %v13945_v5  ;;  %v8444_v21 = vadd.f32 %v8443_v43, %v8442_v51 }
 0x6bf   : > { %v8491_v15 = vpop.f32.mrb[160].mxu0  ;;  %v5482_v45 = vadd.f32 %v8444_v21, %v13947_v17 }
 0x6c0   : > { %v8492_v58 = vpop.f32.mrb[161].mxu0 }
 0x6c1   : > { %v8493_v14 = vadd.f32 %v8492_v58, %v8491_v15  ;;  %v8494_v50 = vpop.f32.mrb[162].mxu0  ;;  %v8445_v29 = vpop.f32.mrb[172].mxu1 }
 0x6c2   : > { %v8495_v42 = vpop.f32.mrb[163].mxu0  ;;  %v8446_v48 = vpop.f32.mrb[173].mxu1 }
 0x6c3   : > { %v13981_v8 = vadd.f32 %v8493_v14, %v5463_v11  ;;  %v8496_v52 = vadd.f32 %v8495_v42, %v8494_v50  ;;  %v8447_v26 = vadd.f32 %v8446_v48, %v8445_v29  ;;  %v8448_v61 = vpop.f32.mrb[174].mxu1 }
 0x6c4   : > { %v8449_v27 = vpop.f32.mrb[175].mxu1 }
 0x6c5   : > { %v13983_v39 = vadd.f32 %v8496_v52, %v5466_v33  ;;  %v5487_v5 = vadd.f32 %v8447_v26, %v13951_v34  ;;  %v8450_v1 = vadd.f32 %v8449_v27, %v8448_v61 }
 0x6c7   : > { %v8497_v47 = vpop.f32.mrb[164].mxu0  ;;  %v5490_v17 = vadd.f32 %v8450_v1, %v13953_v31 }
 0x6c8   : > { %v8498_v55 = vpop.f32.mrb[165].mxu0 }
 0x6c9   : > { %v8499_v23 = vadd.f32 %v8498_v55, %v8497_v47  ;;  %v8500_v25 = vpop.f32.mrb[166].mxu0  ;;  %v8531_v46 = vpop.f32.mrb[176].mxu1 }
 0x6ca   : > { %v8501_v35 = vpop.f32.mrb[167].mxu0  ;;  %v8532_v13 = vpop.f32.mrb[177].mxu1 }
 0x6cb   : > { %v13987_v11 = vadd.f32 %v8499_v23, %v5471_v40  ;;  %v8502_v7 = vadd.f32 %v8501_v35, %v8500_v25  ;;  %v8533_v19 = vadd.f32 %v8532_v13, %v8531_v46  ;;  %v8534_v9 = vpop.f32.mrb[178].mxu1 }
 0x6cc   : > { %v8535_v62 = vpop.f32.mrb[179].mxu1 }
 0x6cd   : > { %v13989_v33 = vadd.f32 %v8502_v7, %v5474_v56  ;;  %v5625_v34 = vadd.f32 %v8533_v19, %v13957_v49  ;;  %v8536_v4 = vadd.f32 %v8535_v62, %v8534_v9 }
 0x6cf   : > { %v8503_v2 = vpop.f32.mrb[168].mxu0  ;;  %v5628_v31 = vadd.f32 %v8536_v4, %v13959_v16 }
 0x6d0   : > { %v8504_v57 = vpop.f32.mrb[169].mxu0 }
 0x6d1   : > { %v8505_v36 = vadd.f32 %v8504_v57, %v8503_v2  ;;  %v8506_v24 = vpop.f32.mrb[170].mxu0  ;;  %v8537_v41 = vpop.f32.mrb[180].mxu1 }
 0x6d2   : > { %v8507_v10 = vpop.f32.mrb[171].mxu0  ;;  %v8538_v44 = vpop.f32.mrb[181].mxu1 }
 0x6d3   : > { %v13993_v40 = vadd.f32 %v8505_v36, %v5479_v30  ;;  %v8508_v60 = vadd.f32 %v8507_v10, %v8506_v24  ;;  %v8539_v0 = vadd.f32 %v8538_v44, %v8537_v41  ;;  %v8540_v37 = vpop.f32.mrb[182].mxu1 }
 0x6d4   : > { %v8541_v18 = vpop.f32.mrb[183].mxu1 }
 0x6d5   : > { %v13995_v56 = vadd.f32 %v8508_v60, %v5482_v45  ;;  %v5633_v49 = vadd.f32 %v8539_v0, %v13963_v54  ;;  %v8542_v6 = vadd.f32 %v8541_v18, %v8540_v37 }
 0x6d7   : > { %v8509_v38 = vpop.f32.mrb[172].mxu0  ;;  %v5636_v16 = vadd.f32 %v8542_v6, %v13965_v20 }
 0x6d8   : > { %v8510_v12 = vpop.f32.mrb[173].mxu0 }
 0x6d9   : > { %v8511_v3 = vadd.f32 %v8510_v12, %v8509_v38  ;;  %v8512_v63 = vpop.f32.mrb[174].mxu0  ;;  %v8543_v22 = vpop.f32.mrb[184].mxu1 }
 0x6da   : > { %v8513_v51 = vpop.f32.mrb[175].mxu0  ;;  %v8544_v43 = vpop.f32.mrb[185].mxu1 }
 0x6db   : > { %v13999_v30 = vadd.f32 %v8511_v3, %v5487_v5  ;;  %v8514_v21 = vadd.f32 %v8513_v51, %v8512_v63  ;;  %v8545_v15 = vadd.f32 %v8544_v43, %v8543_v22  ;;  %v8546_v58 = vpop.f32.mrb[186].mxu1 }
 0x6dc   : > { %v8547_v14 = vpop.f32.mrb[187].mxu1 }
 0x6dd   : > { %v14001_v45 = vadd.f32 %v8514_v21, %v5490_v17  ;;  %v5641_v54 = vadd.f32 %v8545_v15, %v13969_v59  ;;  %v8548_v50 = vadd.f32 %v8547_v14, %v8546_v58 }
 0x6df   : > { %v8595_v29 = vpop.f32.mrb[176].mxu0  ;;  %v5644_v20 = vadd.f32 %v8548_v50, %v13971_v32 }
 0x6e0   : > { %v8596_v42 = vpop.f32.mrb[177].mxu0 }
 0x6e1   : > { %v8597_v48 = vadd.f32 %v8596_v42, %v8595_v29  ;;  %v8598_v52 = vpop.f32.mrb[178].mxu0  ;;  %v8549_v26 = vpop.f32.mrb[188].mxu1 }
 0x6e2   : > { %v8599_v61 = vpop.f32.mrb[179].mxu0  ;;  %v8550_v27 = vpop.f32.mrb[189].mxu1 }
 0x6e3   : > { %v8600_v5 = vadd.f32 %v8599_v61, %v8598_v52  ;;  %v14005_v1 = vadd.f32 %v8597_v48, %v5625_v34  ;;  %v8551_v47 = vadd.f32 %v8550_v27, %v8549_v26  ;;  %v8552_v55 = vpop.f32.mrb[190].mxu1  ;;  %v14023_v48 = vpop.permute.xlu0 %5937 }
 0x6e4   : > { %v8553_v23 = vpop.f32.mrb[191].mxu1  ;;  %v14026_v61 = vpop.permute.xlu1 %5942 }
 0x6e5   : > { %v14007_v17 = vadd.f32 %v8600_v5, %v5628_v31  ;;  %v5649_v59 = vadd.f32 %v8551_v47, %v13975_v28  ;;  %v8554_v25 = vadd.f32 %v8553_v23, %v8552_v55 }
 0x6e7   : > { %v8601_v46 = vpop.f32.mrb[180].mxu0  ;;  %v5652_v32 = vadd.f32 %v8554_v25, %v13977_v53 }
 0x6e8   : > { %v8602_v35 = vpop.f32.mrb[181].mxu0 }
 0x6e9   : > { %v8603_v13 = vadd.f32 %v8602_v35, %v8601_v46  ;;  %v8604_v7 = vpop.f32.mrb[182].mxu0  ;;  %v8555_v19 = vpop.f32.mrb[192].mxu1 }
 0x6ea   : > { %v8605_v9 = vpop.f32.mrb[183].mxu0  ;;  %v8556_v62 = vpop.f32.mrb[193].mxu1 }
 0x6eb   : > { %v8606_v4 = vadd.f32 %v8605_v9, %v8604_v7  ;;  %v14011_v34 = vadd.f32 %v8603_v13, %v5633_v49  ;;  %v8557_v2 = vadd.f32 %v8556_v62, %v8555_v19  ;;  %v8558_v57 = vpop.f32.mrb[194].mxu1 }
 0x6ec   : > { %v8559_v36 = vpop.f32.mrb[195].mxu1 }
 0x6ed   : > { %v14013_v31 = vadd.f32 %v8606_v4, %v5636_v16  ;;  %v5657_v28 = vadd.f32 %v8557_v2, %v13981_v8  ;;  %v8560_v24 = vadd.f32 %v8559_v36, %v8558_v57 }
 0x6ef   : > { %v8607_v41 = vpop.f32.mrb[184].mxu0  ;;  %v5660_v53 = vadd.f32 %v8560_v24, %v13983_v39 }
 0x6f0   : > { %v8608_v10 = vpop.f32.mrb[185].mxu0 }
 0x6f1   : > { %v8609_v44 = vadd.f32 %v8608_v10, %v8607_v41  ;;  %v8610_v60 = vpop.f32.mrb[186].mxu0  ;;  %v8561_v0 = vpop.f32.mrb[196].mxu1 }
 0x6f2   : > { %v8611_v37 = vpop.f32.mrb[187].mxu0  ;;  %v8562_v18 = vpop.f32.mrb[197].mxu1 }
 0x6f3   : > { %v8612_v6 = vadd.f32 %v8611_v37, %v8610_v60  ;;  %v14017_v49 = vadd.f32 %v8609_v44, %v5641_v54  ;;  %v8563_v38 = vadd.f32 %v8562_v18, %v8561_v0  ;;  %v8564_v12 = vpop.f32.mrb[198].mxu1 }
 0x6f4   : > { %v8565_v3 = vpop.f32.mrb[199].mxu1 }
 0x6f5   : > { %v14019_v16 = vadd.f32 %v8612_v6, %v5644_v20  ;;  %v5665_v8 = vadd.f32 %v8563_v38, %v13987_v11  ;;  %v8566_v63 = vadd.f32 %v8565_v3, %v8564_v12 }
 0x6f7   : > { %v8613_v22 = vpop.f32.mrb[188].mxu0  ;;  %v5668_v39 = vadd.f32 %v8566_v63, %v13989_v33 }
 0x6f8   : > { %v8614_v51 = vpop.f32.mrb[189].mxu0 }
 0x6f9   : > { %v8615_v43 = vadd.f32 %v8614_v51, %v8613_v22  ;;  %v8616_v21 = vpop.f32.mrb[190].mxu0  ;;  %v8567_v15 = vpop.f32.mrb[200].mxu1 }
 0x6fa   : > { %v8617_v58 = vpop.f32.mrb[191].mxu0  ;;  %v8568_v14 = vpop.f32.mrb[201].mxu1 }
 0x6fb   : > { %v8618_v50 = vadd.f32 %v8617_v58, %v8616_v21  ;;  %v5746_v54 = vadd.f32 %v8615_v43, %v5649_v59  ;;  %v8569_v29 = vadd.f32 %v8568_v14, %v8567_v15  ;;  %v8570_v42 = vpop.f32.mrb[202].mxu1  ;;  %v14029_v59 = vpop.permute.xlu0 %5947 }
 0x6fc   : > { %v8571_v20 = vpop.f32.mrb[203].mxu1 }
 0x6fd   : > { %v5749_v52 = vadd.f32 %v8618_v50, %v5652_v32  ;;  %v5673_v11 = vadd.f32 %v8569_v29, %v13993_v40  ;;  %v8572_v26 = vadd.f32 %v8571_v20, %v8570_v42  ;;  %v14033_v40 = vpop.permute.xlu1 %5952 }
 0x6ff   : > { %v8619_v33 = vpop.f32.mrb[192].mxu0  ;;  %v5676_v27 = vadd.f32 %v8572_v26, %v13995_v56  ;;  %v14041_v36 = vpop.permute.xlu0 %5957 }
 0x700   : > { %v8620_v5 = vpop.f32.mrb[193].mxu0 }
 0x701   : > { %v8621_v47 = vadd.f32 %v8620_v5, %v8619_v33  ;;  %v8622_v55 = vpop.f32.mrb[194].mxu0  ;;  %v8573_v23 = vpop.f32.mrb[204].mxu1 }
 0x702   : > { %v8623_v25 = vpop.f32.mrb[195].mxu0  ;;  %v8574_v46 = vpop.f32.mrb[205].mxu1 }
 0x703   : > { %v8624_v35 = vadd.f32 %v8623_v25, %v8622_v55  ;;  %v14031_v13 = vadd.f32 %v8621_v47, %v5657_v28  ;;  %v8575_v32 = vadd.f32 %v8574_v46, %v8573_v23  ;;  %v8576_v7 = vpop.f32.mrb[206].mxu1  ;;  %v14043_v44 = vpop.permute.xlu1 %5962 }
 0x704   : > { %v8577_v19 = vpop.f32.mrb[207].mxu1  ;;  %v14057_v3 = vpop.permute.xlu0 %5967 }
 0x705   : > { %v14035_v9 = vadd.f32 %v8624_v35, %v5660_v53  ;;  %v5681_v56 = vadd.f32 %v8575_v32, %v13999_v30  ;;  %v8578_v62 = vadd.f32 %v8577_v19, %v8576_v7 }
 0x707   : > { %v8625_v4 = vpop.f32.mrb[196].mxu0  ;;  %v14039_v2 = vadd.f32 %v8578_v62, %v14001_v45  ;;  %v14063_v22 = vpop.permute.xlu1 %5972 }
 0x708   : > { %v8626_v57 = vpop.f32.mrb[197].mxu0  ;;  %v14074_v33 = vpop.permute.xlu0 %5977 }
 0x709   : > { %v8627_v24 = vadd.f32 %v8626_v57, %v8625_v4  ;;  %v8628_v28 = vpop.f32.mrb[198].mxu0  ;;  %v8868_v41 = vpop.f32.mrb[208].mxu1 }
 0x70a   : > { %v8629_v10 = vpop.f32.mrb[199].mxu0  ;;  %v14046_v60 = vadd.f32 %v8868_v41, %v14011_v34  ;;  %v5818_v53 = vpop.f32.mrb[209].mxu1 }
 0x70b   : > { %v8630_v0 = vadd.f32 %v8629_v10, %v8628_v28  ;;  %v5762_v30 = vadd.f32 %v8627_v24, %v5665_v8  ;;  %v14049_v37 = vadd.f32 %v5818_v53, %v14005_v1  ;;  %v8869_v45 = vpop.f32.mrb[210].mxu1  ;;  %v14083_v25 = vpop.permute.xlu1 %5982 }
 0x70c   : > { %v14052_v18 = vadd.f32 %v8869_v45, %v14013_v31  ;;  %v5821_v6 = vpop.f32.mrb[211].mxu1  ;;  %v14089_v57 = vpop.permute.xlu0 %5987 }
 0x70d   : > { %v5765_v38 = vadd.f32 %v8630_v0, %v5668_v39  ;;  %v14055_v12 = vadd.f32 %v5821_v6, %v14007_v17  ;;  %v6015_v34 = vmul.f32 %v14023_v48, %v14049_v37  ;;  %v6017_v39 = vmul.f32 %v14029_v59, %v14046_v60 }
 0x70e   : > { %v6018_v29 = vmul.f32 %v14033_v40, %v14052_v18 }
 0x70f   : > { %v8631_v63 = vpop.f32.mrb[200].mxu0  ;;  %v6016_v8 = vmul.f32 %v14026_v61, %v14055_v12  ;;  %v14094_v6 = vpop.permute.xlu1 %5992 }
 0x710   : > { %v8632_v1 = vpop.f32.mrb[201].mxu0 }
 0x711   : > { %v8633_v51 = vadd.f32 %v8632_v1, %v8631_v63  ;;  %v8634_v31 = vpop.f32.mrb[202].mxu0  ;;  %v6031_v43 = vadd.f32 %v6016_v8, %v6015_v34  ;;  %v8872_v17 = vpop.f32.mrb[212].mxu1 }
 0x712   : > { %v8635_v21 = vpop.f32.mrb[203].mxu0  ;;  %v14067_v15 = vadd.f32 %v8872_v17, %v5746_v54  ;;  %v5834_v58 = vpop.f32.mrb[213].mxu1 }
 0x713   : > { %v8636_v14 = vadd.f32 %v8635_v21, %v8634_v31  ;;  %v5770_v50 = vadd.f32 %v8633_v51, %v5673_v11  ;;  %v6032_v42 = vadd.f32 %v6031_v43, %v6017_v39  ;;  %v14072_v20 = vadd.f32 %v5834_v58, %v14017_v49  ;;  %v8873_v26 = vpop.f32.mrb[214].mxu1  ;;  %v14100_v39 = vpop.permute.xlu0 %5997 }
 0x714   : > { %v14076_v5 = vadd.f32 %v8873_v26, %v5749_v52  ;;  %v5837_v47 = vpop.f32.mrb[215].mxu1  ;;  %v14103_v21 = vpop.permute.xlu1 %6002 }
 0x715   : > { %v5773_v55 = vadd.f32 %v8636_v14, %v5676_v27  ;;  %v6019_v54 = vmul.f32 %v14041_v36, %v14072_v20  ;;  %v6033_v23 = vadd.f32 %v6032_v42, %v6018_v29  ;;  %v14081_v11 = vadd.f32 %v5837_v47, %v14019_v16 }
 0x716   : > { %v6021_v27 = vmul.f32 %v14057_v3, %v14067_v15  ;;  %v6022_v10 = vmul.f32 %v14063_v22, %v14076_v5 }
 0x717   : > { %v8637_v46 = vpop.f32.mrb[204].mxu0  ;;  %v6034_v35 = vadd.f32 %v6033_v23, %v6019_v54  ;;  %v6020_v49 = vmul.f32 %v14043_v44, %v14081_v11 }
 0x718   : > { %v8638_v32 = vpop.f32.mrb[205].mxu0 }
 0x719   : > { %v8639_v7 = vadd.f32 %v8638_v32, %v8637_v46  ;;  %v8640_v52 = vpop.f32.mrb[206].mxu0  ;;  %v6035_v19 = vadd.f32 %v6034_v35, %v6020_v49  ;;  %v8876_v62 = vpop.f32.mrb[216].mxu1 }
 0x71a   : > { %v8641_v4 = vpop.f32.mrb[207].mxu0  ;;  %v5859_v16 = vadd.f32 %v8876_v62, %v5762_v30  ;;  %v5850_v24 = vpop.f32.mrb[217].mxu1 }
 0x71b   : > { %v5778_v28 = vadd.f32 %v8639_v7, %v5681_v56  ;;  %v8642_v41 = vadd.f32 %v8641_v4, %v8640_v52  ;;  %v6036_v53 = vadd.f32 %v6035_v19, %v6021_v27  ;;  %v5851_v0 = vadd.f32 %v5850_v24, %v14031_v13  ;;  %v8877_v45 = vpop.f32.mrb[218].mxu1  ;;  %v14107_v46 = vpop.permute.xlu0 %6007 }
 0x71c   : > { %v5862_v63 = vadd.f32 %v8877_v45, %v5765_v38  ;;  %v5853_v34 = vpop.f32.mrb[219].mxu1  ;;  %v6025_v43 = vmul.f32 %v14089_v57, %v5859_v16  ;;  %v14111_v7 = vpop.permute.xlu1 %6012 }
 0x71d   : > { %v5781_v8 = vadd.f32 %v8642_v41, %v14039_v2  ;;  %v6023_v1 = vmul.f32 %v14074_v33, %v5851_v0  ;;  %v6037_v51 = vadd.f32 %v6036_v53, %v6022_v10  ;;  %v5854_v30 = vadd.f32 %v5853_v34, %v14035_v9 }
 0x71e   : > { %v6026_v2 = vmul.f32 %v14094_v6, %v5862_v63 }
 0x71f   : > { %v6038_v56 = vadd.f32 %v6037_v51, %v6023_v1  ;;  %v6024_v31 = vmul.f32 %v14083_v25, %v5854_v30  ;;  %v6055_v19 = vpop.permute.xlu0 %6054 }
 0x720   : > { %9444 = vrcp.f32 %v6055_v19 }
 0x721   : > { %v6039_v13 = vadd.f32 %v6038_v56, %v6024_v31  ;;  %v8880_v17 = vpop.f32.mrb[220].mxu1 }
 0x722   : > { %v5875_v38 = vadd.f32 %v8880_v17, %v5778_v28  ;;  %v5866_v58 = vpop.f32.mrb[221].mxu1 }
 0x723   : > { %v6040_v14 = vadd.f32 %v6039_v13, %v6025_v43  ;;  %v5867_v29 = vadd.f32 %v5866_v58, %v5770_v50  ;;  %v8881_v42 = vpop.f32.mrb[222].mxu1 }
 0x724   : > { %v5878_v26 = vadd.f32 %v8881_v42, %v5781_v8  ;;  %v5869_v9 = vpop.f32.mrb[223].mxu1  ;;  %v6029_v35 = vmul.f32 %v14107_v46, %v5875_v38 }
 0x725   : > { %v6027_v47 = vmul.f32 %v14100_v39, %v5867_v29  ;;  %v6041_v54 = vadd.f32 %v6040_v14, %v6026_v2  ;;  %v5870_v23 = vadd.f32 %v5869_v9, %v5773_v55 }
 0x726   : > { %v6030_v52 = vmul.f32 %v14111_v7, %v5878_v26 }
 0x727   : > { %v6042_v49 = vadd.f32 %v6041_v54, %v6027_v47  ;;  %v6028_v32 = vmul.f32 %v14103_v21, %v5870_v23 }
 0x729   : > { %v6043_v27 = vadd.f32 %v6042_v49, %v6028_v32 }
 0x72a   : > { %v14114_v53 = vpop.eup %9444 }
 0x72b   : > { %v6044_v50 = vadd.f32 %v6043_v27, %v6029_v35 }
 0x72d   : > { %v6045_v62 = vadd.f32 %v6044_v50, %v6030_v52 }
 0x72f   : > { %v6046_v4 = vrot.slane %v6045_v62, 4 }
 0x731   : > { %v6047_v24 = vadd.f32 %v6046_v4, %v6045_v62 }
 0x733   : > { %v6048_v28 = vrot.slane %v6047_v24, 2 }
 0x735   : > { %v6049_v55 = vadd.f32 %v6048_v28, %v6047_v24 }
 0x737   : > { %v6050_v41 = vrot.slane %v6049_v55, 1 }
 0x739   : > { %v6051_v10 = vadd.f32 %v6050_v41, %v6049_v55 }
 0x73b   : > { %v6058_v45 = vmul.f32 %v14114_v53, %v6051_v10 }
 0x73d   : > { %v14118_v34 = vsub.f32 %v14049_v37, %v6058_v45  ;;  %v14121_v8 = vsub.f32 %v14055_v12, %v6058_v45  ;;  %v14124_v1 = vsub.f32 %v14046_v60, %v6058_v45  ;;  %v14127_v51 = vsub.f32 %v14052_v18, %v6058_v45 }
 0x73e   : > { %v14130_v56 = vsub.f32 %v14072_v20, %v6058_v45  ;;  %v14133_v31 = vsub.f32 %v14081_v11, %v6058_v45  ;;  %v14136_v43 = vsub.f32 %v14067_v15, %v6058_v45  ;;  %v14139_v37 = vsub.f32 %v14076_v5, %v6058_v45 }
 0x73f   : > { %v14141_v12 = vsub.f32 %v5851_v0, %v6058_v45  ;;  %v14143_v13 = vsub.f32 %v5854_v30, %v6058_v45  ;;  %v14145_v60 = vsub.f32 %v5859_v16, %v6058_v45  ;;  %v14147_v18 = vsub.f32 %v5862_v63, %v6058_v45 }
 0x740   : > { %v14149_v17 = vsub.f32 %v5867_v29, %v6058_v45  ;;  %v14151_v20 = vsub.f32 %v5870_v23, %v6058_v45  ;;  %v14153_v11 = vsub.f32 %v5875_v38, %v6058_v45  ;;  %v14155_v58 = vsub.f32 %v5878_v26, %v6058_v45 }
 0x741   : > { %v6075_v15 = vmul.f32 %v14118_v34, %v14023_v48  ;;  %v6076_v5 = vmul.f32 %v14121_v8, %v14026_v61  ;;  %v6077_v16 = vmul.f32 %v14124_v1, %v14029_v59  ;;  %v6078_v30 = vmul.f32 %v14127_v51, %v14033_v40 }
 0x742   : > { %v6079_v38 = vmul.f32 %v14130_v56, %v14041_v36  ;;  %v6080_v29 = vmul.f32 %v14133_v31, %v14043_v44  ;;  %v6081_v9 = vmul.f32 %v14136_v43, %v14057_v3  ;;  %v6082_v23 = vmul.f32 %v14139_v37, %v14063_v22 }
 0x743   : > { %v6091_v0 = vmul.f32 %v6075_v15, %v6075_v15  ;;  %v6092_v63 = vmul.f32 %v6076_v5, %v6076_v5  ;;  %v6093_v2 = vmul.f32 %v6077_v16, %v6077_v16  ;;  %v6094_v42 = vmul.f32 %v6078_v30, %v6078_v30 }
 0x744   : > { %v6095_v47 = vmul.f32 %v6079_v38, %v6079_v38  ;;  %v6096_v35 = vmul.f32 %v6080_v29, %v6080_v29  ;;  %v6083_v32 = vmul.f32 %v14141_v12, %v14074_v33  ;;  %v6097_v52 = vmul.f32 %v6081_v9, %v6081_v9 }
 0x745   : > { %v6107_v14 = vadd.f32 %v6092_v63, %v6091_v0  ;;  %v6084_v50 = vmul.f32 %v14143_v13, %v14083_v25  ;;  %v6098_v19 = vmul.f32 %v6082_v23, %v6082_v23  ;;  %v6085_v4 = vmul.f32 %v14145_v60, %v14089_v57 }
 0x746   : > { %v6099_v24 = vmul.f32 %v6083_v32, %v6083_v32  ;;  %v6086_v55 = vmul.f32 %v14147_v18, %v14094_v6  ;;  %v6087_v45 = vmul.f32 %v14149_v17, %v14100_v39  ;;  %v6088_v16 = vmul.f32 %v14151_v20, %v14103_v21 }
 0x747   : > { %v6108_v26 = vadd.f32 %v6107_v14, %v6093_v2  ;;  %v6100_v41 = vmul.f32 %v6084_v50, %v6084_v50  ;;  %v6101_v15 = vmul.f32 %v6085_v4, %v6085_v4  ;;  %v6089_v30 = vmul.f32 %v14153_v11, %v14107_v46 }
 0x748   : > { %v6102_v0 = vmul.f32 %v6086_v55, %v6086_v55  ;;  %v6103_v38 = vmul.f32 %v6087_v45, %v6087_v45  ;;  %v6090_v14 = vmul.f32 %v14155_v58, %v14111_v7  ;;  %v6104_v29 = vmul.f32 %v6088_v16, %v6088_v16 }
 0x749   : > { %v6109_v54 = vadd.f32 %v6108_v26, %v6094_v42  ;;  %v6105_v26 = vmul.f32 %v6089_v30, %v6089_v30 }
 0x74b   : > { %v6110_v49 = vadd.f32 %v6109_v54, %v6095_v47  ;;  %v6106_v47 = vmul.f32 %v6090_v14, %v6090_v14 }
 0x74d   : > { %v6111_v27 = vadd.f32 %v6110_v49, %v6096_v35 }
 0x74f   : > { %v6112_v62 = vadd.f32 %v6111_v27, %v6097_v52 }
 0x751   : > { %v6113_v28 = vadd.f32 %v6112_v62, %v6098_v19 }
 0x753   : > { %v6114_v10 = vadd.f32 %v6113_v28, %v6099_v24 }
 0x755   : > { %v6115_v5 = vadd.f32 %v6114_v10, %v6100_v41 }
 0x757   : > { %v6116_v63 = vadd.f32 %v6115_v5, %v6101_v15 }
 0x759   : > { %v6117_v2 = vadd.f32 %v6116_v63, %v6102_v0 }
 0x75b   : > { %v6118_v42 = vadd.f32 %v6117_v2, %v6103_v38 }
 0x75d   : > { %v6119_v9 = vadd.f32 %v6118_v42, %v6104_v29 }
 0x75f   : > { %v6120_v54 = vadd.f32 %v6119_v9, %v6105_v26 }
 0x761   : > { %v6121_v23 = vadd.f32 %v6120_v54, %v6106_v47 }
 0x763   : > { %v6122_v35 = vrot.slane %v6121_v23, 4 }
 0x765   : > { %v6123_v49 = vadd.f32 %v6122_v35, %v6121_v23 }
 0x767   : > { %v6124_v32 = vrot.slane %v6123_v49, 2 }
 0x769   : > { %v6125_v52 = vadd.f32 %v6124_v32, %v6123_v49 }
 0x76b   : > { %v6126_v27 = vrot.slane %v6125_v52, 1 }
 0x76d   : > { %v6127_v50 = vadd.f32 %v6126_v27, %v6125_v52 }
 0x76f   : > { %v6128_v19 = vmul.f32 %v14114_v53, %v6127_v50  ;;  %v7957_v53 = vld [vmem:[%s981_s12] ss:$0 sm:$0xff]  ;;  %s15791_s12 = sld [smem:[#allocation157_spill]] (!%p7959_p9) }
 0x771   : > { %v6129_v62 = vadd.f32 1e-05, %v6128_v19 }
 0x773   : > { %9446 = vrsqrt.f32 %v6129_v62 }
 0x77d   : > { %v9447_v4 = vpop.eup %9446 }
 0x77e   : > { %v6131_v24 = vmul.f32 %v9447_v4, %v14118_v34  ;;  %v6132_v28 = vmul.f32 %v9447_v4, %v14121_v8  ;;  %v6133_v55 = vmul.f32 %v9447_v4, %v14124_v1  ;;  %v6134_v41 = vmul.f32 %v9447_v4, %v14127_v51 }
 0x77f   : > { %v6135_v10 = vmul.f32 %v9447_v4, %v14130_v56  ;;  %v6136_v45 = vmul.f32 %v9447_v4, %v14133_v31  ;;  %v6137_v15 = vmul.f32 %v9447_v4, %v14136_v43  ;;  %v6138_v5 = vmul.f32 %v9447_v4, %v14139_v37 }
 0x780   : > { %v6139_v16 = vmul.f32 %v9447_v4, %v14141_v12  ;;  %v6140_v34 = vmul.f32 %v9447_v4, %v14143_v13  ;;  %v6141_v8 = vmul.f32 %v9447_v4, %v14145_v60  ;;  %v6142_v1 = vmul.f32 %v9447_v4, %v14147_v18  ;;  %v7958_v60 = vld [vmem:[%s989_s2] ss:$0 sm:$0xff] }
 0x781   : > { %v6143_v51 = vmul.f32 %v9447_v4, %v14149_v17  ;;  %v6144_v56 = vmul.f32 %v9447_v4, %v14151_v20  ;;  %v6145_v31 = vmul.f32 %v9447_v4, %v14153_v11  ;;  %v6146_v43 = vmul.f32 %v9447_v4, %v14155_v58 }
 0x782   : > { %v6154_v37 = vmul.f32 %v7957_v53, %v6131_v24  ;;  %v6155_v0 = vmul.f32 %v7957_v53, %v6132_v28  ;;  %v6156_v63 = vmul.f32 %v7957_v53, %v6133_v55  ;;  %v6157_v30 = vmul.f32 %v7957_v53, %v6134_v41 }
 0x783   : > { %v6158_v12 = vmul.f32 %v7957_v53, %v6135_v10  ;;  %v6159_v38 = vmul.f32 %v7957_v53, %v6136_v45  ;;  %v6160_v2 = vmul.f32 %v7957_v53, %v6137_v15  ;;  %v6161_v13 = vmul.f32 %v7957_v53, %v6138_v5 }
 0x784   : > { %v6162_v14 = vmul.f32 %v7957_v53, %v6139_v16  ;;  %v6163_v18 = vmul.f32 %v7957_v53, %v6140_v34  ;;  %v6164_v29 = vmul.f32 %v7957_v53, %v6141_v8  ;;  %v6165_v17 = vmul.f32 %v7957_v53, %v6142_v1 }
 0x785   : > { %v6166_v42 = vmul.f32 %v7957_v53, %v6143_v51  ;;  %v6167_v20 = vmul.f32 %v7957_v53, %v6144_v56  ;;  %v6168_v26 = vmul.f32 %v7957_v53, %v6145_v31  ;;  %v6169_v11 = vmul.f32 %v7957_v53, %v6146_v43 }
 0x786   : > { %v6177_v9 = vadd.f32 %v7958_v60, %v6154_v37  ;;  %v6178_v58 = vadd.f32 %v7958_v60, %v6155_v0  ;;  %v6179_v47 = vadd.f32 %v7958_v60, %v6156_v63  ;;  %v6180_v54 = vadd.f32 %v7958_v60, %v6157_v30 }
 0x787   : > { %v6181_v23 = vadd.f32 %v7958_v60, %v6158_v12  ;;  %v6182_v35 = vadd.f32 %v7958_v60, %v6159_v38  ;;  %v6183_v49 = vadd.f32 %v7958_v60, %v6160_v2  ;;  %v6184_v32 = vadd.f32 %v7958_v60, %v6161_v13 }
 0x788   : > { %v6185_v52 = vadd.f32 %v7958_v60, %v6162_v14  ;;  %v6186_v27 = vadd.f32 %v7958_v60, %v6163_v18  ;;  %v6187_v50 = vadd.f32 %v7958_v60, %v6164_v29  ;;  %v6188_v19 = vadd.f32 %v7958_v60, %v6165_v17 }
 0x789   : > { %v6189_v62 = vadd.f32 %v7958_v60, %v6166_v42  ;;  %v6190_v4 = vadd.f32 %v7958_v60, %v6167_v20  ;;  %v6191_v24 = vadd.f32 %v7958_v60, %v6168_v26  ;;  %v6192_v28 = vadd.f32 %v7958_v60, %v6169_v11 }
 0x78a   : > { %vm6193_vm2 = vcmp.gt.f32.partialorder %v6177_v9, 0.0  ;;  %vm6194_vm9 = vcmp.gt.f32.partialorder %v6178_v58, 0.0  ;;  %vm6195_vm10 = vcmp.gt.f32.partialorder %v6179_v47, 0.0  ;;  %vm6196_vm7 = vcmp.gt.f32.partialorder %v6180_v54, 0.0 }
 0x78b   : > { %vm6197_vm6 = vcmp.gt.f32.partialorder %v6181_v23, 0.0  ;;  %vm6198_vm3 = vcmp.gt.f32.partialorder %v6182_v35, 0.0  ;;  %vm6199_vm4 = vcmp.gt.f32.partialorder %v6183_v49, 0.0  ;;  %vm6200_vm0 = vcmp.gt.f32.partialorder %v6184_v32, 0.0 }
 0x78c   : > { %vm6201_vm11 = vcmp.gt.f32.partialorder %v6185_v52, 0.0  ;;  %vm6202_vm12 = vcmp.gt.f32.partialorder %v6186_v27, 0.0  ;;  %vm6203_vm8 = vcmp.gt.f32.partialorder %v6187_v50, 0.0  ;;  %vm6204_vm14 = vcmp.gt.f32.partialorder %v6188_v19, 0.0 }
 0x78d   : > { %vm6205_vm5 = vcmp.gt.f32.partialorder %v6189_v62, 0.0  ;;  %vm6206_vm1 = vcmp.gt.f32.partialorder %v6190_v4, 0.0  ;;  %vm6207_vm13 = vcmp.gt.f32.partialorder %v6191_v24, 0.0  ;;  %vm6208_vm15 = vcmp.gt.f32.partialorder %v6192_v28, 0.0 }
 0x78e   : > { %v6209_v55 = vmul.f32 0.01, %v6177_v9  ;;  %v6210_v41 = vmul.f32 0.01, %v6178_v58  ;;  %v6211_v10 = vmul.f32 0.01, %v6179_v47 }
 0x78f   : > { %v6212_v45 = vmul.f32 0.01, %v6180_v54  ;;  %v6213_v15 = vmul.f32 0.01, %v6181_v23  ;;  %v6214_v5 = vmul.f32 0.01, %v6182_v35 }
 0x790   : > { %v6215_v53 = vmul.f32 0.01, %v6183_v49  ;;  %v6216_v16 = vmul.f32 0.01, %v6184_v32  ;;  %v6217_v34 = vmul.f32 0.01, %v6185_v52  ;;  %v6225_v8 = vsel %vm6193_vm2, %v6177_v9, %v6209_v55 }
 0x791   : > { %v6218_v1 = vmul.f32 0.01, %v6186_v27  ;;  %v6219_v51 = vmul.f32 0.01, %v6187_v50  ;;  %v6220_v56 = vmul.f32 0.01, %v6188_v19  ;;  %v6226_v31 = vsel %vm6194_vm9, %v6178_v58, %v6210_v41 }
 0x792   : > { %v6221_v43 = vmul.f32 0.01, %v6189_v62  ;;  %v6222_v37 = vmul.f32 0.01, %v6190_v4  ;;  %v6223_v0 = vmul.f32 0.01, %v6191_v24  ;;  %v6227_v63 = vsel %vm6195_vm10, %v6179_v47, %v6211_v10 }
 0x793   : > { %v6224_v30 = vmul.f32 0.01, %v6192_v28  ;;  %v6228_v12 = vsel %vm6196_vm7, %v6180_v54, %v6212_v45  ;;  %v6229_v38 = vsel %vm6197_vm6, %v6181_v23, %v6213_v15  ;;  %v6230_v2 = vsel %vm6198_vm3, %v6182_v35, %v6214_v5 }
 0x794   : > { %v6231_v13 = vsel %vm6199_vm4, %v6183_v49, %v6215_v53  ;;  %v6232_v60 = vsel %vm6200_vm0, %v6184_v32, %v6216_v16  ;;  %v6233_v14 = vsel %vm6201_vm11, %v6185_v52, %v6217_v34  ;;  %v6234_v18 = vsel %vm6202_vm12, %v6186_v27, %v6218_v1 }
 0x795   : > { %v6235_v29 = vsel %vm6203_vm8, %v6187_v50, %v6219_v51  ;;  %v6236_v17 = vsel %vm6204_vm14, %v6188_v19, %v6220_v56  ;;  %v6237_v42 = vsel %vm6205_vm5, %v6189_v62, %v6221_v43  ;;  %v6238_v20 = vsel %vm6206_vm1, %v6190_v4, %v6222_v37 }
 0x796   : > { %v6239_v26 = vsel %vm6207_vm13, %v6191_v24, %v6223_v0  ;;  %v6240_v11 = vsel %vm6208_vm15, %v6192_v28, %v6224_v30  ;;  %v14227_v9 = vmul.f32 %v6225_v8, %v14023_v48  ;;  %v14230_v58 = vmul.f32 %v6226_v31, %v14026_v61 }
 0x797   : > { %v14233_v47 = vmul.f32 %v6227_v63, %v14029_v59  ;;  %v14236_v54 = vmul.f32 %v6228_v12, %v14033_v40  ;;  %v14239_v23 = vmul.f32 %v6229_v38, %v14041_v36  ;;  %v14242_v35 = vmul.f32 %v6230_v2, %v14043_v44 }
 0x798   : > { %v14245_v49 = vmul.f32 %v6231_v13, %v14057_v3  ;;  %v14248_v48 = vmul.f32 %v6232_v60, %v14063_v22  ;;  %v14251_v61 = vmul.f32 %v6233_v14, %v14074_v33  ;;  %v14254_v59 = vmul.f32 %v6234_v18, %v14083_v25  ;;  %6257 = vst [vmem:[#allocation2] sm:$0xff] %v14227_v9  ;;  %v6277_v25 = vld [vmem:[#allocation11] sm:$0x1] (!%p7959_p9) }
 0x799   : > { %6258 = vst [vmem:[#allocation2 + $0x8] sm:$0xff] %v14230_v58  ;;  %v14259_v40 = vmul.f32 %v6235_v29, %v14089_v57  ;;  %v14262_v36 = vmul.f32 %v6236_v17, %v14094_v6  ;;  %v14265_v44 = vmul.f32 %v6237_v42, %v14100_v39  ;;  %v14268_v3 = vmul.f32 %v6238_v20, %v14103_v21 }
 0x79a   : > { %6259 = vst [vmem:[#allocation2 + $0x10] sm:$0xff] %v14233_v47  ;;  %6260 = vst [vmem:[#allocation2 + $0x18] sm:$0xff] %v14236_v54  ;;  %v14275_v22 = vmul.f32 %v6239_v26, %v14107_v46  ;;  %v14278_v33 = vmul.f32 %v6240_v11, %v14111_v7  ;;  %6276 = sbr.rel (%p7959_p9) target bundleno = 2950 (0xb86), region = 188  ;;  %v6338_v57 = vlaneseq (!%p7959_p9)  ;;  %v6280_v6 = vpack.c.bf16 (!%p7959_p9), %v14230_v58, %v14227_v9 }
 0x79b   : > { %6261 = vst [vmem:[#allocation2 + $0x20] sm:$0xff] %v14239_v23  ;;  %6262 = vst [vmem:[#allocation2 + $0x28] sm:$0xff] %v14242_v35  ;;  %v6373_v39 = vshrl.u32 (!%p7959_p9), %v6277_v25, 16  ;;  %v6336_v21 = vpack.i.b16 (!%p7959_p9), %v6277_v25, %v6277_v25  ;;  %v10021_v32 = vmov (!%p7959_p9), 0.0   ;;  %v6281_v27 = vpack.c.bf16 (!%p7959_p9), %v14236_v54, %v14233_v47 }
 0x79c   : > { %6263 = vst [vmem:[#allocation2 + $0x30] sm:$0xff] %v14245_v49  ;;  %6264 = vst [vmem:[#allocation2 + $0x38] sm:$0xff] %v14248_v48  ;;  %v6339_v46 = vshrl.u32 (!%p7959_p9), %v6338_v57, 7  ;;  %8882 = vmatprep.subr.bf16.mxu0 (!%p7959_p9), %v10021_v32  ;;  %v10022_v62 = vmov (!%p7959_p9), 0   ;;  %vm10023_vm2 = vmmov (!%p7959_p9), 0   ;;  %v6282_v4 = vpack.c.bf16 (!%p7959_p9), %v14242_v35, %v14239_v23 }
 0x79d   : > { %6265 = vst [vmem:[#allocation2 + $0x40] sm:$0xff] %v14251_v61  ;;  %6266 = vst [vmem:[#allocation2 + $0x48] sm:$0xff] %v14254_v59  ;;  %v6374_v7 = vpack.i.b16 (!%p7959_p9), %v6373_v39, %v6373_v39  ;;  %8883 = vmatpush3.bf16.msra.mxu0 (!%p7959_p9), %v6280_v6  ;;  %9449 = vset.pattern.permute.xlu1 (!%p7959_p9), %v10022_v62  ;;  %v6283_v24 = vpack.c.bf16 (!%p7959_p9), %v14248_v48, %v14245_v49  ;;  %v10024_v45 = vmov (!%p7959_p9), 839922192   ;;  %v10025_v5 = vmov (!%p7959_p9), 1985246804  }
 0x79e   : > { %6267 = vst [vmem:[#allocation2 + $0x50] sm:$0xff] %v14259_v40  ;;  %6268 = vst [vmem:[#allocation2 + $0x58] sm:$0xff] %v14262_v36  ;;  %v6340_v52 = vsub.s32 (!%p7959_p9), 0, %v6339_v46  ;;  %8884 = vmatprep.subr.bf16.mxu0 (!%p7959_p9), %v10021_v32  ;;  %9448 = vset.pattern.permute.xlu0 (!%p7959_p9), %v10022_v62  ;;  %v6284_v28 = vpack.c.bf16 (!%p7959_p9), %v14254_v59, %v14251_v61  ;;  %v6285_v55 = vpack.c.bf16 (!%p7959_p9), %v14262_v36, %v14259_v40 }
 0x79f   : > { %6269 = vst [vmem:[#allocation2 + $0x60] sm:$0xff] %v14265_v44  ;;  %6270 = vst [vmem:[#allocation2 + $0x68] sm:$0xff] %v14268_v3  ;;  %8898 = vmatprep.mubr.msk.bf16.mxu0 (!%p7959_p9), %vm10023_vm2, %v10021_v32  ;;  %v6286_v41 = vpack.c.bf16 (!%p7959_p9), %v14268_v3, %v14265_v44  ;;  %v6287_v10 = vpack.c.bf16 (!%p7959_p9), %v14278_v33, %v14275_v22  ;;  %v6444_v15 = vunpack.c.l.s4 (!%p7959_p9), %v10024_v45  ;;  %v6451_v53 = vunpack.c.l.s4 (!%p7959_p9), %v10025_v5 }
 0x7a0   : > { %6271 = vst [vmem:[#allocation2 + $0x70] sm:$0xff] %v14275_v22  ;;  %6272 = vst [vmem:[#allocation2 + $0x78] sm:$0xff] %v14278_v33  ;;  %v6341_v50 = vrot.slane (!%p7959_p9), %v6336_v21, %v6340_v52  ;;  %v6379_v19 = vrot.slane (!%p7959_p9), %v6374_v7, %v6340_v52 }
 0x7a1   : > { %8885 = vmatpush3.bf16.msra.mxu0 %v6281_v27  ;;  %v6445_v16 = vunpack.c.0.s8 %v6444_v15  ;;  %v6452_v34 = vunpack.c.0.s8 %v6451_v53 }
 0x7a2   : > { %6343 = vbcast.lane.c.b16.xlu0 %v6341_v50, 256  ;;  %6381 = vbcast.lane.c.b16.xlu1 %v6379_v19, 256 }
 0x7a3   : > { %8886 = vmatprep.subr.bf16.mxu0 %v10021_v32  ;;  %v14322_v8 = vsub.s32 %v6445_v16, %v6339_v46  ;;  %v14324_v1 = vsub.s32 %v6452_v34, %v6339_v46 }
 0x7a5   : > { %8887 = vmatpush3.bf16.msra.mxu0 %v6282_v4 }
 0x7a6   : > { %6347 = vbcast.lane.c.b16.xlu0 %v6341_v50, 272  ;;  %6385 = vbcast.lane.c.b16.xlu1 %v6379_v19, 272 }
 0x7a7   : > { %8888 = vmatprep.subr.bf16.mxu0 %v10021_v32 }
 0x7a9   : > { %8889 = vmatpush3.bf16.msra.mxu0 %v6283_v24 }
 0x7aa   : > { %6351 = vbcast.lane.c.b16.xlu0 %v6341_v50, 288  ;;  %6389 = vbcast.lane.c.b16.xlu1 %v6379_v19, 288 }
 0x7ab   : > { %8890 = vmatprep.subr.bf16.mxu0 %v10021_v32 }
 0x7ad   : > { %8891 = vmatpush3.bf16.msra.mxu0 %v6284_v28 }
 0x7ae   : > { %6355 = vbcast.lane.c.b16.xlu0 %v6341_v50, 304  ;;  %6393 = vbcast.lane.c.b16.xlu1 %v6379_v19, 304 }
 0x7af   : > { %8892 = vmatprep.subr.bf16.mxu0 %v10021_v32 }
 0x7b1   : > { %8893 = vmatpush3.bf16.msra.mxu0 %v6285_v55 }
 0x7b2   : > { %6359 = vbcast.lane.c.b16.xlu0 %v6341_v50, 320  ;;  %6397 = vbcast.lane.c.b16.xlu1 %v6379_v19, 320 }
 0x7b3   : > { %8894 = vmatprep.subr.bf16.mxu0 %v10021_v32 }
 0x7b5   : > { %8895 = vmatpush3.bf16.msra.mxu0 %v6286_v41 }
 0x7b6   : > { %6363 = vbcast.lane.c.b16.xlu0 %v6341_v50, 336  ;;  %6401 = vbcast.lane.c.b16.xlu1 %v6379_v19, 336 }
 0x7b7   : > { %8896 = vmatprep.subr.bf16.mxu0 %v10021_v32 }
 0x7b9   : > { %8897 = vmatpush3.bf16.msra.mxu0 %v6287_v10 }
 0x7ba   : > { %6367 = vbcast.lane.c.b16.xlu0 %v6341_v50, 352  ;;  %6405 = vbcast.lane.c.b16.xlu1 %v6379_v19, 352 }
 0x7bb   : > { %8902 = vmatprep.subr.bf16.mxu0 %v10021_v32 }
 0x7bc   : > { %8899 = vmatmul.mubr.bf16.vlgmr.msra.gmra.mrb[0].mxu0 %v6277_v25 }
 0x7bd   : > { %8918 = vmatprep.mubr.msk.bf16.mxu0 %vm10023_vm2, %v10021_v32 }
 0x7be   : > { %6371 = vbcast.lane.c.b16.xlu0 %v6341_v50, 368  ;;  %6409 = vbcast.lane.c.b16.xlu1 %v6379_v19, 368 }
 0x814   : > { %v6344_v51 = vpop.permute.xlu0 %6343  ;;  %v6382_v56 = vpop.permute.xlu1 %6381 }
 0x815   : > { %vm6411_vm9 = vcmp.gt.bf16.partialorder %v6344_v51, 1056980736  ;;  %vm6419_vm10 = vcmp.gt.bf16.partialorder %v6382_v56, 1056980736 }
 0x816   : > { %v6427_v31 = vsel %vm6411_vm9, 65537, %v10022_v62  ;;  %v6435_v43 = vsel %vm6419_vm10, 65537, %v10022_v62 }
 0x817   : > { %v6449_v37 = vrot.slane %v6427_v31, %v14322_v8  ;;  %v6456_v0 = vrot.slane %v6427_v31, %v14324_v1  ;;  %v6561_v63 = vrot.slane %v6435_v43, %v14322_v8  ;;  %v6568_v30 = vrot.slane %v6435_v43, %v14324_v1 }
 0x818   : > { %v6348_v12 = vpop.permute.xlu0 %6347  ;;  %v6386_v38 = vpop.permute.xlu1 %6385 }
 0x819   : > { %vm6667_vm7 = vcmp.ne.s16.totalorder %v6449_v37, 0  ;;  %vm6668_vm6 = vcmp.ne.s16.totalorder %v6456_v0, 0  ;;  %vm6412_vm3 = vcmp.gt.bf16.partialorder %v6348_v12, 1056980736  ;;  %vm6683_vm4 = vcmp.ne.s16.totalorder %v6561_v63, 0 }
 0x81a   : > { %v6428_v2 = vsel %vm6412_vm3, 65537, %v10022_v62  ;;  %vm6684_vm0 = vcmp.ne.s16.totalorder %v6568_v30, 0  ;;  %v6700_v13 = vsel %vm6668_vm6, 65537, %v10022_v62  ;;  %v6699_v60 = vsel %vm6667_vm7, 65537, %v10022_v62 }
 0x81b   : > { %v6463_v14 = vrot.slane %v6428_v2, %v14322_v8  ;;  %v6470_v18 = vrot.slane %v6428_v2, %v14324_v1  ;;  %v6732_v29 = vunpack.c.l.b16 %v6700_v13  ;;  %v6731_v17 = vunpack.c.l.b16 %v6699_v60 }
 0x81c   : > { %vm6420_vm11 = vcmp.gt.bf16.partialorder %v6386_v38, 1056980736  ;;  %v6716_v42 = vsel %vm6684_vm0, 65537, %v10022_v62  ;;  %v6715_v20 = vsel %vm6683_vm4, 65537, %v10022_v62  ;;  %v6352_v26 = vpop.permute.xlu0 %6351  ;;  %v6390_v19 = vpop.permute.xlu1 %6389 }
 0x81d   : > { %vm6669_vm12 = vcmp.ne.s16.totalorder %v6463_v14, 0  ;;  %vm6670_vm8 = vcmp.ne.s16.totalorder %v6470_v18, 0  ;;  %vm6764_vm14 = vcmp.ne.s32.totalorder %v6732_v29, 0  ;;  %vm6763_vm5 = vcmp.ne.s32.totalorder %v6731_v17, 0 }
 0x81e   : > { %v6796_v11 = vsel %vm6764_vm14, 1, %v10022_v62  ;;  %v6795_v25 = vsel %vm6763_vm5, 1, %v10022_v62  ;;  %v6436_v57 = vsel %vm6420_vm11, 65537, %v10022_v62  ;;  %v6702_v6 = vsel %vm6670_vm8, 65537, %v10022_v62 }
 0x81f   : > { %6831 = vperm.xlu1 %9449, %v6796_v11   ;;  %6828 = vperm.xlu0 %9448, %v6795_v25   ;;  %v6575_v39 = vrot.slane %v6436_v57, %v14322_v8  ;;  %v6582_v21 = vrot.slane %v6436_v57, %v14324_v1  ;;  %v6734_v46 = vunpack.c.l.b16 %v6702_v6  ;;  %v6701_v7 = vsel %vm6669_vm12, 65537, %v10022_v62 }
 0x820   : > { %v6733_v52 = vunpack.c.l.b16 %v6701_v7  ;;  %vm6413_vm1 = vcmp.gt.bf16.partialorder %v6352_v26, 1056980736  ;;  %v6748_v27 = vunpack.c.l.b16 %v6716_v42  ;;  %v6747_v50 = vunpack.c.l.b16 %v6715_v20  ;;  %v6356_v45 = vpop.permute.xlu0 %6355  ;;  %v6394_v34 = vpop.permute.xlu1 %6393 }
 0x821   : > { %vm14346_vm13 = vcmp.ne.s16.totalorder %v6575_v39, 0  ;;  %vm14350_vm15 = vcmp.ne.s16.totalorder %v6582_v21, 0  ;;  %vm6766_vm9 = vcmp.ne.s32.totalorder %v6734_v46, 0  ;;  %v6429_v28 = vsel %vm6413_vm1, 65537, %v10022_v62 }
 0x822   : > { %v6798_v55 = vsel %vm6766_vm9, 1, %v10022_v62  ;;  %vm6765_vm10 = vcmp.ne.s32.totalorder %v6733_v52, 0  ;;  %v6477_v41 = vrot.slane %v6429_v28, %v14322_v8  ;;  %v6484_v10 = vrot.slane %v6429_v28, %v14324_v1 }
 0x823   : > { %6837 = vperm.xlu0 %9448, %v6798_v55   ;;  %v6797_v15 = vsel %vm6765_vm10, 1, %v10022_v62  ;;  %vm6780_vm7 = vcmp.ne.s32.totalorder %v6748_v27, 0  ;;  %vm6779_vm6 = vcmp.ne.s32.totalorder %v6747_v50, 0  ;;  %vm6421_vm3 = vcmp.gt.bf16.partialorder %v6390_v19, 1056980736 }
 0x824   : > { %6834 = vperm.xlu1 %9449, %v6797_v15   ;;  %vm14359_vm4 = vcmp.ne.s16.totalorder %v6477_v41, 0  ;;  %vm6672_vm0 = vcmp.ne.s16.totalorder %v6484_v10, 0  ;;  %v6812_v53 = vsel %vm6780_vm7, 1, %v10022_v62  ;;  %v6811_v16 = vsel %vm6779_vm6, 1, %v10022_v62  ;;  %v6360_v6 = vpop.permute.xlu0 %6359  ;;  %v6398_v4 = vpop.permute.xlu1 %6397 }
 0x825   : > { %v6437_v51 = vsel %vm6421_vm3, 65537, %v10022_v62  ;;  %v6718_v56 = vsel %vm14350_vm15, 65537, %v10022_v62  ;;  %v6717_v31 = vsel %vm14346_vm13, 65537, %v10022_v62  ;;  %vm6414_vm11 = vcmp.gt.bf16.partialorder %v6356_v45, 1056980736 }
 0x826   : > { %v6589_v43 = vrot.slane %v6437_v51, %v14322_v8  ;;  %v6596_v37 = vrot.slane %v6437_v51, %v14324_v1  ;;  %v6750_v0 = vunpack.c.l.b16 %v6718_v56  ;;  %v6749_v63 = vunpack.c.l.b16 %v6717_v31 }
 0x827   : > { %6879 = vperm.xlu0 %9448, %v6812_v53   ;;  %v6430_v30 = vsel %vm6414_vm11, 65537, %v10022_v62  ;;  %v6704_v12 = vsel %vm6672_vm0, 65537, %v10022_v62  ;;  %v6703_v38 = vsel %vm14359_vm4, 65537, %v10022_v62  ;;  %vm6422_vm12 = vcmp.gt.bf16.partialorder %v6394_v34, 1056980736 }
 0x828   : > { %6876 = vperm.xlu1 %9449, %v6811_v16   ;;  %vm14379_vm8 = vcmp.ne.s16.totalorder %v6589_v43, 0  ;;  %vm6688_vm14 = vcmp.ne.s16.totalorder %v6596_v37, 0  ;;  %vm6782_vm5 = vcmp.ne.s32.totalorder %v6750_v0, 0  ;;  %vm6781_vm1 = vcmp.ne.s32.totalorder %v6749_v63, 0  ;;  %v6364_v16 = vpop.permute.xlu0 %6363 }
 0x829   : > { %v6814_v13 = vsel %vm6782_vm5, 1, %v10022_v62  ;;  %v6813_v60 = vsel %vm6781_vm1, 1, %v10022_v62  ;;  %v6491_v14 = vrot.slane %v6430_v30, %v14322_v8  ;;  %v6498_v18 = vrot.slane %v6430_v30, %v14324_v1 }
 0x82a   : > { %v6736_v29 = vunpack.c.l.b16 %v6704_v12  ;;  %v6735_v17 = vunpack.c.l.b16 %v6703_v38  ;;  %v6438_v42 = vsel %vm6422_vm12, 65537, %v10022_v62  ;;  %v6720_v20 = vsel %vm6688_vm14, 65537, %v10022_v62 }
 0x82b   : > { %6885 = vperm.xlu0 %9448, %v6814_v13   ;;  %vm14389_vm13 = vcmp.ne.s16.totalorder %v6491_v14, 0  ;;  %vm14393_vm15 = vcmp.ne.s16.totalorder %v6498_v18, 0  ;;  %v6603_v25 = vrot.slane %v6438_v42, %v14322_v8  ;;  %v6610_v57 = vrot.slane %v6438_v42, %v14324_v1  ;;  %v6402_v13 = vpop.permute.xlu1 %6401 }
 0x82c   : > { %6882 = vperm.xlu1 %9449, %v6813_v60   ;;  %vm6768_vm9 = vcmp.ne.s32.totalorder %v6736_v29, 0  ;;  %vm6767_vm10 = vcmp.ne.s32.totalorder %v6735_v17, 0  ;;  %v6752_v39 = vunpack.c.l.b16 %v6720_v20  ;;  %v6719_v21 = vsel %vm14379_vm8, 65537, %v10022_v62  ;;  %v6368_v26 = vpop.permute.xlu0 %6367 }
 0x82d   : > { %v6800_v46 = vsel %vm6768_vm9, 1, %v10022_v62  ;;  %v6799_v7 = vsel %vm6767_vm10, 1, %v10022_v62  ;;  %vm14404_vm7 = vcmp.ne.s16.totalorder %v6603_v25, 0  ;;  %vm14408_vm6 = vcmp.ne.s16.totalorder %v6610_v57, 0 }
 0x82e   : > { %vm6784_vm3 = vcmp.ne.s32.totalorder %v6752_v39, 0  ;;  %v6751_v50 = vunpack.c.l.b16 %v6719_v21  ;;  %vm6415_vm4 = vcmp.gt.bf16.partialorder %v6360_v6, 1056980736  ;;  %v6706_v19 = vsel %vm14393_vm15, 65537, %v10022_v62 }
 0x82f   : > { %6843 = vperm.xlu0 %9448, %v6800_v46   ;;  %v6816_v24 = vsel %vm6784_vm3, 1, %v10022_v62  ;;  %v6431_v28 = vsel %vm6415_vm4, 65537, %v10022_v62  ;;  %v6738_v55 = vunpack.c.l.b16 %v6706_v19  ;;  %v6705_v41 = vsel %vm14389_vm13, 65537, %v10022_v62 }
 0x830   : > { %6840 = vperm.xlu1 %9449, %v6799_v7   ;;  %vm6783_vm0 = vcmp.ne.s32.totalorder %v6751_v50, 0  ;;  %v6505_v10 = vrot.slane %v6431_v28, %v14322_v8  ;;  %v6512_v45 = vrot.slane %v6431_v28, %v14324_v1  ;;  %v6737_v15 = vunpack.c.l.b16 %v6705_v41 }
 0x831   : > { %v6815_v5 = vsel %vm6783_vm0, 1, %v10022_v62  ;;  %vm6770_vm11 = vcmp.ne.s32.totalorder %v6738_v55, 0  ;;  %vm6423_vm12 = vcmp.gt.bf16.partialorder %v6398_v4, 1056980736  ;;  %v6722_v53 = vsel %vm14408_vm6, 65537, %v10022_v62 }
 0x832   : > { %vm14426_vm8 = vcmp.ne.s16.totalorder %v6505_v10, 0  ;;  %vm6676_vm14 = vcmp.ne.s16.totalorder %v6512_v45, 0  ;;  %v6802_v51 = vsel %vm6770_vm11, 1, %v10022_v62  ;;  %vm6769_vm5 = vcmp.ne.s32.totalorder %v6737_v15, 0 }
 0x833   : > { %6891 = vperm.xlu0 %9448, %v6816_v24   ;;  %v6801_v56 = vsel %vm6769_vm5, 1, %v10022_v62  ;;  %v6439_v31 = vsel %vm6423_vm12, 65537, %v10022_v62  ;;  %v6754_v43 = vunpack.c.l.b16 %v6722_v53  ;;  %v6721_v37 = vsel %vm14404_vm7, 65537, %v10022_v62  ;;  %v6406_v24 = vpop.permute.xlu1 %6405 }
 0x834   : > { %6888 = vperm.xlu1 %9449, %v6815_v5   ;;  %v6617_v0 = vrot.slane %v6439_v31, %v14322_v8  ;;  %v6624_v63 = vrot.slane %v6439_v31, %v14324_v1  ;;  %v6753_v30 = vunpack.c.l.b16 %v6721_v37  ;;  %vm6416_vm1 = vcmp.gt.bf16.partialorder %v6364_v16, 1056980736  ;;  %v6372_v16 = vpop.permute.xlu0 %6371  ;;  %v9451_v5 = vld [vmem:[#allocation12] sm:$0xff]  }
 0x835   : > { %vm6786_vm13 = vcmp.ne.s32.totalorder %v6754_v43, 0  ;;  %v6432_v12 = vsel %vm6416_vm1, 65537, %v10022_v62  ;;  %v6708_v38 = vsel %vm6676_vm14, 65537, %v10022_v62  ;;  %v6707_v2 = vsel %vm14426_vm8, 65537, %v10022_v62  ;;  %v9454_v43 = vld [vmem:[#allocation12 + $0x50] sm:$0xff]  }
 0x836   : > { %vm6691_vm15 = vcmp.ne.s16.totalorder %v6617_v0, 0  ;;  %vm6692_vm9 = vcmp.ne.s16.totalorder %v6624_v63, 0  ;;  %vm6785_vm10 = vcmp.ne.s32.totalorder %v6753_v30, 0  ;;  %v6818_v60 = vsel %vm6786_vm13, 1, %v10022_v62 }
 0x837   : > { %6849 = vperm.xlu0 %9448, %v6802_v51   ;;  %v6519_v14 = vrot.slane %v6432_v12, %v14322_v8  ;;  %v6526_v18 = vrot.slane %v6432_v12, %v14324_v1  ;;  %v6740_v29 = vunpack.c.l.b16 %v6708_v38  ;;  %v6739_v17 = vunpack.c.l.b16 %v6707_v2 }
 0x838   : > { %6846 = vperm.xlu1 %9449, %v6801_v56   ;;  %vm6424_vm7 = vcmp.gt.bf16.partialorder %v6402_v13, 1056980736  ;;  %v6724_v42 = vsel %vm6692_vm9, 65537, %v10022_v62  ;;  %v6723_v20 = vsel %vm6691_vm15, 65537, %v10022_v62  ;;  %v6817_v11 = vsel %vm6785_vm10, 1, %v10022_v62  ;;  %v6410_v13 = vpop.permute.xlu1 %6409 }
 0x839   : > { %vm14449_vm6 = vcmp.ne.s16.totalorder %v6526_v18, 0  ;;  %vm6772_vm3 = vcmp.ne.s32.totalorder %v6740_v29, 0  ;;  %v6440_v57 = vsel %vm6424_vm7, 65537, %v10022_v62  ;;  %vm14454_vm4 = vcmp.ne.s16.totalorder %v6519_v14, 0 }
 0x83a   : > { %vm6771_vm0 = vcmp.ne.s32.totalorder %v6739_v17, 0  ;;  %v6631_v39 = vrot.slane %v6440_v57, %v14322_v8  ;;  %v6638_v21 = vrot.slane %v6440_v57, %v14324_v1  ;;  %v6804_v46 = vsel %vm6772_vm3, 1, %v10022_v62 }
 0x83b   : > { %6897 = vperm.xlu0 %9448, %v6818_v60   ;;  %v6756_v7 = vunpack.c.l.b16 %v6724_v42  ;;  %v6755_v52 = vunpack.c.l.b16 %v6723_v20  ;;  %vm6417_vm11 = vcmp.gt.bf16.partialorder %v6368_v26, 1056980736  ;;  %v6803_v27 = vsel %vm6771_vm0, 1, %v10022_v62 }
 0x83c   : > { %6894 = vperm.xlu1 %9449, %v6817_v11   ;;  %vm14462_vm12 = vcmp.ne.s16.totalorder %v6631_v39, 0  ;;  %v6433_v19 = vsel %vm6417_vm11, 65537, %v10022_v62  ;;  %v6710_v4 = vsel %vm14449_vm6, 65537, %v10022_v62  ;;  %vm14470_vm8 = vcmp.ne.s16.totalorder %v6638_v21, 0 }
 0x83d   : > { %vm6788_vm14 = vcmp.ne.s32.totalorder %v6756_v7, 0  ;;  %v6533_v55 = vrot.slane %v6433_v19, %v14322_v8  ;;  %v6540_v41 = vrot.slane %v6433_v19, %v14324_v1  ;;  %vm6787_vm5 = vcmp.ne.s32.totalorder %v6755_v52, 0 }
 0x83e   : > { %v6742_v10 = vunpack.c.l.b16 %v6710_v4  ;;  %v6709_v45 = vsel %vm14454_vm4, 65537, %v10022_v62  ;;  %v6820_v15 = vsel %vm6788_vm14, 1, %v10022_v62  ;;  %vm6425_vm13 = vcmp.gt.bf16.partialorder %v6406_v24, 1056980736 }
 0x83f   : > { %6855 = vperm.xlu0 %9448, %v6804_v46   ;;  %vm14480_vm1 = vcmp.ne.s16.totalorder %v6540_v41, 0  ;;  %v6741_v53 = vunpack.c.l.b16 %v6709_v45  ;;  %v6441_v34 = vsel %vm6425_vm13, 65537, %v10022_v62  ;;  %v6726_v51 = vsel %vm14470_vm8, 65537, %v10022_v62  ;;  %v9450_v45 = vld [vmem:[#allocation12 + $0x40] sm:$0xff]  }
 0x840   : > { %6852 = vperm.xlu1 %9449, %v6803_v27   ;;  %vm6774_vm15 = vcmp.ne.s32.totalorder %v6742_v10, 0  ;;  %v6725_v56 = vsel %vm14462_vm12, 65537, %v10022_v62  ;;  %v6819_v31 = vsel %vm6787_vm5, 1, %v10022_v62  ;;  %vm14492_vm9 = vcmp.ne.s16.totalorder %v6533_v55, 0  ;;  %8668 = vmatprep.subr.bf16.mxu1 %v9450_v45 }
 0x841   : > { %v6645_v37 = vrot.slane %v6441_v34, %v14322_v8  ;;  %v6652_v0 = vrot.slane %v6441_v34, %v14324_v1  ;;  %vm6773_vm10 = vcmp.ne.s32.totalorder %v6741_v53, 0  ;;  %v6758_v63 = vunpack.c.l.b16 %v6726_v51  ;;  %8669 = vmatpush3.bf16.msra.mxu1 %v9451_v5  ;;  %v6278_v51 = vld [vmem:[%s15790_s27] sm:$0x3] }
 0x842   : > { %v6757_v30 = vunpack.c.l.b16 %v6725_v56  ;;  %vm6418_vm7 = vcmp.gt.bf16.partialorder %v6372_v16, 1056980736  ;;  %v6806_v12 = vsel %vm6774_vm15, 1, %v10022_v62  ;;  %v6712_v2 = vsel %vm14480_vm1, 65537, %v10022_v62  ;;  %v9452_v16 = vld [vmem:[#allocation12 + $0x48] sm:$0xff]  }
 0x843   : > { %6903 = vperm.xlu0 %9448, %v6820_v15   ;;  %v6434_v38 = vsel %vm6418_vm7, 65537, %v10022_v62  ;;  %vm6695_vm6 = vcmp.ne.s16.totalorder %v6645_v37, 0  ;;  %vm6696_vm3 = vcmp.ne.s16.totalorder %v6652_v0, 0  ;;  %v6805_v18 = vsel %vm6773_vm10, 1, %v10022_v62  ;;  %v9453_v56 = vld [vmem:[#allocation12 + $0x8] sm:$0xff]   ;;  %8670 = vmatprep.subr.bf16.mxu1 %v9452_v16  ;;  %v9455_v37 = vld [vmem:[#allocation12 + $0x10] sm:$0xff]  }
 0x844   : > { %6900 = vperm.xlu1 %9449, %v6819_v31   ;;  %v6547_v60 = vrot.slane %v6434_v38, %v14322_v8  ;;  %v6554_v14 = vrot.slane %v6434_v38, %v14324_v1  ;;  %vm6790_vm4 = vcmp.ne.s32.totalorder %v6758_v63, 0  ;;  %v6744_v29 = vunpack.c.l.b16 %v6712_v2  ;;  %v9456_v0 = vld [vmem:[#allocation12 + $0x58] sm:$0xff]   ;;  %v9461_v38 = vld [vmem:[#allocation12 + $0x28] sm:$0xff]   ;;  %v9462_v2 = vld [vmem:[#allocation12 + $0x70] sm:$0xff]  }
 0x845   : > { %v6711_v17 = vsel %vm14492_vm9, 65537, %v10022_v62  ;;  %vm6789_vm0 = vcmp.ne.s32.totalorder %v6757_v30, 0  ;;  %vm6426_vm11 = vcmp.gt.bf16.partialorder %v6410_v13, 1056980736  ;;  %v6728_v26 = vsel %vm6696_vm3, 65537, %v10022_v62  ;;  %8671 = vmatpush3.bf16.msra.mxu1 %v9453_v56  ;;  %v9457_v63 = vld [vmem:[#allocation12 + $0x18] sm:$0xff]  }
 0x846   : > { %v6743_v42 = vunpack.c.l.b16 %v6711_v17  ;;  %vm6682_vm12 = vcmp.ne.s16.totalorder %v6554_v14, 0  ;;  %v6442_v20 = vsel %vm6426_vm11, 65537, %v10022_v62  ;;  %v6727_v11 = vsel %vm6695_vm6, 65537, %v10022_v62  ;;  %8672 = vmatprep.subr.bf16.mxu1 %v9454_v43  ;;  %v9459_v30 = vld [vmem:[#allocation12 + $0x20] sm:$0xff]   ;;  %v9463_v13 = vld [vmem:[#allocation12 + $0x30] sm:$0xff]   ;;  %v9465_v14 = vld [vmem:[#allocation12 + $0x38] sm:$0xff]  }
 0x847   : > { %6861 = vperm.xlu0 %9448, %v6806_v12   ;;  %v6822_v25 = vsel %vm6790_vm4, 1, %v10022_v62  ;;  %vm6681_vm8 = vcmp.ne.s16.totalorder %v6547_v60, 0  ;;  %v6659_v57 = vrot.slane %v6442_v20, %v14322_v8  ;;  %v6666_v6 = vrot.slane %v6442_v20, %v14324_v1  ;;  %v9460_v12 = vld [vmem:[#allocation12 + $0x68] sm:$0xff]   ;;  %v9464_v60 = vld [vmem:[#allocation12 + $0x78] sm:$0xff]  }
 0x848   : > { %6858 = vperm.xlu1 %9449, %v6805_v18   ;;  %v6821_v39 = vsel %vm6789_vm0, 1, %v10022_v62  ;;  %vm6776_vm14 = vcmp.ne.s32.totalorder %v6744_v29, 0  ;;  %v6760_v21 = vunpack.c.l.b16 %v6728_v26  ;;  %vm6775_vm5 = vcmp.ne.s32.totalorder %v6743_v42, 0  ;;  %v9466_v18 = vld [vmem:[%s15791_s12] sm:$0xff]   ;;  %v9467_v29 = vld [vmem:[%s15791_s12 + $0x8] sm:$0xff]   ;;  %v9468_v17 = vld [vmem:[%s15791_s12 + $0x10] sm:$0xff]  }
 0x849   : > { %v6759_v46 = vunpack.c.l.b16 %v6727_v11  ;;  %v6714_v7 = vsel %vm6682_vm12, 65537, %v10022_v62  ;;  %vm6698_vm1 = vcmp.ne.s16.totalorder %v6666_v6, 0  ;;  %v6713_v52 = vsel %vm6681_vm8, 65537, %v10022_v62  ;;  %8673 = vmatpush3.bf16.msra.mxu1 %v9455_v37  ;;  %8903 = vmatpush3.bf16.msra.mxu0 %v9466_v18  ;;  %v9469_v42 = vld [vmem:[%s15791_s12 + $0x18] sm:$0xff]   ;;  %v9470_v20 = vld [vmem:[%s15791_s12 + $0x20] sm:$0xff]  }
 0x84a   : > { %v6808_v27 = vsel %vm6776_vm14, 1, %v10022_v62  ;;  %vm6697_vm13 = vcmp.ne.s16.totalorder %v6659_v57, 0  ;;  %v6807_v8 = vsel %vm6775_vm5, 1, %v10022_v62  ;;  %vm6792_vm15 = vcmp.ne.s32.totalorder %v6760_v21, 0  ;;  %8674 = vmatprep.subr.bf16.mxu1 %v9456_v0  ;;  %8904 = vmatprep.subr.bf16.mxu0 %v10021_v32 }
 0x84b   : > { %6909 = vperm.xlu0 %9448, %v6822_v25   ;;  %v6746_v1 = vunpack.c.l.b16 %v6714_v7  ;;  %vm6791_vm9 = vcmp.ne.s32.totalorder %v6759_v46, 0  ;;  %v6745_v50 = vunpack.c.l.b16 %v6713_v52  ;;  %v6730_v19 = vsel %vm6698_vm1, 65537, %v10022_v62 }
 0x84c   : > { %6906 = vperm.xlu1 %9449, %v6821_v39   ;;  %v6729_v4 = vsel %vm6697_vm13, 65537, %v10022_v62  ;;  %v6824_v24 = vsel %vm6792_vm15, 1, %v10022_v62  ;;  %v6823_v28 = vsel %vm6791_vm9, 1, %v10022_v62  ;;  %v6762_v55 = vunpack.c.l.b16 %v6730_v19 }
 0x84d   : > { %vm6778_vm10 = vcmp.ne.s32.totalorder %v6746_v1, 0  ;;  %vm6777_vm7 = vcmp.ne.s32.totalorder %v6745_v50, 0  ;;  %v6761_v41 = vunpack.c.l.b16 %v6729_v4  ;;  %v6279_v31 = vmax.f32 %v6278_v51, 1.0  ;;  %8675 = vmatpush3.bf16.msra.mxu1 %v9457_v63  ;;  %8905 = vmatpush3.bf16.msra.mxu0 %v9467_v29 }
 0x84e   : > { %v6810_v10 = vsel %vm6778_vm10, 1, %v10022_v62  ;;  %v6809_v15 = vsel %vm6777_vm7, 1, %v10022_v62  ;;  %vm6794_vm6 = vcmp.ne.s32.totalorder %v6762_v55, 0  ;;  %8906 = vmatprep.subr.bf16.mxu0 %v10021_v32 }
 0x84f   : > { %6867 = vperm.xlu0 %9448, %v6808_v27   ;;  %vm6793_vm3 = vcmp.ne.s32.totalorder %v6761_v41, 0  ;;  %v6826_v53 = vsel %vm6794_vm6, 1, %v10022_v62 }
 0x850   : > { %6864 = vperm.xlu1 %9449, %v6807_v8   ;;  %v6825_v34 = vsel %vm6793_vm3, 1, %v10022_v62  ;;  %v9458_v62 = vld [vmem:[#allocation12 + $0x60] sm:$0xff]  }
 0x851   : > { %8676 = vmatprep.subr.bf16.mxu1 %v9458_v62  ;;  %8907 = vmatpush3.bf16.msra.mxu0 %v9468_v17 }
 0x852   : > { %8677 = vmatpush3.bf16.msra.mxu1 %v9459_v30  ;;  %8908 = vmatprep.subr.bf16.mxu0 %v10021_v32 }
 0x853   : > { %6915 = vperm.xlu0 %9448, %v6824_v24   ;;  %8678 = vmatprep.subr.bf16.mxu1 %v9460_v12 }
 0x854   : > { %6912 = vperm.xlu1 %9449, %v6823_v28  }
 0x855   : > { %8909 = vmatpush3.bf16.msra.mxu0 %v9469_v42 }
 0x856   : > { %8679 = vmatpush3.bf16.msra.mxu1 %v9461_v38  ;;  %8910 = vmatprep.subr.bf16.mxu0 %v10021_v32 }
 0x857   : > { %6873 = vperm.xlu0 %9448, %v6810_v10   ;;  %8680 = vmatprep.subr.bf16.mxu1 %v9462_v2 }
 0x858   : > { %6870 = vperm.xlu1 %9449, %v6809_v15  }
 0x859   : > { %8911 = vmatpush3.bf16.msra.mxu0 %v9470_v20 }
 0x85a   : > { %8681 = vmatpush3.bf16.msra.mxu1 %v9463_v13  ;;  %8912 = vmatprep.subr.bf16.mxu0 %v10021_v32 }
 0x85b   : > { %6921 = vperm.xlu0 %9448, %v6826_v53   ;;  %8682 = vmatprep.subr.bf16.mxu1 %v9464_v60 }
 0x85c   : > { %6918 = vperm.xlu1 %9449, %v6825_v34  }
 0x85e   : > { %8683 = vmatpush3.bf16.msra.mxu1 %v9465_v14 }
 0x85f   : > { %8922 = vmatprep.subr.bf16.mxu1 %v10021_v32 }
 0x860   : > { %6330 = vperm.xlu1 %9449, %v6279_v31  }
 0x88f   : > { %v14552_v26 = vpop.f32.mrb[0].mxu0 }
 0x890   : > { %v8900_v11 = vpop.f32.mrb[1].mxu0 }
 0x891   : > { %v6325_v25 = vpop.f32.mrb[2].mxu0 }
 0x892   : > { %v8901_v57 = vpop.f32.mrb[3].mxu0 }
 0x89e   : > { %v6832_v6 = vpop.permute.xlu1 %6831  ;;  %v6829_v39 = vpop.permute.xlu0 %6828 }
 0x89f   : > { %vm6924_vm4 = vcmp.eq.s32.totalorder %v6832_v6, 1  ;;  %vm6923_vm11 = vcmp.eq.s32.totalorder %v6829_v39, 1 }
 0x8a0   : > { %v6956_v16 = vsel %vm6924_vm4, %v14230_v58, -1e+30  ;;  %v6955_v56 = vsel %vm6923_vm11, %v14227_v9, -1e+30 }
 0x8a2   : > { %v6838_v21 = vpop.permute.xlu0 %6837 }
 0x8a3   : > { %v6835_v46 = vpop.permute.xlu1 %6834  ;;  %vm6926_vm0 = vcmp.eq.s32.totalorder %v6838_v21, 1 }
 0x8a4   : > { %vm6925_vm12 = vcmp.eq.s32.totalorder %v6835_v46, 1  ;;  %v6958_v34 = vsel %vm6926_vm0, %v14236_v54, -1e+30 }
 0x8a5   : > { %v6957_v31 = vsel %vm6925_vm12, %v14233_v47, -1e+30  ;;  %v6988_v0 = vmax.f32 %v6956_v16, %v6958_v34 }
 0x8a6   : > { %v6880_v7 = vpop.permute.xlu0 %6879  ;;  %v6987_v12 = vmax.f32 %v6955_v56, %v6957_v31 }
 0x8a7   : > { %v6877_v52 = vpop.permute.xlu1 %6876  ;;  %vm6940_vm8 = vcmp.eq.s32.totalorder %v6880_v7, 1 }
 0x8a8   : > { %vm6939_vm9 = vcmp.eq.s32.totalorder %v6877_v52, 1  ;;  %v6972_v43 = vsel %vm6940_vm8, %v14230_v58, -1e+30 }
 0x8a9   : > { %v6971_v60 = vsel %vm6939_vm9, %v14227_v9, -1e+30 }
 0x8aa   : > { %v6886_v27 = vpop.permute.xlu0 %6885 }
 0x8ab   : > { %v6883_v8 = vpop.permute.xlu1 %6882  ;;  %vm6942_vm14 = vcmp.eq.s32.totalorder %v6886_v27, 1 }
 0x8ac   : > { %vm6941_vm5 = vcmp.eq.s32.totalorder %v6883_v8, 1  ;;  %v6974_v37 = vsel %vm6942_vm14, %v14236_v54, -1e+30 }
 0x8ad   : > { %v6973_v63 = vsel %vm6941_vm5, %v14233_v47, -1e+30  ;;  %v7009_v58 = vmax.f32 %v6972_v43, %v6974_v37 }
 0x8ae   : > { %v6844_v1 = vpop.permute.xlu0 %6843  ;;  %v7008_v14 = vmax.f32 %v6971_v60, %v6973_v63 }
 0x8af   : > { %v6841_v50 = vpop.permute.xlu1 %6840  ;;  %vm6928_vm1 = vcmp.eq.s32.totalorder %v6844_v1, 1 }
 0x8b0   : > { %vm6927_vm13 = vcmp.eq.s32.totalorder %v6841_v50, 1  ;;  %v6960_v62 = vsel %vm6928_vm1, %v14242_v35, -1e+30 }
 0x8b1   : > { %v6959_v38 = vsel %vm6927_vm13, %v14239_v23, -1e+30  ;;  %v6990_v18 = vmax.f32 %v6988_v0, %v6960_v62 }
 0x8b2   : > { %v6892_v19 = vpop.permute.xlu0 %6891  ;;  %v6989_v29 = vmax.f32 %v6987_v12, %v6959_v38 }
 0x8b3   : > { %v6889_v4 = vpop.permute.xlu1 %6888  ;;  %vm6944_vm15 = vcmp.eq.s32.totalorder %v6892_v19, 1 }
 0x8b4   : > { %vm6943_vm10 = vcmp.eq.s32.totalorder %v6889_v4, 1  ;;  %v6976_v2 = vsel %vm6944_vm15, %v14242_v35, -1e+30 }
 0x8b5   : > { %v6975_v54 = vsel %vm6943_vm10, %v14239_v23, -1e+30  ;;  %v7011_v17 = vmax.f32 %v7009_v58, %v6976_v2 }
 0x8b6   : > { %v6850_v24 = vpop.permute.xlu0 %6849  ;;  %v7010_v35 = vmax.f32 %v7008_v14, %v6975_v54 }
 0x8b7   : > { %v6847_v28 = vpop.permute.xlu1 %6846  ;;  %vm6930_vm7 = vcmp.eq.s32.totalorder %v6850_v24, 1 }
 0x8b8   : > { %vm6929_vm6 = vcmp.eq.s32.totalorder %v6847_v28, 1  ;;  %v6962_v47 = vsel %vm6930_vm7, %v14248_v48, -1e+30 }
 0x8b9   : > { %v6961_v42 = vsel %vm6929_vm6, %v14245_v49, -1e+30  ;;  %v6992_v25 = vmax.f32 %v6990_v18, %v6962_v47 }
 0x8ba   : > { %v6898_v55 = vpop.permute.xlu0 %6897  ;;  %v6991_v57 = vmax.f32 %v6989_v29, %v6961_v42 }
 0x8bb   : > { %v6895_v41 = vpop.permute.xlu1 %6894  ;;  %vm6946_vm3 = vcmp.eq.s32.totalorder %v6898_v55, 1 }
 0x8bc   : > { %vm6945_vm11 = vcmp.eq.s32.totalorder %v6895_v41, 1  ;;  %v6978_v11 = vsel %vm6946_vm3, %v14248_v48, -1e+30 }
 0x8bd   : > { %v6977_v39 = vsel %vm6945_vm11, %v14245_v49, -1e+30  ;;  %v7013_v21 = vmax.f32 %v7011_v17, %v6978_v11  ;;  %vm7036_vm11 = vcmask 1041409  }
 0x8be   : > { %v6856_v10 = vpop.permute.xlu0 %6855  ;;  %v7012_v4 = vmax.f32 %v7010_v35, %v6977_v39 }
 0x8bf   : > { %v6853_v45 = vpop.permute.xlu1 %6852  ;;  %vm6932_vm4 = vcmp.eq.s32.totalorder %v6856_v10, 1 }
 0x8c0   : > { %vm6931_vm0 = vcmp.eq.s32.totalorder %v6853_v45, 1  ;;  %v6964_v23 = vsel %vm6932_vm4, %v14254_v59, -1e+30 }
 0x8c1   : > { %v6963_v6 = vsel %vm6931_vm0, %v14251_v61, -1e+30  ;;  %v6994_v7 = vmax.f32 %v6992_v25, %v6964_v23 }
 0x8c2   : > { %v14554_v15 = vpop.permute.xlu0 %6903  ;;  %v6993_v1 = vmax.f32 %v6991_v57, %v6963_v6 }
 0x8c3   : > { %v14556_v5 = vpop.permute.xlu1 %6900  ;;  %vm6948_vm8 = vcmp.eq.s32.totalorder %v14554_v15, 1 }
 0x8c4   : > { %vm6947_vm5 = vcmp.eq.s32.totalorder %v14556_v5, 1  ;;  %v6980_v52 = vsel %vm6948_vm8, %v14254_v59, -1e+30  ;;  %vm7373_vm8 = vcmask 523264  }
 0x8c5   : > { %v6979_v50 = vsel %vm6947_vm5, %v14251_v61, -1e+30  ;;  %v7015_v28 = vmax.f32 %v7013_v21, %v6980_v52  ;;  %v9471_v21 = vld [vmem:[%s15791_s12 + $0x28] sm:$0xff]  }
 0x8c6   : > { %v6862_v53 = vpop.permute.xlu0 %6861  ;;  %v7014_v10 = vmax.f32 %v7012_v4, %v6979_v50  ;;  %8913 = vmatpush3.bf16.msra.mxu0 %v9471_v21 }
 0x8c7   : > { %v6859_v51 = vpop.permute.xlu1 %6858  ;;  %vm6934_vm12 = vcmp.eq.s32.totalorder %v6862_v53, 1  ;;  %8914 = vmatprep.subr.bf16.mxu0 %v10021_v32 }
 0x8c8   : > { %vm6933_vm14 = vcmp.eq.s32.totalorder %v6859_v51, 1  ;;  %v6966_v46 = vsel %vm6934_vm12, %v14262_v36, -1e+30 }
 0x8c9   : > { %v6965_v27 = vsel %vm6933_vm14, %v14259_v40, -1e+30  ;;  %v6996_v49 = vmax.f32 %v6994_v7, %v6966_v46  ;;  %v9473_v46 = vld [vmem:[%s15791_s12 + $0x38] sm:$0xff]   ;;  %v9475_v7 = vld [vmem:[%s15792_s10 + $0x8] sm:$0xff]   ;;  %vm7417_vm14 = vcmask 1024  }
 0x8ca   : > { %v6910_v30 = vpop.permute.xlu0 %6909  ;;  %v6995_v55 = vmax.f32 %v6993_v1, %v6965_v27  ;;  %v7960_v27 = vld [vmem:[#allocation14] ss:$0 sm:$0xff] }
 0x8cb   : > { %v6907_v13 = vpop.permute.xlu1 %6906  ;;  %vm6950_vm15 = vcmp.eq.s32.totalorder %v6910_v30, 1 }
 0x8cc   : > { %vm6949_vm9 = vcmp.eq.s32.totalorder %v6907_v13, 1  ;;  %v6982_v41 = vsel %vm6950_vm15, %v14262_v36, -1e+30 }
 0x8cd   : > { %v6981_v45 = vsel %vm6949_vm9, %v14259_v40, -1e+30  ;;  %v7017_v34 = vmax.f32 %v7015_v28, %v6982_v41  ;;  %v9477_v41 = vld [vmem:[%s15792_s10 + $0x18] sm:$0xff]  }
 0x8ce   : > { %v6868_v20 = vpop.permute.xlu0 %6867  ;;  %v7016_v31 = vmax.f32 %v7014_v10, %v6981_v45 }
 0x8cf   : > { %v6865_v9 = vpop.permute.xlu1 %6864  ;;  %vm6936_vm1 = vcmp.eq.s32.totalorder %v6868_v20, 1 }
 0x8d0   : > { %vm6935_vm13 = vcmp.eq.s32.totalorder %v6865_v9, 1  ;;  %v6968_v19 = vsel %vm6936_vm1, %v14268_v3, -1e+30 }
 0x8d1   : > { %v6967_v24 = vsel %vm6935_vm13, %v14265_v44, -1e+30  ;;  %v6998_v15 = vmax.f32 %v6996_v49, %v6968_v19 }
 0x8d2   : > { %v6916_v48 = vpop.permute.xlu0 %6915  ;;  %v6997_v61 = vmax.f32 %v6995_v55, %v6967_v24  ;;  %v9476_v55 = vld [vmem:[%s15792_s10 + $0x10] sm:$0xff]  }
 0x8d3   : > { %v6913_v8 = vpop.permute.xlu1 %6912  ;;  %vm6952_vm10 = vcmp.eq.s32.totalorder %v6916_v48, 1  ;;  %v9474_v48 = vld [vmem:[%s15792_s10] sm:$0xff]  }
 0x8d4   : > { %vm6951_vm7 = vcmp.eq.s32.totalorder %v6913_v8, 1  ;;  %v6984_v53 = vsel %vm6952_vm10, %v14268_v3, -1e+30 }
 0x8d5   : > { %v6983_v51 = vsel %vm6951_vm7, %v14265_v44, -1e+30  ;;  %v7019_v0 = vmax.f32 %v7017_v34, %v6984_v53 }
 0x8d6   : > { %v6874_v59 = vpop.permute.xlu0 %6873  ;;  %v7018_v63 = vmax.f32 %v7016_v31, %v6983_v51  ;;  %v7986_v51 = vld [vmem:[#allocation3] ss:$0 sm:$0xff] }
 0x8d7   : > { %v6871_v5 = vpop.permute.xlu1 %6870  ;;  %vm6938_vm6 = vcmp.eq.s32.totalorder %v6874_v59, 1  ;;  %v7977_v59 = vld [vmem:[#allocation15] ss:$0 sm:$0xff] }
 0x8d8   : > { %vm6937_vm3 = vcmp.eq.s32.totalorder %v6871_v5, 1  ;;  %v6970_v16 = vsel %vm6938_vm6, %v14278_v33, -1e+30 }
 0x8d9   : > { %v6969_v56 = vsel %vm6937_vm3, %v14275_v22, -1e+30  ;;  %v7000_v36 = vmax.f32 %v6998_v15, %v6970_v16 }
 0x8da   : > { %v6999_v43 = vmax.f32 %v6997_v61, %v6969_v56  ;;  %v6922_v37 = vpop.permute.xlu0 %6921 }
 0x8db   : > { %v6919_v40 = vpop.permute.xlu1 %6918  ;;  %vm6954_vm4 = vcmp.eq.s32.totalorder %v6922_v37, 1 }
 0x8dc   : > { %v7001_v62 = vmax.f32 %v6999_v43, %v7000_v36  ;;  %vm6953_vm0 = vcmp.eq.s32.totalorder %v6919_v40, 1  ;;  %v6986_v3 = vsel %vm6954_vm4, %v14278_v33, -1e+30 }
 0x8dd   : > { %v6985_v30 = vsel %vm6953_vm0, %v14275_v22, -1e+30  ;;  %v7021_v12 = vmax.f32 %v7019_v0, %v6986_v3 }
 0x8de   : > { %v7002_v38 = vrot.slane %v7001_v62, 4  ;;  %v7020_v2 = vmax.f32 %v7018_v63, %v6985_v30 }
 0x8df   : > { %v6331_v60 = vpop.permute.xlu1 %6330 }
 0x8e0   : > { %v7003_v44 = vmax.f32 %v7001_v62, %v7002_v38  ;;  %v7022_v13 = vmax.f32 %v7020_v2, %v7021_v12  ;;  %9478 = vrcp.f32 %v6331_v60 }
 0x8e2   : > { %v7004_v58 = vrot.slane %v7003_v44, 2  ;;  %v7023_v54 = vrot.slane %v7022_v13, 4 }
 0x8e4   : > { %v7024_v14 = vmax.f32 %v7022_v13, %v7023_v54  ;;  %v7005_v18 = vmax.f32 %v7003_v44, %v7004_v58 }
 0x8e6   : > { %v7025_v47 = vrot.slane %v7024_v14, 2  ;;  %v7006_v29 = vrot.slane %v7005_v18, 1 }
 0x8e8   : > { %v7026_v17 = vmax.f32 %v7024_v14, %v7025_v47  ;;  %v7007_v42 = vmax.f32 %v7005_v18, %v7006_v29 }
 0x8ea   : > { %v7027_v20 = vrot.slane %v7026_v17, 1  ;;  %v7030_v33 = vpack.c.bf16 %v7007_v42, %v7007_v42  ;;  %v9479_v11 = vpop.eup %9478 }
 0x8eb   : > { %v6334_v9 = vmul.f32 %v9479_v11, %v14552_v26  ;;  %v9472_v26 = vld [vmem:[%s15791_s12 + $0x30] sm:$0xff]  }
 0x8ec   : > { %v7028_v35 = vmax.f32 %v7026_v17, %v7027_v20  ;;  %v7034_v25 = vunpack.c.l.b16 %v7030_v33  ;;  %8915 = vmatpush3.bf16.msra.mxu0 %v9472_v26 }
 0x8ed   : > { %v7029_v39 = vpack.c.bf16 %v6334_v9, %v6334_v9  ;;  %8916 = vmatprep.subr.bf16.mxu0 %v10021_v32 }
 0x8ee   : > { %v7031_v22 = vpack.c.bf16 %v7028_v35, %v7028_v35 }
 0x8f0   : > { %v7035_v23 = vunpack.c.l.b16 %v7031_v22  ;;  %8917 = vmatpush3.bf16.msra.mxu0 %v9473_v46 }
 0x8f2   : > { %v7037_v57 = vsel %vm7036_vm11, %v7035_v23, %v7034_v25 }
 0x8f3   : > { %v7038_v6 = vpack.c.b16 %v7037_v57, %v7037_v57 }
 0x8f5   : > { %7207 = vmatprep.mubr.bf16.mxu1 %v7038_v6 }
 0x8f6   : > { %7208 = vmatmul.mubr.bf16.vlgmr.msra.gmra.mrb[0].mxu1 %v7029_v39 }
 0x8f7   : > { %8930 = vmatprep.mubr.msk.bf16.mxu1 %vm10023_vm2, %v10021_v32  ;;  %8923 = vmatpush3.bf16.msra.mxu1 %v9474_v48 }
 0x8f8   : > { %8924 = vmatprep.subr.bf16.mxu1 %v10021_v32 }
 0x8fb   : > { %8925 = vmatpush3.bf16.msra.mxu1 %v9475_v7 }
 0x8fc   : > { %8926 = vmatprep.subr.bf16.mxu1 %v10021_v32 }
 0x8ff   : > { %8927 = vmatpush3.bf16.msra.mxu1 %v9476_v55 }
 0x900   : > { %8928 = vmatprep.subr.bf16.mxu1 %v10021_v32 }
 0x903   : > { %8929 = vmatpush3.bf16.msra.mxu1 %v9477_v41 }
 0x9c9   : > { %v8684_v52 = vpop.f32.mrb[0].mxu1 }
 0x9ca   : > { %v8685_v8 = vpop.f32.mrb[1].mxu1 }
 0x9cb   : > { %v8686_v1 = vadd.f32 %v8685_v8, %v8684_v52  ;;  %v8687_v50 = vpop.f32.mrb[2].mxu1 }
 0x9cc   : > { %v8688_v19 = vpop.f32.mrb[3].mxu1 }
 0x9cd   : > { %v7210_v4 = vadd.f32 %v8686_v1, %v7960_v27 }
 0x9cf   : > { %vm7215_vm2 = vcmp.gt.f32.partialorder %v7210_v4, 0.0  ;;  %v7216_v49 = vmul.f32 0.01, %v7210_v4 }
 0x9d1   : > { %v7217_v24 = vsel %vm7215_vm2, %v7210_v4, %v7216_v49 }
 0x9d2   : > { %v7218_v28 = vpack.c.bf16 %v7217_v24, %v7217_v24 }
 0x9d4   : > { %8919 = vmatmul.mubr.bf16.vlgmr.msra.gmra.mrb[4].mxu0 %v7218_v28 }
 0xaa7   : > { %v7324_v10 = vpop.f32.mrb[4].mxu0 }
 0xaa8   : > { %v7325_v45 = vadd.f32 %v7977_v59, %v7324_v10  ;;  %v8920_v15 = vpop.f32.mrb[5].mxu0 }
 0xaa9   : > { %v7327_v5 = vpop.f32.mrb[6].mxu0 }
 0xaaa   : > { %vm7330_vm12 = vcmp.gt.f32.partialorder %v7325_v45, 0.0  ;;  %v7331_v61 = vmul.f32 0.01, %v7325_v45  ;;  %v8921_v53 = vpop.f32.mrb[7].mxu0 }
 0xaac   : > { %v7332_v16 = vsel %vm7330_vm12, %v7325_v45, %v7331_v61 }
 0xaad   : > { %v7333_v34 = vpack.c.bf16 %v7332_v16, %v7332_v16 }
 0xaaf   : > { %8931 = vmatmul.mubr.msk.bf16.vlgmr.msra.gmra.mrb[4].mxu1 %vm7373_vm8, %v7333_v34 }
 0xb82   : > { %v7411_v56 = vpop.f32.mrb[4].mxu1 }
 0xb83   : > { %v7412_v32 = vadd.f32 %v7986_v51, %v7411_v56  ;;  %v8932_v36 = vpop.f32.mrb[5].mxu1 }
 0xb84   : > { %v7414_v31 = vpop.f32.mrb[6].mxu1 }
 0xb85   : > { %7418 = vst.msk [vmem:[%s15793_s28] sm:$0x3] %vm7417_vm14, %v7412_v32  ;;  %v8933_v43 = vpop.f32.mrb[7].mxu1 }
 0xb86 PF: > { %s15794_s2 = sld [smem:[#allocation34_spill]]  ;;  %s15795_s27 = sld [smem:[#allocation31_spill]] }
 0xb87   : > { %s15796_s28 = sld [smem:[#allocation32_spill]]  ;;  %s15797_s6 = sld [smem:[#allocation35_spill]] }
 0xb8c   : > { %p38_p8 = scmp.ge.s32.totalorder %s15794_s2, 8  }
 0xb8e   :  { %40 = sbr.rel (!%p38_p8) target bundleno = 25 (0x19), region = 268 }
 0xb95   :  { %7430 = vsyncpa [#allocation5], 1 }
 0xb96   :  { %7432 = vsyncpa [#allocation5 + $0x1], 1 }
 0xb97   :  { %7433 = vsyncpa [#allocation7], 1 }
 0xb98   :  { %7434 = vsyncpa [#allocation10], 1 }
 0xb99   :  { %7435 = vsyncpa [#allocation13], 1 }
 0xb9a   :  { %7436 = vsyncpa [#allocation16], 1 }

</bundles_post_ra>
